<compile_context>
chip_gen: v6e
topology: v6e:2x2x1
jax: 0.10.0
libtpu: 0.0.40
codegen_flags: <defaults>
</compile_context>

<pallas_src>
import jax
import jax.numpy as jnp
from jax.experimental import pallas as pl
from jax.experimental.pallas import tpu as pltpu

LEAKY_SLOPE = 0.1
BN_EPS = 1e-5
LANE = 128          # TPU lane width; all channel dims are padded to a multiple of this
COL0 = 8            # 8-aligned sublane offset of the data window inside the halo scratch


def _round_up(x, m):
    return (x + m - 1) // m * m


def _neck_kernel(x_ref,
                 w1_ref, s1_ref, b1_ref,
                 w2_ref, s2_ref, b2_ref,
                 w3_ref, s3_ref, b3_ref,
                 w4_ref, s4_ref, b4_ref,
                 w5_ref, s5_ref, b5_ref,
                 o_ref, halo_ref):
    # x_ref: (H, W, Cp_in) bf16 (batch dim squeezed)
    # wK_ref: (Cp_in, Cp_out) bf16 for 1x1, (3, 3, Cp_in, Cp_out) bf16 for 3x3
    # sK/bK: (1, Cp_out) f32 folded BatchNorm scale/bias
    # o_ref: (H, W, Cp_out) f32
    # halo_ref: (H+2, >=COL0+W+1, Cp) f32 zero-halo scratch for the 3x3 convs
    H, W, _ = x_ref.shape
    HW = H * W

    def bn_leaky(acc_f32, s_ref, b_ref):
        y = acc_f32 * s_ref[...] + b_ref[...]          # folded BN (eval mode), f32
        return jnp.where(y > 0.0, y, LEAKY_SLOPE * y)  # LeakyReLU(0.1), f32

    def cbl_1x1(a_bf16, w_ref, s_ref, b_ref):
        acc = jnp.dot(a_bf16, w_ref[...], preferred_element_type=jnp.float32)
        return bn_leaky(acc, s_ref, b_ref)

    def cbl_3x3(a_f32, w_ref, s_ref, b_ref):
        cin = a_f32.shape[-1]
        cout = w_ref.shape[-1]
        # Zero the halo buffer, drop the activation into the (8-aligned) interior window;
        # the untouched border ring provides the conv's zero padding.
        halo_ref[...] = jnp.zeros_like(halo_ref)
        halo_ref[1:H + 1, COL0:COL0 + W, :] = a_f32.reshape(H, W, cin)
        acc = jnp.zeros((HW, cout), jnp.float32)
        for dy in range(3):
            for dx in range(3):
                patch = halo_ref[dy:dy + H, COL0 - 1 + dx:COL0 - 1 + dx + W, :]
                acc = acc + jnp.dot(
                    patch.reshape(HW, cin).astype(jnp.bfloat16),
                    w_ref[dy, dx],
                    preferred_element_type=jnp.float32)
        return bn_leaky(acc, s_ref, b_ref)

    x = x_ref[...].reshape(HW, x_ref.shape[-1])                    # (HW, Cp) bf16
    y1 = cbl_1x1(x, w1_ref, s1_ref, b1_ref)                        # conv1 1x1
    y2 = cbl_3x3(y1, w2_ref, s2_ref, b2_ref)                       # conv2 3x3
    y3 = cbl_1x1(y2.astype(jnp.bfloat16), w3_ref, s3_ref, b3_ref)  # conv3 1x1
    y4 = cbl_3x3(y3, w4_ref, s4_ref, b4_ref)                       # conv4 3x3
    y5 = cbl_1x1(y4.astype(jnp.bfloat16), w5_ref, s5_ref, b5_ref)  # conv5 1x1
    o_ref[...] = y5.reshape(H, W, y5.shape[-1]).astype(o_ref.dtype)


def yolo_neck_pallas(x_nchw, layers):
    """layers: list of (w_hwio, scale, bias, ksize); x_nchw: (N, Cin, H, W) f32."""
    N, cin, H, W = x_nchw.shape
    cp_in = _round_up(cin, LANE)

    # NCHW -> NHWC, channel-pad to 128 lanes, cast operands to bf16 at the call boundary.
    x = jnp.transpose(x_nchw, (0, 2, 3, 1))
    x = jnp.pad(x, ((0, 0), (0, 0), (0, 0), (0, cp_in - cin))).astype(jnp.bfloat16)

    kernel_args = [x]
    in_specs = [pl.BlockSpec((None, H, W, cp_in), lambda n: (n, 0, 0, 0))]

    halo_cin = LANE
    for (w_hwio, scale, bias, ksize) in layers:
        kh, kw, ci, co = w_hwio.shape
        cpi, cpo = _round_up(ci, LANE), _round_up(co, LANE)
        w_p = jnp.zeros((kh, kw, cpi, cpo), jnp.float32).at[:, :, :ci, :co].set(w_hwio)
        s_p = jnp.zeros((1, cpo), jnp.float32).at[0, :co].set(scale)
        b_p = jnp.zeros((1, cpo), jnp.float32).at[0, :co].set(bias)
        if ksize == 1:
            w_arg = w_p.reshape(cpi, cpo).astype(jnp.bfloat16)
            w_spec = pl.BlockSpec((cpi, cpo), lambda n: (0, 0))
        else:
            w_arg = w_p.astype(jnp.bfloat16)
            w_spec = pl.BlockSpec((kh, kw, cpi, cpo), lambda n: (0, 0, 0, 0))
            halo_cin = max(halo_cin, cpi)
        kernel_args += [w_arg, s_p, b_p]
        in_specs += [w_spec,
                     pl.BlockSpec((1, cpo), lambda n: (0, 0)),
                     pl.BlockSpec((1, cpo), lambda n: (0, 0))]

    co_out = layers[-1][0].shape[-1]
    cp_out = _round_up(co_out, LANE)
    halo_w = _round_up(COL0 + W + 1, 8)   # 8-aligned sublane width of the halo scratch

    out = pl.pallas_call(
        _neck_kernel,
        out_shape=jax.ShapeDtypeStruct((N, H, W, cp_out), jnp.float32),
        grid_spec=pltpu.PrefetchScalarGridSpec(
            num_scalar_prefetch=0,
            grid=(N,),
            in_specs=in_specs,
            out_specs=pl.BlockSpec((None, H, W, cp_out), lambda n: (n, 0, 0, 0)),
            scratch_shapes=[pltpu.VMEM((H + 2, halo_w, halo_cin), jnp.float32)],
        ),
        compiler_params=pltpu.CompilerParams(dimension_semantics=("parallel",)),
    )(*kernel_args)

    out = out[..., :co_out]                       # strip channel padding
    return jnp.transpose(out, (0, 3, 1, 2))       # NHWC -> NCHW


def init_cbl(key, cin, cout, ksize):
    k1, k2, k3, k4, k5 = jax.random.split(key, 5)
    w_hwio = jax.random.normal(k1, (ksize, ksize, cin, cout), jnp.float32) * 0.1
    gamma = 1.0 + 0.1 * jax.random.normal(k2, (cout,), jnp.float32)
    beta = 0.1 * jax.random.normal(k3, (cout,), jnp.float32)
    mean = 0.1 * jax.random.normal(k4, (cout,), jnp.float32)
    var = jnp.abs(jax.random.normal(k5, (cout,), jnp.float32)) + 0.5
    # TODO(synk): BatchNorm reproduced in eval mode (running stats folded); training-mode
    # batch statistics are not modeled.
    scale = gamma / jnp.sqrt(var + BN_EPS)
    bias = beta - mean * scale
    return (w_hwio, scale, bias, ksize)


def yolo_neck_ref(x_nchw, layers):
    # Reference: XLA conv in NHWC with the same bf16 operand rounding the kernel uses
    # (products exact in f32, f32 accumulation), f32 BN/LeakyReLU epilogue.
    x = jnp.transpose(x_nchw, (0, 2, 3, 1))
    for (w_hwio, scale, bias, ksize) in layers:
        xb = x.astype(jnp.bfloat16).astype(jnp.float32)
        wb = w_hwio.astype(jnp.bfloat16).astype(jnp.float32)
        pad = ((1, 1), (1, 1)) if ksize == 3 else ((0, 0), (0, 0))
        y = jax.lax.conv_general_dilated(
            xb, wb, window_strides=(1, 1), padding=pad,
            dimension_numbers=("NHWC", "HWIO", "NHWC"))
        y = y * scale.reshape(1, 1, 1, -1) + bias.reshape(1, 1, 1, -1)
        x = jnp.where(y > 0, y, LEAKY_SLOPE * y)
    return jnp.transpose(x, (0, 3, 1, 2))


if __name__ == "__main__":
    key = jax.random.PRNGKey(0)
    N, C_in, C_out, H, W = 2, 4, 8, 16, 16

    kx, *kls = jax.random.split(key, 6)
    x = jax.random.normal(kx, (N, C_in, H, W), jnp.float32)   # NCHW like PyTorch

    # (cin, cout, ksize) for conv1..conv5 of YoloNeck((C_in, C_out))
    cfg = [(C_in, C_out, 1), (C_out, 2 * C_out, 3), (2 * C_out, C_out, 1),
           (C_out, 2 * C_out, 3), (2 * C_out, C_out, 1)]
    layers = [init_cbl(k, ci, co, ks) for k, (ci, co, ks) in zip(kls, cfg)]

    out = jax.block_until_ready(yolo_neck_pallas(x, layers))
    ref = jax.block_until_ready(yolo_neck_ref(x, layers))

    assert out.shape == (N, C_out, H, W), out.shape
    max_err = float(jnp.max(jnp.abs(out - ref)))
    assert jnp.allclose(out, ref, atol=5e-3, rtol=5e-3), max_err
    print("KERNEL_OK")
</pallas_src>

<mosaic_0001>
module attributes {stable_mosaic.version = 11 : i64} {
  func.func @_neck_kernel(%arg0: i32, %arg1: memref<1x16x16x128xbf16, #tpu.memory_space<vmem>>, %arg2: memref<128x128xbf16, #tpu.memory_space<vmem>>, %arg3: memref<1x128xf32, #tpu.memory_space<vmem>>, %arg4: memref<1x128xf32, #tpu.memory_space<vmem>>, %arg5: memref<3x3x128x128xbf16, #tpu.memory_space<vmem>>, %arg6: memref<1x128xf32, #tpu.memory_space<vmem>>, %arg7: memref<1x128xf32, #tpu.memory_space<vmem>>, %arg8: memref<128x128xbf16, #tpu.memory_space<vmem>>, %arg9: memref<1x128xf32, #tpu.memory_space<vmem>>, %arg10: memref<1x128xf32, #tpu.memory_space<vmem>>, %arg11: memref<3x3x128x128xbf16, #tpu.memory_space<vmem>>, %arg12: memref<1x128xf32, #tpu.memory_space<vmem>>, %arg13: memref<1x128xf32, #tpu.memory_space<vmem>>, %arg14: memref<128x128xbf16, #tpu.memory_space<vmem>>, %arg15: memref<1x128xf32, #tpu.memory_space<vmem>>, %arg16: memref<1x128xf32, #tpu.memory_space<vmem>>, %arg17: memref<1x16x16x128xf32, #tpu.memory_space<vmem>>, %arg18: memref<18x32x128xf32, #tpu.memory_space<vmem>>) attributes {dimension_semantics = [#tpu.dimension_semantics<parallel>], iteration_bounds = array<i64: 2>, scalar_prefetch = 0 : i64, scratch_operands = 1 : i64, tpu.core_type = #tpu.core_type<tc>, window_params = [{transform_indices = @transform_0, window_bounds = array<i64: 1, 16, 16, 128>}, {pipeline_mode = #tpu.pipeline_mode<synchronous>, transform_indices = @transform_1, window_bounds = array<i64: 128, 128>}, {pipeline_mode = #tpu.pipeline_mode<synchronous>, transform_indices = @transform_2, window_bounds = array<i64: 1, 128>}, {pipeline_mode = #tpu.pipeline_mode<synchronous>, transform_indices = @transform_3, window_bounds = array<i64: 1, 128>}, {pipeline_mode = #tpu.pipeline_mode<synchronous>, transform_indices = @transform_4, window_bounds = array<i64: 3, 3, 128, 128>}, {pipeline_mode = #tpu.pipeline_mode<synchronous>, transform_indices = @transform_5, window_bounds = array<i64: 1, 128>}, {pipeline_mode = #tpu.pipeline_mode<synchronous>, transform_indices = @transform_6, window_bounds = array<i64: 1, 128>}, {pipeline_mode = #tpu.pipeline_mode<synchronous>, transform_indices = @transform_7, window_bounds = array<i64: 128, 128>}, {pipeline_mode = #tpu.pipeline_mode<synchronous>, transform_indices = @transform_8, window_bounds = array<i64: 1, 128>}, {pipeline_mode = #tpu.pipeline_mode<synchronous>, transform_indices = @transform_9, window_bounds = array<i64: 1, 128>}, {pipeline_mode = #tpu.pipeline_mode<synchronous>, transform_indices = @transform_10, window_bounds = array<i64: 3, 3, 128, 128>}, {pipeline_mode = #tpu.pipeline_mode<synchronous>, transform_indices = @transform_11, window_bounds = array<i64: 1, 128>}, {pipeline_mode = #tpu.pipeline_mode<synchronous>, transform_indices = @transform_12, window_bounds = array<i64: 1, 128>}, {pipeline_mode = #tpu.pipeline_mode<synchronous>, transform_indices = @transform_13, window_bounds = array<i64: 128, 128>}, {pipeline_mode = #tpu.pipeline_mode<synchronous>, transform_indices = @transform_14, window_bounds = array<i64: 1, 128>}, {pipeline_mode = #tpu.pipeline_mode<synchronous>, transform_indices = @transform_15, window_bounds = array<i64: 1, 128>}, {transform_indices = @transform_16, window_bounds = array<i64: 1, 16, 16, 128>}]} {
    %c0 = arith.constant 0 : index
    %c0_0 = arith.constant 0 : index
    %c0_1 = arith.constant 0 : index
    %c0_2 = arith.constant 0 : index
    %0 = vector.load %arg1[%c0, %c0_0, %c0_1, %c0_2] : memref<1x16x16x128xbf16, #tpu.memory_space<vmem>>, vector<1x16x16x128xbf16>
    %1 = vector.shape_cast %0 : vector<1x16x16x128xbf16> to vector<16x16x128xbf16>
    %2 = vector.shape_cast %1 : vector<16x16x128xbf16> to vector<256x128xbf16>
    %c0_3 = arith.constant 0 : index
    %c0_4 = arith.constant 0 : index
    %3 = vector.load %arg2[%c0_3, %c0_4] : memref<128x128xbf16, #tpu.memory_space<vmem>>, vector<128x128xbf16>
    %cst = arith.constant dense<0.000000e+00> : vector<256x128xf32>
    %4 = tpu.matmul %2, %3, %cst {dimension_numbers = #tpu.dot_dimension_numbers<[1], [0], [0], [1], [0, 0, 1, 1], [], []>} : vector<256x128xbf16>, vector<128x128xbf16>, vector<256x128xf32> -> vector<256x128xf32>
    %c0_5 = arith.constant 0 : index
    %c0_6 = arith.constant 0 : index
    %5 = vector.load %arg3[%c0_5, %c0_6] : memref<1x128xf32, #tpu.memory_space<vmem>>, vector<1x128xf32>
    %6 = vector.broadcast %5 : vector<1x128xf32> to vector<256x128xf32>
    %7 = arith.mulf %4, %6 : vector<256x128xf32>
    %c0_7 = arith.constant 0 : index
    %c0_8 = arith.constant 0 : index
    %8 = vector.load %arg4[%c0_7, %c0_8] : memref<1x128xf32, #tpu.memory_space<vmem>>, vector<1x128xf32>
    %9 = vector.broadcast %8 : vector<1x128xf32> to vector<256x128xf32>
    %10 = arith.addf %7, %9 : vector<256x128xf32>
    %cst_9 = arith.constant 0.000000e+00 : f32
    %11 = vector.broadcast %cst_9 : f32 to vector<256x128xf32>
    %12 = arith.cmpf ogt, %10, %11 : vector<256x128xf32>
    %cst_10 = arith.constant 1.000000e-01 : f32
    %13 = vector.broadcast %cst_10 : f32 to vector<256x128xf32>
    %14 = arith.mulf %13, %10 : vector<256x128xf32>
    %15 = arith.select %12, %10, %14 : vector<256x128xi1>, vector<256x128xf32>
    %cst_11 = arith.constant 0.000000e+00 : f32
    %16 = vector.broadcast %cst_11 : f32 to vector<18x32x128xf32>
    %c0_12 = arith.constant 0 : index
    %c0_13 = arith.constant 0 : index
    %c0_14 = arith.constant 0 : index
    %17 = vector.load %arg18[%c0_12, %c0_13, %c0_14] : memref<18x32x128xf32, #tpu.memory_space<vmem>>, vector<18x32x128xf32>
    tpu.vector_store %arg18[%c0_12, %c0_13, %c0_14], %16 {strides = array<i32>} : memref<18x32x128xf32, #tpu.memory_space<vmem>>, vector<18x32x128xf32>,
    %18 = vector.shape_cast %15 : vector<256x128xf32> to vector<16x16x128xf32>
    %c1 = arith.constant 1 : index
    %c8 = arith.constant 8 : index
    %c0_15 = arith.constant 0 : index
    %19 = vector.load %arg18[%c1, %c8, %c0_15] : memref<18x32x128xf32, #tpu.memory_space<vmem>>, vector<16x16x128xf32>
    tpu.vector_store %arg18[%c1, %c8, %c0_15], %18 {strides = array<i32>} : memref<18x32x128xf32, #tpu.memory_space<vmem>>, vector<16x16x128xf32>,
    %cst_16 = arith.constant 0.000000e+00 : f32
    %20 = vector.broadcast %cst_16 : f32 to vector<256x128xf32>
    %c0_17 = arith.constant 0 : index
    %c7 = arith.constant 7 : index
    %c0_18 = arith.constant 0 : index
    %21 = vector.load %arg18[%c0_17, %c7, %c0_18] : memref<18x32x128xf32, #tpu.memory_space<vmem>>, vector<16x16x128xf32>
    %22 = vector.shape_cast %21 : vector<16x16x128xf32> to vector<256x128xf32>
    %23 = arith.truncf %22 : vector<256x128xf32> to vector<256x128xbf16>
    %c0_19 = arith.constant 0 : index
    %c0_20 = arith.constant 0 : index
    %c0_21 = arith.constant 0 : index
    %c0_22 = arith.constant 0 : index
    %24 = vector.load %arg5[%c0_19, %c0_20, %c0_21, %c0_22] : memref<3x3x128x128xbf16, #tpu.memory_space<vmem>>, vector<1x1x128x128xbf16>
    %25 = vector.shape_cast %24 : vector<1x1x128x128xbf16> to vector<128x128xbf16>
    %cst_23 = arith.constant dense<0.000000e+00> : vector<256x128xf32>
    %26 = tpu.matmul %23, %25, %cst_23 {dimension_numbers = #tpu.dot_dimension_numbers<[1], [0], [0], [1], [0, 0, 1, 1], [], []>} : vector<256x128xbf16>, vector<128x128xbf16>, vector<256x128xf32> -> vector<256x128xf32>
    %27 = arith.addf %20, %26 : vector<256x128xf32>
    %c0_24 = arith.constant 0 : index
    %c8_25 = arith.constant 8 : index
    %c0_26 = arith.constant 0 : index
    %28 = vector.load %arg18[%c0_24, %c8_25, %c0_26] : memref<18x32x128xf32, #tpu.memory_space<vmem>>, vector<16x16x128xf32>
    %29 = vector.shape_cast %28 : vector<16x16x128xf32> to vector<256x128xf32>
    %30 = arith.truncf %29 : vector<256x128xf32> to vector<256x128xbf16>
    %c0_27 = arith.constant 0 : index
    %c1_28 = arith.constant 1 : index
    %c0_29 = arith.constant 0 : index
    %c0_30 = arith.constant 0 : index
    %31 = vector.load %arg5[%c0_27, %c1_28, %c0_29, %c0_30] : memref<3x3x128x128xbf16, #tpu.memory_space<vmem>>, vector<1x1x128x128xbf16>
    %32 = vector.shape_cast %31 : vector<1x1x128x128xbf16> to vector<128x128xbf16>
    %cst_31 = arith.constant dense<0.000000e+00> : vector<256x128xf32>
    %33 = tpu.matmul %30, %32, %cst_31 {dimension_numbers = #tpu.dot_dimension_numbers<[1], [0], [0], [1], [0, 0, 1, 1], [], []>} : vector<256x128xbf16>, vector<128x128xbf16>, vector<256x128xf32> -> vector<256x128xf32>
    %34 = arith.addf %27, %33 : vector<256x128xf32>
    %c0_32 = arith.constant 0 : index
    %c9 = arith.constant 9 : index
    %c0_33 = arith.constant 0 : index
    %35 = vector.load %arg18[%c0_32, %c9, %c0_33] : memref<18x32x128xf32, #tpu.memory_space<vmem>>, vector<16x16x128xf32>
    %36 = vector.shape_cast %35 : vector<16x16x128xf32> to vector<256x128xf32>
    %37 = arith.truncf %36 : vector<256x128xf32> to vector<256x128xbf16>
    %c0_34 = arith.constant 0 : index
    %c2 = arith.constant 2 : index
    %c0_35 = arith.constant 0 : index
    %c0_36 = arith.constant 0 : index
    %38 = vector.load %arg5[%c0_34, %c2, %c0_35, %c0_36] : memref<3x3x128x128xbf16, #tpu.memory_space<vmem>>, vector<1x1x128x128xbf16>
    %39 = vector.shape_cast %38 : vector<1x1x128x128xbf16> to vector<128x128xbf16>
    %cst_37 = arith.constant dense<0.000000e+00> : vector<256x128xf32>
    %40 = tpu.matmul %37, %39, %cst_37 {dimension_numbers = #tpu.dot_dimension_numbers<[1], [0], [0], [1], [0, 0, 1, 1], [], []>} : vector<256x128xbf16>, vector<128x128xbf16>, vector<256x128xf32> -> vector<256x128xf32>
    %41 = arith.addf %34, %40 : vector<256x128xf32>
    %c1_38 = arith.constant 1 : index
    %c7_39 = arith.constant 7 : index
    %c0_40 = arith.constant 0 : index
    %42 = vector.load %arg18[%c1_38, %c7_39, %c0_40] : memref<18x32x128xf32, #tpu.memory_space<vmem>>, vector<16x16x128xf32>
    %43 = vector.shape_cast %42 : vector<16x16x128xf32> to vector<256x128xf32>
    %44 = arith.truncf %43 : vector<256x128xf32> to vector<256x128xbf16>
    %c1_41 = arith.constant 1 : index
    %c0_42 = arith.constant 0 : index
    %c0_43 = arith.constant 0 : index
    %c0_44 = arith.constant 0 : index
    %45 = vector.load %arg5[%c1_41, %c0_42, %c0_43, %c0_44] : memref<3x3x128x128xbf16, #tpu.memory_space<vmem>>, vector<1x1x128x128xbf16>
    %46 = vector.shape_cast %45 : vector<1x1x128x128xbf16> to vector<128x128xbf16>
    %cst_45 = arith.constant dense<0.000000e+00> : vector<256x128xf32>
    %47 = tpu.matmul %44, %46, %cst_45 {dimension_numbers = #tpu.dot_dimension_numbers<[1], [0], [0], [1], [0, 0, 1, 1], [], []>} : vector<256x128xbf16>, vector<128x128xbf16>, vector<256x128xf32> -> vector<256x128xf32>
    %48 = arith.addf %41, %47 : vector<256x128xf32>
    %c1_46 = arith.constant 1 : index
    %c8_47 = arith.constant 8 : index
    %c0_48 = arith.constant 0 : index
    %49 = vector.load %arg18[%c1_46, %c8_47, %c0_48] : memref<18x32x128xf32, #tpu.memory_space<vmem>>, vector<16x16x128xf32>
    %50 = vector.shape_cast %49 : vector<16x16x128xf32> to vector<256x128xf32>
    %51 = arith.truncf %50 : vector<256x128xf32> to vector<256x128xbf16>
    %c1_49 = arith.constant 1 : index
    %c1_50 = arith.constant 1 : index
    %c0_51 = arith.constant 0 : index
    %c0_52 = arith.constant 0 : index
    %52 = vector.load %arg5[%c1_49, %c1_50, %c0_51, %c0_52] : memref<3x3x128x128xbf16, #tpu.memory_space<vmem>>, vector<1x1x128x128xbf16>
    %53 = vector.shape_cast %52 : vector<1x1x128x128xbf16> to vector<128x128xbf16>
    %cst_53 = arith.constant dense<0.000000e+00> : vector<256x128xf32>
    %54 = tpu.matmul %51, %53, %cst_53 {dimension_numbers = #tpu.dot_dimension_numbers<[1], [0], [0], [1], [0, 0, 1, 1], [], []>} : vector<256x128xbf16>, vector<128x128xbf16>, vector<256x128xf32> -> vector<256x128xf32>
    %55 = arith.addf %48, %54 : vector<256x128xf32>
    %c1_54 = arith.constant 1 : index
    %c9_55 = arith.constant 9 : index
    %c0_56 = arith.constant 0 : index
    %56 = vector.load %arg18[%c1_54, %c9_55, %c0_56] : memref<18x32x128xf32, #tpu.memory_space<vmem>>, vector<16x16x128xf32>
    %57 = vector.shape_cast %56 : vector<16x16x128xf32> to vector<256x128xf32>
    %58 = arith.truncf %57 : vector<256x128xf32> to vector<256x128xbf16>
    %c1_57 = arith.constant 1 : index
    %c2_58 = arith.constant 2 : index
    %c0_59 = arith.constant 0 : index
    %c0_60 = arith.constant 0 : index
    %59 = vector.load %arg5[%c1_57, %c2_58, %c0_59, %c0_60] : memref<3x3x128x128xbf16, #tpu.memory_space<vmem>>, vector<1x1x128x128xbf16>
    %60 = vector.shape_cast %59 : vector<1x1x128x128xbf16> to vector<128x128xbf16>
    %cst_61 = arith.constant dense<0.000000e+00> : vector<256x128xf32>
    %61 = tpu.matmul %58, %60, %cst_61 {dimension_numbers = #tpu.dot_dimension_numbers<[1], [0], [0], [1], [0, 0, 1, 1], [], []>} : vector<256x128xbf16>, vector<128x128xbf16>, vector<256x128xf32> -> vector<256x128xf32>
    %62 = arith.addf %55, %61 : vector<256x128xf32>
    %c2_62 = arith.constant 2 : index
    %c7_63 = arith.constant 7 : index
    %c0_64 = arith.constant 0 : index
    %63 = vector.load %arg18[%c2_62, %c7_63, %c0_64] : memref<18x32x128xf32, #tpu.memory_space<vmem>>, vector<16x16x128xf32>
    %64 = vector.shape_cast %63 : vector<16x16x128xf32> to vector<256x128xf32>
    %65 = arith.truncf %64 : vector<256x128xf32> to vector<256x128xbf16>
    %c2_65 = arith.constant 2 : index
    %c0_66 = arith.constant 0 : index
    %c0_67 = arith.constant 0 : index
    %c0_68 = arith.constant 0 : index
    %66 = vector.load %arg5[%c2_65, %c0_66, %c0_67, %c0_68] : memref<3x3x128x128xbf16, #tpu.memory_space<vmem>>, vector<1x1x128x128xbf16>
    %67 = vector.shape_cast %66 : vector<1x1x128x128xbf16> to vector<128x128xbf16>
    %cst_69 = arith.constant dense<0.000000e+00> : vector<256x128xf32>
    %68 = tpu.matmul %65, %67, %cst_69 {dimension_numbers = #tpu.dot_dimension_numbers<[1], [0], [0], [1], [0, 0, 1, 1], [], []>} : vector<256x128xbf16>, vector<128x128xbf16>, vector<256x128xf32> -> vector<256x128xf32>
    %69 = arith.addf %62, %68 : vector<256x128xf32>
    %c2_70 = arith.constant 2 : index
    %c8_71 = arith.constant 8 : index
    %c0_72 = arith.constant 0 : index
    %70 = vector.load %arg18[%c2_70, %c8_71, %c0_72] : memref<18x32x128xf32, #tpu.memory_space<vmem>>, vector<16x16x128xf32>
    %71 = vector.shape_cast %70 : vector<16x16x128xf32> to vector<256x128xf32>
    %72 = arith.truncf %71 : vector<256x128xf32> to vector<256x128xbf16>
    %c2_73 = arith.constant 2 : index
    %c1_74 = arith.constant 1 : index
    %c0_75 = arith.constant 0 : index
    %c0_76 = arith.constant 0 : index
    %73 = vector.load %arg5[%c2_73, %c1_74, %c0_75, %c0_76] : memref<3x3x128x128xbf16, #tpu.memory_space<vmem>>, vector<1x1x128x128xbf16>
    %74 = vector.shape_cast %73 : vector<1x1x128x128xbf16> to vector<128x128xbf16>
    %cst_77 = arith.constant dense<0.000000e+00> : vector<256x128xf32>
    %75 = tpu.matmul %72, %74, %cst_77 {dimension_numbers = #tpu.dot_dimension_numbers<[1], [0], [0], [1], [0, 0, 1, 1], [], []>} : vector<256x128xbf16>, vector<128x128xbf16>, vector<256x128xf32> -> vector<256x128xf32>
    %76 = arith.addf %69, %75 : vector<256x128xf32>
    %c2_78 = arith.constant 2 : index
    %c9_79 = arith.constant 9 : index
    %c0_80 = arith.constant 0 : index
    %77 = vector.load %arg18[%c2_78, %c9_79, %c0_80] : memref<18x32x128xf32, #tpu.memory_space<vmem>>, vector<16x16x128xf32>
    %78 = vector.shape_cast %77 : vector<16x16x128xf32> to vector<256x128xf32>
    %79 = arith.truncf %78 : vector<256x128xf32> to vector<256x128xbf16>
    %c2_81 = arith.constant 2 : index
    %c2_82 = arith.constant 2 : index
    %c0_83 = arith.constant 0 : index
    %c0_84 = arith.constant 0 : index
    %80 = vector.load %arg5[%c2_81, %c2_82, %c0_83, %c0_84] : memref<3x3x128x128xbf16, #tpu.memory_space<vmem>>, vector<1x1x128x128xbf16>
    %81 = vector.shape_cast %80 : vector<1x1x128x128xbf16> to vector<128x128xbf16>
    %cst_85 = arith.constant dense<0.000000e+00> : vector<256x128xf32>
    %82 = tpu.matmul %79, %81, %cst_85 {dimension_numbers = #tpu.dot_dimension_numbers<[1], [0], [0], [1], [0, 0, 1, 1], [], []>} : vector<256x128xbf16>, vector<128x128xbf16>, vector<256x128xf32> -> vector<256x128xf32>
    %83 = arith.addf %76, %82 : vector<256x128xf32>
    %c0_86 = arith.constant 0 : index
    %c0_87 = arith.constant 0 : index
    %84 = vector.load %arg6[%c0_86, %c0_87] : memref<1x128xf32, #tpu.memory_space<vmem>>, vector<1x128xf32>
    %85 = vector.broadcast %84 : vector<1x128xf32> to vector<256x128xf32>
    %86 = arith.mulf %83, %85 : vector<256x128xf32>
    %c0_88 = arith.constant 0 : index
    %c0_89 = arith.constant 0 : index
    %87 = vector.load %arg7[%c0_88, %c0_89] : memref<1x128xf32, #tpu.memory_space<vmem>>, vector<1x128xf32>
    %88 = vector.broadcast %87 : vector<1x128xf32> to vector<256x128xf32>
    %89 = arith.addf %86, %88 : vector<256x128xf32>
    %cst_90 = arith.constant 0.000000e+00 : f32
    %90 = vector.broadcast %cst_90 : f32 to vector<256x128xf32>
    %91 = arith.cmpf ogt, %89, %90 : vector<256x128xf32>
    %cst_91 = arith.constant 1.000000e-01 : f32
    %92 = vector.broadcast %cst_91 : f32 to vector<256x128xf32>
    %93 = arith.mulf %92, %89 : vector<256x128xf32>
    %94 = arith.select %91, %89, %93 : vector<256x128xi1>, vector<256x128xf32>
    %95 = arith.truncf %94 : vector<256x128xf32> to vector<256x128xbf16>
    %c0_92 = arith.constant 0 : index
    %c0_93 = arith.constant 0 : index
    %96 = vector.load %arg8[%c0_92, %c0_93] : memref<128x128xbf16, #tpu.memory_space<vmem>>, vector<128x128xbf16>
    %cst_94 = arith.constant dense<0.000000e+00> : vector<256x128xf32>
    %97 = tpu.matmul %95, %96, %cst_94 {dimension_numbers = #tpu.dot_dimension_numbers<[1], [0], [0], [1], [0, 0, 1, 1], [], []>} : vector<256x128xbf16>, vector<128x128xbf16>, vector<256x128xf32> -> vector<256x128xf32>
    %c0_95 = arith.constant 0 : index
    %c0_96 = arith.constant 0 : index
    %98 = vector.load %arg9[%c0_95, %c0_96] : memref<1x128xf32, #tpu.memory_space<vmem>>, vector<1x128xf32>
    %99 = vector.broadcast %98 : vector<1x128xf32> to vector<256x128xf32>
    %100 = arith.mulf %97, %99 : vector<256x128xf32>
    %c0_97 = arith.constant 0 : index
    %c0_98 = arith.constant 0 : index
    %101 = vector.load %arg10[%c0_97, %c0_98] : memref<1x128xf32, #tpu.memory_space<vmem>>, vector<1x128xf32>
    %102 = vector.broadcast %101 : vector<1x128xf32> to vector<256x128xf32>
    %103 = arith.addf %100, %102 : vector<256x128xf32>
    %cst_99 = arith.constant 0.000000e+00 : f32
    %104 = vector.broadcast %cst_99 : f32 to vector<256x128xf32>
    %105 = arith.cmpf ogt, %103, %104 : vector<256x128xf32>
    %cst_100 = arith.constant 1.000000e-01 : f32
    %106 = vector.broadcast %cst_100 : f32 to vector<256x128xf32>
    %107 = arith.mulf %106, %103 : vector<256x128xf32>
    %108 = arith.select %105, %103, %107 : vector<256x128xi1>, vector<256x128xf32>
    %cst_101 = arith.constant 0.000000e+00 : f32
    %109 = vector.broadcast %cst_101 : f32 to vector<18x32x128xf32>
    %c0_102 = arith.constant 0 : index
    %c0_103 = arith.constant 0 : index
    %c0_104 = arith.constant 0 : index
    %110 = vector.load %arg18[%c0_102, %c0_103, %c0_104] : memref<18x32x128xf32, #tpu.memory_space<vmem>>, vector<18x32x128xf32>
    tpu.vector_store %arg18[%c0_102, %c0_103, %c0_104], %109 {strides = array<i32>} : memref<18x32x128xf32, #tpu.memory_space<vmem>>, vector<18x32x128xf32>,
    %111 = vector.shape_cast %108 : vector<256x128xf32> to vector<16x16x128xf32>
    %c1_105 = arith.constant 1 : index
    %c8_106 = arith.constant 8 : index
    %c0_107 = arith.constant 0 : index
    %112 = vector.load %arg18[%c1_105, %c8_106, %c0_107] : memref<18x32x128xf32, #tpu.memory_space<vmem>>, vector<16x16x128xf32>
    tpu.vector_store %arg18[%c1_105, %c8_106, %c0_107], %111 {strides = array<i32>} : memref<18x32x128xf32, #tpu.memory_space<vmem>>, vector<16x16x128xf32>,
    %cst_108 = arith.constant 0.000000e+00 : f32
    %113 = vector.broadcast %cst_108 : f32 to vector<256x128xf32>
    %c0_109 = arith.constant 0 : index
    %c7_110 = arith.constant 7 : index
    %c0_111 = arith.constant 0 : index
    %114 = vector.load %arg18[%c0_109, %c7_110, %c0_111] : memref<18x32x128xf32, #tpu.memory_space<vmem>>, vector<16x16x128xf32>
    %115 = vector.shape_cast %114 : vector<16x16x128xf32> to vector<256x128xf32>
    %116 = arith.truncf %115 : vector<256x128xf32> to vector<256x128xbf16>
    %c0_112 = arith.constant 0 : index
    %c0_113 = arith.constant 0 : index
    %c0_114 = arith.constant 0 : index
    %c0_115 = arith.constant 0 : index
    %117 = vector.load %arg11[%c0_112, %c0_113, %c0_114, %c0_115] : memref<3x3x128x128xbf16, #tpu.memory_space<vmem>>, vector<1x1x128x128xbf16>
    %118 = vector.shape_cast %117 : vector<1x1x128x128xbf16> to vector<128x128xbf16>
    %cst_116 = arith.constant dense<0.000000e+00> : vector<256x128xf32>
    %119 = tpu.matmul %116, %118, %cst_116 {dimension_numbers = #tpu.dot_dimension_numbers<[1], [0], [0], [1], [0, 0, 1, 1], [], []>} : vector<256x128xbf16>, vector<128x128xbf16>, vector<256x128xf32> -> vector<256x128xf32>
    %120 = arith.addf %113, %119 : vector<256x128xf32>
    %c0_117 = arith.constant 0 : index
    %c8_118 = arith.constant 8 : index
    %c0_119 = arith.constant 0 : index
    %121 = vector.load %arg18[%c0_117, %c8_118, %c0_119] : memref<18x32x128xf32, #tpu.memory_space<vmem>>, vector<16x16x128xf32>
    %122 = vector.shape_cast %121 : vector<16x16x128xf32> to vector<256x128xf32>
    %123 = arith.truncf %122 : vector<256x128xf32> to vector<256x128xbf16>
    %c0_120 = arith.constant 0 : index
    %c1_121 = arith.constant 1 : index
    %c0_122 = arith.constant 0 : index
    %c0_123 = arith.constant 0 : index
    %124 = vector.load %arg11[%c0_120, %c1_121, %c0_122, %c0_123] : memref<3x3x128x128xbf16, #tpu.memory_space<vmem>>, vector<1x1x128x128xbf16>
    %125 = vector.shape_cast %124 : vector<1x1x128x128xbf16> to vector<128x128xbf16>
    %cst_124 = arith.constant dense<0.000000e+00> : vector<256x128xf32>
    %126 = tpu.matmul %123, %125, %cst_124 {dimension_numbers = #tpu.dot_dimension_numbers<[1], [0], [0], [1], [0, 0, 1, 1], [], []>} : vector<256x128xbf16>, vector<128x128xbf16>, vector<256x128xf32> -> vector<256x128xf32>
    %127 = arith.addf %120, %126 : vector<256x128xf32>
    %c0_125 = arith.constant 0 : index
    %c9_126 = arith.constant 9 : index
    %c0_127 = arith.constant 0 : index
    %128 = vector.load %arg18[%c0_125, %c9_126, %c0_127] : memref<18x32x128xf32, #tpu.memory_space<vmem>>, vector<16x16x128xf32>
    %129 = vector.shape_cast %128 : vector<16x16x128xf32> to vector<256x128xf32>
    %130 = arith.truncf %129 : vector<256x128xf32> to vector<256x128xbf16>
    %c0_128 = arith.constant 0 : index
    %c2_129 = arith.constant 2 : index
    %c0_130 = arith.constant 0 : index
    %c0_131 = arith.constant 0 : index
    %131 = vector.load %arg11[%c0_128, %c2_129, %c0_130, %c0_131] : memref<3x3x128x128xbf16, #tpu.memory_space<vmem>>, vector<1x1x128x128xbf16>
    %132 = vector.shape_cast %131 : vector<1x1x128x128xbf16> to vector<128x128xbf16>
    %cst_132 = arith.constant dense<0.000000e+00> : vector<256x128xf32>
    %133 = tpu.matmul %130, %132, %cst_132 {dimension_numbers = #tpu.dot_dimension_numbers<[1], [0], [0], [1], [0, 0, 1, 1], [], []>} : vector<256x128xbf16>, vector<128x128xbf16>, vector<256x128xf32> -> vector<256x128xf32>
    %134 = arith.addf %127, %133 : vector<256x128xf32>
    %c1_133 = arith.constant 1 : index
    %c7_134 = arith.constant 7 : index
    %c0_135 = arith.constant 0 : index
    %135 = vector.load %arg18[%c1_133, %c7_134, %c0_135] : memref<18x32x128xf32, #tpu.memory_space<vmem>>, vector<16x16x128xf32>
    %136 = vector.shape_cast %135 : vector<16x16x128xf32> to vector<256x128xf32>
    %137 = arith.truncf %136 : vector<256x128xf32> to vector<256x128xbf16>
    %c1_136 = arith.constant 1 : index
    %c0_137 = arith.constant 0 : index
    %c0_138 = arith.constant 0 : index
    %c0_139 = arith.constant 0 : index
    %138 = vector.load %arg11[%c1_136, %c0_137, %c0_138, %c0_139] : memref<3x3x128x128xbf16, #tpu.memory_space<vmem>>, vector<1x1x128x128xbf16>
    %139 = vector.shape_cast %138 : vector<1x1x128x128xbf16> to vector<128x128xbf16>
    %cst_140 = arith.constant dense<0.000000e+00> : vector<256x128xf32>
    %140 = tpu.matmul %137, %139, %cst_140 {dimension_numbers = #tpu.dot_dimension_numbers<[1], [0], [0], [1], [0, 0, 1, 1], [], []>} : vector<256x128xbf16>, vector<128x128xbf16>, vector<256x128xf32> -> vector<256x128xf32>
    %141 = arith.addf %134, %140 : vector<256x128xf32>
    %c1_141 = arith.constant 1 : index
    %c8_142 = arith.constant 8 : index
    %c0_143 = arith.constant 0 : index
    %142 = vector.load %arg18[%c1_141, %c8_142, %c0_143] : memref<18x32x128xf32, #tpu.memory_space<vmem>>, vector<16x16x128xf32>
    %143 = vector.shape_cast %142 : vector<16x16x128xf32> to vector<256x128xf32>
    %144 = arith.truncf %143 : vector<256x128xf32> to vector<256x128xbf16>
    %c1_144 = arith.constant 1 : index
    %c1_145 = arith.constant 1 : index
    %c0_146 = arith.constant 0 : index
    %c0_147 = arith.constant 0 : index
    %145 = vector.load %arg11[%c1_144, %c1_145, %c0_146, %c0_147] : memref<3x3x128x128xbf16, #tpu.memory_space<vmem>>, vector<1x1x128x128xbf16>
    %146 = vector.shape_cast %145 : vector<1x1x128x128xbf16> to vector<128x128xbf16>
    %cst_148 = arith.constant dense<0.000000e+00> : vector<256x128xf32>
    %147 = tpu.matmul %144, %146, %cst_148 {dimension_numbers = #tpu.dot_dimension_numbers<[1], [0], [0], [1], [0, 0, 1, 1], [], []>} : vector<256x128xbf16>, vector<128x128xbf16>, vector<256x128xf32> -> vector<256x128xf32>
    %148 = arith.addf %141, %147 : vector<256x128xf32>
    %c1_149 = arith.constant 1 : index
    %c9_150 = arith.constant 9 : index
    %c0_151 = arith.constant 0 : index
    %149 = vector.load %arg18[%c1_149, %c9_150, %c0_151] : memref<18x32x128xf32, #tpu.memory_space<vmem>>, vector<16x16x128xf32>
    %150 = vector.shape_cast %149 : vector<16x16x128xf32> to vector<256x128xf32>
    %151 = arith.truncf %150 : vector<256x128xf32> to vector<256x128xbf16>
    %c1_152 = arith.constant 1 : index
    %c2_153 = arith.constant 2 : index
    %c0_154 = arith.constant 0 : index
    %c0_155 = arith.constant 0 : index
    %152 = vector.load %arg11[%c1_152, %c2_153, %c0_154, %c0_155] : memref<3x3x128x128xbf16, #tpu.memory_space<vmem>>, vector<1x1x128x128xbf16>
    %153 = vector.shape_cast %152 : vector<1x1x128x128xbf16> to vector<128x128xbf16>
    %cst_156 = arith.constant dense<0.000000e+00> : vector<256x128xf32>
    %154 = tpu.matmul %151, %153, %cst_156 {dimension_numbers = #tpu.dot_dimension_numbers<[1], [0], [0], [1], [0, 0, 1, 1], [], []>} : vector<256x128xbf16>, vector<128x128xbf16>, vector<256x128xf32> -> vector<256x128xf32>
    %155 = arith.addf %148, %154 : vector<256x128xf32>
    %c2_157 = arith.constant 2 : index
    %c7_158 = arith.constant 7 : index
    %c0_159 = arith.constant 0 : index
    %156 = vector.load %arg18[%c2_157, %c7_158, %c0_159] : memref<18x32x128xf32, #tpu.memory_space<vmem>>, vector<16x16x128xf32>
    %157 = vector.shape_cast %156 : vector<16x16x128xf32> to vector<256x128xf32>
    %158 = arith.truncf %157 : vector<256x128xf32> to vector<256x128xbf16>
    %c2_160 = arith.constant 2 : index
    %c0_161 = arith.constant 0 : index
    %c0_162 = arith.constant 0 : index
    %c0_163 = arith.constant 0 : index
    %159 = vector.load %arg11[%c2_160, %c0_161, %c0_162, %c0_163] : memref<3x3x128x128xbf16, #tpu.memory_space<vmem>>, vector<1x1x128x128xbf16>
    %160 = vector.shape_cast %159 : vector<1x1x128x128xbf16> to vector<128x128xbf16>
    %cst_164 = arith.constant dense<0.000000e+00> : vector<256x128xf32>
    %161 = tpu.matmul %158, %160, %cst_164 {dimension_numbers = #tpu.dot_dimension_numbers<[1], [0], [0], [1], [0, 0, 1, 1], [], []>} : vector<256x128xbf16>, vector<128x128xbf16>, vector<256x128xf32> -> vector<256x128xf32>
    %162 = arith.addf %155, %161 : vector<256x128xf32>
    %c2_165 = arith.constant 2 : index
    %c8_166 = arith.constant 8 : index
    %c0_167 = arith.constant 0 : index
    %163 = vector.load %arg18[%c2_165, %c8_166, %c0_167] : memref<18x32x128xf32, #tpu.memory_space<vmem>>, vector<16x16x128xf32>
    %164 = vector.shape_cast %163 : vector<16x16x128xf32> to vector<256x128xf32>
    %165 = arith.truncf %164 : vector<256x128xf32> to vector<256x128xbf16>
    %c2_168 = arith.constant 2 : index
    %c1_169 = arith.constant 1 : index
    %c0_170 = arith.constant 0 : index
    %c0_171 = arith.constant 0 : index
    %166 = vector.load %arg11[%c2_168, %c1_169, %c0_170, %c0_171] : memref<3x3x128x128xbf16, #tpu.memory_space<vmem>>, vector<1x1x128x128xbf16>
    %167 = vector.shape_cast %166 : vector<1x1x128x128xbf16> to vector<128x128xbf16>
    %cst_172 = arith.constant dense<0.000000e+00> : vector<256x128xf32>
    %168 = tpu.matmul %165, %167, %cst_172 {dimension_numbers = #tpu.dot_dimension_numbers<[1], [0], [0], [1], [0, 0, 1, 1], [], []>} : vector<256x128xbf16>, vector<128x128xbf16>, vector<256x128xf32> -> vector<256x128xf32>
    %169 = arith.addf %162, %168 : vector<256x128xf32>
    %c2_173 = arith.constant 2 : index
    %c9_174 = arith.constant 9 : index
    %c0_175 = arith.constant 0 : index
    %170 = vector.load %arg18[%c2_173, %c9_174, %c0_175] : memref<18x32x128xf32, #tpu.memory_space<vmem>>, vector<16x16x128xf32>
    %171 = vector.shape_cast %170 : vector<16x16x128xf32> to vector<256x128xf32>
    %172 = arith.truncf %171 : vector<256x128xf32> to vector<256x128xbf16>
    %c2_176 = arith.constant 2 : index
    %c2_177 = arith.constant 2 : index
    %c0_178 = arith.constant 0 : index
    %c0_179 = arith.constant 0 : index
    %173 = vector.load %arg11[%c2_176, %c2_177, %c0_178, %c0_179] : memref<3x3x128x128xbf16, #tpu.memory_space<vmem>>, vector<1x1x128x128xbf16>
    %174 = vector.shape_cast %173 : vector<1x1x128x128xbf16> to vector<128x128xbf16>
    %cst_180 = arith.constant dense<0.000000e+00> : vector<256x128xf32>
    %175 = tpu.matmul %172, %174, %cst_180 {dimension_numbers = #tpu.dot_dimension_numbers<[1], [0], [0], [1], [0, 0, 1, 1], [], []>} : vector<256x128xbf16>, vector<128x128xbf16>, vector<256x128xf32> -> vector<256x128xf32>
    %176 = arith.addf %169, %175 : vector<256x128xf32>
    %c0_181 = arith.constant 0 : index
    %c0_182 = arith.constant 0 : index
    %177 = vector.load %arg12[%c0_181, %c0_182] : memref<1x128xf32, #tpu.memory_space<vmem>>, vector<1x128xf32>
    %178 = vector.broadcast %177 : vector<1x128xf32> to vector<256x128xf32>
    %179 = arith.mulf %176, %178 : vector<256x128xf32>
    %c0_183 = arith.constant 0 : index
    %c0_184 = arith.constant 0 : index
    %180 = vector.load %arg13[%c0_183, %c0_184] : memref<1x128xf32, #tpu.memory_space<vmem>>, vector<1x128xf32>
    %181 = vector.broadcast %180 : vector<1x128xf32> to vector<256x128xf32>
    %182 = arith.addf %179, %181 : vector<256x128xf32>
    %cst_185 = arith.constant 0.000000e+00 : f32
    %183 = vector.broadcast %cst_185 : f32 to vector<256x128xf32>
    %184 = arith.cmpf ogt, %182, %183 : vector<256x128xf32>
    %cst_186 = arith.constant 1.000000e-01 : f32
    %185 = vector.broadcast %cst_186 : f32 to vector<256x128xf32>
    %186 = arith.mulf %185, %182 : vector<256x128xf32>
    %187 = arith.select %184, %182, %186 : vector<256x128xi1>, vector<256x128xf32>
    %188 = arith.truncf %187 : vector<256x128xf32> to vector<256x128xbf16>
    %c0_187 = arith.constant 0 : index
    %c0_188 = arith.constant 0 : index
    %189 = vector.load %arg14[%c0_187, %c0_188] : memref<128x128xbf16, #tpu.memory_space<vmem>>, vector<128x128xbf16>
    %cst_189 = arith.constant dense<0.000000e+00> : vector<256x128xf32>
    %190 = tpu.matmul %188, %189, %cst_189 {dimension_numbers = #tpu.dot_dimension_numbers<[1], [0], [0], [1], [0, 0, 1, 1], [], []>} : vector<256x128xbf16>, vector<128x128xbf16>, vector<256x128xf32> -> vector<256x128xf32>
    %c0_190 = arith.constant 0 : index
    %c0_191 = arith.constant 0 : index
    %191 = vector.load %arg15[%c0_190, %c0_191] : memref<1x128xf32, #tpu.memory_space<vmem>>, vector<1x128xf32>
    %192 = vector.broadcast %191 : vector<1x128xf32> to vector<256x128xf32>
    %193 = arith.mulf %190, %192 : vector<256x128xf32>
    %c0_192 = arith.constant 0 : index
    %c0_193 = arith.constant 0 : index
    %194 = vector.load %arg16[%c0_192, %c0_193] : memref<1x128xf32, #tpu.memory_space<vmem>>, vector<1x128xf32>
    %195 = vector.broadcast %194 : vector<1x128xf32> to vector<256x128xf32>
    %196 = arith.addf %193, %195 : vector<256x128xf32>
    %cst_194 = arith.constant 0.000000e+00 : f32
    %197 = vector.broadcast %cst_194 : f32 to vector<256x128xf32>
    %198 = arith.cmpf ogt, %196, %197 : vector<256x128xf32>
    %cst_195 = arith.constant 1.000000e-01 : f32
    %199 = vector.broadcast %cst_195 : f32 to vector<256x128xf32>
    %200 = arith.mulf %199, %196 : vector<256x128xf32>
    %201 = arith.select %198, %196, %200 : vector<256x128xi1>, vector<256x128xf32>
    %202 = vector.shape_cast %201 : vector<256x128xf32> to vector<16x16x128xf32>
    %c0_196 = arith.constant 0 : index
    %c0_197 = arith.constant 0 : index
    %c0_198 = arith.constant 0 : index
    %c0_199 = arith.constant 0 : index
    %203 = vector.load %arg17[%c0_196, %c0_197, %c0_198, %c0_199] : memref<1x16x16x128xf32, #tpu.memory_space<vmem>>, vector<1x16x16x128xf32>
    %204 = vector.shape_cast %203 : vector<1x16x16x128xf32> to vector<16x16x128xf32>
    %205 = vector.shape_cast %202 : vector<16x16x128xf32> to vector<1x16x16x128xf32>
    tpu.vector_store %arg17[%c0_196, %c0_197, %c0_198, %c0_199], %205 {strides = array<i32>} : memref<1x16x16x128xf32, #tpu.memory_space<vmem>>, vector<1x16x16x128xf32>,
    return
  }
  func.func @transform_0(%arg0: i32) -> (i32, i32, i32, i32) {
    %c0_i32 = arith.constant 0 : i32
    %c0_i32_0 = arith.constant 0 : i32
    %c0_i32_1 = arith.constant 0 : i32
    %c0_i32_2 = arith.constant 0 : i32
    return %arg0, %c0_i32, %c0_i32_0, %c0_i32_1 : i32, i32, i32, i32
  }
  func.func @transform_1(%arg0: i32) -> (i32, i32) {
    %c0_i32 = arith.constant 0 : i32
    %c0_i32_0 = arith.constant 0 : i32
    %c0_i32_1 = arith.constant 0 : i32
    return %c0_i32, %c0_i32_0 : i32, i32
  }
  func.func @transform_2(%arg0: i32) -> (i32, i32) {
    %c0_i32 = arith.constant 0 : i32
    %c0_i32_0 = arith.constant 0 : i32
    %c0_i32_1 = arith.constant 0 : i32
    return %c0_i32, %c0_i32_0 : i32, i32
  }
  func.func @transform_3(%arg0: i32) -> (i32, i32) {
    %c0_i32 = arith.constant 0 : i32
    %c0_i32_0 = arith.constant 0 : i32
    %c0_i32_1 = arith.constant 0 : i32
    return %c0_i32, %c0_i32_0 : i32, i32
  }
  func.func @transform_4(%arg0: i32) -> (i32, i32, i32, i32) {
    %c0_i32 = arith.constant 0 : i32
    %c0_i32_0 = arith.constant 0 : i32
    %c0_i32_1 = arith.constant 0 : i32
    %c0_i32_2 = arith.constant 0 : i32
    %c0_i32_3 = arith.constant 0 : i32
    return %c0_i32, %c0_i32_0, %c0_i32_1, %c0_i32_2 : i32, i32, i32, i32
  }
  func.func @transform_5(%arg0: i32) -> (i32, i32) {
    %c0_i32 = arith.constant 0 : i32
    %c0_i32_0 = arith.constant 0 : i32
    %c0_i32_1 = arith.constant 0 : i32
    return %c0_i32, %c0_i32_0 : i32, i32
  }
  func.func @transform_6(%arg0: i32) -> (i32, i32) {
    %c0_i32 = arith.constant 0 : i32
    %c0_i32_0 = arith.constant 0 : i32
    %c0_i32_1 = arith.constant 0 : i32
    return %c0_i32, %c0_i32_0 : i32, i32
  }
  func.func @transform_7(%arg0: i32) -> (i32, i32) {
    %c0_i32 = arith.constant 0 : i32
    %c0_i32_0 = arith.constant 0 : i32
    %c0_i32_1 = arith.constant 0 : i32
    return %c0_i32, %c0_i32_0 : i32, i32
  }
  func.func @transform_8(%arg0: i32) -> (i32, i32) {
    %c0_i32 = arith.constant 0 : i32
    %c0_i32_0 = arith.constant 0 : i32
    %c0_i32_1 = arith.constant 0 : i32
    return %c0_i32, %c0_i32_0 : i32, i32
  }
  func.func @transform_9(%arg0: i32) -> (i32, i32) {
    %c0_i32 = arith.constant 0 : i32
    %c0_i32_0 = arith.constant 0 : i32
    %c0_i32_1 = arith.constant 0 : i32
    return %c0_i32, %c0_i32_0 : i32, i32
  }
  func.func @transform_10(%arg0: i32) -> (i32, i32, i32, i32) {
    %c0_i32 = arith.constant 0 : i32
    %c0_i32_0 = arith.constant 0 : i32
    %c0_i32_1 = arith.constant 0 : i32
    %c0_i32_2 = arith.constant 0 : i32
    %c0_i32_3 = arith.constant 0 : i32
    return %c0_i32, %c0_i32_0, %c0_i32_1, %c0_i32_2 : i32, i32, i32, i32
  }
  func.func @transform_11(%arg0: i32) -> (i32, i32) {
    %c0_i32 = arith.constant 0 : i32
    %c0_i32_0 = arith.constant 0 : i32
    %c0_i32_1 = arith.constant 0 : i32
    return %c0_i32, %c0_i32_0 : i32, i32
  }
  func.func @transform_12(%arg0: i32) -> (i32, i32) {
    %c0_i32 = arith.constant 0 : i32
    %c0_i32_0 = arith.constant 0 : i32
    %c0_i32_1 = arith.constant 0 : i32
    return %c0_i32, %c0_i32_0 : i32, i32
  }
  func.func @transform_13(%arg0: i32) -> (i32, i32) {
    %c0_i32 = arith.constant 0 : i32
    %c0_i32_0 = arith.constant 0 : i32
    %c0_i32_1 = arith.constant 0 : i32
    return %c0_i32, %c0_i32_0 : i32, i32
  }
  func.func @transform_14(%arg0: i32) -> (i32, i32) {
    %c0_i32 = arith.constant 0 : i32
    %c0_i32_0 = arith.constant 0 : i32
    %c0_i32_1 = arith.constant 0 : i32
    return %c0_i32, %c0_i32_0 : i32, i32
  }
  func.func @transform_15(%arg0: i32) -> (i32, i32) {
    %c0_i32 = arith.constant 0 : i32
    %c0_i32_0 = arith.constant 0 : i32
    %c0_i32_1 = arith.constant 0 : i32
    return %c0_i32, %c0_i32_0 : i32, i32
  }
  func.func @transform_16(%arg0: i32) -> (i32, i32, i32, i32) {
    %c0_i32 = arith.constant 0 : i32
    %c0_i32_0 = arith.constant 0 : i32
    %c0_i32_1 = arith.constant 0 : i32
    %c0_i32_2 = arith.constant 0 : i32
    return %arg0, %c0_i32, %c0_i32_0, %c0_i32_1 : i32, i32, i32, i32
  }
}

</mosaic_0001>

<bundles_post_ra>
// kernel: tpu_custom_call.1
= control target key start
LH: loop header
LB: loop body
LE: loop exit
PB: predicated region body
PF: predicated region fallthrough
CT: control target
= control target key end

     0   :  { %s13110_s0 = inlined_call_operand.hbm [shape: bf16[2,16,16,128], index: 0, kind: input, shape index: {}]   ;;  %s13111_s1 = inlined_call_operand.hbm [shape: bf16[128,128], index: 1, kind: input, shape index: {}]   ;;  %s13112_s2 = inlined_call_operand.vmem [shape: f32[1,128], index: 2, kind: input, shape index: {}]   ;;  %s13113_s3 = inlined_call_operand.vmem [shape: f32[1,128], index: 3, kind: input, shape index: {}]   ;;  %s13114_s4 = inlined_call_operand.hbm [shape: bf16[3,3,128,128], index: 4, kind: input, shape index: {}]   ;;  %s13115_s5 = inlined_call_operand.vmem [shape: f32[1,128], index: 5, kind: input, shape index: {}]   ;;  %s13116_s6 = inlined_call_operand.vmem [shape: f32[1,128], index: 6, kind: input, shape index: {}]   ;;  %s13117_s7 = inlined_call_operand.hbm [shape: bf16[128,128], index: 7, kind: input, shape index: {}]   ;;  %s13118_s8 = inlined_call_operand.vmem [shape: f32[1,128], index: 8, kind: input, shape index: {}]   ;;  %s13119_s9 = inlined_call_operand.vmem [shape: f32[1,128], index: 9, kind: input, shape index: {}]   ;;  %s13120_s10 = inlined_call_operand.hbm [shape: bf16[3,3,128,128], index: 10, kind: input, shape index: {}]   ;;  %s13121_s11 = inlined_call_operand.vmem [shape: f32[1,128], index: 11, kind: input, shape index: {}]   ;;  %s13122_s12 = inlined_call_operand.vmem [shape: f32[1,128], index: 12, kind: input, shape index: {}]   ;;  %s13123_s13 = inlined_call_operand.hbm [shape: bf16[128,128], index: 13, kind: input, shape index: {}]   ;;  %s13124_s14 = inlined_call_operand.vmem [shape: f32[1,128], index: 14, kind: input, shape index: {}]   ;;  %s13125_s15 = inlined_call_operand.vmem [shape: f32[1,128], index: 15, kind: input, shape index: {}]   ;;  %s13126_s16 = inlined_call_operand.hbm [shape: f32[2,16,16,128], index: 16, kind: output, shape index: {}]  }
   0x1   :  { %13139 = sst [smem:[#allocation71_spill]] %s13110_s0 }
   0x2   :  { %13140 = sst [smem:[#allocation72_spill]] %s13111_s1 }
   0x3   :  { %13141 = sst [smem:[#allocation73_spill]] %s13114_s4 }
   0x4   :  { %13142 = sst [smem:[#allocation74_spill]] %s13117_s7 }
   0x5   :  { %13143 = sst [smem:[#allocation75_spill]] %s13120_s10 }
   0x6   :  { %13144 = sst [smem:[#allocation76_spill]] %s13123_s13 }
   0x7   :  { %13145 = sst [smem:[#allocation77_spill]] %s13125_s15 }
   0x8   :  { %13146 = sst [smem:[#allocation78_spill]] %s13126_s16 }
   0x9   :  { %21 = vsyncpa [#allocation4], 0 }
   0xa   :  { %23 = vsyncpa [#allocation4 + $0x1], 0 }
   0xb   :  { %24 = vsyncpa [#allocation7], 0 }
   0xc   :  { %25 = vsyncpa [#allocation10], 0 }
   0xd   :  { %26 = vsyncpa [#allocation13], 0 }
   0xe   :  { %27 = vsyncpa [#allocation5], 0 }
   0xf   :  { %29 = vsyncpa [#allocation5 + $0x1], 0  ;;  %s10445_s21 = smov 0   ;;  %s10447_s22 = smov 0  }
  0x10   :  { %s10449_s23 = smov 0   ;;  %s10451_s24 = smov 0  }
  0x11 LB: > { %13147 = sst [smem:[#allocation20_spill]] %s10341_s23  ;;  %s10347_s25 = smov [#allocation6]   ;;  %s10345_s24 = sphi %s10451_s24, %s13343_s24   ;;  %s10341_s23 = sphi %s10449_s23, %s13345_s23   ;;  %s10337_s22 = sphi %s10447_s22, %s13347_s22   ;;  %s10333_s21 = sphi %s10445_s21, %s13346_s21  }
  0x12   : > { %s419_s26 = sshll.u32 %s10347_s25, 4  ;;  %s10466_s27 = sadd.s32 4294967295, %s10345_s24   ;;  %s420_s26 = int_to_ptr.vmem [resolvable:$true] %s419_s26 }
  0x13   : > { %p8075_p0 = scmp.ge.s32.totalorder %s10345_s24, 1  ;;  %p13131_p1 = scmp.eq.s32.totalorder %s10466_s27, 0 }
  0x14   : > { %p407_p2 = scmp.lt.s32.totalorder %s10345_s24, 3  ;;  %s10348_s29 = smov [#allocation9]  }
  0x15   : > { %s457_s30 = sshll.u32 %s10348_s29, 4  ;;  %s10349_s17 = smov [#allocation8]   ;;  %s10484_s30 = int_to_ptr.vmem [resolvable:$true] %s457_s30 }
  0x16   : > { %p10471_p3 = pnand %p8075_p0, %p407_p2  ;;  %s438_s18 = sshll.u32 %s10349_s17, 4  ;;  %s10486_s18 = int_to_ptr.vmem [resolvable:$true] %s438_s18 }
  0x17   : > { %s10122_s20 = scalar_lea.vmem %s420_s26, 1024  ;;  %p10130_p11 = scmp.lt.s32.totalorder %s420_s26, %s420_s26 }
  0x18   : > { %s13148_s28 = scalar_select %p10471_p3, 1, 0 }
  0x19   : > { %p9846_p5 = pneg %p10471_p3  ;;  %p10123_p8 = scmp.ne.s32.totalorder %s420_s26, %s10122_s20 }
  0x1a   : > { %p10131_p12 = scmp.lt.s32.totalorder %s10122_s20, %s10122_s20 }
  0x1b   : > { %p10480_p6 = pnand %p9846_p5, %p13131_p1 }
  0x1c   : > { %p10132_p13 = por %p10131_p12, %p10130_p11 }
  0x1d   : > { %p10490_p7 = pneg %p10480_p6 }
  0x1f   : > { %p10125_p9 = pnand %p10123_p8, %p10490_p7 }
  0x21   : > { %p10126_p10 = pneg %p10125_p9 }
  0x23   : > { %p10133_p0 = pnand %p10132_p13, %p10126_p10 }
  0x25   : > { %10136 = shalt.err (!%p10133_p0)
}
  0x26   : > { %s13129_s25 = smov 64   ;;  %s13130_s29 = smov 4  }
  0x27   : > { %s13151_s1 = sld [smem:[#allocation72_spill]]  ;;  %s10148_s15 = scalar_lea.vmem %s10484_s30, 1024 }
  0x28   : > { %p10149_p2 = scmp.ne.s32.totalorder %s10484_s30, %s10148_s15  ;;  %p10156_p9 = scmp.lt.s32.totalorder %s10484_s30, %s10484_s30 }
  0x29   : > { %p10157_p10 = scmp.lt.s32.totalorder %s10148_s15, %s10148_s15 }
  0x2a   : > { %p10151_p5 = pnand %p10149_p2, %p10490_p7 }
  0x2b   : > { %p10158_p11 = por %p10157_p10, %p10156_p9 }
  0x2c   : > { %p10152_p8 = pneg %p10151_p5 }
  0x2d   : > { %9849 = dma.hbm_to_vmem [thread:$0]  (!%p10480_p6), %s13151_s1, 1024, %s420_s26, [#allocation7], %s13129_s25, %s13129_s25, %s13130_s29  }
  0x2e   : > { %p10159_p12 = pnand %p10158_p11, %p10152_p8 }
  0x30   : > { %10162 = shalt.err (!%p10159_p12)
}
  0x31   : > { %s13152_s7 = sld [smem:[#allocation74_spill]]  ;;  %s10174_s26 = scalar_lea.vmem %s10486_s18, 9216 }
  0x32   : > { %p10175_p13 = scmp.ne.s32.totalorder %s10486_s18, %s10174_s26  ;;  %p10182_p5 = scmp.lt.s32.totalorder %s10486_s18, %s10486_s18 }
  0x33   : > { %p10183_p8 = scmp.lt.s32.totalorder %s10174_s26, %s10174_s26 }
  0x34   : > { %p10177_p0 = pnand %p10175_p13, %p10490_p7 }
  0x35   : > { %p10184_p9 = por %p10183_p8, %p10182_p5 }
  0x36   : > { %p10178_p2 = pneg %p10177_p0 }
  0x37   : > { %9855 = dma.hbm_to_vmem [thread:$0]  (!%p10480_p6), %s13152_s7, 1024, %s10484_s30, [#allocation10], %s13129_s25, %s13129_s25, %s13130_s29  }
  0x38   : > { %p10185_p10 = pnand %p10184_p9, %p10178_p2 }
  0x3a   : > { %10188 = shalt.err (!%p10185_p10)
}
  0x3b   : > { %s13153_s4 = sld [smem:[#allocation73_spill]]  ;;  %s10352_s30 = smov [#allocation11]  }
  0x3c   : > { %s476_s20 = sshll.u32 %s10352_s30, 4  ;;  %s10353_s16 = smov [#allocation12]   ;;  %s477_s20 = int_to_ptr.vmem [resolvable:$true] %s476_s20 }
  0x3d   : > { %s495_s1 = sshll.u32 %s10353_s16, 4  ;;  %s10200_s26 = scalar_lea.vmem %s477_s20, 9216  ;;  %s496_s1 = int_to_ptr.vmem [resolvable:$true] %s495_s1 }
  0x3e   : > { %p10201_p11 = scmp.ne.s32.totalorder %s477_s20, %s10200_s26  ;;  %p10208_p0 = scmp.lt.s32.totalorder %s477_s20, %s477_s20 }
  0x3f   : > { %p10209_p2 = scmp.lt.s32.totalorder %s10200_s26, %s10200_s26 }
  0x40   : > { %p10203_p12 = pnand %p10201_p11, %p10490_p7 }
  0x41   : > { %9852 = dma.hbm_to_vmem [thread:$0]  (!%p10480_p6), %s13153_s4, 9216, %s10486_s18, [#allocation7], %s13129_s25, %s13129_s25, %s13130_s29  }
  0x42   : > { %p10204_p13 = pneg %p10203_p12  ;;  %p10210_p5 = por %p10209_p2, %p10208_p0 }
  0x44   : > { %p10211_p8 = pnand %p10210_p5, %p10204_p13 }
  0x46   : > { %10214 = shalt.err (!%p10211_p8)
}
  0x47   : > { %s13154_s10 = sld [smem:[#allocation75_spill]]  ;;  %s10226_s17 = scalar_lea.vmem %s496_s1, 1024 }
  0x48   : > { %p10227_p9 = scmp.ne.s32.totalorder %s496_s1, %s10226_s17  ;;  %p10234_p12 = scmp.lt.s32.totalorder %s496_s1, %s496_s1 }
  0x49   : > { %p10235_p0 = scmp.lt.s32.totalorder %s10226_s17, %s10226_s17 }
  0x4a   : > { %p10229_p10 = pnand %p10227_p9, %p10490_p7 }
  0x4b   : > { %p10236_p13 = por %p10235_p0, %p10234_p12 }
  0x4c   : > { %p10230_p11 = pneg %p10229_p10 }
  0x4d   : > { %9858 = dma.hbm_to_vmem [thread:$0]  (!%p10480_p6), %s13154_s10, 9216, %s477_s20, [#allocation10], %s13129_s25, %s13129_s25, %s13130_s29  }
  0x4e   : > { %p10237_p2 = pnand %p10236_p13, %p10230_p11 }
  0x50   : > { %10240 = shalt.err (!%p10237_p2)
}
  0x51   : > { %s13155_s13 = sld [smem:[#allocation76_spill]]  ;;  %s8074_s0 = sadd.s32 4294967294, %s10345_s24  }
  0x52   : > { %s10556_s19 = sadd.s32 1, %s10345_s24   ;;  %s42_s20 = sadd.s32 1, %s10341_s23 }
  0x53   : > { %13156 = sst [smem:[#allocation21_spill]] %s10556_s19  ;;  %s39_s26 = ssub.s32 %s10345_s24, %s10556_s19 }
  0x54   : > { %p49_p7 = scmp.ne.s32.totalorder %s10341_s23, %s10337_s22  ;;  %p40_p5 = scmp.eq.s32.totalorder %s39_s26, 0 }
  0x55   : > { %p50_p8 = scmp.eq.s32.totalorder %s10345_s24, 0  ;;  %p55_p9 = scmp.ne.s32.totalorder %s10337_s22, %s10333_s21 }
  0x56   : > { %p394_p10 = scmp.eq.s32.totalorder %s10466_s27, 1  ;;  %p400_p0 = scmp.eq.s32.totalorder %s8074_s0, 1 }
  0x57   : > { %9861 = dma.hbm_to_vmem [thread:$0]  (!%p10480_p6), %s13155_s13, 1024, %s496_s1, [#allocation13], %s13129_s25, %s13129_s25, %s13130_s29  }
  0x58   : > { %s10568_s18 = scalar_select %p40_p5, %s10341_s23, %s42_s20  }
  0x59   : > { %p51_p11 = por %p50_p8, %p49_p7  ;;  %p10572_p12 = por %p13131_p1, %p55_p9 }
  0x5a   : > { %13157 = sst [smem:[#allocation22_spill]] %s10568_s18  ;;  %p10576_p6 = por %p394_p10, %p49_p7 }
  0x5b   : > { %s13158_s15 = scalar_select %p10572_p12, 1, 0 }
  0x5c   : > { %s13159_s1 = scalar_select %p10576_p6, 1, 0 }
  0x5d   : > { %p9875_p13 = scmp.lt.s32.totalorder %s10345_s24, 2  ;;  %s515_s17 = sand.u32 1, %s10341_s23  }
  0x5e   : > { %p10582_p2 = por %p400_p0, %p55_p9  ;;  %s8082_s16 = sshll.u32 %s515_s17, 7 }
  0x5f   : > { %s8292_s20 = sshll.u32 %s10345_s24, 11  ;;  %s13161_s29 = sld [smem:[#allocation71_spill]] }
  0x60   : > { %s13160_s30 = scalar_select %p10582_p2, 1, 0 }
  0x61   : > { %s519_s7 = scalar_lea.vmem [#allocation3], %s8082_s16  ;;  %p10592_p7 = pnand %p9875_p13, %p51_p11 }
  0x62   : > { %s526_s10 = sshll.u32 %s519_s7, 4  ;;  %s10598_s13 = scalar_lea.sflag [#allocation4], %s515_s17  ;;  %s10596_s10 = int_to_ptr.vmem [resolvable:$true] %s526_s10 }
  0x63   : > { %p10243_p8 = pneg %p10592_p7 }
  0x65   : > { %s10590_s4 = scalar_lea.hbm %s13161_s29, %s8292_s20  ;;  %s10246_s16 = scalar_lea.hbm %s13161_s29, 4096 }
  0x66   : > { %s10241_s18 = scalar_lea.hbm %s10590_s4, 2048  ;;  %p10247_p11 = scmp.lt.s32.totalorder %s10590_s4, %s13161_s29 }
  0x67   : > { %p10242_p5 = scmp.ne.s32.totalorder %s10590_s4, %s10241_s18  ;;  %p10248_p0 = scmp.lt.s32.totalorder %s10246_s16, %s10241_s18 }
  0x69   : > { %p10244_p9 = pnand %p10243_p8, %p10242_p5  ;;  %p10249_p13 = por %p10248_p0, %p10247_p11 }
  0x6b   : > { %p10245_p10 = pneg %p10244_p9 }
  0x6d   : > { %p10250_p4 = pnand %p10249_p13, %p10245_p10 }
  0x6f   : > { %10253 = shalt.err (!%p10250_p4)
}
  0x70   : > { %s10254_s17 = scalar_lea.vmem %s10596_s10, 2048  ;;  %s10354_s23 = smov [#allocation3]  }
  0x71   : > { %p10255_p1 = scmp.ne.s32.totalorder %s10596_s10, %s10254_s17  ;;  %s10259_s19 = sshll.u32 %s10354_s23, 4  ;;  %s10260_s19 = int_to_ptr.vmem [resolvable:$false] %s10259_s19 }
  0x72   : > { %s10261_s25 = scalar_lea.vmem %s10260_s19, 4096  ;;  %p10262_p9 = scmp.lt.s32.totalorder %s10596_s10, %s10260_s19 }
  0x73   : > { %p10257_p2 = pnand %p10255_p1, %p10243_p8  ;;  %p10263_p6 = scmp.lt.s32.totalorder %s10261_s25, %s10254_s17 }
  0x75   : > { %p10258_p5 = pneg %p10257_p2  ;;  %p10264_p12 = por %p10263_p6, %p10262_p9 }
  0x77   : > { %p10265_p3 = pnand %p10264_p12, %p10258_p5 }
  0x79   : > { %10268 = shalt.err (!%p10265_p3)
}
  0x7a   : > { %s13163_s18 = smov 4   ;;  %s13164_s20 = smov 64  }
  0x7b   : > { %9865 = dma.hbm_to_vmem [thread:$0]  (!%p10592_p7), %s10590_s4, 2048, %s10596_s10, %s10598_s13, %s13164_s20, %s13164_s20, %s13163_s18  }
  0x7c   : > { %p13165_p1 = scmp.ne.s32.totalorder %s13148_s28, 0 }
  0x7e   : > { %538 = sbr.rel (%p13165_p1) target bundleno = 1816 (0x718), region = 84 }
  0x83   : > { %s10625_s23 = sand.u32 1, %s10337_s22   ;;  %p13166_p3 = scmp.ne.s32.totalorder %s13158_s15, 0 }
  0x84   : > { %s8086_s19 = sshll.u32 %s10625_s23, 7  ;;  %s541_s16 = scalar_lea.sflag [#allocation4], %s10625_s23 }
  0x85   : > { %s10629_s7 = scalar_lea.vmem [#allocation3], %s8086_s19 }
  0x86   : > { %10312 = dma.done.wait (%p13166_p3), %s541_s16, 2048  }
  0x87   : > { %10314 = vsyncadd (%p13166_p3), %s541_s16, 4294965248  ;;  %p13167_p4 = scmp.eq.s32.totalorder %s10466_s27, 0 }
  0x89   : > { %10316 = dma.done.wait (%p13167_p4), [#allocation7], 10240   ;;  %p13168_p12 = pmov %p13167_p4 }
  0x8a   : > { %p13169_p6 = pmov %p13167_p4 }
  0x8b   : > { %10318 = vsyncadd (%p13168_p12), [#allocation7], 4294957056 }
  0x8c   : > { %10320 = dma.done.wait (%p13169_p6), [#allocation10], 10240   ;;  %p13170_p2 = pmov %p13167_p4 }
  0x8e   : > { %10322 = vsyncadd (%p13170_p2), [#allocation10], 4294957056  ;;  %p13171_p7 = pmov %p13170_p2 }
  0x8f   : > { %p13172_p8 = pmov %p13170_p2 }
  0x90   : > { %10324 = dma.done.wait (%p13171_p7), [#allocation13], 1024  }
  0x91   : > { %10326 = vsyncadd (%p13172_p8), [#allocation13], 4294966272  ;;  %v9924_v0 = vld [vmem:[#allocation6 + $0x38] sm:$0xff]   ;;  %v9925_v1 = vld [vmem:[#allocation6 + $0x30] sm:$0xff]   ;;  %v10355_v36 = vmov 0.0   ;;  %v10356_v40 = vmov 0.0|0.0  }
  0x92   : > { %8798 = vmatprep.subr.bf16.mxu0 %v9924_v0  ;;  %9806 = vmatprep.subr.bf16.mxu1 %v9924_v0  ;;  %v9926_v2 = vld [vmem:[#allocation6 + $0x28] sm:$0xff]   ;;  %v9927_v3 = vld [vmem:[#allocation6 + $0x20] sm:$0xff]   ;;  %v9928_v5 = vld [vmem:[#allocation6 + $0x18] sm:$0xff]   ;;  %1141 = vst [vmem:[#allocation2] sm:$0xff] %v10355_v36  ;;  %s13338_s26 = sld [smem:[#allocation77_spill]]  ;;  %s8092_s17 = sshll.u32 %s10625_s23, 8 }
  0x93   : > { %8799 = vmatpush3.bf16.msra.mxu0 %v9924_v0  ;;  %9814 = vmatpush3.bf16.msra.mxu1 %v9924_v0  ;;  %v9932_v4 = vld [vmem:[%s10629_s7] sm:$0xff]   ;;  %v9929_v7 = vld [vmem:[#allocation6 + $0x10] sm:$0xff]   ;;  %v9930_v8 = vld [vmem:[#allocation6 + $0x8] sm:$0xff]   ;;  %1142 = vst [vmem:[#allocation2 + $0x8] sm:$0xff] %v10355_v36  ;;  %s12968_s25 = scalar_lea.vmem [#allocation14], %s8092_s17  ;;  %s8293_s18 = sshll.u32 %s10466_s27, 12 }
  0x94   : > { %8800 = vmatprep.subr.bf16.mxu0 %v9925_v1  ;;  %9807 = vmatprep.subr.bf16.mxu1 %v9925_v1  ;;  %v9939_v6 = vld [vmem:[%s10629_s7 + $0x40] sm:$0xff]   ;;  %v9948_v10 = vld [vmem:[#allocation8 + $0x78] sm:$0xff]   ;;  %v9933_v11 = vld [vmem:[%s10629_s7 + $0x8] sm:$0xff]   ;;  %1143 = vst [vmem:[#allocation2 + $0x10] sm:$0xff] %v10355_v36  ;;  %s7953_s20 = sshll.u32 %s12968_s25, 4  ;;  %s7940_s27 = scalar_lea.sflag [#allocation5], %s10625_s23  ;;  %s13066_s20 = int_to_ptr.vmem [resolvable:$true] %s7953_s20 }
  0x95   : > { %8814 = vmatprep.mubr.bf16.mxu0 %v9932_v4  ;;  %8830 = vmatprep.mubr.bf16.mxu1 %v9939_v6  ;;  %v9931_v9 = vld [vmem:[#allocation6] sm:$0xff]   ;;  %v9941_v12 = vld [vmem:[%s10629_s7 + $0x48] sm:$0xff]   ;;  %v9949_v13 = vld [vmem:[#allocation8 + $0x38] sm:$0xff]   ;;  %1144 = vst [vmem:[#allocation2 + $0x18] sm:$0xff] %v10355_v36  ;;  %s10269_s10 = scalar_lea.vmem %s13066_s20, 4096  ;;  %p13340_p11 = scmp.ne.s32.totalorder %s13159_s1, 0 }
  0x96   : > { %v9934_v14 = vld [vmem:[%s10629_s7 + $0x10] sm:$0xff]   ;;  %v9952_v18 = vld [vmem:[#allocation8 + $0x68] sm:$0xff]   ;;  %v9935_v19 = vld [vmem:[%s10629_s7 + $0x18] sm:$0xff]   ;;  %1145 = vst [vmem:[#allocation2 + $0x20] sm:$0xff] %v10355_v36  ;;  %p10270_p10 = scmp.ne.s32.totalorder %s13066_s20, %s10269_s10  ;;  %s10357_s13 = smov [#allocation14]  }
  0x97   : > { %8801 = vmatpush3.bf16.msra.mxu0 %v9925_v1  ;;  %9815 = vmatpush3.bf16.msra.mxu1 %v9925_v1  ;;  %v9942_v15 = vld [vmem:[%s10629_s7 + $0x50] sm:$0xff]   ;;  %v9943_v20 = vld [vmem:[%s10629_s7 + $0x58] sm:$0xff]   ;;  %v9936_v21 = vld [vmem:[%s10629_s7 + $0x20] sm:$0xff]   ;;  %1148 = vst [vmem:[#allocation2 + $0x38] sm:$0xff] %v10355_v36  ;;  %s10273_s28 = sshll.u32 %s10357_s13, 4  ;;  %s10274_s28 = int_to_ptr.vmem [resolvable:$false] %s10273_s28 }
  0x98   : > { %8802 = vmatprep.subr.bf16.mxu0 %v9926_v2  ;;  %9808 = vmatprep.subr.bf16.mxu1 %v9926_v2  ;;  %v9950_v16 = vld [vmem:[#allocation8 + $0x70] sm:$0xff]   ;;  %v9944_v22 = vld [vmem:[%s10629_s7 + $0x60] sm:$0xff]   ;;  %v9937_v23 = vld [vmem:[%s10629_s7 + $0x28] sm:$0xff]   ;;  %1149 = vst [vmem:[#allocation2 + $0x40] sm:$0xff] %v10355_v36  ;;  %p10271_p0 = pnand %p10270_p10, %p13340_p11  ;;  %s10275_s15 = scalar_lea.vmem %s10274_s28, 8192 }
  0x99   : > { %v9951_v17 = vld [vmem:[#allocation8 + $0x30] sm:$0xff]   ;;  %v9945_v24 = vld [vmem:[%s10629_s7 + $0x68] sm:$0xff]   ;;  %v9940_v27 = vld [vmem:[%s10629_s7 + $0x38] sm:$0xff]   ;;  %1152 = vst [vmem:[#allocation2 + $0x58] sm:$0xff] %v10355_v36  ;;  %p10276_p5 = scmp.lt.s32.totalorder %s13066_s20, %s10274_s28  ;;  %p10277_p9 = scmp.lt.s32.totalorder %s10275_s15, %s10269_s10 }
  0x9a   : > { %v9938_v25 = vld [vmem:[%s10629_s7 + $0x30] sm:$0xff]   ;;  %v9947_v28 = vld [vmem:[%s10629_s7 + $0x78] sm:$0xff]   ;;  %v9954_v29 = vld [vmem:[#allocation8 + $0x60] sm:$0xff]   ;;  %1153 = vst [vmem:[#allocation2 + $0x60] sm:$0xff] %v10355_v36  ;;  %p10272_p13 = pneg %p10271_p0 }
  0x9b   : > { %8803 = vmatpush3.bf16.msra.mxu0 %v9926_v2  ;;  %9816 = vmatpush3.bf16.msra.mxu1 %v9926_v2  ;;  %v9946_v26 = vld [vmem:[%s10629_s7 + $0x70] sm:$0xff]   ;;  %v9953_v30 = vld [vmem:[#allocation8 + $0x28] sm:$0xff]   ;;  %v9956_v31 = vld [vmem:[#allocation8 + $0x58] sm:$0xff]   ;;  %1156 = vst [vmem:[#allocation2 + $0x78] sm:$0xff] %v10355_v36  ;;  %s13339_s7 = sld [smem:[#allocation78_spill]]  ;;  %p10278_p1 = por %p10277_p9, %p10276_p5 }
  0x9c   : > { %8804 = vmatprep.subr.bf16.mxu0 %v9927_v3  ;;  %9809 = vmatprep.subr.bf16.mxu1 %v9927_v3  ;;  %v9955_v32 = vld [vmem:[#allocation8 + $0x20] sm:$0xff]   ;;  %v9958_v33 = vld [vmem:[#allocation8 + $0x50] sm:$0xff]   ;;  %v9957_v34 = vld [vmem:[#allocation8 + $0x18] sm:$0xff]   ;;  %1157 = vst [vmem:[#allocation2 + $0x80] sm:$0xff] %v10355_v36 }
  0x9d   : > { %v9960_v35 = vld [vmem:[#allocation8 + $0x48] sm:$0xff]   ;;  %1160 = vst [vmem:[#allocation2 + $0x98] sm:$0xff] %v10355_v36  ;;  %1161 = vst [vmem:[#allocation2 + $0xa0] sm:$0xff] %v10355_v36  ;;  %v9959_v37 = vld [vmem:[#allocation8 + $0x10] sm:$0xff]   ;;  %p10279_p3 = pnand %p10278_p1, %p10272_p13 }
  0x9e   : > { %1164 = vst [vmem:[#allocation2 + $0xb8] sm:$0xff] %v10355_v36  ;;  %1165 = vst [vmem:[#allocation2 + $0xc0] sm:$0xff] %v10355_v36  ;;  %v9962_v38 = vld [vmem:[#allocation8 + $0x40] sm:$0xff]   ;;  %v9961_v39 = vld [vmem:[#allocation8 + $0x8] sm:$0xff]  }
  0x9f   : > { %8805 = vmatpush3.bf16.msra.mxu0 %v9927_v3  ;;  %9817 = vmatpush3.bf16.msra.mxu1 %v9927_v3  ;;  %1168 = vst [vmem:[#allocation2 + $0xd8] sm:$0xff] %v10355_v36  ;;  %1169 = vst [vmem:[#allocation2 + $0xe0] sm:$0xff] %v10355_v36  ;;  %v9963_v41 = vld [vmem:[#allocation8] sm:$0xff]   ;;  %v1247_v43 = vld [vmem:[#allocation2 + $0xf] sm:$0xff] }
  0xa0   : > { %8806 = vmatprep.subr.bf16.mxu0 %v9928_v5  ;;  %9810 = vmatprep.subr.bf16.mxu1 %v9928_v5  ;;  %1172 = vst [vmem:[#allocation2 + $0xf8] sm:$0xff] %v10355_v36  ;;  %1173 = vst [vmem:[#allocation2 + $0x100] sm:$0xff] %v10355_v36  ;;  %v1246_v42 = vld [vmem:[#allocation2 + $0x7] sm:$0xff]  ;;  %v10704_v45 = vld [vmem:[#allocation8 + $0xb8] sm:$0xff]  }
  0xa1   : > { %1176 = vst [vmem:[#allocation2 + $0x118] sm:$0xff] %v10355_v36  ;;  %1177 = vst [vmem:[#allocation2 + $0x120] sm:$0xff] %v10355_v36  ;;  %v1278_v44 = vpack.c.bf16 %v1247_v43, %v1246_v42  ;;  %v10707_v46 = vld [vmem:[#allocation8 + $0xf8] sm:$0xff]   ;;  %v10710_v47 = vld [vmem:[#allocation2 + $0x9] sm:$0xff]  ;;  %s13064_s4 = scalar_lea.hbm %s13339_s7, %s8293_s18 }
  0xa2   : > { %1180 = vst [vmem:[#allocation2 + $0x138] sm:$0xff] %v10355_v36  ;;  %1181 = vst [vmem:[#allocation2 + $0x140] sm:$0xff] %v10355_v36  ;;  %v10712_v48 = vld [vmem:[#allocation2 + $0x11] sm:$0xff]  ;;  %v10722_v50 = vld [vmem:[%s13112_s2] ss:$0 sm:$0xff] }
  0xa3   : > { %8807 = vmatpush3.bf16.msra.mxu0 %v9928_v5  ;;  %9818 = vmatpush3.bf16.msra.mxu1 %v9928_v5  ;;  %1184 = vst [vmem:[#allocation2 + $0x158] sm:$0xff] %v10355_v36  ;;  %1185 = vst [vmem:[#allocation2 + $0x160] sm:$0xff] %v10355_v36  ;;  %v10727_v52 = vld [vmem:[%s13113_s3] ss:$0 sm:$0xff] }
  0xa4   : > { %8808 = vmatprep.subr.bf16.mxu0 %v9929_v7  ;;  %9811 = vmatprep.subr.bf16.mxu1 %v9929_v7  ;;  %1188 = vst [vmem:[#allocation2 + $0x178] sm:$0xff] %v10355_v36  ;;  %1189 = vst [vmem:[#allocation2 + $0x180] sm:$0xff] %v10355_v36 }
  0xa5   : > { %1192 = vst [vmem:[#allocation2 + $0x198] sm:$0xff] %v10355_v36  ;;  %1193 = vst [vmem:[#allocation2 + $0x1a0] sm:$0xff] %v10355_v36 }
  0xa6   : > { %1196 = vst [vmem:[#allocation2 + $0x1b8] sm:$0xff] %v10355_v36  ;;  %1197 = vst [vmem:[#allocation2 + $0x1c0] sm:$0xff] %v10355_v36 }
  0xa7   : > { %8809 = vmatpush3.bf16.msra.mxu0 %v9929_v7  ;;  %9819 = vmatpush3.bf16.msra.mxu1 %v9929_v7  ;;  %1200 = vst [vmem:[#allocation2 + $0x1d8] sm:$0xff] %v10355_v36  ;;  %1201 = vst [vmem:[#allocation2 + $0x1e0] sm:$0xff] %v10355_v36 }
  0xa8   : > { %8810 = vmatprep.subr.bf16.mxu0 %v9930_v8  ;;  %9812 = vmatprep.subr.bf16.mxu1 %v9930_v8  ;;  %1204 = vst [vmem:[#allocation2 + $0x1f8] sm:$0xff] %v10355_v36  ;;  %1205 = vst [vmem:[#allocation2 + $0x200] sm:$0xff] %v10355_v36 }
  0xa9   : > { %1208 = vst [vmem:[#allocation2 + $0x218] sm:$0xff] %v10355_v36  ;;  %1209 = vst [vmem:[#allocation2 + $0x220] sm:$0xff] %v10355_v36 }
  0xaa   : > { %1210 = vst [vmem:[#allocation2 + $0x228] sm:$0xff] %v10355_v36  ;;  %1211 = vst [vmem:[#allocation2 + $0x230] sm:$0xff] %v10355_v36 }
  0xab   : > { %8811 = vmatpush3.bf16.msra.mxu0 %v9930_v8  ;;  %9820 = vmatpush3.bf16.msra.mxu1 %v9930_v8  ;;  %1212 = vst [vmem:[#allocation2 + $0x238] sm:$0xff] %v10355_v36  ;;  %4525 = vst [vmem:[#allocation2] sm:$0xff] %v10355_v36 }
  0xac   : > { %8812 = vmatprep.subr.bf16.mxu0 %v9931_v9  ;;  %9813 = vmatprep.subr.bf16.mxu1 %v9931_v9  ;;  %4526 = vst [vmem:[#allocation2 + $0x8] sm:$0xff] %v10355_v36  ;;  %4527 = vst [vmem:[#allocation2 + $0x10] sm:$0xff] %v10355_v36 }
  0xad   : > { %4528 = vst [vmem:[#allocation2 + $0x18] sm:$0xff] %v10355_v36 }
  0xaf   : > { %8813 = vmatpush3.bf16.msra.mxu0 %v9931_v9  ;;  %9821 = vmatpush3.bf16.msra.mxu1 %v9931_v9 }
  0xb0   : > { %8846 = vmatprep.subr.bf16.mxu1 %v9948_v10  ;;  %8894 = vmatprep.subr.bf16.mxu0 %v9949_v13 }
  0xb2   : > { %8815 = vmatmul.mubr.bf16.vlgmr.msra.gmra.mxu0 %v9933_v11  ;;  %8831 = vmatmul.mubr.bf16.vlgmr.msra.gmra.mxu1 %v9941_v12 }
  0xb3   : > { %8818 = vmatprep.mubr.bf16.mxu0 %v9934_v14  ;;  %8834 = vmatprep.mubr.bf16.mxu1 %v9942_v15 }
  0xb4   : > { %8847 = vmatpush3.bf16.msra.mxu1 %v9948_v10  ;;  %8895 = vmatpush3.bf16.msra.mxu0 %v9949_v13 }
  0xb5   : > { %8848 = vmatprep.subr.bf16.mxu1 %v9950_v16  ;;  %8896 = vmatprep.subr.bf16.mxu0 %v9951_v17 }
  0xb8   : > { %8849 = vmatpush3.bf16.msra.mxu1 %v9950_v16  ;;  %8897 = vmatpush3.bf16.msra.mxu0 %v9951_v17 }
  0xb9   : > { %8850 = vmatprep.subr.bf16.mxu1 %v9952_v18  ;;  %8898 = vmatprep.subr.bf16.mxu0 %v9953_v30 }
  0xba   : > { %8819 = vmatmul.mubr.bf16.gmra.mxu0 %v9935_v19  ;;  %8835 = vmatmul.mubr.bf16.gmra.mxu1 %v9943_v20 }
  0xbb   : > { %8822 = vmatprep.mubr.bf16.mxu0 %v9936_v21  ;;  %8838 = vmatprep.mubr.bf16.mxu1 %v9944_v22 }
  0xbc   : > { %8851 = vmatpush3.bf16.msra.mxu1 %v9952_v18  ;;  %8899 = vmatpush3.bf16.msra.mxu0 %v9953_v30 }
  0xbd   : > { %8852 = vmatprep.subr.bf16.mxu1 %v9954_v29  ;;  %8900 = vmatprep.subr.bf16.mxu0 %v9955_v32 }
  0xc0   : > { %8853 = vmatpush3.bf16.msra.mxu1 %v9954_v29  ;;  %8901 = vmatpush3.bf16.msra.mxu0 %v9955_v32 }
  0xc1   : > { %8854 = vmatprep.subr.bf16.mxu1 %v9956_v31  ;;  %8902 = vmatprep.subr.bf16.mxu0 %v9957_v34 }
  0xc2   : > { %8823 = vmatmul.mubr.bf16.gmra.mxu0 %v9937_v23  ;;  %8839 = vmatmul.mubr.bf16.gmra.mxu1 %v9945_v24 }
  0xc3   : > { %8826 = vmatprep.mubr.bf16.mxu0 %v9938_v25  ;;  %8842 = vmatprep.mubr.bf16.mxu1 %v9946_v26 }
  0xc4   : > { %8855 = vmatpush3.bf16.msra.mxu1 %v9956_v31  ;;  %8903 = vmatpush3.bf16.msra.mxu0 %v9957_v34 }
  0xc5   : > { %8856 = vmatprep.subr.bf16.mxu1 %v9958_v33  ;;  %8904 = vmatprep.subr.bf16.mxu0 %v9959_v37 }
  0xc8   : > { %8857 = vmatpush3.bf16.msra.mxu1 %v9958_v33  ;;  %8905 = vmatpush3.bf16.msra.mxu0 %v9959_v37 }
  0xc9   : > { %8858 = vmatprep.subr.bf16.mxu1 %v9960_v35  ;;  %8906 = vmatprep.subr.bf16.mxu0 %v9961_v39 }
  0xca   : > { %8827 = vmatmul.mubr.bf16.gmra.mxu0 %v9940_v27  ;;  %8843 = vmatmul.mubr.bf16.gmra.mxu1 %v9947_v28 }
  0xcb   : > { %8862 = vmatprep.mubr.bf16.mxu1 %v10356_v40  ;;  %8910 = vmatprep.mubr.bf16.mxu0 %v1278_v44 }
  0xcc   : > { %8859 = vmatpush3.bf16.msra.mxu1 %v9960_v35  ;;  %8907 = vmatpush3.bf16.msra.mxu0 %v9961_v39 }
  0xcd   : > { %8860 = vmatprep.subr.bf16.mxu1 %v9962_v38  ;;  %8908 = vmatprep.subr.bf16.mxu0 %v9963_v41 }
  0xd0   : > { %8861 = vmatpush3.bf16.msra.mxu1 %v9962_v38  ;;  %8909 = vmatpush3.bf16.msra.mxu0 %v9963_v41 }
  0xd1   : > { %8942 = vmatprep.subr.bf16.mxu1 %v10704_v45  ;;  %8990 = vmatprep.subr.bf16.mxu0 %v10707_v46 }
 0x172   : > { %v8816_v51 = vpop.f32.mrf.mxu0  ;;  %v8832_v53 = vpop.f32.mrf.mxu1 }
 0x173   : > { %v976_v54 = vmul.f32 %v8816_v51, %v10722_v50  ;;  %v992_v55 = vmul.f32 %v8832_v53, %v10722_v50 }
 0x174   : > { %v840_v56 = vpop.f32.mrf.mxu0  ;;  %v904_v57 = vpop.f32.mrf.mxu1 }
 0x175   : > { %v1015_v58 = vadd.f32 %v10727_v52, %v976_v54  ;;  %v974_v59 = vmul.f32 %v10722_v50, %v840_v56  ;;  %v1031_v60 = vadd.f32 %v10727_v52, %v992_v55  ;;  %v990_v61 = vmul.f32 %v10722_v50, %v904_v57 }
 0x176   : > { %v8817_v62 = vpop.f32.mrf.mxu0  ;;  %v8833_v63 = vpop.f32.mrf.mxu1 }
 0x177   : > { %vm1047_vm0 = vcmp.gt.f32.partialorder %v1015_v58, 0.0  ;;  %v1079_v0 = vmul.f32 0.1, %v1015_v58  ;;  %v1013_v1 = vadd.f32 %v10727_v52, %v974_v59  ;;  %v977_v2 = vmul.f32 %v8817_v62, %v10722_v50  ;;  %v9965_v59 = vld [vmem:[#allocation8 + $0xb0] sm:$0xff]  }
 0x178   : > { %v843_v3 = vpop.f32.mrf.mxu0  ;;  %vm1063_vm1 = vcmp.gt.f32.partialorder %v1031_v60, 0.0  ;;  %v1095_v4 = vmul.f32 0.1, %v1031_v60  ;;  %v1029_v5 = vadd.f32 %v10727_v52, %v990_v61  ;;  %v993_v6 = vmul.f32 %v8833_v63, %v10722_v50  ;;  %v907_v7 = vpop.f32.mrf.mxu1 }
 0x179   : > { %v10739_v8 = vsel %vm1047_vm0, %v1015_v58, %v1079_v0  ;;  %vm1045_vm2 = vcmp.gt.f32.partialorder %v1013_v1, 0.0  ;;  %v1077_v9 = vmul.f32 0.1, %v1013_v1  ;;  %v1016_v10 = vadd.f32 %v10727_v52, %v977_v2 }
 0x17a   : > { %1216 = vst [vmem:[#allocation2 + $0x48] sm:$0xff] %v10739_v8  ;;  %v975_v11 = vmul.f32 %v10722_v50, %v843_v3  ;;  %v8820_v12 = vpop.f32.mrf.mxu0  ;;  %v10744_v13 = vsel %vm1063_vm1, %v1031_v60, %v1095_v4  ;;  %vm1061_vm3 = vcmp.gt.f32.partialorder %v1029_v5, 0.0  ;;  %v1093_v14 = vmul.f32 0.1, %v1029_v5  ;;  %v8836_v15 = vpop.f32.mrf.mxu1 }
 0x17b   : > { %v1109_v16 = vsel %vm1045_vm2, %v1013_v1, %v1077_v9  ;;  %vm1048_vm4 = vcmp.gt.f32.partialorder %v1016_v10, 0.0  ;;  %v1080_v17 = vmul.f32 0.1, %v1016_v10  ;;  %v980_v18 = vmul.f32 %v8820_v12, %v10722_v50  ;;  %1232 = vst [vmem:[#allocation2 + $0x148] sm:$0xff] %v10744_v13 }
 0x17c   : > { %1214 = vst [vmem:[#allocation2 + $0x28] sm:$0xff] %v1109_v16  ;;  %v1014_v19 = vadd.f32 %v10727_v52, %v975_v11  ;;  %v856_v20 = vpop.f32.mrf.mxu0  ;;  %v10749_v21 = vsel %vm1061_vm3, %v1029_v5, %v1093_v14  ;;  %v1032_v22 = vadd.f32 %v10727_v52, %v993_v6  ;;  %v991_v23 = vmul.f32 %v10722_v50, %v907_v7  ;;  %v10753_v24 = vpop.f32.mrf.mxu1 }
 0x17d   : > { %v1112_v25 = vsel %vm1048_vm4, %v1016_v10, %v1080_v17  ;;  %v1019_v26 = vadd.f32 %v10727_v52, %v980_v18  ;;  %v978_v27 = vmul.f32 %v10722_v50, %v856_v20  ;;  %1230 = vst [vmem:[#allocation2 + $0x128] sm:$0xff] %v10749_v21  ;;  %v996_v28 = vmul.f32 %v8836_v15, %v10722_v50  ;;  %v10807_v17 = vld [vmem:[#allocation8 + $0xa8] sm:$0xff]  }
 0x17e   : > { %1217 = vst [vmem:[#allocation2 + $0x50] sm:$0xff] %v1112_v25  ;;  %vm1046_vm5 = vcmp.gt.f32.partialorder %v1014_v19, 0.0  ;;  %v1078_v29 = vmul.f32 0.1, %v1014_v19  ;;  %v8821_v30 = vpop.f32.mrf.mxu0  ;;  %v1344_v31 = vpack.c.bf16 %v1112_v25, %v10739_v8  ;;  %vm1064_vm6 = vcmp.gt.f32.partialorder %v1032_v22, 0.0  ;;  %v10760_v32 = vpop.f32.mrf.mxu1 }
 0x17f   : > { %vm1051_vm7 = vcmp.gt.f32.partialorder %v1019_v26, 0.0  ;;  %v1083_v33 = vmul.f32 0.1, %v1019_v26  ;;  %v1017_v34 = vadd.f32 %v10727_v52, %v978_v27  ;;  %v981_v35 = vmul.f32 %v8821_v30, %v10722_v50 }
 0x180   : > { %v1110_v37 = vsel %vm1046_vm5, %v1014_v19, %v1078_v29  ;;  %v859_v38 = vpop.f32.mrf.mxu0  ;;  %v1096_v39 = vmul.f32 0.1, %v1032_v22  ;;  %v1030_v40 = vadd.f32 %v10727_v52, %v991_v23  ;;  %v1035_v41 = vadd.f32 %v10727_v52, %v996_v28  ;;  %v10766_v42 = vpop.f32.mrf.mxu1 }
 0x181   : > { %1215 = vst [vmem:[#allocation2 + $0x30] sm:$0xff] %v1110_v37  ;;  %v10768_v43 = vsel %vm1051_vm7, %v1019_v26, %v1083_v33  ;;  %vm1049_vm8 = vcmp.gt.f32.partialorder %v1017_v34, 0.0  ;;  %v1081_v44 = vmul.f32 0.1, %v1017_v34  ;;  %v1020_v51 = vadd.f32 %v10727_v52, %v981_v35  ;;  %v1250_v53 = vld [vmem:[#allocation2 + $0x47] sm:$0xff] }
 0x182   : > { %v10771_v54 = vld [vmem:[#allocation2 + $0x47] sm:$0xff]  ;;  %1220 = vst [vmem:[#allocation2 + $0x88] sm:$0xff] %v10768_v43  ;;  %v979_v55 = vmul.f32 %v10722_v50, %v859_v38  ;;  %v8824_v56 = vpop.f32.mrf.mxu0  ;;  %v1343_v57 = vpack.c.bf16 %v1110_v37, %v1109_v16  ;;  %v10776_v58 = vsel %vm1064_vm6, %v1032_v22, %v1096_v39  ;;  %vm1062_vm9 = vcmp.gt.f32.partialorder %v1030_v40, 0.0  ;;  %v10778_v60 = vpop.f32.mrf.mxu1 }
 0x183   : > { %v10780_v61 = vld [vmem:[#allocation2 + $0x147] sm:$0xff]  ;;  %4533 = vst [vmem:[#allocation2 + $0x40] sm:$0xff] %v10355_v36  ;;  %v10786_v63 = vsel %vm1049_vm8, %v1017_v34, %v1081_v44  ;;  %vm1052_vm10 = vcmp.gt.f32.partialorder %v1020_v51, 0.0  ;;  %v1084_v0 = vmul.f32 0.1, %v1020_v51  ;;  %v984_v1 = vmul.f32 %v8824_v56, %v10722_v50  ;;  %1233 = vst [vmem:[#allocation2 + $0x150] sm:$0xff] %v10776_v58 }
 0x184   : > { %v10783_v62 = vld [vmem:[#allocation2 + $0x147] sm:$0xff]  ;;  %1218 = vst [vmem:[#allocation2 + $0x68] sm:$0xff] %v10786_v63  ;;  %v1018_v3 = vadd.f32 %v10727_v52, %v979_v55  ;;  %v872_v4 = vpop.f32.mrf.mxu0  ;;  %8863 = vmatmul.mubr.bf16.vlgmr.msra.gmra.mxu1 %v1343_v57  ;;  %v1094_v5 = vmul.f32 0.1, %v1030_v40  ;;  %v1099_v6 = vmul.f32 0.1, %v1035_v41  ;;  %v10799_v11 = vpop.f32.mrf.mxu1  ;;  %v994_v27 = vmul.f32 %v10722_v50, %v10753_v24 }
 0x185   : > { %v1248_v2 = vld [vmem:[#allocation2 + $0x27] sm:$0xff]  ;;  %4565 = vst [vmem:[#allocation2 + $0x140] sm:$0xff] %v10355_v36  ;;  %v10794_v7 = vsel %vm1052_vm10, %v1020_v51, %v1084_v0  ;;  %v1023_v8 = vadd.f32 %v10727_v52, %v984_v1  ;;  %v982_v9 = vmul.f32 %v10722_v50, %v872_v4  ;;  %8943 = vmatpush3.bf16.msra.mxu1 %v10704_v45  ;;  %v1251_v10 = vld [vmem:[#allocation2 + $0x4f] sm:$0xff]  ;;  %vm1067_vm11 = vcmp.gt.f32.partialorder %v1035_v41, 0.0 }
 0x186   : > { %4529 = vst [vmem:[#allocation2 + $0x20] sm:$0xff] %v10355_v36  ;;  %8866 = vmatprep.mubr.bf16.mxu1 %v1344_v31  ;;  %1221 = vst [vmem:[#allocation2 + $0x90] sm:$0xff] %v10794_v7  ;;  %vm1050_vm12 = vcmp.gt.f32.partialorder %v1018_v3, 0.0  ;;  %v1082_v12 = vmul.f32 0.1, %v1018_v3  ;;  %v8825_v14 = vpop.f32.mrf.mxu0  ;;  %v10802_v15 = vpack.c.bf16 %v1251_v10, %v1250_v53  ;;  %v10805_v16 = vsel %vm1062_vm9, %v1030_v40, %v1094_v5  ;;  %v10825_v33 = vpop.f32.mrf.mxu1  ;;  %v10835_v39 = vld [vmem:[#allocation8 + $0xa0] sm:$0xff]  }
 0x187   : > { %8944 = vmatprep.subr.bf16.mxu1 %v9965_v59  ;;  %vm1055_vm13 = vcmp.gt.f32.partialorder %v1023_v8, 0.0  ;;  %v1087_v45 = vmul.f32 0.1, %v1023_v8  ;;  %v1021_v18 = vadd.f32 %v10727_v52, %v982_v9  ;;  %v985_v19 = vmul.f32 %v8825_v14, %v10722_v50  ;;  %1231 = vst [vmem:[#allocation2 + $0x130] sm:$0xff] %v10805_v16  ;;  %v10842_v51 = vld [vmem:[#allocation2 + $0x127] sm:$0xff]  ;;  %v9970_v53 = vld [vmem:[#allocation8 + $0xf0] sm:$0xff]  }
 0x188   : > { %v1114_v20 = vsel %vm1050_vm12, %v1018_v3, %v1082_v12  ;;  %v875_v22 = vpop.f32.mrf.mxu0  ;;  %v1249_v23 = vld [vmem:[#allocation2 + $0x2f] sm:$0xff]  ;;  %v10813_v25 = vsel %vm1067_vm11, %v1035_v41, %v1099_v6  ;;  %v1346_v26 = vpack.c.bf16 %v10794_v7, %v10768_v43  ;;  %v1033_v38 = vadd.f32 %v10727_v52, %v994_v27  ;;  %v10852_v1 = vld [vmem:[#allocation2 + $0x127] sm:$0xff]  ;;  %v10860_v6 = vpop.f32.mrf.mxu1 }
 0x189   : > { %v10819_v28 = vld [vmem:[#allocation2 + $0x31] sm:$0xff]  ;;  %1219 = vst [vmem:[#allocation2 + $0x70] sm:$0xff] %v1114_v20  ;;  %v10821_v29 = vsel %vm1055_vm13, %v1023_v8, %v1087_v45  ;;  %vm1053_vm14 = vcmp.gt.f32.partialorder %v1021_v18, 0.0  ;;  %v1085_v30 = vmul.f32 0.1, %v1021_v18  ;;  %v1024_v31 = vadd.f32 %v10727_v52, %v985_v19  ;;  %1236 = vst [vmem:[#allocation2 + $0x188] sm:$0xff] %v10813_v25  ;;  %8945 = vmatpush3.bf16.msra.mxu1 %v9965_v59 }
 0x18a   : > { %4532 = vst [vmem:[#allocation2 + $0x38] sm:$0xff] %v10355_v36  ;;  %1224 = vst [vmem:[#allocation2 + $0xc8] sm:$0xff] %v10821_v29  ;;  %v983_v24 = vmul.f32 %v10722_v50, %v875_v22  ;;  %v8828_v34 = vpop.f32.mrf.mxu0  ;;  %v10830_v35 = vpack.c.bf16 %v1249_v23, %v1248_v2  ;;  %v1345_v37 = vpack.c.bf16 %v1114_v20, %v10786_v63  ;;  %8946 = vmatprep.subr.bf16.mxu1 %v10807_v17  ;;  %v1254_v57 = vld [vmem:[#allocation2 + $0x87] sm:$0xff]  ;;  %v10876_v45 = vld [vmem:[#allocation8 + $0x98] sm:$0xff]  }
 0x18b   : > { %v10837_v40 = vsel %vm1053_vm14, %v1021_v18, %v1085_v30  ;;  %vm1056_vm15 = vcmp.gt.f32.partialorder %v1024_v31, 0.0  ;;  %v1088_v41 = vmul.f32 0.1, %v1024_v31  ;;  %v988_v43 = vmul.f32 %v8828_v34, %v10722_v50  ;;  %v10840_v44 = vld [vmem:[#allocation2 + $0x67] sm:$0xff]  ;;  %4561 = vst [vmem:[#allocation2 + $0x120] sm:$0xff] %v10355_v36 }
 0x18c   : > { %1222 = vst [vmem:[#allocation2 + $0xa8] sm:$0xff] %v10837_v40  ;;  %v1022_v55 = vadd.f32 %v10727_v52, %v983_v24  ;;  %8911 = vmatmul.mubr.bf16.vlgmr.msra.gmra.mxu0 %v10830_v35  ;;  %v888_v56 = vpop.f32.mrf.mxu0  ;;  %8867 = vmatmul.mubr.bf16.gmra.mxu1 %v1345_v37  ;;  %vm1065_vm0 = vcmp.gt.f32.partialorder %v1033_v38, 0.0  ;;  %v1097_v59 = vmul.f32 0.1, %v1033_v38  ;;  %v997_v63 = vmul.f32 %v10760_v32, %v10722_v50  ;;  %v10850_v0 = vld [vmem:[#allocation2 + $0x87] sm:$0xff] }
 0x18d   : > { %4537 = vst [vmem:[#allocation2 + $0x60] sm:$0xff] %v10355_v36  ;;  %v10855_v2 = vsel %vm1056_vm15, %v1024_v31, %v1088_v41  ;;  %v1027_v3 = vadd.f32 %v10727_v52, %v988_v43  ;;  %8914 = vmatprep.mubr.bf16.mxu0 %v10802_v15  ;;  %v986_v4 = vmul.f32 %v10722_v50, %v888_v56  ;;  %v1255_v5 = vld [vmem:[#allocation2 + $0x8f] sm:$0xff]  ;;  %4541 = vst [vmem:[#allocation2 + $0x80] sm:$0xff] %v10355_v36  ;;  %v8844_v31 = vpop.f32.mrf.mxu1 }
 0x18e   : > { %8870 = vmatprep.mubr.bf16.mxu1 %v1346_v26  ;;  %1225 = vst [vmem:[#allocation2 + $0xd0] sm:$0xff] %v10855_v2  ;;  %vm1054_vm1 = vcmp.gt.f32.partialorder %v1022_v55, 0.0  ;;  %v1086_v32 = vmul.f32 0.1, %v1022_v55  ;;  %v8829_v7 = vpop.f32.mrf.mxu0  ;;  %v10865_v8 = vpack.c.bf16 %v1255_v5, %v1254_v57  ;;  %v10868_v9 = vsel %vm1065_vm0, %v1033_v38, %v1097_v59  ;;  %8947 = vmatpush3.bf16.msra.mxu1 %v10807_v17  ;;  %v9972_v18 = vld [vmem:[#allocation8 + $0xe8] sm:$0xff]  }
 0x18f   : > { %8991 = vmatpush3.bf16.msra.mxu0 %v10707_v46  ;;  %vm1059_vm2 = vcmp.gt.f32.partialorder %v1027_v3, 0.0  ;;  %v1091_v10 = vmul.f32 0.1, %v1027_v3  ;;  %v1025_v12 = vadd.f32 %v10727_v52, %v986_v4  ;;  %v989_v14 = vmul.f32 %v8829_v7, %v10722_v50  ;;  %1234 = vst [vmem:[#allocation2 + $0x168] sm:$0xff] %v10868_v9  ;;  %8948 = vmatprep.subr.bf16.mxu1 %v10835_v39  ;;  %v952_v7 = vpop.f32.mrf.mxu1 }
 0x190   : > { %8992 = vmatprep.subr.bf16.mxu0 %v9970_v53  ;;  %v1118_v19 = vsel %vm1054_vm1, %v1022_v55, %v1086_v32  ;;  %v891_v20 = vpop.f32.mrf.mxu0  ;;  %v1253_v17 = vld [vmem:[#allocation2 + $0x6f] sm:$0xff]  ;;  %v1036_v46 = vadd.f32 %v10727_v52, %v997_v63  ;;  %v995_v22 = vmul.f32 %v10722_v50, %v10766_v42  ;;  %v1000_v23 = vmul.f32 %v10778_v60, %v10722_v50 }
 0x191   : > { %1223 = vst [vmem:[#allocation2 + $0xb0] sm:$0xff] %v1118_v19  ;;  %v10885_v26 = vsel %vm1059_vm2, %v1027_v3, %v1091_v10  ;;  %vm1057_vm3 = vcmp.gt.f32.partialorder %v1025_v12, 0.0  ;;  %v1089_v27 = vmul.f32 0.1, %v1025_v12  ;;  %v1028_v30 = vadd.f32 %v10727_v52, %v989_v14  ;;  %v10888_v24 = vld [vmem:[#allocation2 + $0x71] sm:$0xff]  ;;  %v1258_v43 = vld [vmem:[#allocation2 + $0xc7] sm:$0xff] }
 0x192   : > { %1228 = vst [vmem:[#allocation2 + $0x108] sm:$0xff] %v10885_v26  ;;  %v987_v34 = vmul.f32 %v10722_v50, %v891_v20  ;;  %v10893_v42 = vpack.c.bf16 %v1253_v17, %v10840_v44  ;;  %vm1068_vm4 = vcmp.gt.f32.partialorder %v1036_v46, 0.0  ;;  %v1100_v60 = vmul.f32 0.1, %v1036_v46  ;;  %8949 = vmatpush3.bf16.msra.mxu1 %v10835_v39  ;;  %4540 = vst [vmem:[#allocation2 + $0x78] sm:$0xff] %v10355_v36  ;;  %v10910_v63 = vld [vmem:[#allocation2 + $0xc7] sm:$0xff]  ;;  %v8845_v17 = vpop.f32.mrf.mxu1 }
 0x193   : > { %8993 = vmatpush3.bf16.msra.mxu0 %v9970_v53  ;;  %v10897_v37 = vsel %vm1057_vm3, %v1025_v12, %v1089_v27  ;;  %vm1060_vm5 = vcmp.gt.f32.partialorder %v1028_v30, 0.0  ;;  %v1092_v38 = vmul.f32 0.1, %v1028_v30  ;;  %v1034_v41 = vadd.f32 %v10727_v52, %v995_v22  ;;  %8950 = vmatprep.subr.bf16.mxu1 %v10876_v45  ;;  %v1256_v57 = vld [vmem:[#allocation2 + $0xa7] sm:$0xff]  ;;  %v9971_v10 = vld [vmem:[#allocation8 + $0x90] sm:$0xff]   ;;  %4549 = vst [vmem:[#allocation2 + $0xc0] sm:$0xff] %v10355_v36 }
 0x194   : > { %8994 = vmatprep.subr.bf16.mxu0 %v9972_v18  ;;  %1226 = vst [vmem:[#allocation2 + $0xe8] sm:$0xff] %v10897_v37  ;;  %v1026_v55 = vadd.f32 %v10727_v52, %v987_v34  ;;  %8915 = vmatmul.mubr.bf16.gmra.mxu0 %v10893_v42  ;;  %v10904_v39 = vsel %vm1068_vm4, %v1036_v46, %v1100_v60  ;;  %v10908_v59 = vld [vmem:[#allocation2 + $0xa7] sm:$0xff] }
 0x195   : > { %v1039_v53 = vadd.f32 %v10727_v52, %v1000_v23  ;;  %v1347_v56 = vpack.c.bf16 %v1118_v19, %v10837_v40  ;;  %v10912_v3 = vsel %vm1060_vm5, %v1028_v30, %v1092_v38  ;;  %8918 = vmatprep.mubr.bf16.mxu0 %v10865_v8  ;;  %1237 = vst [vmem:[#allocation2 + $0x190] sm:$0xff] %v10904_v39  ;;  %vm1066_vm6 = vcmp.gt.f32.partialorder %v1034_v41, 0.0  ;;  %v1259_v32 = vld [vmem:[#allocation2 + $0xcf] sm:$0xff]  ;;  %v9973_v40 = vld [vmem:[#allocation8 + $0xe0] sm:$0xff]  }
 0x196   : > { %v1098_v4 = vmul.f32 0.1, %v1034_v41  ;;  %v1348_v5 = vpack.c.bf16 %v10855_v2, %v10821_v29  ;;  %4545 = vst [vmem:[#allocation2 + $0xa0] sm:$0xff] %v10355_v36  ;;  %1229 = vst [vmem:[#allocation2 + $0x110] sm:$0xff] %v10912_v3  ;;  %vm1058_vm7 = vcmp.gt.f32.partialorder %v1026_v55, 0.0  ;;  %v10924_v29 = vpack.c.bf16 %v1259_v32, %v1258_v43  ;;  %8951 = vmatpush3.bf16.msra.mxu1 %v10876_v45  ;;  %v9974_v38 = vld [vmem:[#allocation8 + $0x88] sm:$0xff]  }
 0x197   : > { %v1090_v12 = vmul.f32 0.1, %v1026_v55  ;;  %vm1071_vm8 = vcmp.gt.f32.partialorder %v1039_v53, 0.0  ;;  %v1103_v14 = vmul.f32 0.1, %v1039_v53  ;;  %8871 = vmatmul.mubr.bf16.gmra.mxu1 %v1347_v56  ;;  %8995 = vmatpush3.bf16.msra.mxu0 %v9972_v18  ;;  %v998_v2 = vmul.f32 %v10722_v50, %v10799_v11 }
 0x198   : > { %v10922_v19 = vsel %vm1066_vm6, %v1034_v41, %v1098_v4  ;;  %8874 = vmatprep.mubr.bf16.mxu1 %v1348_v5  ;;  %v1001_v20 = vmul.f32 %v10825_v33, %v10722_v50  ;;  %v1257_v23 = vld [vmem:[#allocation2 + $0xaf] sm:$0xff]  ;;  %v999_v18 = vmul.f32 %v10722_v50, %v10860_v6  ;;  %v1004_v27 = vmul.f32 %v8844_v31, %v10722_v50  ;;  %v9975_v4 = vld [vmem:[#allocation8 + $0xd8] sm:$0xff]   ;;  %v9977_v5 = vld [vmem:[#allocation8 + $0x80] sm:$0xff]  }
 0x199   : > { %v1122_v46 = vsel %vm1058_vm7, %v1026_v55, %v1090_v12  ;;  %1235 = vst [vmem:[#allocation2 + $0x170] sm:$0xff] %v10922_v19  ;;  %v10931_v22 = vsel %vm1071_vm8, %v1039_v53, %v1103_v14  ;;  %v10938_v11 = vpack.c.bf16 %v1257_v23, %v1256_v57  ;;  %v1037_v33 = vadd.f32 %v10727_v52, %v998_v2  ;;  %v955_v55 = vpop.f32.mrf.mxu1  ;;  %v9976_v14 = vld [vmem:[#allocation8 + $0xd0] sm:$0xff]  }
 0x19a   : > { %1227 = vst [vmem:[#allocation2 + $0xf0] sm:$0xff] %v1122_v46  ;;  %1240 = vst [vmem:[#allocation2 + $0x1c8] sm:$0xff] %v10931_v22  ;;  %v1040_v30 = vadd.f32 %v10727_v52, %v1001_v20  ;;  %v1349_v34 = vpack.c.bf16 %v1122_v46, %v10897_v37  ;;  %8952 = vmatprep.subr.bf16.mxu1 %v9971_v10  ;;  %v1038_v60 = vadd.f32 %v10727_v52, %v999_v18 }
 0x19b   : > { %v1043_v6 = vadd.f32 %v10727_v52, %v1004_v27  ;;  %v1350_v31 = vpack.c.bf16 %v10912_v3, %v10885_v26  ;;  %v1002_v45 = vmul.f32 %v10722_v50, %v952_v7  ;;  %8996 = vmatprep.subr.bf16.mxu0 %v9973_v40  ;;  %vm1069_vm9 = vcmp.gt.f32.partialorder %v1037_v33, 0.0  ;;  %8953 = vmatpush3.bf16.msra.mxu1 %v9971_v10  ;;  %v1260_v2 = vld [vmem:[#allocation2 + $0xe7] sm:$0xff]  ;;  %v10968_v27 = vld [vmem:[#allocation8 + $0x138] sm:$0xff]  }
 0x19c   : > { %v1101_v41 = vmul.f32 0.1, %v1037_v33  ;;  %vm1072_vm10 = vcmp.gt.f32.partialorder %v1040_v30, 0.0  ;;  %v1104_v43 = vmul.f32 0.1, %v1040_v30  ;;  %8997 = vmatpush3.bf16.msra.mxu0 %v9973_v40  ;;  %vm1070_vm11 = vcmp.gt.f32.partialorder %v1038_v60, 0.0  ;;  %8954 = vmatprep.subr.bf16.mxu1 %v9974_v38 }
 0x19d   : > { %8919 = vmatmul.mubr.bf16.gmra.mxu0 %v10938_v11  ;;  %v1102_v37 = vmul.f32 0.1, %v1038_v60  ;;  %vm1075_vm12 = vcmp.gt.f32.partialorder %v1043_v6, 0.0  ;;  %v1107_v53 = vmul.f32 0.1, %v1043_v6  ;;  %v1041_v57 = vadd.f32 %v10727_v52, %v1002_v45  ;;  %8998 = vmatprep.subr.bf16.mxu0 %v9975_v4  ;;  %v10978_v45 = vld [vmem:[#allocation2 + $0xe7] sm:$0xff] }
 0x19e   : > { %8922 = vmatprep.mubr.bf16.mxu0 %v10924_v29  ;;  %v10950_v26 = vsel %vm1069_vm9, %v1037_v33, %v1101_v41  ;;  %v10952_v56 = vsel %vm1072_vm10, %v1040_v30, %v1104_v43  ;;  %v1005_v3 = vmul.f32 %v8845_v17, %v10722_v50  ;;  %v1003_v10 = vmul.f32 %v10722_v50, %v955_v55  ;;  %v1263_v17 = vld [vmem:[#allocation2 + $0x10f] sm:$0xff]  ;;  %v1262_v33 = vld [vmem:[#allocation2 + $0x107] sm:$0xff] }
 0x19f   : > { %1238 = vst [vmem:[#allocation2 + $0x1a8] sm:$0xff] %v10950_v26  ;;  %1241 = vst [vmem:[#allocation2 + $0x1d0] sm:$0xff] %v10952_v56  ;;  %v10958_v32 = vsel %vm1070_vm11, %v1038_v60, %v1102_v37  ;;  %v1139_v7 = vsel %vm1075_vm12, %v1043_v6, %v1107_v53  ;;  %8875 = vmatmul.mubr.bf16.gmra.mxu1 %v1349_v34  ;;  %vm1073_vm13 = vcmp.gt.f32.partialorder %v1041_v57, 0.0  ;;  %v1105_v40 = vmul.f32 0.1, %v1041_v57  ;;  %v9978_v60 = vld [vmem:[#allocation8 + $0xc8] sm:$0xff]  }
 0x1a0   : > { %1239 = vst [vmem:[#allocation2 + $0x1b0] sm:$0xff] %v10958_v32  ;;  %1244 = vst [vmem:[#allocation2 + $0x208] sm:$0xff] %v1139_v7  ;;  %8878 = vmatprep.mubr.bf16.mxu1 %v1350_v31  ;;  %v1044_v12 = vadd.f32 %v10727_v52, %v1005_v3  ;;  %v1042_v46 = vadd.f32 %v10727_v52, %v1003_v10  ;;  %8955 = vmatpush3.bf16.msra.mxu1 %v9974_v38  ;;  %v10980_v38 = vld [vmem:[#allocation2 + $0x107] sm:$0xff]  ;;  %v1267_v55 = vld [vmem:[#allocation2 + $0x14f] sm:$0xff] }
 0x1a1   : > { %v1261_v20 = vld [vmem:[#allocation2 + $0xef] sm:$0xff]  ;;  %v10966_v18 = vsel %vm1073_vm13, %v1041_v57, %v1105_v40  ;;  %8956 = vmatprep.subr.bf16.mxu1 %v9977_v5  ;;  %8999 = vmatpush3.bf16.msra.mxu0 %v9975_v4  ;;  %v10971_v34 = vpack.c.bf16 %v1263_v17, %v1262_v33  ;;  %v1351_v31 = vpack.c.bf16 %v10805_v16, %v10749_v21  ;;  %v9979_v16 = vld [vmem:[#allocation8 + $0xc0] sm:$0xff]   ;;  %v11000_v57 = vld [vmem:[#allocation8 + $0x178] sm:$0xff]  }
 0x1a2   : > { %v10964_v23 = vpack.c.bf16 %v1261_v20, %v1260_v2  ;;  %vm1076_vm14 = vcmp.gt.f32.partialorder %v1044_v12, 0.0  ;;  %v1108_v50 = vmul.f32 0.1, %v1044_v12  ;;  %1242 = vst [vmem:[#allocation2 + $0x1e8] sm:$0xff] %v10966_v18  ;;  %vm1074_vm15 = vcmp.gt.f32.partialorder %v1042_v46, 0.0  ;;  %9000 = vmatprep.subr.bf16.mxu0 %v9976_v14  ;;  %4553 = vst [vmem:[#allocation2 + $0xe0] sm:$0xff] %v10355_v36 }
 0x1a3   : > { %v1106_v30 = vmul.f32 0.1, %v1042_v46  ;;  %v1352_v41 = vpack.c.bf16 %v10776_v58, %v10744_v13  ;;  %4557 = vst [vmem:[#allocation2 + $0x100] sm:$0xff] %v10355_v36  ;;  %v1265_v21 = vld [vmem:[#allocation2 + $0x12f] sm:$0xff]  ;;  %v1268_v13 = vld [vmem:[#allocation2 + $0x167] sm:$0xff]  ;;  %v10998_v53 = vpack.c.bf16 %v1267_v55, %v10780_v61  ;;  %v1353_v3 = vpack.c.bf16 %v10922_v19, %v10868_v9  ;;  %v11016_v9 = vld [vmem:[#allocation2 + $0x58] sm:$0xff] }
 0x1a4   : > { %v1140_v52 = vsel %vm1076_vm14, %v1044_v12, %v1108_v50  ;;  %8957 = vmatpush3.bf16.msra.mxu1 %v9977_v5  ;;  %v10993_v37 = vpack.c.bf16 %v1265_v21, %v10842_v51  ;;  %v10995_v58 = vld [vmem:[#allocation2 + $0x167] sm:$0xff]  ;;  %v1269_v51 = vld [vmem:[#allocation2 + $0x16f] sm:$0xff]  ;;  %v1354_v4 = vpack.c.bf16 %v10904_v39, %v10813_v25 }
 0x1a5   : > { %8923 = vmatmul.mubr.bf16.gmra.mxu0 %v10964_v23  ;;  %1245 = vst [vmem:[#allocation2 + $0x210] sm:$0xff] %v1140_v52  ;;  %v10974_v6 = vsel %vm1074_vm15, %v1042_v46, %v1106_v30  ;;  %9038 = vmatprep.subr.bf16.mxu1 %v10968_v27  ;;  %4569 = vst [vmem:[#allocation2 + $0x160] sm:$0xff] %v10355_v36  ;;  %v1270_v5 = vld [vmem:[#allocation2 + $0x187] sm:$0xff]  ;;  %v1271_v39 = vld [vmem:[#allocation2 + $0x18f] sm:$0xff]  ;;  %v11035_v20 = vpack.c.bf16 %v1269_v51, %v1268_v13 }
 0x1a6   : > { %8926 = vmatprep.mubr.bf16.mxu0 %v10971_v34  ;;  %1243 = vst [vmem:[#allocation2 + $0x1f0] sm:$0xff] %v10974_v6  ;;  %9001 = vmatpush3.bf16.msra.mxu0 %v9976_v14  ;;  %v11009_v61 = vld [vmem:[#allocation2 + $0x1c7] sm:$0xff]  ;;  %v11030_v14 = vld [vmem:[#allocation2 + $0x51] sm:$0xff]  ;;  %v11042_v50 = vpack.c.bf16 %v1271_v39, %v1270_v5  ;;  %v1355_v52 = vpack.c.bf16 %v10958_v32, %v10950_v26 }
 0x1a7   : > { %8879 = vmatmul.mubr.bf16.gmra.mxu1 %v1351_v31  ;;  %9002 = vmatprep.subr.bf16.mxu0 %v9978_v60  ;;  %v10989_v43 = vld [vmem:[#allocation2 + $0x207] sm:$0xff]  ;;  %v11033_v2 = vld [vmem:[#allocation2 + $0x51] sm:$0xff] }
 0x1a8   : > { %8882 = vmatprep.mubr.bf16.mxu1 %v1352_v41  ;;  %4589 = vst [vmem:[#allocation2 + $0x200] sm:$0xff] %v10355_v36  ;;  %v11013_v10 = vld [vmem:[#allocation2 + $0x187] sm:$0xff]  ;;  %v11037_v17 = vld [vmem:[#allocation2 + $0x91] sm:$0xff]  ;;  %4536 = vst [vmem:[#allocation2 + $0x58] sm:$0xff] %v11016_v9  ;;  %v1356_v41 = vpack.c.bf16 %v10952_v56, %v10931_v22 }
 0x1a9   : > { %v1272_v36 = vld [vmem:[#allocation2 + $0x1a7] sm:$0xff]  ;;  %4573 = vst [vmem:[#allocation2 + $0x180] sm:$0xff] %v11016_v9  ;;  %v11040_v46 = vld [vmem:[#allocation2 + $0x91] sm:$0xff] }
 0x1aa   : > { %9003 = vmatpush3.bf16.msra.mxu0 %v9978_v60  ;;  %v11019_v19 = vld [vmem:[#allocation2 + $0x1a7] sm:$0xff]  ;;  %v11044_v33 = vld [vmem:[#allocation2 + $0xb1] sm:$0xff]  ;;  %4544 = vst [vmem:[#allocation2 + $0x98] sm:$0xff] %v11016_v9 }
 0x1ab   : > { %9004 = vmatprep.subr.bf16.mxu0 %v9979_v16  ;;  %v11021_v25 = vld [vmem:[#allocation2 + $0x1c7] sm:$0xff]  ;;  %4577 = vst [vmem:[#allocation2 + $0x1a0] sm:$0xff] %v11016_v9  ;;  %v11047_v30 = vld [vmem:[#allocation2 + $0xb1] sm:$0xff] }
 0x1ac   : > { %v11011_v7 = vld [vmem:[#allocation2 + $0x211] sm:$0xff]  ;;  %v11024_v40 = vld [vmem:[#allocation2 + $0x1e7] sm:$0xff]  ;;  %4581 = vst [vmem:[#allocation2 + $0x1c0] sm:$0xff] %v11016_v9  ;;  %4548 = vst [vmem:[#allocation2 + $0xb8] sm:$0xff] %v11016_v9 }
 0x1ad   : > { %8927 = vmatmul.mubr.bf16.gmra.mxu0 %v10993_v37  ;;  %4592 = vst [vmem:[#allocation2 + $0x218] sm:$0xff] %v11016_v9  ;;  %v11028_v12 = vld [vmem:[#allocation2 + $0x1e7] sm:$0xff]  ;;  %v11052_v60 = vld [vmem:[#allocation2 + $0xd1] sm:$0xff] }
 0x1ae   : > { %8930 = vmatprep.mubr.bf16.mxu0 %v10998_v53  ;;  %9005 = vmatpush3.bf16.msra.mxu0 %v9979_v16  ;;  %4585 = vst [vmem:[#allocation2 + $0x1e0] sm:$0xff] %v11016_v9  ;;  %v11055_v31 = vld [vmem:[#allocation2 + $0xd1] sm:$0xff] }
 0x1af   : > { %8883 = vmatmul.mubr.bf16.gmra.mxu1 %v1353_v3  ;;  %9086 = vmatprep.subr.bf16.mxu0 %v11000_v57  ;;  %v11060_v21 = vld [vmem:[#allocation2 + $0xf1] sm:$0xff]  ;;  %4552 = vst [vmem:[#allocation2 + $0xd8] sm:$0xff] %v11016_v9 }
 0x1b0   : > { %8886 = vmatprep.mubr.bf16.mxu1 %v1354_v4  ;;  %v11062_v16 = vld [vmem:[#allocation2 + $0x131] sm:$0xff] }
 0x1b1   : > { %v11064_v55 = vld [vmem:[#allocation2 + $0x151] sm:$0xff] }
 0x1b2   : > { %v11067_v26 = vld [vmem:[#allocation2 + $0xf1] sm:$0xff] }
 0x1b3   : > { %13173 = vst [vmem:[#allocation23_spill] sm:$0xff] %v11067_v26  ;;  %v11069_v32 = vld [vmem:[#allocation2 + $0x111] sm:$0xff]  ;;  %4556 = vst [vmem:[#allocation2 + $0xf8] sm:$0xff] %v11016_v9 }
 0x1b4   : > { %v11071_v13 = vld [vmem:[#allocation2 + $0x171] sm:$0xff] }
 0x1b5   : > { %8931 = vmatmul.mubr.bf16.gmra.mxu0 %v11035_v20  ;;  %v11074_v3 = vld [vmem:[#allocation2 + $0x111] sm:$0xff] }
 0x1b6   : > { %8934 = vmatprep.mubr.bf16.mxu0 %v11042_v50  ;;  %13174 = vst [vmem:[#allocation24_spill] sm:$0xff] %v11074_v3  ;;  %v1273_v22 = vld [vmem:[#allocation2 + $0x1af] sm:$0xff]  ;;  %4560 = vst [vmem:[#allocation2 + $0x118] sm:$0xff] %v11016_v9 }
 0x1b7   : > { %8887 = vmatmul.mubr.bf16.gmra.mxu1 %v1355_v52  ;;  %v11077_v56 = vld [vmem:[#allocation2 + $0x131] sm:$0xff] }
 0x1b8   : > { %8890 = vmatprep.mubr.bf16.mxu1 %v1356_v41  ;;  %13175 = vst [vmem:[#allocation25_spill] sm:$0xff] %v11077_v56  ;;  %v11079_v51 = vld [vmem:[#allocation2 + $0x151] sm:$0xff]  ;;  %4564 = vst [vmem:[#allocation2 + $0x138] sm:$0xff] %v11016_v9  ;;  %v11094_v56 = vpack.c.bf16 %v1273_v22, %v1272_v36  ;;  %v1357_v36 = vpack.c.bf16 %v10974_v6, %v10966_v18 }
 0x1b9   : > { %13176 = vst [vmem:[#allocation26_spill] sm:$0xff] %v11079_v51  ;;  %v1275_v4 = vld [vmem:[#allocation2 + $0x1cf] sm:$0xff]  ;;  %4568 = vst [vmem:[#allocation2 + $0x158] sm:$0xff] %v11016_v9 }
 0x1ba   : > { %v11081_v5 = vld [vmem:[#allocation2 + $0x191] sm:$0xff] }
 0x1bb   : > { %v11085_v39 = vld [vmem:[#allocation2 + $0x171] sm:$0xff] }
 0x1bc   : > { %13177 = vst [vmem:[#allocation27_spill] sm:$0xff] %v11085_v39  ;;  %v11087_v52 = vld [vmem:[#allocation2 + $0x1b1] sm:$0xff]  ;;  %4572 = vst [vmem:[#allocation2 + $0x178] sm:$0xff] %v11016_v9  ;;  %v11103_v39 = vpack.c.bf16 %v1275_v4, %v11009_v61  ;;  %v13182_v61 = vpack.c.bf16 %v10712_v48, %v10710_v47  ;;  %v1795_v4 = vld [vmem:[#allocation2 + $0x29] sm:$0xff] }
 0x1bd   : > { %v11090_v41 = vld [vmem:[#allocation2 + $0x191] sm:$0xff]  ;;  %8935 = vmatmul.mubr.bf16.gmra.mxu0 %v11094_v56  ;;  %v9982_v47 = vld [vmem:[#allocation8 + $0x128] sm:$0xff]  }
 0x1be   : > { %13178 = vst [vmem:[#allocation28_spill] sm:$0xff] %v11090_v41  ;;  %v11092_v49 = vld [vmem:[#allocation2 + $0x1b1] sm:$0xff]  ;;  %4576 = vst [vmem:[#allocation2 + $0x198] sm:$0xff] %v11016_v9  ;;  %8938 = vmatprep.mubr.bf16.mxu0 %v11103_v39  ;;  %v1799_v48 = vld [vmem:[#allocation2 + $0x69] sm:$0xff] }
 0x1bf   : > { %13179 = vst [vmem:[#allocation29_spill] sm:$0xff] %v11092_v49  ;;  %v11096_v51 = vld [vmem:[#allocation2 + $0x1d1] sm:$0xff]  ;;  %4580 = vst [vmem:[#allocation2 + $0x1b8] sm:$0xff] %v11016_v9  ;;  %8891 = vmatmul.mubr.bf16.gmra.mxu1 %v1357_v36  ;;  %v11123_v49 = vpack.c.bf16 %v10819_v28, %v1795_v4  ;;  %v11134_v28 = vpack.c.bf16 %v10888_v24, %v1799_v48  ;;  %v9989_v4 = vld [vmem:[#allocation8 + $0x160] sm:$0xff]  }
 0x1c0   : > { %v11100_v3 = vld [vmem:[#allocation2 + $0x1d1] sm:$0xff]  ;;  %8958 = vmatprep.mubr.bf16.mxu1 %v13182_v61  ;;  %v1805_v61 = vld [vmem:[#allocation2 + $0xc9] sm:$0xff] }
 0x1c1   : > { %13180 = vst [vmem:[#allocation30_spill] sm:$0xff] %v11100_v3  ;;  %v11105_v26 = vld [vmem:[#allocation2 + $0x1f1] sm:$0xff]  ;;  %4584 = vst [vmem:[#allocation2 + $0x1d8] sm:$0xff] %v11016_v9 }
 0x1c2   : > { %v11108_v41 = vld [vmem:[#allocation2 + $0x1f1] sm:$0xff] }
 0x1c3   : > { %13181 = vst [vmem:[#allocation31_spill] sm:$0xff] %v11108_v41  ;;  %4588 = vst [vmem:[#allocation2 + $0x1f8] sm:$0xff] %v11016_v9  ;;  %v1277_v22 = vld [vmem:[#allocation2 + $0x1ef] sm:$0xff] }
 0x1c4   : > { %v11119_v3 = vpack.c.bf16 %v1277_v22, %v11024_v40  ;;  %v1797_v41 = vld [vmem:[#allocation2 + $0x49] sm:$0xff] }
 0x1c5   : > { %v9981_v18 = vld [vmem:[#allocation8 + $0x130] sm:$0xff]   ;;  %v11127_v36 = vpack.c.bf16 %v11030_v14, %v1797_v41 }
 0x1c6   : > { %8939 = vmatmul.mubr.bf16.gmra.mxu0 %v11119_v3  ;;  %v1801_v40 = vld [vmem:[#allocation2 + $0x89] sm:$0xff] }
 0x1c7   : > { %9006 = vmatprep.mubr.bf16.mxu0 %v10830_v35  ;;  %8959 = vmatmul.mubr.bf16.vlgmr.msra.gmra.mxu1 %v11123_v49  ;;  %v9986_v22 = vld [vmem:[#allocation8 + $0x170] sm:$0xff]   ;;  %v9983_v35 = vld [vmem:[#allocation8 + $0x120] sm:$0xff]   ;;  %v11138_v14 = vpack.c.bf16 %v11037_v17, %v1801_v40  ;;  %v11149_v17 = vpack.c.bf16 %v11052_v60, %v1805_v61 }
 0x1c8   : > { %9039 = vmatpush3.bf16.msra.mxu1 %v10968_v27  ;;  %8962 = vmatprep.mubr.bf16.mxu1 %v11127_v36  ;;  %v9988_v27 = vld [vmem:[#allocation8 + $0x168] sm:$0xff]   ;;  %v9992_v48 = vld [vmem:[#allocation8 + $0x150] sm:$0xff]   ;;  %v9993_v60 = vld [vmem:[#allocation8 + $0x100] sm:$0xff]  }
 0x1c9   : > { %9040 = vmatprep.subr.bf16.mxu1 %v9981_v18  ;;  %v1803_v41 = vld [vmem:[#allocation2 + $0xa9] sm:$0xff] }
 0x1ca   : > { %v1817_v61 = vld [vmem:[#allocation2 + $0x189] sm:$0xff] }
 0x1cc   : > { %9041 = vmatpush3.bf16.msra.mxu1 %v9981_v18  ;;  %v9991_v18 = vld [vmem:[#allocation8 + $0x158] sm:$0xff]  }
 0x1cd   : > { %9042 = vmatprep.subr.bf16.mxu1 %v9982_v47 }
 0x1ce   : > { %9007 = vmatmul.mubr.bf16.vlgmr.msra.gmra.mxu0 %v10802_v15  ;;  %v9984_v15 = vld [vmem:[#allocation8 + $0x118] sm:$0xff]  }
 0x1cf   : > { %9010 = vmatprep.mubr.bf16.mxu0 %v10893_v42  ;;  %9087 = vmatpush3.bf16.msra.mxu0 %v11000_v57  ;;  %v11145_v42 = vpack.c.bf16 %v11044_v33, %v1803_v41  ;;  %v9987_v57 = vld [vmem:[#allocation8 + $0x110] sm:$0xff]  }
 0x1d0   : > { %8963 = vmatmul.mubr.bf16.gmra.mxu1 %v11134_v28  ;;  %9088 = vmatprep.subr.bf16.mxu0 %v9986_v22  ;;  %v1809_v33 = vld [vmem:[#allocation2 + $0x109] sm:$0xff] }
 0x1d1   : > { %8966 = vmatprep.mubr.bf16.mxu1 %v11138_v14  ;;  %9043 = vmatpush3.bf16.msra.mxu1 %v9982_v47  ;;  %v1807_v47 = vld [vmem:[#allocation2 + $0xe9] sm:$0xff]  ;;  %v11159_v40 = vpack.c.bf16 %v11069_v32, %v1809_v33 }
 0x1d2   : > { %9044 = vmatprep.subr.bf16.mxu1 %v9983_v35  ;;  %v1815_v41 = vld [vmem:[#allocation2 + $0x169] sm:$0xff] }
 0x1d3   : > { %9089 = vmatpush3.bf16.msra.mxu0 %v9986_v22  ;;  %v9994_v22 = vld [vmem:[#allocation8 + $0x148] sm:$0xff]  }
 0x1d4   : > { %9090 = vmatprep.subr.bf16.mxu0 %v9988_v27  ;;  %v11208_v33 = vld [vmem:[#allocation2 + $0x227] sm:$0xff] }
 0x1d5   : > { %9045 = vmatpush3.bf16.msra.mxu1 %v9983_v35  ;;  %v1811_v35 = vld [vmem:[#allocation2 + $0x129] sm:$0xff]  ;;  %4593 = vst [vmem:[#allocation2 + $0x220] sm:$0xff] %v11016_v9 }
 0x1d6   : > { %9011 = vmatmul.mubr.bf16.gmra.mxu0 %v10865_v8  ;;  %9046 = vmatprep.subr.bf16.mxu1 %v9984_v15  ;;  %v9990_v8 = vld [vmem:[#allocation8 + $0x108] sm:$0xff]  }
 0x1d7   : > { %9014 = vmatprep.mubr.bf16.mxu0 %v10938_v11  ;;  %9091 = vmatpush3.bf16.msra.mxu0 %v9988_v27  ;;  %v11155_v11 = vpack.c.bf16 %v11060_v21, %v1807_v47  ;;  %v1813_v21 = vld [vmem:[#allocation2 + $0x149] sm:$0xff]  ;;  %v9995_v27 = vld [vmem:[#allocation8 + $0x140] sm:$0xff]  }
 0x1d8   : > { %8967 = vmatmul.mubr.bf16.gmra.mxu1 %v11145_v42  ;;  %9092 = vmatprep.subr.bf16.mxu0 %v9989_v4  ;;  %v11169_v32 = vpack.c.bf16 %v11064_v55, %v1813_v21  ;;  %v1821_v55 = vld [vmem:[#allocation2 + $0x1c9] sm:$0xff] }
 0x1d9   : > { %8970 = vmatprep.mubr.bf16.mxu1 %v11149_v17  ;;  %9047 = vmatpush3.bf16.msra.mxu1 %v9984_v15  ;;  %v10001_v15 = vld [vmem:[#allocation8 + $0x1f8] sm:$0xff]   ;;  %v9997_v47 = vld [vmem:[#allocation8 + $0x1b0] sm:$0xff]   ;;  %v2413_v21 = vld [vmem:[#allocation2 + $0xa8] sm:$0xff] }
 0x1da   : > { %9048 = vmatprep.subr.bf16.mxu1 %v9987_v57 }
 0x1db   : > { %9093 = vmatpush3.bf16.msra.mxu0 %v9989_v4 }
 0x1dc   : > { %9094 = vmatprep.subr.bf16.mxu0 %v9991_v18 }
 0x1dd   : > { %9049 = vmatpush3.bf16.msra.mxu1 %v9987_v57 }
 0x1de   : > { %9015 = vmatmul.mubr.bf16.gmra.mxu0 %v10924_v29  ;;  %9050 = vmatprep.subr.bf16.mxu1 %v9990_v8  ;;  %v9996_v29 = vld [vmem:[#allocation8 + $0x1b8] sm:$0xff]  }
 0x1df   : > { %9018 = vmatprep.mubr.bf16.mxu0 %v10964_v23  ;;  %9095 = vmatpush3.bf16.msra.mxu0 %v9991_v18  ;;  %v11165_v23 = vpack.c.bf16 %v11062_v16, %v1811_v35  ;;  %v1819_v16 = vld [vmem:[#allocation2 + $0x1a9] sm:$0xff] }
 0x1e0   : > { %8971 = vmatmul.mubr.bf16.gmra.mxu1 %v11155_v11  ;;  %9096 = vmatprep.subr.bf16.mxu0 %v9992_v48  ;;  %v11185_v4 = vpack.c.bf16 %v11087_v52, %v1819_v16  ;;  %v2410_v18 = vld [vmem:[#allocation2 + $0x70] sm:$0xff]  ;;  %v2411_v35 = vld [vmem:[#allocation2 + $0x88] sm:$0xff] }
 0x1e1   : > { %8974 = vmatprep.mubr.bf16.mxu1 %v11159_v40  ;;  %9051 = vmatpush3.bf16.msra.mxu1 %v9990_v8  ;;  %v2407_v8 = vld [vmem:[#allocation2 + $0x48] sm:$0xff]  ;;  %v2418_v16 = vld [vmem:[#allocation2 + $0xf0] sm:$0xff] }
 0x1e2   : > { %9052 = vmatprep.subr.bf16.mxu1 %v9993_v60 }
 0x1e3   : > { %9097 = vmatpush3.bf16.msra.mxu0 %v9992_v48  ;;  %v2412_v48 = vld [vmem:[#allocation2 + $0x90] sm:$0xff] }
 0x1e4   : > { %9098 = vmatprep.subr.bf16.mxu0 %v9994_v22 }
 0x1e5   : > { %9053 = vmatpush3.bf16.msra.mxu1 %v9993_v60  ;;  %v2414_v60 = vld [vmem:[#allocation2 + $0xb0] sm:$0xff] }
 0x1e6   : > { %9019 = vmatmul.mubr.bf16.gmra.mxu0 %v10971_v34  ;;  %9134 = vmatprep.subr.bf16.mxu1 %v9996_v29  ;;  %v11175_v34 = vpack.c.bf16 %v11071_v13, %v1815_v41  ;;  %v2406_v13 = vld [vmem:[#allocation2 + $0x30] sm:$0xff]  ;;  %v11217_v41 = vpack.c.bf16 %v2414_v60, %v2413_v21  ;;  %v11237_v60 = vld [vmem:[#allocation8 + $0x238] sm:$0xff]  }
 0x1e7   : > { %9022 = vmatprep.mubr.bf16.mxu0 %v10993_v37  ;;  %9099 = vmatpush3.bf16.msra.mxu0 %v9994_v22  ;;  %v11179_v37 = vpack.c.bf16 %v11081_v5, %v1817_v61  ;;  %v10002_v22 = vld [vmem:[#allocation8 + $0x1f0] sm:$0xff]   ;;  %v10000_v61 = vld [vmem:[#allocation8 + $0x198] sm:$0xff]  }
 0x1e8   : > { %8975 = vmatmul.mubr.bf16.gmra.mxu1 %v11165_v23  ;;  %9100 = vmatprep.subr.bf16.mxu0 %v9995_v27  ;;  %v2426_v21 = vld [vmem:[#allocation2 + $0x170] sm:$0xff] }
 0x1e9   : > { %8978 = vmatprep.mubr.bf16.mxu1 %v11169_v32 }
 0x1eb   : > { %9101 = vmatpush3.bf16.msra.mxu0 %v9995_v27  ;;  %v9999_v27 = vld [vmem:[#allocation8 + $0x1a0] sm:$0xff]  }
 0x1ec   : > { %9182 = vmatprep.subr.bf16.mxu0 %v10001_v15 }
 0x1ee   : > { %9023 = vmatmul.mubr.bf16.gmra.mxu0 %v10998_v53  ;;  %v11189_v53 = vpack.c.bf16 %v11096_v51, %v1821_v55  ;;  %v2408_v51 = vld [vmem:[#allocation2 + $0x50] sm:$0xff]  ;;  %v10005_v55 = vld [vmem:[#allocation8 + $0x1e0] sm:$0xff]  }
 0x1ef   : > { %9026 = vmatprep.mubr.bf16.mxu0 %v11035_v20  ;;  %v1823_v20 = vld [vmem:[#allocation2 + $0x1e9] sm:$0xff] }
 0x1f0   : > { %8979 = vmatmul.mubr.bf16.gmra.mxu1 %v11175_v34  ;;  %v11195_v5 = vpack.c.bf16 %v11105_v26, %v1823_v20  ;;  %v2409_v26 = vld [vmem:[#allocation2 + $0x68] sm:$0xff] }
 0x1f1   : > { %8982 = vmatprep.mubr.bf16.mxu1 %v11179_v37  ;;  %v2415_v20 = vld [vmem:[#allocation2 + $0xc8] sm:$0xff] }
 0x1f6   : > { %9027 = vmatmul.mubr.bf16.gmra.mxu0 %v11042_v50  ;;  %v2405_v50 = vld [vmem:[#allocation2 + $0x28] sm:$0xff] }
 0x1f7   : > { %9030 = vmatprep.mubr.bf16.mxu0 %v11094_v56  ;;  %v2437_v52 = vpack.c.bf16 %v2406_v13, %v2405_v50  ;;  %v2130_v56 = vld [vmem:[#allocation2 + $0x20f] sm:$0xff] }
 0x1f8   : > { %8983 = vmatmul.mubr.bf16.gmra.mxu1 %v11185_v4  ;;  %v11200_v57 = vpack.c.bf16 %v2130_v56, %v10989_v43  ;;  %v9998_v43 = vld [vmem:[#allocation8 + $0x1a8] sm:$0xff]   ;;  %v10003_v13 = vld [vmem:[#allocation8 + $0x190] sm:$0xff]  }
 0x1f9   : > { %8986 = vmatprep.mubr.bf16.mxu1 %v11189_v53  ;;  %v10006_v56 = vld [vmem:[#allocation8 + $0x188] sm:$0xff]  }
 0x1fe   : > { %9031 = vmatmul.mubr.bf16.gmra.mxu0 %v11103_v39  ;;  %v11203_v39 = vpack.c.bf16 %v2408_v51, %v2407_v8  ;;  %v2421_v51 = vld [vmem:[#allocation2 + $0x128] sm:$0xff]  ;;  %v10008_v8 = vld [vmem:[#allocation8 + $0x1d0] sm:$0xff]  }
 0x1ff   : > { %9034 = vmatprep.mubr.bf16.mxu0 %v11119_v3  ;;  %v11206_v3 = vpack.c.bf16 %v2410_v18, %v2409_v26  ;;  %v2422_v18 = vld [vmem:[#allocation2 + $0x130] sm:$0xff]  ;;  %v2419_v26 = vld [vmem:[#allocation2 + $0x108] sm:$0xff] }
 0x200   : > { %8987 = vmatmul.mubr.bf16.gmra.mxu1 %v11195_v5 }
 0x201   : > { %9054 = vmatprep.mubr.bf16.mxu1 %v2437_v52  ;;  %v10007_v52 = vld [vmem:[#allocation8 + $0x1d8] sm:$0xff]  }
 0x206   : > { %9035 = vmatmul.mubr.bf16.gmra.mxu0 %v11200_v57 }
 0x207   : > { %9102 = vmatprep.mubr.bf16.mxu0 %v11123_v49  ;;  %v11214_v49 = vpack.c.bf16 %v2412_v48, %v2411_v35  ;;  %v10010_v48 = vld [vmem:[#allocation8 + $0x1c8] sm:$0xff]  }
 0x208   : > { %9055 = vmatmul.mubr.bf16.vlgmr.msra.gmra.mxu1 %v11203_v39  ;;  %v2425_v35 = vld [vmem:[#allocation2 + $0x168] sm:$0xff] }
 0x209   : > { %9135 = vmatpush3.bf16.msra.mxu1 %v9996_v29  ;;  %9058 = vmatprep.mubr.bf16.mxu1 %v11206_v3  ;;  %v10004_v29 = vld [vmem:[#allocation8 + $0x1e8] sm:$0xff]  }
 0x20a   : > { %9136 = vmatprep.subr.bf16.mxu1 %v9997_v47 }
 0x20d   : > { %9137 = vmatpush3.bf16.msra.mxu1 %v9997_v47  ;;  %v10009_v47 = vld [vmem:[#allocation8 + $0x180] sm:$0xff]  }
 0x20e   : > { %9103 = vmatmul.mubr.bf16.vlgmr.msra.gmra.mxu0 %v11127_v36  ;;  %9138 = vmatprep.subr.bf16.mxu1 %v9998_v43  ;;  %v2416_v36 = vld [vmem:[#allocation2 + $0xd0] sm:$0xff] }
 0x20f   : > { %9106 = vmatprep.mubr.bf16.mxu0 %v11134_v28  ;;  %9183 = vmatpush3.bf16.msra.mxu0 %v10001_v15  ;;  %v11222_v28 = vpack.c.bf16 %v2416_v36, %v2415_v20  ;;  %v2417_v15 = vld [vmem:[#allocation2 + $0xe8] sm:$0xff]  ;;  %v2428_v36 = vld [vmem:[#allocation2 + $0x190] sm:$0xff] }
 0x210   : > { %9059 = vmatmul.mubr.bf16.gmra.mxu1 %v11214_v49  ;;  %9184 = vmatprep.subr.bf16.mxu0 %v10002_v22  ;;  %v11225_v50 = vpack.c.bf16 %v2418_v16, %v2417_v15  ;;  %v2429_v16 = vld [vmem:[#allocation2 + $0x1a8] sm:$0xff]  ;;  %v2432_v15 = vld [vmem:[#allocation2 + $0x1d0] sm:$0xff] }
 0x211   : > { %9062 = vmatprep.mubr.bf16.mxu1 %v11217_v41  ;;  %9139 = vmatpush3.bf16.msra.mxu1 %v9998_v43  ;;  %v11233_v43 = vpack.c.bf16 %v2422_v18, %v2421_v51  ;;  %v2431_v20 = vld [vmem:[#allocation2 + $0x1c8] sm:$0xff] }
 0x212   : > { %9140 = vmatprep.subr.bf16.mxu1 %v9999_v27  ;;  %v3021_v18 = vld [vmem:[#allocation2 + $0x6f] sm:$0xff] }
 0x213   : > { %9185 = vmatpush3.bf16.msra.mxu0 %v10002_v22  ;;  %v2424_v22 = vld [vmem:[#allocation2 + $0x150] sm:$0xff] }
 0x214   : > { %9186 = vmatprep.subr.bf16.mxu0 %v10004_v29 }
 0x215   : > { %9141 = vmatpush3.bf16.msra.mxu1 %v9999_v27 }
 0x216   : > { %9107 = vmatmul.mubr.bf16.gmra.mxu0 %v11138_v14  ;;  %9142 = vmatprep.subr.bf16.mxu1 %v10000_v61  ;;  %v2420_v14 = vld [vmem:[#allocation2 + $0x110] sm:$0xff] }
 0x217   : > { %9110 = vmatprep.mubr.bf16.mxu0 %v11145_v42  ;;  %9187 = vmatpush3.bf16.msra.mxu0 %v10004_v29  ;;  %v11230_v42 = vpack.c.bf16 %v2420_v14, %v2419_v26  ;;  %v11244_v29 = vpack.c.bf16 %v2426_v21, %v2425_v35  ;;  %v3019_v14 = vld [vmem:[#allocation2 + $0x4f] sm:$0xff] }
 0x218   : > { %9063 = vmatmul.mubr.bf16.gmra.mxu1 %v11222_v28  ;;  %9188 = vmatprep.subr.bf16.mxu0 %v10005_v55  ;;  %v3027_v21 = vld [vmem:[#allocation2 + $0xcf] sm:$0xff] }
 0x219   : > { %9066 = vmatprep.mubr.bf16.mxu1 %v11225_v50  ;;  %9143 = vmatpush3.bf16.msra.mxu1 %v10000_v61  ;;  %v2427_v61 = vld [vmem:[#allocation2 + $0x188] sm:$0xff] }
 0x21a   : > { %9144 = vmatprep.subr.bf16.mxu1 %v10003_v13 }
 0x21b   : > { %9189 = vmatpush3.bf16.msra.mxu0 %v10005_v55  ;;  %v2430_v55 = vld [vmem:[#allocation2 + $0x1b0] sm:$0xff] }
 0x21c   : > { %9190 = vmatprep.subr.bf16.mxu0 %v10007_v52 }
 0x21d   : > { %9145 = vmatpush3.bf16.msra.mxu1 %v10003_v13  ;;  %v11256_v13 = vld [vmem:[#allocation2 + $0x1e8] sm:$0xff] }
 0x21e   : > { %9111 = vmatmul.mubr.bf16.gmra.mxu0 %v11149_v17  ;;  %9146 = vmatprep.subr.bf16.mxu1 %v10006_v56  ;;  %v2423_v17 = vld [vmem:[#allocation2 + $0x148] sm:$0xff] }
 0x21f   : > { %9114 = vmatprep.mubr.bf16.mxu0 %v11155_v11  ;;  %9191 = vmatpush3.bf16.msra.mxu0 %v10007_v52  ;;  %v10011_v11 = vld [vmem:[#allocation8 + $0x1c0] sm:$0xff]   ;;  %v11240_v27 = vpack.c.bf16 %v2424_v22, %v2423_v17  ;;  %v11259_v52 = vpack.c.bf16 %v2432_v15, %v2431_v20  ;;  %v11282_v17 = vld [vmem:[#allocation2 + $0x231] sm:$0xff] }
 0x220   : > { %9067 = vmatmul.mubr.bf16.gmra.mxu1 %v11230_v42  ;;  %9192 = vmatprep.subr.bf16.mxu0 %v10008_v8  ;;  %4596 = vst [vmem:[#allocation2 + $0x238] sm:$0xff] %v11016_v9 }
 0x221   : > { %9070 = vmatprep.mubr.bf16.mxu1 %v11233_v43  ;;  %9147 = vmatpush3.bf16.msra.mxu1 %v10006_v56  ;;  %v2436_v56 = vld [vmem:[#allocation2 + $0x210] sm:$0xff] }
 0x222   : > { %9148 = vmatprep.subr.bf16.mxu1 %v10009_v47 }
 0x223   : > { %9193 = vmatpush3.bf16.msra.mxu0 %v10008_v8  ;;  %v3023_v8 = vld [vmem:[#allocation2 + $0x8f] sm:$0xff] }
 0x224   : > { %9194 = vmatprep.subr.bf16.mxu0 %v10010_v48 }
 0x225   : > { %9149 = vmatpush3.bf16.msra.mxu1 %v10009_v47  ;;  %v10013_v47 = vld [vmem:[#allocation8 + $0x230] sm:$0xff]  }
 0x226   : > { %9115 = vmatmul.mubr.bf16.gmra.mxu0 %v11159_v40  ;;  %9230 = vmatprep.subr.bf16.mxu1 %v11237_v60  ;;  %v11249_v40 = vpack.c.bf16 %v2428_v36, %v2427_v61 }
 0x227   : > { %9118 = vmatprep.mubr.bf16.mxu0 %v11165_v23  ;;  %9195 = vmatpush3.bf16.msra.mxu0 %v10010_v48  ;;  %v11252_v23 = vpack.c.bf16 %v2430_v55, %v2429_v16  ;;  %v11280_v48 = vld [vmem:[#allocation2 + $0x229] sm:$0xff]  ;;  %v10015_v16 = vld [vmem:[#allocation8 + $0x220] sm:$0xff]  }
 0x228   : > { %9071 = vmatmul.mubr.bf16.gmra.mxu1 %v11240_v27  ;;  %9196 = vmatprep.subr.bf16.mxu0 %v10011_v11  ;;  %v3677_v22 = vpack.c.bf16 %v11282_v17, %v11280_v48 }
 0x229   : > { %9074 = vmatprep.mubr.bf16.mxu1 %v11244_v29 }
 0x22b   : > { %9197 = vmatpush3.bf16.msra.mxu0 %v10011_v11 }
 0x22e   : > { %9119 = vmatmul.mubr.bf16.gmra.mxu0 %v11169_v32  ;;  %v2451_v32 = vpack.c.bf16 %v10974_v6, %v11256_v13 }
 0x22f   : > { %9122 = vmatprep.mubr.bf16.mxu0 %v11175_v34  ;;  %v2435_v34 = vld [vmem:[#allocation2 + $0x208] sm:$0xff] }
 0x230   : > { %9075 = vmatmul.mubr.bf16.gmra.mxu1 %v11249_v40  ;;  %v11266_v51 = vpack.c.bf16 %v2436_v56, %v2435_v34  ;;  %v10016_v56 = vld [vmem:[#allocation8 + $0x218] sm:$0xff]  }
 0x231   : > { %9078 = vmatprep.mubr.bf16.mxu1 %v11252_v23 }
 0x236   : > { %9123 = vmatmul.mubr.bf16.gmra.mxu0 %v11179_v37  ;;  %v3050_v37 = vpack.c.bf16 %v3019_v14, %v10771_v54  ;;  %v11278_v54 = vld [vmem:[#allocation2 + $0x22f] sm:$0xff] }
 0x237   : > { %9126 = vmatprep.mubr.bf16.mxu0 %v11185_v4  ;;  %v2741_v4 = vld [vmem:[#allocation2 + $0x209] sm:$0xff]  ;;  %4594 = vst [vmem:[#allocation2 + $0x228] sm:$0xff] %v11016_v9  ;;  %4595 = vst [vmem:[#allocation2 + $0x230] sm:$0xff] %v11016_v9 }
 0x238   : > { %9079 = vmatmul.mubr.bf16.gmra.mxu1 %v11259_v52  ;;  %v11272_v6 = vpack.c.bf16 %v11011_v7, %v2741_v4  ;;  %v3029_v14 = vld [vmem:[#allocation2 + $0xef] sm:$0xff] }
 0x239   : > { %9082 = vmatprep.mubr.bf16.mxu1 %v2451_v32 }
 0x23e   : > { %9127 = vmatmul.mubr.bf16.gmra.mxu0 %v11189_v53  ;;  %v3051_v53 = vpack.c.bf16 %v3021_v18, %v10840_v44  ;;  %v3031_v18 = vld [vmem:[#allocation2 + $0x10f] sm:$0xff] }
 0x23f   : > { %9130 = vmatprep.mubr.bf16.mxu0 %v11195_v5  ;;  %v3052_v5 = vpack.c.bf16 %v3023_v8, %v10850_v0  ;;  %v10014_v0 = vld [vmem:[#allocation8 + $0x228] sm:$0xff]   ;;  %v3055_v8 = vpack.c.bf16 %v3029_v14, %v10978_v45 }
 0x240   : > { %9083 = vmatmul.mubr.bf16.gmra.mxu1 %v11266_v51 }
 0x241   : > { %9150 = vmatprep.mubr.bf16.mxu1 %v3050_v37 }
 0x244   : > { %v8864_v26 = vpop.f32.mrf.mxu1 }
 0x246   : > { %9131 = vmatmul.mubr.bf16.gmra.mxu0 %v11272_v6  ;;  %v1457_v7 = vpop.f32.mrf.mxu1 }
 0x247   : > { %9198 = vmatprep.mubr.bf16.mxu0 %v11203_v39  ;;  %v3025_v39 = vld [vmem:[#allocation2 + $0xaf] sm:$0xff] }
 0x248   : > { %9151 = vmatmul.mubr.bf16.vlgmr.msra.gmra.mxu1 %v3051_v53  ;;  %v8865_v44 = vpop.f32.mrf.mxu1  ;;  %v3053_v36 = vpack.c.bf16 %v3025_v39, %v10908_v59 }
 0x249   : > { %9231 = vmatpush3.bf16.msra.mxu1 %v11237_v60  ;;  %9154 = vmatprep.mubr.bf16.mxu1 %v3052_v5  ;;  %v3054_v60 = vpack.c.bf16 %v3027_v21, %v10910_v63 }
 0x24a   : > { %9232 = vmatprep.subr.bf16.mxu1 %v10013_v47  ;;  %v1460_v35 = vpop.f32.mrf.mxu1 }
 0x24c   : > { %v8912_v11 = vpop.f32.mrf.mxu0  ;;  %v8868_v61 = vpop.f32.mrf.mxu1 }
 0x24d   : > { %9233 = vmatpush3.bf16.msra.mxu1 %v10013_v47  ;;  %v11292_v55 = vadd.f32 %v8912_v11, %v8864_v26  ;;  %v10017_v26 = vld [vmem:[#allocation8 + $0x210] sm:$0xff]   ;;  %v3056_v47 = vpack.c.bf16 %v3031_v18, %v10980_v38 }
 0x24e   : > { %9199 = vmatmul.mubr.bf16.vlgmr.msra.gmra.mxu0 %v11206_v3  ;;  %9234 = vmatprep.subr.bf16.mxu1 %v10014_v0  ;;  %v1666_v20 = vpop.f32.mrf.mxu0  ;;  %v1473_v15 = vpop.f32.mrf.mxu1 }
 0x24f   : > { %9202 = vmatprep.mubr.bf16.mxu0 %v11214_v49  ;;  %v11296_v32 = vadd.f32 %v1666_v20, %v1457_v7 }
 0x250   : > { %9155 = vmatmul.mubr.bf16.gmra.mxu1 %v3053_v36  ;;  %v8913_v34 = vpop.f32.mrf.mxu0  ;;  %v8869_v3 = vpop.f32.mrf.mxu1 }
 0x251   : > { %9158 = vmatprep.mubr.bf16.mxu1 %v3054_v60  ;;  %9235 = vmatpush3.bf16.msra.mxu1 %v10014_v0  ;;  %v11298_v59 = vadd.f32 %v8913_v34, %v8865_v44  ;;  %v10019_v60 = vld [vmem:[#allocation8 + $0x200] sm:$0xff]  }
 0x252   : > { %9236 = vmatprep.subr.bf16.mxu1 %v10015_v16  ;;  %v1669_v37 = vpop.f32.mrf.mxu0  ;;  %v1476_v4 = vpop.f32.mrf.mxu1 }
 0x253   : > { %v11300_v49 = vadd.f32 %v1669_v37, %v1460_v35  ;;  %v3033_v35 = vld [vmem:[#allocation2 + $0x12f] sm:$0xff] }
 0x254   : > { %v8916_v63 = vpop.f32.mrf.mxu0 }
 0x255   : > { %9237 = vmatpush3.bf16.msra.mxu1 %v10015_v16  ;;  %v11304_v53 = vadd.f32 %v8916_v63, %v8868_v61  ;;  %v3035_v61 = vld [vmem:[#allocation2 + $0x14f] sm:$0xff]  ;;  %v3057_v16 = vpack.c.bf16 %v3033_v35, %v10852_v1 }
 0x256   : > { %9203 = vmatmul.mubr.bf16.gmra.mxu0 %v11217_v41  ;;  %9238 = vmatprep.subr.bf16.mxu1 %v10016_v56  ;;  %v1682_v5 = vpop.f32.mrf.mxu0  ;;  %v10018_v41 = vld [vmem:[#allocation8 + $0x208] sm:$0xff]  }
 0x257   : > { %9206 = vmatprep.mubr.bf16.mxu0 %v11222_v28  ;;  %v8872_v7 = vpop.f32.mrf.mxu1  ;;  %v11308_v44 = vadd.f32 %v1682_v5, %v1473_v15  ;;  %v3058_v15 = vpack.c.bf16 %v3035_v61, %v10783_v62  ;;  %v3037_v1 = vld [vmem:[#allocation2 + $0x16f] sm:$0xff] }
 0x258   : > { %9159 = vmatmul.mubr.bf16.gmra.mxu1 %v3055_v8  ;;  %v8917_v0 = vpop.f32.mrf.mxu0  ;;  %v3039_v63 = vld [vmem:[#allocation2 + $0x18f] sm:$0xff] }
 0x259   : > { %9162 = vmatprep.mubr.bf16.mxu1 %v3056_v47  ;;  %9239 = vmatpush3.bf16.msra.mxu1 %v10016_v56  ;;  %v1489_v39 = vpop.f32.mrf.mxu1  ;;  %v11310_v45 = vadd.f32 %v8917_v0, %v8869_v3  ;;  %v3060_v5 = vpack.c.bf16 %v3039_v63, %v11013_v10 }
 0x25a   : > { %9240 = vmatprep.subr.bf16.mxu1 %v10017_v26  ;;  %v1685_v21 = vpop.f32.mrf.mxu0 }
 0x25b   : > { %v8873_v11 = vpop.f32.mrf.mxu1  ;;  %v11312_v28 = vadd.f32 %v1685_v21, %v1476_v4 }
 0x25d   : > { %9241 = vmatpush3.bf16.msra.mxu1 %v10017_v26  ;;  %v8920_v38 = vpop.f32.mrf.mxu0  ;;  %v1492_v36 = vpop.f32.mrf.mxu1  ;;  %v3059_v26 = vpack.c.bf16 %v3037_v1, %v10995_v58  ;;  %v3043_v58 = vld [vmem:[#allocation2 + $0x1cf] sm:$0xff] }
 0x25e   : > { %9207 = vmatmul.mubr.bf16.gmra.mxu0 %v11225_v50  ;;  %9242 = vmatprep.subr.bf16.mxu1 %v10018_v41  ;;  %v11316_v20 = vadd.f32 %v8920_v38, %v8872_v7 }
 0x25f   : > { %9210 = vmatprep.mubr.bf16.mxu0 %v11230_v42  ;;  %v1698_v34 = vpop.f32.mrf.mxu0  ;;  %v8876_v3 = vpop.f32.mrf.mxu1 }
 0x260   : > { %9163 = vmatmul.mubr.bf16.gmra.mxu1 %v3057_v16  ;;  %v11320_v56 = vadd.f32 %v1698_v34, %v1489_v39 }
 0x261   : > { %9166 = vmatprep.mubr.bf16.mxu1 %v3058_v15  ;;  %9243 = vmatpush3.bf16.msra.mxu1 %v10018_v41  ;;  %v8921_v14 = vpop.f32.mrf.mxu0  ;;  %v1505_v50 = vpop.f32.mrf.mxu1 }
 0x262   : > { %9244 = vmatprep.subr.bf16.mxu1 %v10019_v60  ;;  %v11322_v37 = vadd.f32 %v8921_v14, %v8873_v11 }
 0x263   : > { %v1701_v4 = vpop.f32.mrf.mxu0  ;;  %v8877_v18 = vpop.f32.mrf.mxu1 }
 0x264   : > { %v11324_v8 = vadd.f32 %v1701_v4, %v1492_v36 }
 0x265   : > { %9245 = vmatpush3.bf16.msra.mxu1 %v10019_v60  ;;  %v8924_v62 = vpop.f32.mrf.mxu0  ;;  %v1508_v42 = vpop.f32.mrf.mxu1  ;;  %v3062_v60 = vpack.c.bf16 %v3043_v58, %v11021_v25 }
 0x266   : > { %9211 = vmatmul.mubr.bf16.gmra.mxu0 %v11233_v43  ;;  %v11328_v47 = vadd.f32 %v8924_v62, %v8876_v3  ;;  %v3041_v43 = vld [vmem:[#allocation2 + $0x1af] sm:$0xff] }
 0x267   : > { %9214 = vmatprep.mubr.bf16.mxu0 %v11240_v27  ;;  %v1714_v7 = vpop.f32.mrf.mxu0  ;;  %v8880_v0 = vpop.f32.mrf.mxu1  ;;  %v3061_v27 = vpack.c.bf16 %v3041_v43, %v11019_v19  ;;  %v3630_v43 = vld [vmem:[#allocation2 + $0x49] sm:$0xff] }
 0x268   : > { %9167 = vmatmul.mubr.bf16.gmra.mxu1 %v3059_v26  ;;  %v11332_v39 = vadd.f32 %v1714_v7, %v1505_v50 }
 0x269   : > { %9170 = vmatprep.mubr.bf16.mxu1 %v3060_v5  ;;  %v8925_v41 = vpop.f32.mrf.mxu0  ;;  %v1521_v35 = vpop.f32.mrf.mxu1  ;;  %v3351_v5 = vld [vmem:[#allocation2 + $0x1f0] sm:$0xff] }
 0x26a   : > { %v11334_v21 = vadd.f32 %v8925_v41, %v8877_v18 }
 0x26b   : > { %v1717_v11 = vpop.f32.mrf.mxu0  ;;  %v8881_v61 = vpop.f32.mrf.mxu1 }
 0x26c   : > { %v11336_v38 = vadd.f32 %v1717_v11, %v1508_v42 }
 0x26d   : > { %v8928_v36 = vpop.f32.mrf.mxu0  ;;  %v11339_v10 = vpop.f32.mrf.mxu1 }
 0x26e   : > { %9215 = vmatmul.mubr.bf16.gmra.mxu0 %v11244_v29  ;;  %v11342_v16 = vadd.f32 %v8928_v36, %v8880_v0  ;;  %v3045_v29 = vld [vmem:[#allocation2 + $0x1ef] sm:$0xff] }
 0x26f   : > { %9218 = vmatprep.mubr.bf16.mxu0 %v11249_v40  ;;  %v1730_v15 = vpop.f32.mrf.mxu0  ;;  %v8884_v34 = vpop.f32.mrf.mxu1  ;;  %v3063_v25 = vpack.c.bf16 %v3045_v29, %v11028_v12  ;;  %v3369_v12 = vpack.c.bf16 %v3351_v5, %v11256_v13 }
 0x270   : > { %9171 = vmatmul.mubr.bf16.gmra.mxu1 %v3061_v27  ;;  %v11346_v3 = vadd.f32 %v1730_v15, %v1521_v35 }
 0x271   : > { %9174 = vmatprep.mubr.bf16.mxu1 %v3062_v60  ;;  %v8929_v14 = vpop.f32.mrf.mxu0  ;;  %v1537_v50 = vpop.f32.mrf.mxu1 }
 0x272   : > { %v11348_v1 = vadd.f32 %v8929_v14, %v8881_v61 }
 0x273   : > { %v11350_v4 = vpop.f32.mrf.mxu0  ;;  %v8885_v19 = vpop.f32.mrf.mxu1 }
 0x275   : > { %v8932_v18 = vpop.f32.mrf.mxu0  ;;  %v11353_v40 = vpop.f32.mrf.mxu1 }
 0x276   : > { %9219 = vmatmul.mubr.bf16.gmra.mxu0 %v11252_v23  ;;  %v11356_v63 = vadd.f32 %v8932_v18, %v8884_v34  ;;  %v3632_v34 = vld [vmem:[#allocation2 + $0x69] sm:$0xff] }
 0x277   : > { %9222 = vmatprep.mubr.bf16.mxu0 %v11259_v52  ;;  %v1746_v62 = vpop.f32.mrf.mxu0  ;;  %v8888_v42 = vpop.f32.mrf.mxu1  ;;  %v3065_v52 = vpack.c.bf16 %v11278_v54, %v11208_v33  ;;  %v3371_v33 = vpack.c.bf16 %v11016_v9, %v11016_v9 }
 0x278   : > { %9175 = vmatmul.mubr.bf16.gmra.mxu1 %v3063_v25  ;;  %v11359_v26 = vadd.f32 %v1746_v62, %v1537_v50 }
 0x279   : > { %9178 = vmatprep.mubr.bf16.mxu1 %v11200_v57  ;;  %v8933_v7 = vpop.f32.mrf.mxu0  ;;  %v1553_v0 = vpop.f32.mrf.mxu1  ;;  %v3662_v57 = vpack.c.bf16 %v11033_v2, %v3630_v43 }
 0x27a   : > { %v11362_v41 = vadd.f32 %v8933_v7, %v8885_v19  ;;  %v3663_v19 = vpack.c.bf16 %v10888_v24, %v3632_v34 }
 0x27b   : > { %v11364_v23 = vpop.f32.mrf.mxu0  ;;  %v8889_v35 = vpop.f32.mrf.mxu1 }
 0x27d   : > { %v8936_v11 = vpop.f32.mrf.mxu0  ;;  %v11369_v61 = vpop.f32.mrf.mxu1 }
 0x27e   : > { %9223 = vmatmul.mubr.bf16.gmra.mxu0 %v3369_v12  ;;  %v11371_v58 = vadd.f32 %v8936_v11, %v8888_v42  ;;  %v3638_v11 = vld [vmem:[#allocation2 + $0xc9] sm:$0xff] }
 0x27f   : > { %9226 = vmatprep.mubr.bf16.mxu0 %v11266_v51  ;;  %v1762_v36 = vpop.f32.mrf.mxu0  ;;  %v8892_v27 = vpop.f32.mrf.mxu1  ;;  %v3634_v51 = vld [vmem:[#allocation2 + $0x89] sm:$0xff] }
 0x280   : > { %9179 = vmatmul.mubr.bf16.gmra.mxu1 %v3065_v52  ;;  %v11375_v60 = vadd.f32 %v1762_v36, %v1553_v0  ;;  %v3664_v25 = vpack.c.bf16 %v11040_v46, %v3634_v51  ;;  %v3636_v52 = vld [vmem:[#allocation2 + $0xa9] sm:$0xff] }
 0x281   : > { %9246 = vmatprep.mubr.bf16.mxu1 %v3662_v57  ;;  %v8937_v13 = vpop.f32.mrf.mxu0  ;;  %v1569_v15 = vpop.f32.mrf.mxu1 }
 0x282   : > { %v11379_v54 = vadd.f32 %v8937_v13, %v8889_v35 }
 0x283   : > { %v11381_v14 = vpop.f32.mrf.mxu0  ;;  %v8893_v50 = vpop.f32.mrf.mxu1 }
 0x285   : > { %v11383_v2 = vpop.f32.mrf.mxu1 }
 0x286   : > { %v8940_v29 = vpop.f32.mrf.mxu0  ;;  %9227 = vmatmul.mubr.bf16.gmra.mxu0 %v3371_v33 }
 0x287   : > { %v11386_v18 = vadd.f32 %v8940_v29, %v8892_v27  ;;  %v8960_v42 = vpop.f32.mrf.mxu1  ;;  %v3665_v27 = vpack.c.bf16 %v11047_v30, %v3636_v52  ;;  %v13184_v52 = vld [vmem:[#allocation24_spill] sm:$0xff] }
 0x288   : > { %v1778_v62 = vpop.f32.mrf.mxu0  ;;  %9247 = vmatmul.mubr.bf16.vlgmr.msra.gmra.mxu1 %v3663_v19  ;;  %v2069_v5 = vadd.f32 %v8960_v42, %v11292_v55  ;;  %v3640_v19 = vld [vmem:[#allocation2 + $0xe9] sm:$0xff] }
 0x289   : > { %v11389_v9 = vadd.f32 %v1778_v62, %v1569_v15  ;;  %9250 = vmatprep.mubr.bf16.mxu1 %v3664_v25  ;;  %v1940_v0 = vpop.f32.mrf.mxu1  ;;  %v3666_v15 = vpack.c.bf16 %v11055_v31, %v3638_v11  ;;  %v3642_v62 = vld [vmem:[#allocation2 + $0x109] sm:$0xff] }
 0x28a   : > { %v8941_v7 = vpop.f32.mrf.mxu0  ;;  %v2067_v35 = vadd.f32 %v1940_v0, %v11296_v32 }
 0x28b   : > { %v11392_v12 = vadd.f32 %v8941_v7, %v8893_v50  ;;  %v8961_v43 = vpop.f32.mrf.mxu1  ;;  %v13183_v7 = vld [vmem:[#allocation23_spill] sm:$0xff] }
 0x28c   : > { %v11395_v24 = vpop.f32.mrf.mxu0  ;;  %v2070_v46 = vadd.f32 %v8961_v43, %v11298_v59  ;;  %v3667_v0 = vpack.c.bf16 %v13183_v7, %v3640_v19  ;;  %v3668_v43 = vpack.c.bf16 %v13184_v52, %v3642_v62 }
 0x28d   : > { %v1943_v36 = vpop.f32.mrf.mxu1 }
 0x28e   : > { %v9008_v57 = vpop.f32.mrf.mxu0  ;;  %v11402_v55 = vadd.f32 %v1943_v36, %v11300_v49 }
 0x28f   : > { %v11399_v13 = vadd.f32 %v9008_v57, %v2069_v5 }
 0x290   : > { %v2246_v33 = vpop.f32.mrf.mxu0  ;;  %v8964_v32 = vpop.f32.mrf.mxu1  ;;  %9251 = vmatmul.mubr.bf16.gmra.mxu1 %v3665_v27 }
 0x291   : > { %v11405_v34 = vadd.f32 %v2246_v33, %v2067_v35  ;;  %v2073_v50 = vadd.f32 %v8964_v32, %v11304_v53  ;;  %9254 = vmatprep.mubr.bf16.mxu1 %v3666_v15  ;;  %v3644_v33 = vld [vmem:[#allocation2 + $0x129] sm:$0xff] }
 0x292   : > { %v9009_v59 = vpop.f32.mrf.mxu0  ;;  %v1956_v51 = vpop.f32.mrf.mxu1 }
 0x293   : > { %v11408_v29 = vadd.f32 %v9009_v59, %v2070_v46  ;;  %v2071_v30 = vadd.f32 %v1956_v51, %v11308_v44 }
 0x294   : > { %v11411_v25 = vpop.f32.mrf.mxu0  ;;  %v8965_v49 = vpop.f32.mrf.mxu1 }
 0x295   : > { %v2074_v31 = vadd.f32 %v8965_v49, %v11310_v45 }
 0x296   : > { %v9012_v42 = vpop.f32.mrf.mxu0  ;;  %v1959_v5 = vpop.f32.mrf.mxu1 }
 0x297   : > { %v11415_v35 = vadd.f32 %v9012_v42, %v2073_v50  ;;  %v11418_v53 = vadd.f32 %v1959_v5, %v11312_v28  ;;  %v3646_v50 = vld [vmem:[#allocation2 + $0x149] sm:$0xff] }
 0x298   : > { %v2262_v11 = vpop.f32.mrf.mxu0  ;;  %v8968_v44 = vpop.f32.mrf.mxu1  ;;  %9255 = vmatmul.mubr.bf16.gmra.mxu1 %v3667_v0 }
 0x299   : > { %v11421_v46 = vadd.f32 %v2262_v11, %v2071_v30  ;;  %v2077_v57 = vadd.f32 %v8968_v44, %v11316_v20  ;;  %9258 = vmatprep.mubr.bf16.mxu1 %v3668_v43  ;;  %v13185_v30 = vld [vmem:[#allocation25_spill] sm:$0xff] }
 0x29a   : > { %v9013_v45 = vpop.f32.mrf.mxu0  ;;  %v1972_v36 = vpop.f32.mrf.mxu1  ;;  %v3669_v49 = vpack.c.bf16 %v13185_v30, %v3644_v33 }
 0x29b   : > { %v11424_v27 = vadd.f32 %v9013_v45, %v2074_v31  ;;  %v2075_v15 = vadd.f32 %v1972_v36, %v11320_v56  ;;  %v13186_v31 = vld [vmem:[#allocation26_spill] sm:$0xff]  ;;  %v3650_v36 = vld [vmem:[#allocation2 + $0x189] sm:$0xff] }
 0x29c   : > { %v11427_v32 = vpop.f32.mrf.mxu0  ;;  %v8969_v28 = vpop.f32.mrf.mxu1  ;;  %v3670_v42 = vpack.c.bf16 %v13186_v31, %v3646_v50 }
 0x29d   : > { %v2078_v59 = vadd.f32 %v8969_v28, %v11322_v37  ;;  %v10020_v37 = vld [vmem:[#allocation9 + $0x38] sm:$0xff]  }
 0x29e   : > { %v9016_v51 = vpop.f32.mrf.mxu0  ;;  %v1975_v19 = vpop.f32.mrf.mxu1  ;;  %9278 = vmatprep.subr.bf16.mxu0 %v10020_v37 }
 0x29f   : > { %v11431_v62 = vadd.f32 %v9016_v51, %v2077_v57  ;;  %v11434_v20 = vadd.f32 %v1975_v19, %v11324_v8  ;;  %v3648_v57 = vld [vmem:[#allocation2 + $0x169] sm:$0xff]  ;;  %9279 = vmatpush3.bf16.msra.mxu0 %v10020_v37 }
 0x2a0   : > { %v2278_v5 = vpop.f32.mrf.mxu0  ;;  %v8972_v56 = vpop.f32.mrf.mxu1  ;;  %9259 = vmatmul.mubr.bf16.gmra.mxu1 %v3669_v49  ;;  %v13188_v19 = vld [vmem:[#allocation28_spill] sm:$0xff] }
 0x2a1   : > { %v11437_v7 = vadd.f32 %v2278_v5, %v2075_v15  ;;  %v2081_v0 = vadd.f32 %v8972_v56, %v11328_v47  ;;  %9262 = vmatprep.mubr.bf16.mxu1 %v3670_v42  ;;  %v13187_v47 = vld [vmem:[#allocation27_spill] sm:$0xff] }
 0x2a2   : > { %v9017_v52 = vpop.f32.mrf.mxu0  ;;  %v1988_v43 = vpop.f32.mrf.mxu1  ;;  %v3671_v50 = vpack.c.bf16 %v13187_v47, %v3648_v57  ;;  %v3654_v57 = vld [vmem:[#allocation2 + $0x1c9] sm:$0xff] }
 0x2a3   : > { %v11440_v11 = vadd.f32 %v9017_v52, %v2078_v59  ;;  %v2079_v44 = vadd.f32 %v1988_v43, %v11332_v39  ;;  %v3672_v39 = vpack.c.bf16 %v13188_v19, %v3650_v36  ;;  %v3652_v52 = vld [vmem:[#allocation2 + $0x1a9] sm:$0xff] }
 0x2a4   : > { %v11443_v8 = vpop.f32.mrf.mxu0  ;;  %v8973_v45 = vpop.f32.mrf.mxu1 }
 0x2a5   : > { %v2082_v15 = vadd.f32 %v8973_v45, %v11334_v21  ;;  %v10021_v21 = vld [vmem:[#allocation9 + $0x30] sm:$0xff]  }
 0x2a6   : > { %v9020_v33 = vpop.f32.mrf.mxu0  ;;  %v1991_v28 = vpop.f32.mrf.mxu1  ;;  %9280 = vmatprep.subr.bf16.mxu0 %v10021_v21 }
 0x2a7   : > { %v11447_v51 = vadd.f32 %v9020_v33, %v2081_v0  ;;  %v11450_v59 = vadd.f32 %v1991_v28, %v11336_v38  ;;  %9281 = vmatpush3.bf16.msra.mxu0 %v10021_v21 }
 0x2a8   : > { %v2294_v30 = vpop.f32.mrf.mxu0  ;;  %v8976_v49 = vpop.f32.mrf.mxu1  ;;  %9263 = vmatmul.mubr.bf16.gmra.mxu1 %v3671_v50 }
 0x2a9   : > { %v11453_v31 = vadd.f32 %v2294_v30, %v2079_v44  ;;  %v2085_v42 = vadd.f32 %v8976_v49, %v11342_v16  ;;  %9266 = vmatprep.mubr.bf16.mxu1 %v3672_v39  ;;  %v13189_v16 = vld [vmem:[#allocation29_spill] sm:$0xff]  ;;  %v10022_v30 = vld [vmem:[#allocation9 + $0x28] sm:$0xff]  }
 0x2aa   : > { %v9021_v5 = vpop.f32.mrf.mxu0  ;;  %v2004_v56 = vpop.f32.mrf.mxu1  ;;  %v3673_v33 = vpack.c.bf16 %v13189_v16, %v3652_v52  ;;  %9282 = vmatprep.subr.bf16.mxu0 %v10022_v30 }
 0x2ab   : > { %v11456_v37 = vadd.f32 %v9021_v5, %v2082_v15  ;;  %v2083_v0 = vadd.f32 %v2004_v56, %v11346_v3  ;;  %v13190_v15 = vld [vmem:[#allocation30_spill] sm:$0xff]  ;;  %v3656_v56 = vld [vmem:[#allocation2 + $0x1e9] sm:$0xff]  ;;  %9283 = vmatpush3.bf16.msra.mxu0 %v10022_v30 }
 0x2ac   : > { %v11459_v38 = vpop.f32.mrf.mxu0  ;;  %v8977_v43 = vpop.f32.mrf.mxu1  ;;  %v3674_v47 = vpack.c.bf16 %v13190_v15, %v3654_v57 }
 0x2ad   : > { %v2086_v44 = vadd.f32 %v8977_v43, %v11348_v1 }
 0x2ae   : > { %v9024_v45 = vpop.f32.mrf.mxu0  ;;  %v11462_v36 = vpop.f32.mrf.mxu1 }
 0x2af   : > { %v11465_v28 = vadd.f32 %v9024_v45, %v2085_v42 }
 0x2b0   : > { %v2310_v50 = vpop.f32.mrf.mxu0  ;;  %v8980_v3 = vpop.f32.mrf.mxu1  ;;  %9267 = vmatmul.mubr.bf16.gmra.mxu1 %v3673_v33 }
 0x2b1   : > { %v11468_v19 = vadd.f32 %v2310_v50, %v2083_v0  ;;  %v2089_v39 = vadd.f32 %v8980_v3, %v11356_v63  ;;  %9270 = vmatprep.mubr.bf16.mxu1 %v3674_v47  ;;  %v13191_v63 = vld [vmem:[#allocation31_spill] sm:$0xff] }
 0x2b2   : > { %v9025_v49 = vpop.f32.mrf.mxu0  ;;  %v2020_v1 = vpop.f32.mrf.mxu1  ;;  %v3675_v45 = vpack.c.bf16 %v13191_v63, %v3656_v56  ;;  %v10023_v47 = vld [vmem:[#allocation9 + $0x20] sm:$0xff]  }
 0x2b3   : > { %v11471_v21 = vadd.f32 %v9025_v49, %v2086_v44  ;;  %v2087_v5 = vadd.f32 %v2020_v1, %v11359_v26  ;;  %9284 = vmatprep.subr.bf16.mxu0 %v10023_v47 }
 0x2b4   : > { %v11474_v42 = vpop.f32.mrf.mxu0  ;;  %v8981_v52 = vpop.f32.mrf.mxu1  ;;  %9285 = vmatpush3.bf16.msra.mxu0 %v10023_v47 }
 0x2b5   : > { %v2090_v43 = vadd.f32 %v8981_v52, %v11362_v41 }
 0x2b6   : > { %v9028_v0 = vpop.f32.mrf.mxu0  ;;  %v11477_v57 = vpop.f32.mrf.mxu1 }
 0x2b7   : > { %v11480_v16 = vadd.f32 %v9028_v0, %v2089_v39  ;;  %v10024_v0 = vld [vmem:[#allocation9 + $0x18] sm:$0xff]  }
 0x2b8   : > { %v2326_v33 = vpop.f32.mrf.mxu0  ;;  %v8984_v44 = vpop.f32.mrf.mxu1  ;;  %9271 = vmatmul.mubr.bf16.gmra.mxu1 %v3675_v45  ;;  %9286 = vmatprep.subr.bf16.mxu0 %v10024_v0 }
 0x2b9   : > { %v11482_v15 = vadd.f32 %v2326_v33, %v2087_v5  ;;  %v2093_v26 = vadd.f32 %v8984_v44, %v11371_v58  ;;  %9274 = vmatprep.mubr.bf16.mxu1 %v11272_v6  ;;  %9287 = vmatpush3.bf16.msra.mxu0 %v10024_v0 }
 0x2ba   : > { %v9029_v50 = vpop.f32.mrf.mxu0  ;;  %v2036_v3 = vpop.f32.mrf.mxu1 }
 0x2bb   : > { %v11486_v41 = vadd.f32 %v9029_v50, %v2090_v43  ;;  %v2091_v30 = vadd.f32 %v2036_v3, %v11375_v60 }
 0x2bc   : > { %v11489_v49 = vpop.f32.mrf.mxu0  ;;  %v8985_v39 = vpop.f32.mrf.mxu1 }
 0x2bd   : > { %v2094_v1 = vadd.f32 %v8985_v39, %v11379_v54 }
 0x2be   : > { %v9032_v5 = vpop.f32.mrf.mxu0  ;;  %v11492_v56 = vpop.f32.mrf.mxu1 }
 0x2bf   : > { %v11494_v58 = vadd.f32 %v9032_v5, %v2093_v26 }
 0x2c0   : > { %v2342_v6 = vpop.f32.mrf.mxu0  ;;  %v8988_v52 = vpop.f32.mrf.mxu1  ;;  %9275 = vmatmul.mubr.bf16.gmra.mxu1 %v3677_v22 }
 0x2c1   : > { %v11499_v43 = vadd.f32 %v2342_v6, %v2091_v30  ;;  %v2097_v60 = vadd.f32 %v8988_v52, %v11386_v18  ;;  %v10025_v18 = vld [vmem:[#allocation9 + $0x10] sm:$0xff]  }
 0x2c2   : > { %v9033_v63 = vpop.f32.mrf.mxu0  ;;  %v2052_v45 = vpop.f32.mrf.mxu1  ;;  %9288 = vmatprep.subr.bf16.mxu0 %v10025_v18 }
 0x2c3   : > { %v11502_v33 = vadd.f32 %v9033_v63, %v2094_v1  ;;  %v2095_v54 = vadd.f32 %v2052_v45, %v11389_v9  ;;  %9289 = vmatpush3.bf16.msra.mxu0 %v10025_v18 }
 0x2c4   : > { %v11505_v44 = vpop.f32.mrf.mxu0  ;;  %v8989_v26 = vpop.f32.mrf.mxu1 }
 0x2c5   : > { %v2098_v47 = vadd.f32 %v8989_v26, %v11392_v12 }
 0x2c6   : > { %v9036_v48 = vpop.f32.mrf.mxu0  ;;  %v11508_v17 = vpop.f32.mrf.mxu1 }
 0x2c7   : > { %v11510_v22 = vadd.f32 %v9036_v48, %v2097_v60  ;;  %v10026_v48 = vld [vmem:[#allocation9 + $0x8] sm:$0xff]  }
 0x2c8   : > { %v2358_v50 = vpop.f32.mrf.mxu0  ;;  %v9056_v3 = vpop.f32.mrf.mxu1  ;;  %9290 = vmatprep.subr.bf16.mxu0 %v10026_v48 }
 0x2c9   : > { %v11512_v30 = vadd.f32 %v2358_v50, %v2095_v54  ;;  %v2681_v39 = vadd.f32 %v9056_v3, %v11399_v13  ;;  %9291 = vmatpush3.bf16.msra.mxu0 %v10026_v48 }
 0x2ca   : > { %v9037_v9 = vpop.f32.mrf.mxu0  ;;  %v2552_v1 = vpop.f32.mrf.mxu1 }
 0x2cb   : > { %v11515_v5 = vadd.f32 %v9037_v9, %v2098_v47  ;;  %v2679_v12 = vadd.f32 %v2552_v1, %v11405_v34 }
 0x2cc   : > { %v11518_v6 = vpop.f32.mrf.mxu0  ;;  %v9057_v52 = vpop.f32.mrf.mxu1 }
 0x2cd   : > { %v11521_v60 = vadd.f32 %v9057_v52, %v11408_v29 }
 0x2ce   : > { %v9104_v0 = vpop.f32.mrf.mxu0  ;;  %v11523_v63 = vpop.f32.mrf.mxu1 }
 0x2cf   : > { %v11525_v45 = vadd.f32 %v9104_v0, %v2681_v39 }
 0x2d0   : > { %v2858_v13 = vpop.f32.mrf.mxu0  ;;  %v9060_v54 = vpop.f32.mrf.mxu1 }
 0x2d1   : > { %v11527_v26 = vadd.f32 %v2858_v13, %v2679_v12  ;;  %v2685_v47 = vadd.f32 %v9060_v54, %v11415_v35 }
 0x2d2   : > { %v11530_v18 = vpop.f32.mrf.mxu0  ;;  %v2568_v34 = vpop.f32.mrf.mxu1 }
 0x2d3   : > { %v2683_v50 = vadd.f32 %v2568_v34, %v11421_v46  ;;  %v10027_v46 = vld [vmem:[#allocation9] sm:$0xff]  }
 0x2d4   : > { %v11533_v29 = vpop.f32.mrf.mxu0  ;;  %v9061_v3 = vpop.f32.mrf.mxu1  ;;  %9292 = vmatprep.subr.bf16.mxu0 %v10027_v46 }
 0x2d5   : > { %v11536_v39 = vadd.f32 %v9061_v3, %v11424_v27  ;;  %9293 = vmatpush3.bf16.msra.mxu0 %v10027_v46 }
 0x2d6   : > { %v9108_v9 = vpop.f32.mrf.mxu0  ;;  %v11538_v1 = vpop.f32.mrf.mxu1 }
 0x2d7   : > { %13192 = vst [vmem:[#allocation23_spill] sm:$0xff] %v11536_v39  ;;  %v11540_v12 = vadd.f32 %v9108_v9, %v2685_v47 }
 0x2d8   : > { %v2874_v35 = vpop.f32.mrf.mxu0  ;;  %v9064_v52 = vpop.f32.mrf.mxu1 }
 0x2d9   : > { %v11542_v0 = vadd.f32 %v2874_v35, %v2683_v50  ;;  %v2689_v13 = vadd.f32 %v9064_v52, %v11431_v62 }
 0x2da   : > { %v11545_v54 = vpop.f32.mrf.mxu0  ;;  %v2584_v34 = vpop.f32.mrf.mxu1 }
 0x2db   : > { %13193 = vst [vmem:[#allocation24_spill] sm:$0xff] %v11545_v54  ;;  %v2687_v48 = vadd.f32 %v2584_v34, %v11437_v7 }
 0x2dc   : > { %v11548_v27 = vpop.f32.mrf.mxu0  ;;  %v9065_v3 = vpop.f32.mrf.mxu1 }
 0x2dd   : > { %13194 = vst [vmem:[#allocation25_spill] sm:$0xff] %v11548_v27  ;;  %v11551_v47 = vadd.f32 %v9065_v3, %v11440_v11 }
 0x2de   : > { %v9112_v9 = vpop.f32.mrf.mxu0  ;;  %v11553_v39 = vpop.f32.mrf.mxu1 }
 0x2df   : > { %13195 = vst [vmem:[#allocation26_spill] sm:$0xff] %v11551_v47  ;;  %13196 = vst [vmem:[#allocation27_spill] sm:$0xff] %v11553_v39  ;;  %v11555_v50 = vadd.f32 %v9112_v9, %v2689_v13 }
 0x2e0   : > { %v2890_v62 = vpop.f32.mrf.mxu0  ;;  %v9068_v35 = vpop.f32.mrf.mxu1 }
 0x2e1   : > { %v11557_v52 = vadd.f32 %v2890_v62, %v2687_v48  ;;  %v2693_v54 = vadd.f32 %v9068_v35, %v11447_v51 }
 0x2e2   : > { %v11560_v7 = vpop.f32.mrf.mxu0  ;;  %v2600_v34 = vpop.f32.mrf.mxu1 }
 0x2e3   : > { %v2691_v27 = vadd.f32 %v2600_v34, %v11453_v31 }
 0x2e4   : > { %v11563_v46 = vpop.f32.mrf.mxu0  ;;  %v9069_v11 = vpop.f32.mrf.mxu1 }
 0x2e5   : > { %13197 = vst [vmem:[#allocation28_spill] sm:$0xff] %v11563_v46  ;;  %v11566_v3 = vadd.f32 %v9069_v11, %v11456_v37 }
 0x2e6   : > { %v9116_v47 = vpop.f32.mrf.mxu0  ;;  %v11568_v13 = vpop.f32.mrf.mxu1 }
 0x2e7   : > { %13198 = vst [vmem:[#allocation29_spill] sm:$0xff] %v11566_v3  ;;  %13199 = vst [vmem:[#allocation30_spill] sm:$0xff] %v11568_v13  ;;  %v11570_v9 = vadd.f32 %v9116_v47, %v2693_v54 }
 0x2e8   : > { %v2906_v48 = vpop.f32.mrf.mxu0  ;;  %v9072_v62 = vpop.f32.mrf.mxu1 }
 0x2e9   : > { %v11572_v39 = vadd.f32 %v2906_v48, %v2691_v27  ;;  %v2697_v51 = vadd.f32 %v9072_v62, %v11465_v28 }
 0x2ea   : > { %v11575_v35 = vpop.f32.mrf.mxu0  ;;  %v2616_v31 = vpop.f32.mrf.mxu1 }
 0x2eb   : > { %v2695_v34 = vadd.f32 %v2616_v31, %v11468_v19 }
 0x2ec   : > { %v11578_v46 = vpop.f32.mrf.mxu0  ;;  %v9073_v37 = vpop.f32.mrf.mxu1 }
 0x2ed   : > { %13200 = vst [vmem:[#allocation31_spill] sm:$0xff] %v11578_v46  ;;  %v11581_v11 = vadd.f32 %v9073_v37, %v11471_v21 }
 0x2ee   : > { %v9120_v3 = vpop.f32.mrf.mxu0  ;;  %v11583_v54 = vpop.f32.mrf.mxu1 }
 0x2ef   : > { %13201 = vst [vmem:[#allocation32_spill] sm:$0xff] %v11581_v11  ;;  %13202 = vst [vmem:[#allocation33_spill] sm:$0xff] %v11583_v54  ;;  %v11585_v47 = vadd.f32 %v9120_v3, %v2697_v51 }
 0x2f0   : > { %v2922_v27 = vpop.f32.mrf.mxu0  ;;  %v9076_v48 = vpop.f32.mrf.mxu1 }
 0x2f1   : > { %v11587_v13 = vadd.f32 %v2922_v27, %v2695_v34  ;;  %v2701_v28 = vadd.f32 %v9076_v48, %v11480_v16 }
 0x2f2   : > { %v11590_v62 = vpop.f32.mrf.mxu0  ;;  %v2632_v19 = vpop.f32.mrf.mxu1 }
 0x2f3   : > { %v2699_v31 = vadd.f32 %v2632_v19, %v11482_v15 }
 0x2f4   : > { %v11593_v46 = vpop.f32.mrf.mxu0  ;;  %v9077_v21 = vpop.f32.mrf.mxu1 }
 0x2f5   : > { %13203 = vst [vmem:[#allocation34_spill] sm:$0xff] %v11593_v46  ;;  %v11596_v37 = vadd.f32 %v9077_v21, %v11486_v41 }
 0x2f6   : > { %v9124_v54 = vpop.f32.mrf.mxu0  ;;  %v11598_v3 = vpop.f32.mrf.mxu1 }
 0x2f7   : > { %13204 = vst [vmem:[#allocation35_spill] sm:$0xff] %v11596_v37  ;;  %13205 = vst [vmem:[#allocation36_spill] sm:$0xff] %v11598_v3  ;;  %v11600_v51 = vadd.f32 %v9124_v54, %v2701_v28 }
 0x2f8   : > { %v2938_v34 = vpop.f32.mrf.mxu0  ;;  %v9080_v27 = vpop.f32.mrf.mxu1 }
 0x2f9   : > { %v11602_v11 = vadd.f32 %v2938_v34, %v2699_v31  ;;  %v2705_v16 = vadd.f32 %v9080_v27, %v11494_v58 }
 0x2fa   : > { %v11605_v48 = vpop.f32.mrf.mxu0  ;;  %v2648_v15 = vpop.f32.mrf.mxu1 }
 0x2fb   : > { %v2703_v19 = vadd.f32 %v2648_v15, %v11499_v43 }
 0x2fc   : > { %v11608_v46 = vpop.f32.mrf.mxu0  ;;  %v9081_v41 = vpop.f32.mrf.mxu1 }
 0x2fd   : > { %13206 = vst [vmem:[#allocation37_spill] sm:$0xff] %v11608_v46  ;;  %v11611_v21 = vadd.f32 %v9081_v41, %v11502_v33 }
 0x2fe   : > { %v9128_v37 = vpop.f32.mrf.mxu0  ;;  %v11613_v54 = vpop.f32.mrf.mxu1 }
 0x2ff   : > { %13207 = vst [vmem:[#allocation38_spill] sm:$0xff] %v11611_v21  ;;  %13208 = vst [vmem:[#allocation39_spill] sm:$0xff] %v11613_v54  ;;  %v11615_v28 = vadd.f32 %v9128_v37, %v2705_v16 }
 0x300   : > { %v2954_v31 = vpop.f32.mrf.mxu0  ;;  %v9084_v34 = vpop.f32.mrf.mxu1 }
 0x301   : > { %v11617_v3 = vadd.f32 %v2954_v31, %v2703_v19  ;;  %v2709_v58 = vadd.f32 %v9084_v34, %v11510_v22 }
 0x302   : > { %v11620_v27 = vpop.f32.mrf.mxu0  ;;  %v2664_v43 = vpop.f32.mrf.mxu1 }
 0x303   : > { %13209 = vst [vmem:[#allocation40_spill] sm:$0xff] %v11620_v27  ;;  %v2707_v15 = vadd.f32 %v2664_v43, %v11512_v30 }
 0x304   : > { %v11623_v46 = vpop.f32.mrf.mxu0  ;;  %v9085_v33 = vpop.f32.mrf.mxu1 }
 0x305   : > { %13210 = vst [vmem:[#allocation41_spill] sm:$0xff] %v11623_v46  ;;  %v11626_v41 = vadd.f32 %v9085_v33, %v11515_v5  ;;  %v11664_v46 = vld [vmem:[#allocation11 + $0x38] sm:$0xff]  }
 0x306   : > { %v9132_v21 = vpop.f32.mrf.mxu0  ;;  %v11628_v37 = vpop.f32.mrf.mxu1  ;;  %13219 = vst [vmem:[#allocation50_spill] sm:$0xff] %v11664_v46  ;;  %9374 = vmatprep.subr.bf16.mxu0 %v11664_v46 }
 0x307   : > { %13211 = vst [vmem:[#allocation42_spill] sm:$0xff] %v11626_v41  ;;  %13212 = vst [vmem:[#allocation43_spill] sm:$0xff] %v11628_v37  ;;  %v11630_v16 = vadd.f32 %v9132_v21, %v2709_v58  ;;  %v10029_v37 = vld [vmem:[#allocation11 + $0x70] sm:$0xff]  }
 0x308   : > { %v2970_v19 = vpop.f32.mrf.mxu0  ;;  %v9152_v31 = vpop.f32.mrf.mxu1 }
 0x309   : > { %v11632_v54 = vadd.f32 %v2970_v19, %v2707_v15  ;;  %v11635_v22 = vadd.f32 %v9152_v31, %v11525_v45 }
 0x30a   : > { %v11637_v34 = vpop.f32.mrf.mxu0  ;;  %v3165_v30 = vpop.f32.mrf.mxu1 }
 0x30b   : > { %13213 = vst [vmem:[#allocation44_spill] sm:$0xff] %v11637_v34  ;;  %v11640_v43 = vadd.f32 %v3165_v30, %v11527_v26  ;;  %v10028_v34 = vld [vmem:[#allocation11 + $0x78] sm:$0xff]  }
 0x30c   : > { %v11642_v5 = vpop.f32.mrf.mxu0  ;;  %v11644_v33 = vpop.f32.mrf.mxu1  ;;  %9326 = vmatprep.subr.bf16.mxu1 %v10028_v34 }
 0x30d   : > { %13214 = vst [vmem:[#allocation45_spill] sm:$0xff] %v11642_v5  ;;  %9327 = vmatpush3.bf16.msra.mxu1 %v10028_v34 }
 0x30e   : > { %v11646_v41 = vpop.f32.mrf.mxu0  ;;  %v11648_v21 = vpop.f32.mrf.mxu1  ;;  %9328 = vmatprep.subr.bf16.mxu1 %v10029_v37 }
 0x30f   : > { %13215 = vst [vmem:[#allocation46_spill] sm:$0xff] %v11648_v21 }
 0x310   : > { %v11650_v58 = vpop.f32.mrf.mxu0  ;;  %v9156_v15 = vpop.f32.mrf.mxu1 }
 0x311   : > { %v11653_v45 = vadd.f32 %v9156_v15, %v11540_v12  ;;  %9329 = vmatpush3.bf16.msra.mxu1 %v10029_v37 }
 0x312   : > { %v11655_v19 = vpop.f32.mrf.mxu0  ;;  %v3181_v31 = vpop.f32.mrf.mxu1 }
 0x313   : > { %13216 = vst [vmem:[#allocation47_spill] sm:$0xff] %v11653_v45  ;;  %v11658_v26 = vadd.f32 %v3181_v31, %v11542_v0  ;;  %v10030_v0 = vld [vmem:[#allocation11 + $0x68] sm:$0xff]  }
 0x314   : > { %v11660_v30 = vpop.f32.mrf.mxu0  ;;  %v11662_v5 = vpop.f32.mrf.mxu1  ;;  %9330 = vmatprep.subr.bf16.mxu1 %v10030_v0 }
 0x315   : > { %13217 = vst [vmem:[#allocation48_spill] sm:$0xff] %v11658_v26  ;;  %13218 = vst [vmem:[#allocation49_spill] sm:$0xff] %v11662_v5  ;;  %9331 = vmatpush3.bf16.msra.mxu1 %v10030_v0 }
 0x316   : > { %v11666_v27 = vpop.f32.mrf.mxu1  ;;  %v11668_v21 = vpop.f32.mrf.mxu0 }
 0x317   : > { %13220 = vst [vmem:[#allocation51_spill] sm:$0xff] %v11666_v27  ;;  %13221 = vst [vmem:[#allocation52_spill] sm:$0xff] %v11668_v21  ;;  %v10031_v21 = vld [vmem:[#allocation11 + $0x60] sm:$0xff]  }
 0x318   : > { %v9160_v12 = vpop.f32.mrf.mxu1  ;;  %v11674_v26 = vpop.f32.mrf.mxu0  ;;  %9332 = vmatprep.subr.bf16.mxu1 %v10031_v21 }
 0x319   : > { %v11672_v15 = vadd.f32 %v9160_v12, %v11555_v50  ;;  %13223 = vst [vmem:[#allocation54_spill] sm:$0xff] %v11674_v26  ;;  %v10032_v50 = vld [vmem:[#allocation11 + $0x58] sm:$0xff]   ;;  %9333 = vmatpush3.bf16.msra.mxu1 %v10031_v21 }
 0x31a   : > { %v3197_v31 = vpop.f32.mrf.mxu1  ;;  %v11683_v46 = vpop.f32.mrf.mxu0  ;;  %9334 = vmatprep.subr.bf16.mxu1 %v10032_v50 }
 0x31b   : > { %13222 = vst [vmem:[#allocation53_spill] sm:$0xff] %v11672_v15  ;;  %v11677_v5 = vadd.f32 %v3197_v31, %v11557_v52  ;;  %v10035_v31 = vld [vmem:[#allocation11 + $0x50] sm:$0xff]  }
 0x31c   : > { %v11679_v27 = vpop.f32.mrf.mxu1  ;;  %v11688_v26 = vpop.f32.mrf.mxu0 }
 0x31d   : > { %13224 = vst [vmem:[#allocation55_spill] sm:$0xff] %v11677_v5  ;;  %9335 = vmatpush3.bf16.msra.mxu1 %v10032_v50 }
 0x31e   : > { %v11681_v34 = vpop.f32.mrf.mxu1  ;;  %v11697_v0 = vpop.f32.mrf.mxu0  ;;  %9336 = vmatprep.subr.bf16.mxu1 %v10035_v31 }
 0x31f   : > { %13225 = vst [vmem:[#allocation56_spill] sm:$0xff] %v11681_v34 }
 0x320   : > { %v9164_v45 = vpop.f32.mrf.mxu1 }
 0x321   : > { %v11686_v12 = vadd.f32 %v9164_v45, %v11570_v9  ;;  %9337 = vmatpush3.bf16.msra.mxu1 %v10035_v31 }
 0x322   : > { %v3213_v15 = vpop.f32.mrf.mxu1 }
 0x323   : > { %13226 = vst [vmem:[#allocation57_spill] sm:$0xff] %v11686_v12  ;;  %v11691_v52 = vadd.f32 %v3213_v15, %v11572_v39  ;;  %v11702_v12 = vpop.f32.mrf.mxu0 }
 0x324   : > { %v11693_v37 = vpop.f32.mrf.mxu1 }
 0x325   : > { %13227 = vst [vmem:[#allocation58_spill] sm:$0xff] %v11691_v52  ;;  %13228 = vst [vmem:[#allocation59_spill] sm:$0xff] %v11693_v37 }
 0x326   : > { %v11695_v34 = vpop.f32.mrf.mxu1 }
 0x327   : > { %13229 = vst [vmem:[#allocation60_spill] sm:$0xff] %v11695_v34  ;;  %v11711_v34 = vpop.f32.mrf.mxu0 }
 0x328   : > { %v9168_v5 = vpop.f32.mrf.mxu1 }
 0x329   : > { %v11700_v9 = vadd.f32 %v9168_v5, %v11585_v47  ;;  %v11716_v47 = vpop.f32.mrf.mxu0 }
 0x32a   : > { %v3229_v45 = vpop.f32.mrf.mxu1 }
 0x32b   : > { %13230 = vst [vmem:[#allocation61_spill] sm:$0xff] %v11700_v9  ;;  %v11705_v39 = vadd.f32 %v3229_v45, %v11587_v13  ;;  %v11725_v31 = vpop.f32.mrf.mxu0 }
 0x32c   : > { %v11707_v21 = vpop.f32.mrf.mxu1 }
 0x32d   : > { %13231 = vst [vmem:[#allocation62_spill] sm:$0xff] %v11705_v39  ;;  %13232 = vst [vmem:[#allocation63_spill] sm:$0xff] %v11707_v21  ;;  %v11730_v21 = vpop.f32.mrf.mxu0 }
 0x32e   : > { %v11709_v15 = vpop.f32.mrf.mxu1 }
 0x32f   : > { %13233 = vst [vmem:[#allocation64_spill] sm:$0xff] %v11709_v15 }
 0x330   : > { %v9172_v52 = vpop.f32.mrf.mxu1 }
 0x331   : > { %v11714_v50 = vadd.f32 %v9172_v52, %v11600_v51 }
 0x332   : > { %v3245_v37 = vpop.f32.mrf.mxu1 }
 0x333   : > { %13234 = vst [vmem:[#allocation65_spill] sm:$0xff] %v11714_v50  ;;  %v11719_v5 = vadd.f32 %v3245_v37, %v11602_v11  ;;  %v11739_v37 = vpop.f32.mrf.mxu0 }
 0x334   : > { %v11721_v9 = vpop.f32.mrf.mxu1 }
 0x335   : > { %13235 = vst [vmem:[#allocation66_spill] sm:$0xff] %v11719_v5 }
 0x336   : > { %v11723_v13 = vpop.f32.mrf.mxu1 }
 0x337   : > { %13236 = vst [vmem:[#allocation67_spill] sm:$0xff] %v11723_v13  ;;  %v1734_v13 = vadd.f32 %v11350_v4, %v11339_v10  ;;  %v2378_v4 = vadd.f32 %v11427_v32, %v11418_v53 }
 0x338   : > { %v9176_v45 = vpop.f32.mrf.mxu1 }
 0x339   : > { %v11728_v15 = vadd.f32 %v9176_v45, %v11615_v28  ;;  %v1750_v28 = vadd.f32 %v11364_v23, %v11353_v40 }
 0x33a   : > { %v3261_v39 = vpop.f32.mrf.mxu1 }
 0x33b   : > { %13237 = vst [vmem:[#allocation68_spill] sm:$0xff] %v11728_v15  ;;  %v11733_v51 = vadd.f32 %v3261_v39, %v11617_v3  ;;  %v1766_v3 = vadd.f32 %v11381_v14, %v11369_v61  ;;  %v1782_v39 = vadd.f32 %v11395_v24, %v11383_v2  ;;  %v11755_v15 = vpop.f32.mrf.mxu0  ;;  %v2088_v40 = vadd.f32 %v11477_v57, %v1750_v28  ;;  %v13247_v28 = vld [vmem:[#allocation29_spill] sm:$0xff] }
 0x33c   : > { %v11735_v52 = vpop.f32.mrf.mxu1  ;;  %v2382_v2 = vadd.f32 %v11443_v8, %v11434_v20  ;;  %v2386_v24 = vadd.f32 %v11459_v38, %v11450_v59  ;;  %v2684_v57 = vadd.f32 %v11538_v1, %v2378_v4  ;;  %v2988_v20 = vadd.f32 %v11530_v18, %v11521_v60  ;;  %v13240_v59 = vld [vmem:[#allocation27_spill] sm:$0xff]  ;;  %v13244_v1 = vld [vmem:[#allocation26_spill] sm:$0xff] }
 0x33d   : > { %13238 = vst [vmem:[#allocation69_spill] sm:$0xff] %v11733_v51  ;;  %v2084_v51 = vadd.f32 %v11462_v36, %v1734_v13  ;;  %v2092_v23 = vadd.f32 %v11492_v56, %v1766_v3  ;;  %v2096_v61 = vadd.f32 %v11508_v17, %v1782_v39  ;;  %v2394_v53 = vadd.f32 %v11489_v49, %v2088_v40  ;;  %v11785_v17 = vpop.f32.mrf.mxu0  ;;  %v13241_v49 = vld [vmem:[#allocation23_spill] sm:$0xff]  ;;  %v13250_v40 = vld [vmem:[#allocation33_spill] sm:$0xff] }
 0x33e   : > { %v11737_v11 = vpop.f32.mrf.mxu1  ;;  %v2688_v38 = vadd.f32 %v13240_v59, %v2382_v2  ;;  %v11796_v18 = vld [vmem:[%s13115_s5] ss:$0 sm:$0xff] }
 0x33f   : > { %13239 = vst [vmem:[#allocation70_spill] sm:$0xff] %v11737_v11  ;;  %v2374_v11 = vadd.f32 %v11411_v25, %v11402_v55  ;;  %v2390_v55 = vadd.f32 %v11474_v42, %v2084_v51  ;;  %v2398_v32 = vadd.f32 %v11505_v44, %v2092_v23  ;;  %v2402_v36 = vadd.f32 %v11518_v6, %v2096_v61  ;;  %v13242_v44 = vld [vmem:[#allocation24_spill] sm:$0xff]  ;;  %v13243_v6 = vld [vmem:[#allocation25_spill] sm:$0xff]  ;;  %v13248_v3 = vld [vmem:[#allocation31_spill] sm:$0xff]  ;;  %v11823_v2 = vpop.f32.mrf.mxu0 }
 0x340   : > { %v9180_v5 = vpop.f32.mrf.mxu1  ;;  %v3600_v42 = vadd.f32 %v11646_v41, %v11635_v22  ;;  %v3598_v22 = vadd.f32 %v11650_v58, %v11640_v43  ;;  %v3295_v51 = vadd.f32 %v11644_v33, %v2988_v20  ;;  %v11819_v43 = vld [vmem:[%s13116_s6] ss:$0 sm:$0xff]  ;;  %v13251_v58 = vld [vmem:[#allocation36_spill] sm:$0xff] }
 0x341   : > { %v11744_v50 = vadd.f32 %v9180_v5, %v11630_v16  ;;  %v2680_v25 = vadd.f32 %v11523_v63, %v2374_v11  ;;  %v2992_v63 = vadd.f32 %v13242_v44, %v13241_v49  ;;  %v2996_v16 = vadd.f32 %v11560_v7, %v13244_v1  ;;  %v13245_v5 = vld [vmem:[#allocation30_spill] sm:$0xff]  ;;  %v13253_v20 = vld [vmem:[#allocation35_spill] sm:$0xff] }
 0x342   : > { %v3277_v45 = vpop.f32.mrf.mxu1  ;;  %v2692_v13 = vadd.f32 %v13245_v5, %v2386_v24  ;;  %v11806_v7 = vadd.f32 %v11575_v35, %v13247_v28  ;;  %v2696_v23 = vadd.f32 %v13250_v40, %v2390_v55  ;;  %v2700_v61 = vadd.f32 %v13251_v58, %v2394_v53  ;;  %v13254_v59 = vld [vmem:[#allocation39_spill] sm:$0xff]  ;;  %v13256_v53 = vld [vmem:[#allocation37_spill] sm:$0xff]  ;;  %v13261_v28 = vld [vmem:[#allocation42_spill] sm:$0xff] }
 0x343   : > { %v11758_v10 = vadd.f32 %v3277_v45, %v11632_v54  ;;  %v2986_v8 = vadd.f32 %v11533_v29, %v2680_v25  ;;  %v2990_v54 = vadd.f32 %v13243_v6, %v2684_v57  ;;  %v13246_v29 = vld [vmem:[#allocation28_spill] sm:$0xff]  ;;  %v3601_v35 = vadd.f32 %v11655_v19, %v3295_v51  ;;  %v13252_v57 = vld [vmem:[#allocation34_spill] sm:$0xff]  ;;  %v13260_v51 = vld [vmem:[#allocation43_spill] sm:$0xff] }
 0x344   : > { %v11765_v14 = vpop.f32.mrf.mxu1  ;;  %v11799_v41 = vadd.f32 %v13246_v29, %v2688_v38  ;;  %v11809_v39 = vadd.f32 %v13248_v3, %v2692_v13  ;;  %v13249_v45 = vld [vmem:[#allocation32_spill] sm:$0xff]  ;;  %v11831_v55 = vadd.f32 %v11605_v48, %v13253_v20  ;;  %v2704_v38 = vadd.f32 %v13254_v59, %v2398_v32  ;;  %v13257_v13 = vld [vmem:[#allocation38_spill] sm:$0xff]  ;;  %v13263_v40 = vld [vmem:[#allocation47_spill] sm:$0xff] }
 0x345   : > { %v11813_v4 = vadd.f32 %v11590_v62, %v13249_v45  ;;  %v11827_v62 = vadd.f32 %v13252_v57, %v2696_v23  ;;  %v11836_v6 = vadd.f32 %v13256_v53, %v2700_v61  ;;  %v11848_v32 = vadd.f32 %v13260_v51, %v2402_v36  ;;  %v13262_v3 = vld [vmem:[#allocation44_spill] sm:$0xff]  ;;  %v13265_v58 = vld [vmem:[#allocation49_spill] sm:$0xff] }
 0x346   : > { %v11777_v56 = vpop.f32.mrf.mxu1  ;;  %v11853_v45 = vadd.f32 %v13262_v3, %v13261_v28  ;;  %v13264_v23 = vld [vmem:[#allocation52_spill] sm:$0xff]  ;;  %v3299_v61 = vadd.f32 %v13265_v58, %v2992_v63 }
 0x348   : > { %v9248_v60 = vpop.f32.mrf.mxu1  ;;  %v3605_v63 = vadd.f32 %v11683_v46, %v3299_v61 }
 0x349   : > { %v3906_v11 = vadd.f32 %v9248_v60, %v3600_v42  ;;  %v13255_v42 = vld [vmem:[#allocation46_spill] sm:$0xff]  ;;  %v13258_v60 = vld [vmem:[#allocation40_spill] sm:$0xff] }
 0x34a   : > { %v3777_v33 = vpop.f32.mrf.mxu1  ;;  %v3293_v49 = vadd.f32 %v13255_v42, %v2986_v8  ;;  %v11842_v29 = vadd.f32 %v13258_v60, %v13257_v13  ;;  %v13268_v42 = vld [vmem:[#allocation54_spill] sm:$0xff] }
 0x34b   : > { %v3945_v24 = vmul.f32 %v11796_v18, %v3906_v11  ;;  %v3904_v25 = vadd.f32 %v3777_v33, %v3598_v22  ;;  %v13259_v22 = vld [vmem:[#allocation41_spill] sm:$0xff]  ;;  %v3604_v33 = vadd.f32 %v13264_v23, %v13263_v40 }
 0x34c   : > { %v9249_v44 = vpop.f32.mrf.mxu1  ;;  %v11845_v48 = vadd.f32 %v13259_v22, %v2704_v38  ;;  %v3599_v8 = vadd.f32 %v11660_v30, %v3293_v49  ;;  %v13267_v38 = vld [vmem:[#allocation48_spill] sm:$0xff]  ;;  %v13269_v23 = vld [vmem:[#allocation53_spill] sm:$0xff] }
 0x34d   : > { %v3984_v19 = vadd.f32 %v11819_v43, %v3945_v24  ;;  %v3943_v1 = vmul.f32 %v11796_v18, %v3904_v25  ;;  %v3907_v5 = vadd.f32 %v9249_v44, %v3601_v35  ;;  %v11858_v35 = vpop.f32.mrf.mxu0  ;;  %v13266_v25 = vld [vmem:[#allocation51_spill] sm:$0xff]  ;;  %v3602_v49 = vadd.f32 %v13268_v42, %v13267_v38 }
 0x34e   : > { %v3780_v11 = vpop.f32.mrf.mxu1  ;;  %v3297_v57 = vadd.f32 %v13266_v25, %v2990_v54  ;;  %v13270_v25 = vld [vmem:[#allocation55_spill] sm:$0xff] }
 0x34f   : > { %v3946_v24 = vmul.f32 %v11796_v18, %v3907_v5  ;;  %v4048_v36 = vmul.f32 0.1, %v3984_v19  ;;  %v3982_v20 = vadd.f32 %v11819_v43, %v3943_v1  ;;  %v3905_v30 = vadd.f32 %v3780_v11, %v3599_v8  ;;  %v11870_v22 = vpop.f32.mrf.mxu0 }
 0x350   : > { %v9252_v59 = vpop.f32.mrf.mxu1  ;;  %vm4016_vm0 = vcmp.gt.f32.partialorder %v3984_v19, 0.0  ;;  %v3603_v13 = vadd.f32 %v11688_v26, %v3297_v57  ;;  %v3303_v5 = vadd.f32 %v11679_v27, %v2996_v16  ;;  %v13271_v57 = vld [vmem:[#allocation56_spill] sm:$0xff] }
 0x351   : > { %v3985_v44 = vadd.f32 %v11819_v43, %v3946_v24  ;;  %v3910_v53 = vadd.f32 %v9252_v59, %v3604_v33  ;;  %v3944_v54 = vmul.f32 %v11796_v18, %v3905_v30  ;;  %v4080_v11 = vsel %vm4016_vm0, %v3984_v19, %v4048_v36  ;;  %v11882_v30 = vpop.f32.mrf.mxu0 }
 0x352   : > { %v3793_v60 = vpop.f32.mrf.mxu1  ;;  %v4046_v28 = vmul.f32 0.1, %v3982_v20  ;;  %vm4014_vm2 = vcmp.gt.f32.partialorder %v3982_v20, 0.0  ;;  %v3608_v33 = vadd.f32 %v11697_v0, %v13269_v23  ;;  %v3606_v19 = vadd.f32 %v11702_v12, %v13270_v25 }
 0x353   : > { %vm4017_vm1 = vcmp.gt.f32.partialorder %v3985_v44, 0.0  ;;  %v4049_v1 = vmul.f32 0.1, %v3985_v44  ;;  %v3949_v51 = vmul.f32 %v11796_v18, %v3910_v53  ;;  %v3908_v8 = vadd.f32 %v3793_v60, %v3602_v49 }
 0x354   : > { %v3983_v3 = vadd.f32 %v11819_v43, %v3944_v54  ;;  %v9253_v40 = vpop.f32.mrf.mxu1  ;;  %v3301_v36 = vadd.f32 %v13271_v57, %v11799_v41  ;;  %v4078_v0 = vsel %vm4014_vm2, %v3982_v20, %v4046_v28  ;;  %v3609_v60 = vadd.f32 %v11711_v34, %v3303_v5 }
 0x355   : > { %v4081_v46 = vsel %vm4017_vm1, %v3985_v44, %v4049_v1  ;;  %v3988_v26 = vadd.f32 %v11819_v43, %v3949_v51  ;;  %v3947_v27 = vmul.f32 %v11796_v18, %v3908_v8  ;;  %v3911_v16 = vadd.f32 %v9253_v40, %v3605_v63  ;;  %v11891_v40 = vpop.f32.mrf.mxu0 }
 0x356   : > { %v4111_v58 = vpack.c.bf16 %v4081_v46, %v4080_v11  ;;  %v3796_v61 = vpop.f32.mrf.mxu1  ;;  %vm4015_vm3 = vcmp.gt.f32.partialorder %v3983_v3, 0.0  ;;  %v4047_v24 = vmul.f32 0.1, %v3983_v3  ;;  %v3607_v41 = vadd.f32 %v11716_v47, %v3301_v36  ;;  %v10034_v11 = vld [vmem:[#allocation11 + $0x30] sm:$0xff]  }
 0x357   : > { %v3986_v59 = vadd.f32 %v11819_v43, %v3947_v27  ;;  %v3950_v38 = vmul.f32 %v11796_v18, %v3911_v16  ;;  %v4052_v42 = vmul.f32 0.1, %v3988_v26  ;;  %v3909_v49 = vadd.f32 %v3796_v61, %v3603_v13  ;;  %v13273_v61 = vld [vmem:[#allocation50_spill] sm:$0xff] }
 0x358   : > { %v9256_v44 = vpop.f32.mrf.mxu1  ;;  %v4079_v53 = vsel %vm4015_vm3, %v3983_v3, %v4047_v24  ;;  %vm4020_vm4 = vcmp.gt.f32.partialorder %v3988_v26, 0.0  ;;  %v13272_v3 = vld [vmem:[#allocation59_spill] sm:$0xff]  ;;  %v13274_v24 = vld [vmem:[#allocation57_spill] sm:$0xff] }
 0x359   : > { %v3989_v63 = vadd.f32 %v11819_v43, %v3950_v38  ;;  %v3914_v54 = vadd.f32 %v9256_v44, %v3608_v33  ;;  %v4110_v12 = vpack.c.bf16 %v4079_v53, %v4078_v0  ;;  %v4050_v1 = vmul.f32 0.1, %v3986_v59 }
 0x35a   : > { %v3948_v51 = vmul.f32 %v11796_v18, %v3909_v49  ;;  %v3809_v8 = vpop.f32.mrf.mxu1  ;;  %v3307_v46 = vadd.f32 %v13272_v3, %v11806_v7  ;;  %vm4018_vm6 = vcmp.gt.f32.partialorder %v3986_v59, 0.0  ;;  %v4084_v5 = vsel %vm4020_vm4, %v3988_v26, %v4052_v42  ;;  %v13276_v26 = vld [vmem:[#allocation60_spill] sm:$0xff]  ;;  %v11907_v42 = vpop.f32.mrf.mxu0 }
 0x35b   : > { %vm4021_vm5 = vcmp.gt.f32.partialorder %v3989_v63, 0.0  ;;  %v4053_v13 = vmul.f32 0.1, %v3989_v63  ;;  %v3953_v20 = vmul.f32 %v11796_v18, %v3914_v54  ;;  %v3912_v28 = vadd.f32 %v3809_v8, %v3606_v19  ;;  %9294 = vmatprep.mubr.bf16.mxu0 %v4110_v12  ;;  %v13277_v8 = vld [vmem:[#allocation63_spill] sm:$0xff] }
 0x35c   : > { %v3987_v34 = vadd.f32 %v11819_v43, %v3948_v51  ;;  %9295 = vmatmul.mubr.bf16.vlgmr.msra.gmra.mxu0 %v4111_v58  ;;  %v9257_v47 = vpop.f32.mrf.mxu1  ;;  %v3612_v25 = vadd.f32 %v11725_v31, %v13274_v24  ;;  %v13275_v58 = vld [vmem:[#allocation58_spill] sm:$0xff]  ;;  %v3305_v38 = vadd.f32 %v13276_v26, %v11809_v39  ;;  %v4082_v44 = vsel %vm4018_vm6, %v3986_v59, %v4050_v1 }
 0x35d   : > { %v3992_v27 = vadd.f32 %v11819_v43, %v3953_v20  ;;  %v3951_v16 = vmul.f32 %v11796_v18, %v3912_v28  ;;  %v3915_v23 = vadd.f32 %v9257_v47, %v3609_v60  ;;  %v4085_v33 = vsel %vm4021_vm5, %v3989_v63, %v4053_v13  ;;  %9375 = vmatpush3.bf16.msra.mxu0 %v13273_v61  ;;  %v11918_v20 = vpop.f32.mrf.mxu0 }
 0x35e   : > { %v3812_v19 = vpop.f32.mrf.mxu1  ;;  %vm4019_vm7 = vcmp.gt.f32.partialorder %v3987_v34, 0.0  ;;  %v4051_v7 = vmul.f32 0.1, %v3987_v34  ;;  %v4113_v57 = vpack.c.bf16 %v4085_v33, %v4084_v5  ;;  %9376 = vmatprep.subr.bf16.mxu0 %v10034_v11  ;;  %v3610_v36 = vadd.f32 %v11730_v21, %v13275_v58 }
 0x35f   : > { %v3954_v49 = vmul.f32 %v11796_v18, %v3915_v23  ;;  %v4056_v0 = vmul.f32 0.1, %v3992_v27  ;;  %v3990_v31 = vadd.f32 %v11819_v43, %v3951_v16  ;;  %v3913_v53 = vadd.f32 %v3812_v19, %v3607_v41  ;;  %v13278_v16 = vld [vmem:[#allocation61_spill] sm:$0xff] }
 0x360   : > { %v9260_v63 = vpop.f32.mrf.mxu1  ;;  %v4083_v54 = vsel %vm4019_vm7, %v3987_v34, %v4051_v7  ;;  %vm4024_vm8 = vcmp.gt.f32.partialorder %v3992_v27, 0.0  ;;  %v3613_v39 = vadd.f32 %v11739_v37, %v3307_v46  ;;  %v3611_v51 = vadd.f32 %v11755_v15, %v3305_v38  ;;  %v13280_v7 = vld [vmem:[#allocation64_spill] sm:$0xff] }
 0x361   : > { %v3993_v12 = vadd.f32 %v11819_v43, %v3954_v49  ;;  %v3918_v60 = vadd.f32 %v9260_v63, %v3612_v25  ;;  %v4112_v21 = vpack.c.bf16 %v4083_v54, %v4082_v44  ;;  %9377 = vmatpush3.bf16.msra.mxu0 %v10034_v11  ;;  %v3311_v13 = vadd.f32 %v13277_v8, %v11813_v4  ;;  %v13279_v25 = vld [vmem:[#allocation62_spill] sm:$0xff] }
 0x362   : > { %v3952_v59 = vmul.f32 %v11796_v18, %v3913_v53  ;;  %v3825_v1 = vpop.f32.mrf.mxu1  ;;  %v4054_v34 = vmul.f32 0.1, %v3990_v31  ;;  %vm4022_vm10 = vcmp.gt.f32.partialorder %v3990_v31, 0.0  ;;  %v4088_v15 = vsel %vm4024_vm8, %v3992_v27, %v4056_v0  ;;  %v11931_v27 = vpop.f32.mrf.mxu0 }
 0x363   : > { %vm4025_vm9 = vcmp.gt.f32.partialorder %v3993_v12, 0.0  ;;  %v4057_v41 = vmul.f32 0.1, %v3993_v12  ;;  %v3957_v28 = vmul.f32 %v11796_v18, %v3918_v60  ;;  %v3916_v3 = vadd.f32 %v3825_v1, %v3610_v36  ;;  %9298 = vmatprep.mubr.bf16.mxu0 %v4112_v21 }
 0x364   : > { %v3991_v11 = vadd.f32 %v11819_v43, %v3952_v59  ;;  %9299 = vmatmul.mubr.bf16.gmra.mxu0 %v4113_v57  ;;  %v9261_v37 = vpop.f32.mrf.mxu1  ;;  %v3616_v23 = vadd.f32 %v11785_v17, %v13278_v16  ;;  %v3614_v19 = vadd.f32 %v11823_v2, %v13279_v25  ;;  %v3309_v57 = vadd.f32 %v13280_v7, %v11827_v62  ;;  %v3567_v21 = vpop.f32.mrf.mxu0 }
 0x365   : > { %v3996_v4 = vadd.f32 %v11819_v43, %v3957_v28  ;;  %v3955_v46 = vmul.f32 %v11796_v18, %v3916_v3  ;;  %v3919_v47 = vadd.f32 %v9261_v37, %v3613_v39  ;;  %v4089_v5 = vsel %vm4025_vm9, %v3993_v12, %v4057_v41  ;;  %v13281_v3 = vld [vmem:[#allocation65_spill] sm:$0xff] }
 0x366   : > { %v3828_v33 = vpop.f32.mrf.mxu1  ;;  %vm4023_vm11 = vcmp.gt.f32.partialorder %v3991_v11, 0.0  ;;  %v4055_v61 = vmul.f32 0.1, %v3991_v11  ;;  %v4115_v24 = vpack.c.bf16 %v4089_v5, %v4088_v15  ;;  %v4086_v17 = vsel %vm4022_vm10, %v3990_v31, %v4054_v34 }
 0x367   : > { %v3994_v58 = vadd.f32 %v11819_v43, %v3955_v46  ;;  %v3958_v36 = vmul.f32 %v11796_v18, %v3919_v47  ;;  %v4060_v26 = vmul.f32 0.1, %v3996_v4  ;;  %v3917_v38 = vadd.f32 %v3828_v33, %v3611_v51  ;;  %v13283_v46 = vld [vmem:[#allocation67_spill] sm:$0xff] }
 0x368   : > { %v9264_v49 = vpop.f32.mrf.mxu1  ;;  %v4087_v44 = vsel %vm4023_vm11, %v3991_v11, %v4055_v61  ;;  %vm4028_vm12 = vcmp.gt.f32.partialorder %v3996_v4, 0.0  ;;  %v3617_v63 = vadd.f32 %v11858_v35, %v3311_v13  ;;  %v3615_v62 = vadd.f32 %v11870_v22, %v3309_v57 }
 0x369   : > { %v3997_v0 = vadd.f32 %v11819_v43, %v3958_v36  ;;  %v3922_v53 = vadd.f32 %v9264_v49, %v3616_v23  ;;  %v4114_v2 = vpack.c.bf16 %v4087_v44, %v4086_v17  ;;  %v4058_v54 = vmul.f32 0.1, %v3994_v58 }
 0x36a   : > { %v3956_v12 = vmul.f32 %v11796_v18, %v3917_v38  ;;  %v3841_v60 = vpop.f32.mrf.mxu1  ;;  %v3315_v8 = vadd.f32 %v11721_v9, %v11831_v55  ;;  %vm4026_vm14 = vcmp.gt.f32.partialorder %v3994_v58, 0.0  ;;  %v4092_v22 = vsel %vm4028_vm12, %v3996_v4, %v4060_v26  ;;  %v13282_v55 = vld [vmem:[#allocation66_spill] sm:$0xff]  ;;  %v9225_v4 = vpop.f32.mrf.mxu0 }
 0x36b   : > { %vm4029_vm13 = vcmp.gt.f32.partialorder %v3997_v0, 0.0  ;;  %v4061_v39 = vmul.f32 0.1, %v3997_v0  ;;  %v3961_v51 = vmul.f32 %v11796_v18, %v3922_v53  ;;  %v3920_v31 = vadd.f32 %v3841_v60, %v3614_v19  ;;  %9302 = vmatprep.mubr.bf16.mxu0 %v4114_v2 }
 0x36c   : > { %v3995_v59 = vadd.f32 %v11819_v43, %v3956_v12  ;;  %9303 = vmatmul.mubr.bf16.gmra.mxu0 %v4115_v24  ;;  %v9265_v35 = vpop.f32.mrf.mxu1  ;;  %v3620_v34 = vadd.f32 %v11882_v30, %v13281_v3  ;;  %v3618_v15 = vadd.f32 %v11891_v40, %v13282_v55  ;;  %v3313_v47 = vadd.f32 %v13283_v46, %v11836_v6  ;;  %v13284_v40 = vld [vmem:[#allocation45_spill] sm:$0xff]  ;;  %v3570_v38 = vpop.f32.mrf.mxu0 }
 0x36d   : > { %v4000_v13 = vadd.f32 %v11819_v43, %v3961_v51  ;;  %v3959_v1 = vmul.f32 %v11796_v18, %v3920_v31  ;;  %v3923_v41 = vadd.f32 %v9265_v35, %v3617_v63  ;;  %v4093_v28 = vsel %vm4029_vm13, %v3997_v0, %v4061_v39  ;;  %v13285_v51 = vld [vmem:[#allocation68_spill] sm:$0xff] }
 0x36e   : > { %v3844_v11 = vpop.f32.mrf.mxu1  ;;  %vm4027_vm15 = vcmp.gt.f32.partialorder %v3995_v59, 0.0  ;;  %v4059_v37 = vmul.f32 0.1, %v3995_v59  ;;  %v4117_v9 = vpack.c.bf16 %v4093_v28, %v4092_v22  ;;  %v4090_v16 = vsel %vm4026_vm14, %v3994_v58, %v4058_v54  ;;  %v9228_v35 = vpop.f32.mrf.mxu0 }
 0x36f   : > { %v3962_v5 = vmul.f32 %v11796_v18, %v3923_v41  ;;  %v4064_v23 = vmul.f32 0.1, %v4000_v13  ;;  %v3998_v33 = vadd.f32 %v11819_v43, %v3959_v1  ;;  %v3921_v61 = vadd.f32 %v3844_v11, %v3615_v62 }
 0x370   : > { %v9268_v24 = vpop.f32.mrf.mxu1  ;;  %v4091_v30 = vsel %vm4027_vm15, %v3995_v59, %v4059_v37  ;;  %vm4032_vm0 = vcmp.gt.f32.partialorder %v4000_v13, 0.0  ;;  %v11958_v57 = vadd.f32 %v13284_v40, %v11848_v32  ;;  %v3621_v6 = vadd.f32 %v11907_v42, %v3315_v8  ;;  %v13286_v8 = vld [vmem:[#allocation69_spill] sm:$0xff]  ;;  %v3583_v46 = vpop.f32.mrf.mxu0 }
 0x371   : > { %v4001_v25 = vadd.f32 %v11819_v43, %v3962_v5  ;;  %v3926_v19 = vadd.f32 %v9268_v24, %v3620_v34  ;;  %v4116_v7 = vpack.c.bf16 %v4091_v30, %v4090_v16  ;;  %v3619_v36 = vadd.f32 %v11918_v20, %v3313_v47 }
 0x372   : > { %v3960_v58 = vmul.f32 %v11796_v18, %v3921_v61  ;;  %v3857_v26 = vpop.f32.mrf.mxu1  ;;  %v4062_v0 = vmul.f32 0.1, %v3998_v33  ;;  %vm4030_vm2 = vcmp.gt.f32.partialorder %v3998_v33, 0.0  ;;  %v4096_v42 = vsel %vm4032_vm0, %v4000_v13, %v4064_v23 }
 0x373   : > { %vm4033_vm1 = vcmp.gt.f32.partialorder %v4001_v25, 0.0  ;;  %v4065_v49 = vmul.f32 0.1, %v4001_v25  ;;  %v3965_v17 = vmul.f32 %v11796_v18, %v3926_v19  ;;  %v3924_v44 = vadd.f32 %v3857_v26, %v3618_v15  ;;  %9306 = vmatprep.mubr.bf16.mxu0 %v4116_v7  ;;  %v9229_v26 = vpop.f32.mrf.mxu0 }
 0x374   : > { %v3999_v53 = vadd.f32 %v11819_v43, %v3960_v58  ;;  %9307 = vmatmul.mubr.bf16.gmra.mxu0 %v4117_v9  ;;  %v9269_v32 = vpop.f32.mrf.mxu1  ;;  %v3319_v54 = vadd.f32 %v11735_v52, %v11842_v29  ;;  %v3624_v31 = vadd.f32 %v11931_v27, %v13285_v51  ;;  %v3622_v59 = vadd.f32 %v3567_v21, %v13286_v8  ;;  %v13287_v27 = vld [vmem:[#allocation70_spill] sm:$0xff] }
 0x375   : > { %v4004_v20 = vadd.f32 %v11819_v43, %v3965_v17  ;;  %v3963_v2 = vmul.f32 %v11796_v18, %v3924_v44  ;;  %v3927_v63 = vadd.f32 %v9269_v32, %v3621_v6  ;;  %v4097_v62 = vsel %vm4033_vm1, %v4001_v25, %v4065_v49 }
 0x376   : > { %v3860_v12 = vpop.f32.mrf.mxu1  ;;  %vm4031_vm3 = vcmp.gt.f32.partialorder %v3999_v53, 0.0  ;;  %v4063_v60 = vmul.f32 0.1, %v3999_v53  ;;  %v4119_v39 = vpack.c.bf16 %v4097_v62, %v4096_v42  ;;  %v4094_v3 = vsel %vm4030_vm2, %v3998_v33, %v4062_v0 }
 0x377   : > { %v4002_v22 = vadd.f32 %v11819_v43, %v3963_v2  ;;  %v3966_v13 = vmul.f32 %v11796_v18, %v3927_v63  ;;  %v4068_v1 = vmul.f32 0.1, %v4004_v20  ;;  %v3925_v41 = vadd.f32 %v3860_v12, %v3619_v36  ;;  %v3586_v63 = vpop.f32.mrf.mxu0 }
 0x378   : > { %v9272_v28 = vpop.f32.mrf.mxu1  ;;  %v4095_v52 = vsel %vm4031_vm3, %v3999_v53, %v4063_v60  ;;  %vm4036_vm4 = vcmp.gt.f32.partialorder %v4004_v20, 0.0  ;;  %v3625_v37 = vadd.f32 %v9225_v4, %v3319_v54  ;;  %v3317_v21 = vadd.f32 %v13287_v27, %v11845_v48 }
 0x379   : > { %v4005_v29 = vadd.f32 %v11819_v43, %v3966_v13  ;;  %v3930_v34 = vadd.f32 %v9272_v28, %v3624_v31  ;;  %v4118_v11 = vpack.c.bf16 %v4095_v52, %v4094_v3  ;;  %v4066_v9 = vmul.f32 0.1, %v4002_v22 }
 0x37a   : > { %v3964_v55 = vmul.f32 %v11796_v18, %v3925_v41  ;;  %v3873_v15 = vpop.f32.mrf.mxu1  ;;  %v3623_v23 = vadd.f32 %v3570_v38, %v3317_v21  ;;  %vm4034_vm6 = vcmp.gt.f32.partialorder %v4002_v22, 0.0  ;;  %v4100_v4 = vsel %vm4036_vm4, %v4004_v20, %v4068_v1 }
 0x37b   : > { %vm4037_vm5 = vcmp.gt.f32.partialorder %v4005_v29, 0.0  ;;  %v4069_v47 = vmul.f32 0.1, %v4005_v29  ;;  %v3969_v5 = vmul.f32 %v11796_v18, %v3930_v34  ;;  %v3928_v16 = vadd.f32 %v3873_v15, %v3622_v59  ;;  %9310 = vmatprep.mubr.bf16.mxu0 %v4118_v11 }
 0x37c   : > { %v4003_v33 = vadd.f32 %v11819_v43, %v3964_v55  ;;  %9311 = vmatmul.mubr.bf16.gmra.mxu0 %v4119_v39  ;;  %v9273_v61 = vpop.f32.mrf.mxu1  ;;  %v3323_v19 = vadd.f32 %v11765_v14, %v11853_v45  ;;  %v3628_v36 = vadd.f32 %v9228_v35, %v11744_v50  ;;  %v3626_v58 = vadd.f32 %v3583_v46, %v11758_v10 }
 0x37d   : > { %v4008_v48 = vadd.f32 %v11819_v43, %v3969_v5  ;;  %v3967_v24 = vmul.f32 %v11796_v18, %v3928_v16  ;;  %v3931_v30 = vadd.f32 %v9273_v61, %v3625_v37  ;;  %v4101_v25 = vsel %vm4037_vm5, %v4005_v29, %v4069_v47  ;;  %v10036_v61 = vld [vmem:[#allocation11 + $0x28] sm:$0xff]  }
 0x37e   : > { %v3876_v7 = vpop.f32.mrf.mxu1  ;;  %vm4035_vm7 = vcmp.gt.f32.partialorder %v4003_v33, 0.0  ;;  %v4067_v40 = vmul.f32 0.1, %v4003_v33  ;;  %v4121_v6 = vpack.c.bf16 %v4101_v25, %v4100_v4  ;;  %v4098_v49 = vsel %vm4034_vm6, %v4002_v22, %v4066_v9  ;;  %9378 = vmatprep.subr.bf16.mxu0 %v10036_v61  ;;  %v10038_v4 = vld [vmem:[#allocation11 + $0x48] sm:$0xff]   ;;  %v10043_v25 = vld [vmem:[#allocation11] sm:$0xff]  }
 0x37f   : > { %v3970_v38 = vmul.f32 %v11796_v18, %v3931_v30  ;;  %v4072_v17 = vmul.f32 0.1, %v4008_v48  ;;  %v4006_v44 = vadd.f32 %v11819_v43, %v3967_v24  ;;  %v3929_v0 = vadd.f32 %v3876_v7, %v3623_v23  ;;  %9379 = vmatpush3.bf16.msra.mxu0 %v10036_v61  ;;  %9338 = vmatprep.subr.bf16.mxu1 %v10038_v4  ;;  %v10041_v24 = vld [vmem:[#allocation11 + $0x40] sm:$0xff]   ;;  %v10042_v30 = vld [vmem:[#allocation11 + $0x8] sm:$0xff]  }
 0x380   : > { %v9276_v53 = vpop.f32.mrf.mxu1  ;;  %v4099_v32 = vsel %vm4035_vm7, %v4003_v33, %v4067_v40  ;;  %vm4040_vm8 = vcmp.gt.f32.partialorder %v4008_v48, 0.0  ;;  %v3321_v50 = vadd.f32 %v11777_v56, %v11958_v57  ;;  %v3629_v20 = vadd.f32 %v9229_v26, %v3323_v19  ;;  %9339 = vmatpush3.bf16.msra.mxu1 %v10038_v4  ;;  %v10109_v19 = vld [vmem:[#allocation2] sm:$0xff]  ;;  %v12008_v26 = vld [vmem:[#allocation11 + $0xf8] sm:$0xff]   ;;  %v10046_v4 = vld [vmem:[#allocation11 + $0xa8] sm:$0xff]  }
 0x381   : > { %v4009_v14 = vadd.f32 %v11819_v43, %v3970_v38  ;;  %v3934_v45 = vadd.f32 %v9276_v53, %v3628_v36  ;;  %v4120_v42 = vpack.c.bf16 %v4099_v32, %v4098_v49  ;;  %v3968_v10 = vmul.f32 %v11796_v18, %v3929_v0  ;;  %9340 = vmatprep.subr.bf16.mxu1 %v10041_v24  ;;  %v4629_v40 = vld [vmem:[#allocation2 + $0x7] sm:$0xff]  ;;  %v12005_v36 = vld [vmem:[#allocation11 + $0xb8] sm:$0xff]   ;;  %v12014_v38 = vld [vmem:[%s13118_s8] ss:$0 sm:$0xff] }
 0x382   : > { %v3889_v2 = vpop.f32.mrf.mxu1  ;;  %v4070_v60 = vmul.f32 0.1, %v4006_v44  ;;  %vm4038_vm10 = vcmp.gt.f32.partialorder %v4006_v44, 0.0  ;;  %v4104_v31 = vsel %vm4040_vm8, %v4008_v48, %v4072_v17  ;;  %v3627_v35 = vadd.f32 %v3586_v63, %v3321_v50  ;;  %v10040_v48 = vld [vmem:[#allocation11 + $0x10] sm:$0xff]   ;;  %v12019_v17 = vld [vmem:[%s13119_s9] ss:$0 sm:$0xff] }
 0x383   : > { %vm4041_vm9 = vcmp.gt.f32.partialorder %v4009_v14, 0.0  ;;  %v4073_v62 = vmul.f32 0.1, %v4009_v14  ;;  %v3973_v54 = vmul.f32 %v11796_v18, %v3934_v45  ;;  %v3932_v12 = vadd.f32 %v3889_v2, %v3626_v58  ;;  %9314 = vmatprep.mubr.bf16.mxu0 %v4120_v42 }
 0x384   : > { %v4007_v39 = vadd.f32 %v11819_v43, %v3968_v10  ;;  %9315 = vmatmul.mubr.bf16.gmra.mxu0 %v4121_v6  ;;  %v9277_v51 = vpop.f32.mrf.mxu1  ;;  %v4102_v52 = vsel %vm4038_vm10, %v4006_v44, %v4070_v60  ;;  %9341 = vmatpush3.bf16.msra.mxu1 %v10041_v24  ;;  %v4725_v7 = vpack.c.bf16 %v10109_v19, %v10109_v19  ;;  %v4630_v6 = vld [vmem:[#allocation2 + $0xf] sm:$0xff] }
 0x385   : > { %v4012_v56 = vadd.f32 %v11819_v43, %v3973_v54  ;;  %v3971_v57 = vmul.f32 %v11796_v18, %v3932_v12  ;;  %v3935_v8 = vadd.f32 %v9277_v51, %v3629_v20  ;;  %v4105_v59 = vsel %vm4041_vm9, %v4009_v14, %v4073_v62  ;;  %9422 = vmatprep.subr.bf16.mxu1 %v12005_v36 }
 0x386   : > { %v3892_v22 = vpop.f32.mrf.mxu1  ;;  %vm4039_vm11 = vcmp.gt.f32.partialorder %v4007_v39, 0.0  ;;  %v4071_v13 = vmul.f32 0.1, %v4007_v39  ;;  %v4123_v1 = vpack.c.bf16 %v4105_v59, %v4104_v31  ;;  %v4661_v58 = vpack.c.bf16 %v4630_v6, %v4629_v40  ;;  %9342 = vmatprep.mubr.bf16.mxu1 %v4725_v7 }
 0x387   : > { %v3974_v41 = vmul.f32 %v11796_v18, %v3935_v8  ;;  %v4010_v28 = vadd.f32 %v11819_v43, %v3971_v57  ;;  %v3933_v3 = vadd.f32 %v3892_v22, %v3627_v35  ;;  %v4076_v34 = vmul.f32 0.1, %v4012_v56 }
 0x388   : > { %v4103_v29 = vsel %vm4039_vm11, %v4007_v39, %v4071_v13  ;;  %vm4044_vm12 = vcmp.gt.f32.partialorder %v4012_v56, 0.0 }
 0x389   : > { %v4013_v11 = vadd.f32 %v11819_v43, %v3974_v41  ;;  %v4122_v37 = vpack.c.bf16 %v4103_v29, %v4102_v52  ;;  %v3972_v27 = vmul.f32 %v11796_v18, %v3933_v3  ;;  %v4074_v9 = vmul.f32 0.1, %v4010_v28  ;;  %v10037_v18 = vld [vmem:[#allocation11 + $0x20] sm:$0xff]  }
 0x38a   : > { %vm4042_vm14 = vcmp.gt.f32.partialorder %v4010_v28, 0.0  ;;  %v4108_v15 = vsel %vm4044_vm12, %v4012_v56, %v4076_v34  ;;  %9380 = vmatprep.subr.bf16.mxu0 %v10037_v18 }
 0x38b   : > { %vm4045_vm13 = vcmp.gt.f32.partialorder %v4013_v11, 0.0  ;;  %v4077_v21 = vmul.f32 0.1, %v4013_v11  ;;  %9318 = vmatprep.mubr.bf16.mxu0 %v4122_v37  ;;  %v4011_v55 = vadd.f32 %v11819_v43, %v3972_v27  ;;  %v4106_v16 = vsel %vm4042_vm14, %v4010_v28, %v4074_v9  ;;  %9381 = vmatpush3.bf16.msra.mxu0 %v10037_v18  ;;  %v10039_v43 = vld [vmem:[#allocation11 + $0x18] sm:$0xff]  }
 0x38c   : > { %9319 = vmatmul.mubr.bf16.gmra.mxu0 %v4123_v1  ;;  %9382 = vmatprep.subr.bf16.mxu0 %v10039_v43 }
 0x38d   : > { %v4109_v46 = vsel %vm4045_vm13, %v4013_v11, %v4077_v21  ;;  %vm4043_vm15 = vcmp.gt.f32.partialorder %v4011_v55, 0.0  ;;  %v4075_v47 = vmul.f32 0.1, %v4011_v55  ;;  %v10045_v21 = vld [vmem:[#allocation11 + $0xb0] sm:$0xff]  }
 0x38e   : > { %v4125_v5 = vpack.c.bf16 %v4109_v46, %v4108_v15 }
 0x38f   : > { %v4107_v23 = vsel %vm4043_vm15, %v4011_v55, %v4075_v47  ;;  %9383 = vmatpush3.bf16.msra.mxu0 %v10039_v43 }
 0x390   : > { %v4124_v33 = vpack.c.bf16 %v4107_v23, %v4106_v16  ;;  %9384 = vmatprep.subr.bf16.mxu0 %v10040_v48 }
 0x392   : > { %9322 = vmatprep.mubr.bf16.mxu0 %v4124_v33 }
 0x393   : > { %9385 = vmatpush3.bf16.msra.mxu0 %v10040_v48 }
 0x394   : > { %9323 = vmatmul.mubr.bf16.gmra.mxu0 %v4125_v5  ;;  %9386 = vmatprep.subr.bf16.mxu0 %v10042_v30 }
 0x395   : > { %9390 = vmatprep.mubr.bf16.mxu0 %v4661_v58 }
 0x397   : > { %9387 = vmatpush3.bf16.msra.mxu0 %v10042_v30 }
 0x398   : > { %9388 = vmatprep.subr.bf16.mxu0 %v10043_v25 }
 0x39b   : > { %9389 = vmatpush3.bf16.msra.mxu0 %v10043_v25 }
 0x39c   : > { %9470 = vmatprep.subr.bf16.mxu0 %v12008_v26 }
 0x41c   : > { %v9296_v49 = vpop.f32.mrf.mxu0 }
 0x41d   : > { %v4360_v44 = vmul.f32 %v9296_v49, %v12014_v38 }
 0x41e   : > { %v4224_v0 = vpop.f32.mrf.mxu0 }
 0x41f   : > { %v4399_v53 = vadd.f32 %v12019_v17, %v4360_v44  ;;  %v4358_v32 = vmul.f32 %v12014_v38, %v4224_v0 }
 0x420   : > { %v9297_v14 = vpop.f32.mrf.mxu0 }
 0x421   : > { %vm4431_vm0 = vcmp.gt.f32.partialorder %v4399_v53, 0.0  ;;  %v4463_v45 = vmul.f32 0.1, %v4399_v53  ;;  %v4397_v42 = vadd.f32 %v12019_v17, %v4358_v32  ;;  %v4361_v50 = vmul.f32 %v9297_v14, %v12014_v38 }
 0x422   : > { %v4227_v20 = vpop.f32.mrf.mxu0 }
 0x423   : > { %v4495_v10 = vsel %vm4431_vm0, %v4399_v53, %v4463_v45  ;;  %vm4429_vm1 = vcmp.gt.f32.partialorder %v4397_v42, 0.0  ;;  %v4461_v2 = vmul.f32 0.1, %v4397_v42  ;;  %v4400_v63 = vadd.f32 %v12019_v17, %v4361_v50 }
 0x424   : > { %4599 = vst [vmem:[#allocation2 + $0x48] sm:$0xff] %v4495_v10  ;;  %v4359_v62 = vmul.f32 %v12014_v38, %v4227_v20  ;;  %v9300_v54 = vpop.f32.mrf.mxu0  ;;  %v10047_v20 = vld [vmem:[#allocation11 + $0xa0] sm:$0xff]  }
 0x425   : > { %v4493_v12 = vsel %vm4429_vm1, %v4397_v42, %v4461_v2  ;;  %vm4432_vm2 = vcmp.gt.f32.partialorder %v4400_v63, 0.0  ;;  %v4464_v60 = vmul.f32 0.1, %v4400_v63  ;;  %v4364_v39 = vmul.f32 %v9300_v54, %v12014_v38 }
 0x426   : > { %4597 = vst [vmem:[#allocation2 + $0x28] sm:$0xff] %v4493_v12  ;;  %v4398_v51 = vadd.f32 %v12019_v17, %v4359_v62  ;;  %v4240_v31 = vpop.f32.mrf.mxu0 }
 0x427   : > { %v4496_v56 = vsel %vm4432_vm2, %v4400_v63, %v4464_v60  ;;  %v4403_v57 = vadd.f32 %v12019_v17, %v4364_v39  ;;  %v4362_v8 = vmul.f32 %v12014_v38, %v4240_v31 }
 0x428   : > { %4600 = vst [vmem:[#allocation2 + $0x50] sm:$0xff] %v4496_v56  ;;  %vm4430_vm3 = vcmp.gt.f32.partialorder %v4398_v51, 0.0  ;;  %v4462_v59 = vmul.f32 0.1, %v4398_v51  ;;  %v9301_v35 = vpop.f32.mrf.mxu0  ;;  %v4727_v27 = vpack.c.bf16 %v4496_v56, %v4495_v10  ;;  %v10050_v10 = vld [vmem:[#allocation11 + $0xf0] sm:$0xff]  }
 0x429   : > { %vm4435_vm4 = vcmp.gt.f32.partialorder %v4403_v57, 0.0  ;;  %v4467_v22 = vmul.f32 0.1, %v4403_v57  ;;  %v4401_v13 = vadd.f32 %v12019_v17, %v4362_v8  ;;  %v4365_v1 = vmul.f32 %v9301_v35, %v12014_v38  ;;  %v10052_v35 = vld [vmem:[#allocation11 + $0xe8] sm:$0xff]  }
 0x42a   : > { %v4494_v41 = vsel %vm4430_vm3, %v4398_v51, %v4462_v59  ;;  %v4243_v28 = vpop.f32.mrf.mxu0  ;;  %v10048_v59 = vld [vmem:[#allocation11 + $0x98] sm:$0xff]  }
 0x42b   : > { %4598 = vst [vmem:[#allocation2 + $0x30] sm:$0xff] %v4494_v41  ;;  %v12034_v3 = vsel %vm4435_vm4, %v4403_v57, %v4467_v22  ;;  %vm4433_vm5 = vcmp.gt.f32.partialorder %v4401_v13, 0.0  ;;  %v4465_v52 = vmul.f32 0.1, %v4401_v13  ;;  %v4404_v29 = vadd.f32 %v12019_v17, %v4365_v1  ;;  %v4633_v30 = vld [vmem:[#allocation2 + $0x47] sm:$0xff] }
 0x42c   : > { %4603 = vst [vmem:[#allocation2 + $0x88] sm:$0xff] %v12034_v3  ;;  %v4363_v34 = vmul.f32 %v12014_v38, %v4243_v28  ;;  %v9304_v11 = vpop.f32.mrf.mxu0  ;;  %v4726_v37 = vpack.c.bf16 %v4494_v41, %v4493_v12 }
 0x42d   : > { %v4497_v9 = vsel %vm4433_vm5, %v4401_v13, %v4465_v52  ;;  %vm4436_vm6 = vcmp.gt.f32.partialorder %v4404_v29, 0.0  ;;  %v4468_v55 = vmul.f32 0.1, %v4404_v29  ;;  %v4368_v15 = vmul.f32 %v9304_v11, %v12014_v38  ;;  %v4631_v49 = vld [vmem:[#allocation2 + $0x27] sm:$0xff] }
 0x42e   : > { %4601 = vst [vmem:[#allocation2 + $0x68] sm:$0xff] %v4497_v9  ;;  %v4402_v46 = vadd.f32 %v12019_v17, %v4363_v34  ;;  %v4256_v47 = vpop.f32.mrf.mxu0  ;;  %9343 = vmatmul.mubr.bf16.vlgmr.msra.gmra.mxu1 %v4726_v37 }
 0x42f   : > { %v4500_v5 = vsel %vm4436_vm6, %v4404_v29, %v4468_v55  ;;  %v4407_v16 = vadd.f32 %v12019_v17, %v4368_v15  ;;  %v4366_v23 = vmul.f32 %v12014_v38, %v4256_v47  ;;  %9423 = vmatpush3.bf16.msra.mxu1 %v12005_v36  ;;  %9346 = vmatprep.mubr.bf16.mxu1 %v4727_v27  ;;  %v4634_v33 = vld [vmem:[#allocation2 + $0x4f] sm:$0xff] }
 0x430   : > { %4604 = vst [vmem:[#allocation2 + $0x90] sm:$0xff] %v4500_v5  ;;  %vm4434_vm7 = vcmp.gt.f32.partialorder %v4402_v46, 0.0  ;;  %v4466_v61 = vmul.f32 0.1, %v4402_v46  ;;  %v9305_v18 = vpop.f32.mrf.mxu0  ;;  %9424 = vmatprep.subr.bf16.mxu1 %v10045_v21  ;;  %v12046_v40 = vpack.c.bf16 %v4634_v33, %v4633_v30  ;;  %v4729_v14 = vpack.c.bf16 %v4500_v5, %v12034_v3  ;;  %v10051_v15 = vld [vmem:[#allocation11 + $0x90] sm:$0xff]  }
 0x431   : > { %vm4439_vm8 = vcmp.gt.f32.partialorder %v4407_v16, 0.0  ;;  %v4471_v43 = vmul.f32 0.1, %v4407_v16  ;;  %v4405_v48 = vadd.f32 %v12019_v17, %v4366_v23  ;;  %v4369_v24 = vmul.f32 %v9305_v18, %v12014_v38 }
 0x432   : > { %v4498_v25 = vsel %vm4434_vm7, %v4402_v46, %v4466_v61  ;;  %v4259_v19 = vpop.f32.mrf.mxu0  ;;  %v4632_v7 = vld [vmem:[#allocation2 + $0x2f] sm:$0xff]  ;;  %v10053_v46 = vld [vmem:[#allocation11 + $0xe0] sm:$0xff]  }
 0x433   : > { %4602 = vst [vmem:[#allocation2 + $0x70] sm:$0xff] %v4498_v25  ;;  %v12048_v6 = vsel %vm4439_vm8, %v4407_v16, %v4471_v43  ;;  %vm4437_vm9 = vcmp.gt.f32.partialorder %v4405_v48, 0.0  ;;  %v4469_v36 = vmul.f32 0.1, %v4405_v48  ;;  %v4408_v58 = vadd.f32 %v12019_v17, %v4369_v24  ;;  %9425 = vmatpush3.bf16.msra.mxu1 %v10045_v21  ;;  %v4637_v8 = vld [vmem:[#allocation2 + $0x87] sm:$0xff] }
 0x434   : > { %4607 = vst [vmem:[#allocation2 + $0xc8] sm:$0xff] %v12048_v6  ;;  %v4367_v44 = vmul.f32 %v12014_v38, %v4259_v19  ;;  %v9308_v0 = vpop.f32.mrf.mxu0  ;;  %v12053_v53 = vpack.c.bf16 %v4632_v7, %v4631_v49  ;;  %v4728_v32 = vpack.c.bf16 %v4498_v25, %v4497_v9  ;;  %9426 = vmatprep.subr.bf16.mxu1 %v10046_v4  ;;  %v10054_v25 = vld [vmem:[#allocation11 + $0x88] sm:$0xff]   ;;  %v10055_v19 = vld [vmem:[#allocation11 + $0xd8] sm:$0xff]  }
 0x435   : > { %v4501_v45 = vsel %vm4437_vm9, %v4405_v48, %v4469_v36  ;;  %vm4440_vm10 = vcmp.gt.f32.partialorder %v4408_v58, 0.0  ;;  %v4472_v42 = vmul.f32 0.1, %v4408_v58  ;;  %v4372_v50 = vmul.f32 %v9308_v0, %v12014_v38  ;;  %v4635_v29 = vld [vmem:[#allocation2 + $0x67] sm:$0xff] }
 0x436   : > { %4605 = vst [vmem:[#allocation2 + $0xa8] sm:$0xff] %v4501_v45  ;;  %v4406_v2 = vadd.f32 %v12019_v17, %v4367_v44  ;;  %9391 = vmatmul.mubr.bf16.vlgmr.msra.gmra.mxu0 %v12053_v53  ;;  %v4272_v63 = vpop.f32.mrf.mxu0  ;;  %9347 = vmatmul.mubr.bf16.gmra.mxu1 %v4728_v32 }
 0x437   : > { %v4504_v62 = vsel %vm4440_vm10, %v4408_v58, %v4472_v42  ;;  %v4411_v54 = vadd.f32 %v12019_v17, %v4372_v50  ;;  %9394 = vmatprep.mubr.bf16.mxu0 %v12046_v40  ;;  %v4370_v12 = vmul.f32 %v12014_v38, %v4272_v63  ;;  %9350 = vmatprep.mubr.bf16.mxu1 %v4729_v14  ;;  %v4638_v60 = vld [vmem:[#allocation2 + $0x8f] sm:$0xff] }
 0x438   : > { %4608 = vst [vmem:[#allocation2 + $0xd0] sm:$0xff] %v4504_v62  ;;  %vm4438_vm11 = vcmp.gt.f32.partialorder %v4406_v2, 0.0  ;;  %v4470_v39 = vmul.f32 0.1, %v4406_v2  ;;  %v9309_v51 = vpop.f32.mrf.mxu0  ;;  %9427 = vmatpush3.bf16.msra.mxu1 %v10046_v4  ;;  %9471 = vmatpush3.bf16.msra.mxu0 %v12008_v26  ;;  %v12065_v41 = vpack.c.bf16 %v4638_v60, %v4637_v8  ;;  %v4731_v28 = vpack.c.bf16 %v4504_v62, %v12048_v6  ;;  %v10056_v62 = vld [vmem:[#allocation11 + $0xd0] sm:$0xff]  }
 0x439   : > { %vm4443_vm12 = vcmp.gt.f32.partialorder %v4411_v54, 0.0  ;;  %v4475_v31 = vmul.f32 0.1, %v4411_v54  ;;  %v4409_v56 = vadd.f32 %v12019_v17, %v4370_v12  ;;  %v4373_v57 = vmul.f32 %v9309_v51, %v12014_v38  ;;  %9428 = vmatprep.subr.bf16.mxu1 %v10047_v20  ;;  %9472 = vmatprep.subr.bf16.mxu0 %v10050_v10 }
 0x43a   : > { %v4502_v22 = vsel %vm4438_vm11, %v4406_v2, %v4470_v39  ;;  %v4275_v13 = vpop.f32.mrf.mxu0  ;;  %v4636_v1 = vld [vmem:[#allocation2 + $0x6f] sm:$0xff] }
 0x43b   : > { %4606 = vst [vmem:[#allocation2 + $0xb0] sm:$0xff] %v4502_v22  ;;  %v12068_v26 = vsel %vm4443_vm12, %v4411_v54, %v4475_v31  ;;  %vm4441_vm13 = vcmp.gt.f32.partialorder %v4409_v56, 0.0  ;;  %v4473_v3 = vmul.f32 0.1, %v4409_v56  ;;  %v4412_v52 = vadd.f32 %v12019_v17, %v4373_v57  ;;  %v4641_v30 = vld [vmem:[#allocation2 + $0xc7] sm:$0xff] }
 0x43c   : > { %4611 = vst [vmem:[#allocation2 + $0x108] sm:$0xff] %v12068_v26  ;;  %v4371_v34 = vmul.f32 %v12014_v38, %v4275_v13  ;;  %v9312_v11 = vpop.f32.mrf.mxu0  ;;  %v12073_v37 = vpack.c.bf16 %v4636_v1, %v4635_v29  ;;  %v4730_v27 = vpack.c.bf16 %v4502_v22, %v4501_v45  ;;  %9429 = vmatpush3.bf16.msra.mxu1 %v10047_v20  ;;  %v10057_v54 = vld [vmem:[#allocation11 + $0x80] sm:$0xff]   ;;  %v10058_v1 = vld [vmem:[#allocation11 + $0xc8] sm:$0xff]  }
 0x43d   : > { %9473 = vmatpush3.bf16.msra.mxu0 %v10050_v10  ;;  %v12075_v21 = vsel %vm4441_vm13, %v4409_v56, %v4473_v3  ;;  %vm4444_vm14 = vcmp.gt.f32.partialorder %v4412_v52, 0.0  ;;  %v4476_v9 = vmul.f32 0.1, %v4412_v52  ;;  %v4376_v55 = vmul.f32 %v9312_v11, %v12014_v38  ;;  %9430 = vmatprep.subr.bf16.mxu1 %v10048_v59  ;;  %v4639_v14 = vld [vmem:[#allocation2 + $0xa7] sm:$0xff] }
 0x43e   : > { %9474 = vmatprep.subr.bf16.mxu0 %v10052_v35  ;;  %4609 = vst [vmem:[#allocation2 + $0xe8] sm:$0xff] %v12075_v21  ;;  %v4410_v47 = vadd.f32 %v12019_v17, %v4371_v34  ;;  %9395 = vmatmul.mubr.bf16.gmra.mxu0 %v12073_v37  ;;  %v4288_v5 = vpop.f32.mrf.mxu0 }
 0x43f   : > { %9351 = vmatmul.mubr.bf16.gmra.mxu1 %v4730_v27  ;;  %v4508_v16 = vsel %vm4444_vm14, %v4412_v52, %v4476_v9  ;;  %v4415_v23 = vadd.f32 %v12019_v17, %v4376_v55  ;;  %9398 = vmatprep.mubr.bf16.mxu0 %v12065_v41  ;;  %v4374_v33 = vmul.f32 %v12014_v38, %v4288_v5  ;;  %v4642_v61 = vld [vmem:[#allocation2 + $0xcf] sm:$0xff] }
 0x440   : > { %9354 = vmatprep.mubr.bf16.mxu1 %v4731_v28  ;;  %4612 = vst [vmem:[#allocation2 + $0x110] sm:$0xff] %v4508_v16  ;;  %vm4442_vm15 = vcmp.gt.f32.partialorder %v4410_v47, 0.0  ;;  %v4474_v18 = vmul.f32 0.1, %v4410_v47  ;;  %v9313_v4 = vpop.f32.mrf.mxu0  ;;  %9431 = vmatpush3.bf16.msra.mxu1 %v10048_v59  ;;  %v12086_v58 = vpack.c.bf16 %v4642_v61, %v4641_v30  ;;  %v4733_v49 = vpack.c.bf16 %v4508_v16, %v12068_v26  ;;  %v12108_v28 = vld [vmem:[#allocation11 + $0x138] sm:$0xff]  }
 0x441   : > { %9475 = vmatpush3.bf16.msra.mxu0 %v10052_v35  ;;  %vm4447_vm0 = vcmp.gt.f32.partialorder %v4415_v23, 0.0  ;;  %v4479_v43 = vmul.f32 0.1, %v4415_v23  ;;  %v4413_v48 = vadd.f32 %v12019_v17, %v4374_v33  ;;  %v4377_v24 = vmul.f32 %v9313_v4, %v12014_v38  ;;  %9432 = vmatprep.subr.bf16.mxu1 %v10051_v15  ;;  %v10059_v33 = vld [vmem:[#allocation11 + $0xc0] sm:$0xff]  }
 0x442   : > { %9476 = vmatprep.subr.bf16.mxu0 %v10053_v46  ;;  %v4506_v7 = vsel %vm4442_vm15, %v4410_v47, %v4474_v18  ;;  %v4291_v6 = vpop.f32.mrf.mxu0  ;;  %v4640_v36 = vld [vmem:[#allocation2 + $0xaf] sm:$0xff] }
 0x443   : > { %4610 = vst [vmem:[#allocation2 + $0xf0] sm:$0xff] %v4506_v7  ;;  %v12089_v44 = vsel %vm4447_vm0, %v4415_v23, %v4479_v43  ;;  %vm4445_vm1 = vcmp.gt.f32.partialorder %v4413_v48, 0.0  ;;  %v4477_v0 = vmul.f32 0.1, %v4413_v48  ;;  %v4416_v32 = vadd.f32 %v12019_v17, %v4377_v24  ;;  %v4645_v13 = vld [vmem:[#allocation2 + $0x107] sm:$0xff] }
 0x444   : > { %4615 = vst [vmem:[#allocation2 + $0x148] sm:$0xff] %v12089_v44  ;;  %v4375_v45 = vmul.f32 %v12014_v38, %v4291_v6  ;;  %v9316_v42 = vpop.f32.mrf.mxu0  ;;  %v12094_v50 = vpack.c.bf16 %v4640_v36, %v4639_v14  ;;  %v4732_v20 = vpack.c.bf16 %v4506_v7, %v12075_v21  ;;  %9433 = vmatpush3.bf16.msra.mxu1 %v10051_v15 }
 0x445   : > { %9477 = vmatpush3.bf16.msra.mxu0 %v10053_v46  ;;  %v12097_v10 = vsel %vm4445_vm1, %v4413_v48, %v4477_v0  ;;  %vm4448_vm2 = vcmp.gt.f32.partialorder %v4416_v32, 0.0  ;;  %v4480_v2 = vmul.f32 0.1, %v4416_v32  ;;  %v4380_v63 = vmul.f32 %v9316_v42, %v12014_v38  ;;  %9434 = vmatprep.subr.bf16.mxu1 %v10054_v25  ;;  %v4643_v9 = vld [vmem:[#allocation2 + $0xe7] sm:$0xff] }
 0x446   : > { %9478 = vmatprep.subr.bf16.mxu0 %v10055_v19  ;;  %4613 = vst [vmem:[#allocation2 + $0x128] sm:$0xff] %v12097_v10  ;;  %v4414_v12 = vadd.f32 %v12019_v17, %v4375_v45  ;;  %9399 = vmatmul.mubr.bf16.gmra.mxu0 %v12094_v50  ;;  %v4304_v60 = vpop.f32.mrf.mxu0 }
 0x447   : > { %9355 = vmatmul.mubr.bf16.gmra.mxu1 %v4732_v20  ;;  %v4512_v39 = vsel %vm4448_vm2, %v4416_v32, %v4480_v2  ;;  %v4419_v51 = vadd.f32 %v12019_v17, %v4380_v63  ;;  %9402 = vmatprep.mubr.bf16.mxu0 %v12086_v58  ;;  %v4378_v31 = vmul.f32 %v12014_v38, %v4304_v60  ;;  %v4646_v56 = vld [vmem:[#allocation2 + $0x10f] sm:$0xff] }
 0x448   : > { %9358 = vmatprep.mubr.bf16.mxu1 %v4733_v49  ;;  %4616 = vst [vmem:[#allocation2 + $0x150] sm:$0xff] %v4512_v39  ;;  %vm4446_vm3 = vcmp.gt.f32.partialorder %v4414_v12, 0.0  ;;  %v4478_v57 = vmul.f32 0.1, %v4414_v12  ;;  %v9317_v8 = vpop.f32.mrf.mxu0  ;;  %9435 = vmatpush3.bf16.msra.mxu1 %v10054_v25  ;;  %v12110_v29 = vpack.c.bf16 %v4646_v56, %v4645_v13  ;;  %v4735_v34 = vpack.c.bf16 %v4512_v39, %v12089_v44  ;;  %v12130_v49 = vld [vmem:[#allocation11 + $0x178] sm:$0xff]  }
 0x449   : > { %9479 = vmatpush3.bf16.msra.mxu0 %v10055_v19  ;;  %vm4451_vm4 = vcmp.gt.f32.partialorder %v4419_v51, 0.0  ;;  %v4483_v59 = vmul.f32 0.1, %v4419_v51  ;;  %v4417_v35 = vadd.f32 %v12019_v17, %v4378_v31  ;;  %v4381_v22 = vmul.f32 %v9317_v8, %v12014_v38  ;;  %9436 = vmatprep.subr.bf16.mxu1 %v10057_v54 }
 0x44a   : > { %9480 = vmatprep.subr.bf16.mxu0 %v10056_v62  ;;  %v4510_v26 = vsel %vm4446_vm3, %v4414_v12, %v4478_v57  ;;  %v4307_v3 = vpop.f32.mrf.mxu0  ;;  %v4644_v52 = vld [vmem:[#allocation2 + $0xef] sm:$0xff] }
 0x44b   : > { %4614 = vst [vmem:[#allocation2 + $0x130] sm:$0xff] %v4510_v26  ;;  %v12113_v11 = vsel %vm4451_vm4, %v4419_v51, %v4483_v59  ;;  %vm4449_vm5 = vcmp.gt.f32.partialorder %v4417_v35, 0.0  ;;  %v4481_v27 = vmul.f32 0.1, %v4417_v35  ;;  %v4420_v21 = vadd.f32 %v12019_v17, %v4381_v22  ;;  %v4649_v36 = vld [vmem:[#allocation2 + $0x147] sm:$0xff] }
 0x44c   : > { %4619 = vst [vmem:[#allocation2 + $0x188] sm:$0xff] %v12113_v11  ;;  %v4379_v55 = vmul.f32 %v12014_v38, %v4307_v3  ;;  %v9320_v15 = vpop.f32.mrf.mxu0  ;;  %v12118_v46 = vpack.c.bf16 %v4644_v52, %v4643_v9  ;;  %v4734_v47 = vpack.c.bf16 %v4510_v26, %v12097_v10  ;;  %9437 = vmatpush3.bf16.msra.mxu1 %v10057_v54 }
 0x44d   : > { %9481 = vmatpush3.bf16.msra.mxu0 %v10056_v62  ;;  %v4513_v5 = vsel %vm4449_vm5, %v4417_v35, %v4481_v27  ;;  %vm4452_vm6 = vcmp.gt.f32.partialorder %v4420_v21, 0.0  ;;  %v4484_v16 = vmul.f32 0.1, %v4420_v21  ;;  %v4384_v23 = vmul.f32 %v9320_v15, %v12014_v38  ;;  %9518 = vmatprep.subr.bf16.mxu1 %v12108_v28  ;;  %v4647_v10 = vld [vmem:[#allocation2 + $0x127] sm:$0xff] }
 0x44e   : > { %9482 = vmatprep.subr.bf16.mxu0 %v10058_v1  ;;  %4617 = vst [vmem:[#allocation2 + $0x168] sm:$0xff] %v4513_v5  ;;  %v4418_v61 = vadd.f32 %v12019_v17, %v4379_v55  ;;  %9403 = vmatmul.mubr.bf16.gmra.mxu0 %v12118_v46  ;;  %v4320_v18 = vpop.f32.mrf.mxu0 }
 0x44f   : > { %9359 = vmatmul.mubr.bf16.gmra.mxu1 %v4734_v47  ;;  %v4516_v4 = vsel %vm4452_vm6, %v4420_v21, %v4484_v16  ;;  %v4423_v43 = vadd.f32 %v12019_v17, %v4384_v23  ;;  %9406 = vmatprep.mubr.bf16.mxu0 %v12110_v29  ;;  %v4382_v48 = vmul.f32 %v12014_v38, %v4320_v18  ;;  %v4650_v24 = vld [vmem:[#allocation2 + $0x14f] sm:$0xff] }
 0x450   : > { %9362 = vmatprep.mubr.bf16.mxu1 %v4735_v34  ;;  %4620 = vst [vmem:[#allocation2 + $0x190] sm:$0xff] %v4516_v4  ;;  %vm4450_vm7 = vcmp.gt.f32.partialorder %v4418_v61, 0.0  ;;  %v4482_v30 = vmul.f32 0.1, %v4418_v61  ;;  %v9321_v25 = vpop.f32.mrf.mxu0  ;;  %v12134_v14 = vpack.c.bf16 %v4650_v24, %v4649_v36  ;;  %v4737_v12 = vpack.c.bf16 %v4516_v4, %v12113_v11  ;;  %v5177_v24 = vld [vmem:[#allocation2 + $0x11] sm:$0xff] }
 0x451   : > { %9483 = vmatpush3.bf16.msra.mxu0 %v10058_v1  ;;  %vm4455_vm8 = vcmp.gt.f32.partialorder %v4423_v43, 0.0  ;;  %v4487_v19 = vmul.f32 0.1, %v4423_v43  ;;  %v4421_v7 = vadd.f32 %v12019_v17, %v4382_v48  ;;  %v4385_v6 = vmul.f32 %v9321_v25, %v12014_v38  ;;  %v5176_v48 = vld [vmem:[#allocation2 + $0x9] sm:$0xff] }
 0x452   : > { %9484 = vmatprep.subr.bf16.mxu0 %v10059_v33  ;;  %v12132_v44 = vsel %vm4450_vm7, %v4418_v61, %v4482_v30  ;;  %v4323_v0 = vpop.f32.mrf.mxu0  ;;  %v4648_v32 = vld [vmem:[#allocation2 + $0x12f] sm:$0xff]  ;;  %v5208_v36 = vpack.c.bf16 %v5177_v24, %v5176_v48 }
 0x453   : > { %4618 = vst [vmem:[#allocation2 + $0x170] sm:$0xff] %v12132_v44  ;;  %v4519_v45 = vsel %vm4455_vm8, %v4423_v43, %v4487_v19  ;;  %vm4453_vm9 = vcmp.gt.f32.partialorder %v4421_v7, 0.0  ;;  %v4485_v42 = vmul.f32 0.1, %v4421_v7  ;;  %v4424_v20 = vadd.f32 %v12019_v17, %v4385_v6  ;;  %v4653_v15 = vld [vmem:[#allocation2 + $0x187] sm:$0xff]  ;;  %v5197_v24 = vld [vmem:[#allocation2 + $0x151] sm:$0xff] }
 0x454   : > { %4623 = vst [vmem:[#allocation2 + $0x1c8] sm:$0xff] %v4519_v45  ;;  %v4383_v2 = vmul.f32 %v12014_v38, %v4323_v0  ;;  %v9324_v63 = vpop.f32.mrf.mxu0  ;;  %v12139_v62 = vpack.c.bf16 %v4648_v32, %v4647_v10  ;;  %v4736_v54 = vpack.c.bf16 %v12132_v44, %v4513_v5  ;;  %v5196_v48 = vld [vmem:[#allocation2 + $0x149] sm:$0xff] }
 0x455   : > { %9485 = vmatpush3.bf16.msra.mxu0 %v10059_v33  ;;  %v4517_v60 = vsel %vm4453_vm9, %v4421_v7, %v4485_v42  ;;  %vm4456_vm10 = vcmp.gt.f32.partialorder %v4424_v20, 0.0  ;;  %v4488_v39 = vmul.f32 0.1, %v4424_v20  ;;  %v4388_v51 = vmul.f32 %v9324_v63, %v12014_v38  ;;  %v4651_v55 = vld [vmem:[#allocation2 + $0x167] sm:$0xff]  ;;  %v5179_v42 = vld [vmem:[#allocation2 + $0x31] sm:$0xff] }
 0x456   : > { %9566 = vmatprep.subr.bf16.mxu0 %v12130_v49  ;;  %4621 = vst [vmem:[#allocation2 + $0x1a8] sm:$0xff] %v4517_v60  ;;  %v4422_v31 = vadd.f32 %v12019_v17, %v4383_v2  ;;  %9407 = vmatmul.mubr.bf16.gmra.mxu0 %v12139_v62  ;;  %v4336_v56 = vpop.f32.mrf.mxu0  ;;  %v5180_v63 = vld [vmem:[#allocation2 + $0x49] sm:$0xff] }
 0x457   : > { %9363 = vmatmul.mubr.bf16.gmra.mxu1 %v4736_v54  ;;  %v4520_v57 = vsel %vm4456_vm10, %v4424_v20, %v4488_v39  ;;  %v4427_v8 = vadd.f32 %v12019_v17, %v4388_v51  ;;  %9410 = vmatprep.mubr.bf16.mxu0 %v12134_v14  ;;  %v4386_v59 = vmul.f32 %v12014_v38, %v4336_v56  ;;  %v4654_v3 = vld [vmem:[#allocation2 + $0x18f] sm:$0xff] }
 0x458   : > { %9366 = vmatprep.mubr.bf16.mxu1 %v4737_v12  ;;  %4624 = vst [vmem:[#allocation2 + $0x1d0] sm:$0xff] %v4520_v57  ;;  %vm4454_vm11 = vcmp.gt.f32.partialorder %v4422_v31, 0.0  ;;  %v4486_v35 = vmul.f32 0.1, %v4422_v31  ;;  %v9325_v22 = vpop.f32.mrf.mxu0  ;;  %v12156_v16 = vpack.c.bf16 %v4654_v3, %v4653_v15  ;;  %v4739_v18 = vpack.c.bf16 %v4520_v57, %v4519_v45  ;;  %v5178_v45 = vld [vmem:[#allocation2 + $0x29] sm:$0xff]  ;;  %v5181_v54 = vld [vmem:[#allocation2 + $0x51] sm:$0xff] }
 0x459   : > { %vm4459_vm12 = vcmp.gt.f32.partialorder %v4427_v8, 0.0  ;;  %v4491_v13 = vmul.f32 0.1, %v4427_v8  ;;  %v4425_v1 = vadd.f32 %v12019_v17, %v4386_v59  ;;  %v4389_v26 = vmul.f32 %v9325_v22, %v12014_v38  ;;  %v10062_v51 = vld [vmem:[#allocation11 + $0x128] sm:$0xff]   ;;  %v5183_v56 = vld [vmem:[#allocation2 + $0x71] sm:$0xff]  ;;  %v10063_v22 = vld [vmem:[#allocation11 + $0x120] sm:$0xff]  }
 0x45a   : > { %v4518_v52 = vsel %vm4454_vm11, %v4422_v31, %v4486_v35  ;;  %v4339_v34 = vpop.f32.mrf.mxu0  ;;  %v4652_v11 = vld [vmem:[#allocation2 + $0x16f] sm:$0xff]  ;;  %v12178_v12 = vpack.c.bf16 %v5179_v42, %v5178_v45  ;;  %v12182_v39 = vpack.c.bf16 %v5181_v54, %v5180_v63 }
 0x45b   : > { %4622 = vst [vmem:[#allocation2 + $0x1b0] sm:$0xff] %v4518_v52  ;;  %v4523_v27 = vsel %vm4459_vm12, %v4427_v8, %v4491_v13  ;;  %vm4457_vm13 = vcmp.gt.f32.partialorder %v4425_v1, 0.0  ;;  %v4489_v21 = vmul.f32 0.1, %v4425_v1  ;;  %v4428_v9 = vadd.f32 %v12019_v17, %v4389_v26  ;;  %v4657_v0 = vld [vmem:[#allocation2 + $0x1c7] sm:$0xff]  ;;  %v5185_v8 = vld [vmem:[#allocation2 + $0x91] sm:$0xff] }
 0x45c   : > { %4627 = vst [vmem:[#allocation2 + $0x208] sm:$0xff] %v4523_v27  ;;  %v4387_v47 = vmul.f32 %v12014_v38, %v4339_v34  ;;  %v12154_v5 = vpack.c.bf16 %v4652_v11, %v4651_v55  ;;  %v12158_v23 = vpack.c.bf16 %v4518_v52, %v4517_v60  ;;  %v10061_v60 = vld [vmem:[#allocation11 + $0x130] sm:$0xff]   ;;  %v10068_v26 = vld [vmem:[#allocation11 + $0x168] sm:$0xff]   ;;  %v10069_v11 = vld [vmem:[#allocation11 + $0x160] sm:$0xff]  }
 0x45d   : > { %v4521_v33 = vsel %vm4457_vm13, %v4425_v1, %v4489_v21  ;;  %vm4460_vm14 = vcmp.gt.f32.partialorder %v4428_v9, 0.0  ;;  %v4492_v61 = vmul.f32 0.1, %v4428_v9  ;;  %v4655_v25 = vld [vmem:[#allocation2 + $0x1a7] sm:$0xff]  ;;  %v10066_v13 = vld [vmem:[#allocation11 + $0x170] sm:$0xff]  }
 0x45e   : > { %4625 = vst [vmem:[#allocation2 + $0x1e8] sm:$0xff] %v4521_v33  ;;  %v4426_v4 = vadd.f32 %v12019_v17, %v4387_v47  ;;  %9411 = vmatmul.mubr.bf16.gmra.mxu0 %v12154_v5  ;;  %v5182_v31 = vld [vmem:[#allocation2 + $0x69] sm:$0xff]  ;;  %v5187_v1 = vld [vmem:[#allocation2 + $0xb1] sm:$0xff] }
 0x45f   : > { %9367 = vmatmul.mubr.bf16.gmra.mxu1 %v12158_v23  ;;  %v12163_v43 = vsel %vm4460_vm14, %v4428_v9, %v4492_v61  ;;  %9414 = vmatprep.mubr.bf16.mxu0 %v12156_v16  ;;  %v4658_v7 = vld [vmem:[#allocation2 + $0x1cf] sm:$0xff]  ;;  %v12187_v59 = vpack.c.bf16 %v5183_v56, %v5182_v31  ;;  %v10071_v9 = vld [vmem:[#allocation11 + $0x158] sm:$0xff]  }
 0x460   : > { %9370 = vmatprep.mubr.bf16.mxu1 %v4739_v18  ;;  %4628 = vst [vmem:[#allocation2 + $0x210] sm:$0xff] %v12163_v43  ;;  %vm4458_vm15 = vcmp.gt.f32.partialorder %v4426_v4, 0.0  ;;  %v4490_v38 = vmul.f32 0.1, %v4426_v4  ;;  %v12171_v32 = vpack.c.bf16 %v4658_v7, %v4657_v0  ;;  %v5184_v57 = vld [vmem:[#allocation2 + $0x89] sm:$0xff]  ;;  %v5189_v52 = vld [vmem:[#allocation2 + $0xd1] sm:$0xff] }
 0x461   : > { %v12189_v35 = vpack.c.bf16 %v5185_v8, %v5184_v57  ;;  %v5188_v3 = vld [vmem:[#allocation2 + $0xc9] sm:$0xff]  ;;  %v5191_v21 = vld [vmem:[#allocation2 + $0xf1] sm:$0xff] }
 0x462   : > { %v4522_v30 = vsel %vm4458_vm15, %v4426_v4, %v4490_v38  ;;  %v4656_v19 = vld [vmem:[#allocation2 + $0x1af] sm:$0xff]  ;;  %v10076_v38 = vld [vmem:[#allocation11 + $0x1b8] sm:$0xff]  }
 0x463   : > { %4626 = vst [vmem:[#allocation2 + $0x1f0] sm:$0xff] %v4522_v30  ;;  %v12167_v17 = vpack.c.bf16 %v4656_v19, %v4655_v25  ;;  %v12169_v6 = vpack.c.bf16 %v4522_v30, %v4521_v33  ;;  %v5190_v27 = vld [vmem:[#allocation2 + $0xe9] sm:$0xff]  ;;  %v5193_v15 = vld [vmem:[#allocation2 + $0x111] sm:$0xff]  ;;  %v10073_v33 = vld [vmem:[#allocation11 + $0x100] sm:$0xff]  }
 0x464   : > { %v5192_v55 = vld [vmem:[#allocation2 + $0x109] sm:$0xff]  ;;  %v12204_v47 = vpack.c.bf16 %v5191_v21, %v5190_v27  ;;  %v5195_v4 = vld [vmem:[#allocation2 + $0x131] sm:$0xff]  ;;  %v10079_v27 = vld [vmem:[#allocation11 + $0x1a0] sm:$0xff]  }
 0x465   : > { %v4659_v20 = vld [vmem:[#allocation2 + $0x1e7] sm:$0xff]  ;;  %v5199_v19 = vld [vmem:[#allocation2 + $0x171] sm:$0xff] }
 0x466   : > { %9415 = vmatmul.mubr.bf16.gmra.mxu0 %v12167_v17  ;;  %v10074_v61 = vld [vmem:[#allocation11 + $0x148] sm:$0xff]   ;;  %v10081_v7 = vld [vmem:[#allocation11 + $0x1f8] sm:$0xff]   ;;  %v5791_v57 = vld [vmem:[#allocation2 + $0x50] sm:$0xff] }
 0x467   : > { %9371 = vmatmul.mubr.bf16.gmra.mxu1 %v12169_v6  ;;  %9418 = vmatprep.mubr.bf16.mxu0 %v12171_v32  ;;  %v5194_v18 = vld [vmem:[#allocation2 + $0x129] sm:$0xff]  ;;  %v5201_v0 = vld [vmem:[#allocation2 + $0x191] sm:$0xff] }
 0x468   : > { %9438 = vmatprep.mubr.bf16.mxu1 %v5208_v36  ;;  %v12212_v30 = vpack.c.bf16 %v5195_v4, %v5194_v18  ;;  %v5198_v25 = vld [vmem:[#allocation2 + $0x169] sm:$0xff]  ;;  %v10085_v18 = vld [vmem:[#allocation11 + $0x1e0] sm:$0xff]  }
 0x469   : > { %v5200_v36 = vld [vmem:[#allocation2 + $0x189] sm:$0xff]  ;;  %v12220_v45 = vpack.c.bf16 %v5199_v19, %v5198_v25 }
 0x46a   : > { %v4660_v10 = vld [vmem:[#allocation2 + $0x1ef] sm:$0xff]  ;;  %v12222_v42 = vpack.c.bf16 %v5201_v0, %v5200_v36  ;;  %v5512_v8 = vld [vmem:[#allocation2 + $0x207] sm:$0xff] }
 0x46b   : > { %v12176_v2 = vpack.c.bf16 %v4660_v10, %v4659_v20  ;;  %v5204_v20 = vld [vmem:[#allocation2 + $0x1c9] sm:$0xff]  ;;  %v5205_v10 = vld [vmem:[#allocation2 + $0x1d1] sm:$0xff] }
 0x46c   : > { %v12230_v54 = vpack.c.bf16 %v5205_v10, %v5204_v20  ;;  %v5788_v31 = vld [vmem:[#allocation2 + $0x28] sm:$0xff]  ;;  %v10082_v21 = vld [vmem:[#allocation11 + $0x1f0] sm:$0xff]  }
 0x46d   : > { %v5803_v4 = vld [vmem:[#allocation2 + $0x110] sm:$0xff]  ;;  %v5804_v19 = vld [vmem:[#allocation2 + $0x128] sm:$0xff] }
 0x46e   : > { %9419 = vmatmul.mubr.bf16.gmra.mxu0 %v12176_v2  ;;  %v5807_v36 = vld [vmem:[#allocation2 + $0x150] sm:$0xff]  ;;  %v10090_v0 = vld [vmem:[#allocation11 + $0x1c8] sm:$0xff]  }
 0x46f   : > { %9439 = vmatmul.mubr.bf16.vlgmr.msra.gmra.mxu1 %v12178_v12  ;;  %9486 = vmatprep.mubr.bf16.mxu0 %v12053_v53  ;;  %v10064_v53 = vld [vmem:[#allocation11 + $0x118] sm:$0xff]   ;;  %v5806_v20 = vld [vmem:[#allocation2 + $0x148] sm:$0xff] }
 0x470   : > { %9519 = vmatpush3.bf16.msra.mxu1 %v12108_v28  ;;  %9442 = vmatprep.mubr.bf16.mxu1 %v12182_v39  ;;  %v5186_v28 = vld [vmem:[#allocation2 + $0xa9] sm:$0xff]  ;;  %v12277_v10 = vpack.c.bf16 %v5807_v36, %v5806_v20 }
 0x471   : > { %9520 = vmatprep.subr.bf16.mxu1 %v10061_v60  ;;  %v12196_v34 = vpack.c.bf16 %v5187_v1, %v5186_v28  ;;  %v10077_v28 = vld [vmem:[#allocation11 + $0x1b0] sm:$0xff]   ;;  %v5792_v1 = vld [vmem:[#allocation2 + $0x68] sm:$0xff] }
 0x472   : > { %v6412_v36 = vld [vmem:[#allocation2 + $0x107] sm:$0xff] }
 0x474   : > { %9521 = vmatpush3.bf16.msra.mxu1 %v10061_v60  ;;  %v5789_v60 = vld [vmem:[#allocation2 + $0x30] sm:$0xff] }
 0x475   : > { %9522 = vmatprep.subr.bf16.mxu1 %v10062_v51  ;;  %v5820_v56 = vpack.c.bf16 %v5789_v60, %v5788_v31 }
 0x476   : > { %9487 = vmatmul.mubr.bf16.vlgmr.msra.gmra.mxu0 %v12046_v40  ;;  %v12198_v40 = vpack.c.bf16 %v5189_v52, %v5188_v3  ;;  %v5797_v3 = vld [vmem:[#allocation2 + $0xb0] sm:$0xff]  ;;  %v5794_v52 = vld [vmem:[#allocation2 + $0x88] sm:$0xff] }
 0x477   : > { %9443 = vmatmul.mubr.bf16.gmra.mxu1 %v12187_v59  ;;  %9490 = vmatprep.mubr.bf16.mxu0 %v12073_v37  ;;  %v10067_v37 = vld [vmem:[#allocation11 + $0x110] sm:$0xff]  }
 0x478   : > { %9446 = vmatprep.mubr.bf16.mxu1 %v12189_v35  ;;  %9523 = vmatpush3.bf16.msra.mxu1 %v10062_v51 }
 0x479   : > { %9567 = vmatpush3.bf16.msra.mxu0 %v12130_v49  ;;  %9524 = vmatprep.subr.bf16.mxu1 %v10063_v22  ;;  %v10070_v49 = vld [vmem:[#allocation11 + $0x108] sm:$0xff]  }
 0x47a   : > { %9568 = vmatprep.subr.bf16.mxu0 %v10066_v13 }
 0x47c   : > { %9525 = vmatpush3.bf16.msra.mxu1 %v10063_v22  ;;  %v5793_v22 = vld [vmem:[#allocation2 + $0x70] sm:$0xff] }
 0x47d   : > { %9569 = vmatpush3.bf16.msra.mxu0 %v10066_v13  ;;  %9526 = vmatprep.subr.bf16.mxu1 %v10064_v53 }
 0x47e   : > { %9570 = vmatprep.subr.bf16.mxu0 %v10068_v26  ;;  %9491 = vmatmul.mubr.bf16.gmra.mxu0 %v12065_v41  ;;  %v12206_v41 = vpack.c.bf16 %v5193_v15, %v5192_v55  ;;  %v10084_v55 = vld [vmem:[#allocation11 + $0x1e8] sm:$0xff]   ;;  %v5801_v15 = vld [vmem:[#allocation2 + $0xf0] sm:$0xff] }
 0x47f   : > { %9447 = vmatmul.mubr.bf16.gmra.mxu1 %v12196_v34  ;;  %9494 = vmatprep.mubr.bf16.mxu0 %v12094_v50  ;;  %v10072_v50 = vld [vmem:[#allocation11 + $0x150] sm:$0xff]  }
 0x480   : > { %9450 = vmatprep.mubr.bf16.mxu1 %v12198_v40  ;;  %9527 = vmatpush3.bf16.msra.mxu1 %v10064_v53 }
 0x481   : > { %9571 = vmatpush3.bf16.msra.mxu0 %v10068_v26  ;;  %9528 = vmatprep.subr.bf16.mxu1 %v10067_v37  ;;  %v5795_v26 = vld [vmem:[#allocation2 + $0x90] sm:$0xff] }
 0x482   : > { %9572 = vmatprep.subr.bf16.mxu0 %v10069_v11 }
 0x484   : > { %9529 = vmatpush3.bf16.msra.mxu1 %v10067_v37  ;;  %v12251_v37 = vpack.c.bf16 %v5795_v26, %v5794_v52  ;;  %v6406_v52 = vld [vmem:[#allocation2 + $0xa7] sm:$0xff] }
 0x485   : > { %9573 = vmatpush3.bf16.msra.mxu0 %v10069_v11  ;;  %9530 = vmatprep.subr.bf16.mxu1 %v10070_v49  ;;  %v5796_v11 = vld [vmem:[#allocation2 + $0xa8] sm:$0xff] }
 0x486   : > { %9574 = vmatprep.subr.bf16.mxu0 %v10071_v9  ;;  %9495 = vmatmul.mubr.bf16.gmra.mxu0 %v12086_v58  ;;  %v12214_v58 = vpack.c.bf16 %v5197_v24, %v5196_v48  ;;  %v10087_v48 = vld [vmem:[#allocation11 + $0x1d8] sm:$0xff]   ;;  %v5805_v24 = vld [vmem:[#allocation2 + $0x130] sm:$0xff] }
 0x487   : > { %9451 = vmatmul.mubr.bf16.gmra.mxu1 %v12204_v47  ;;  %9498 = vmatprep.mubr.bf16.mxu0 %v12118_v46  ;;  %v10075_v46 = vld [vmem:[#allocation11 + $0x140] sm:$0xff]  }
 0x488   : > { %9454 = vmatprep.mubr.bf16.mxu1 %v12206_v41  ;;  %9531 = vmatpush3.bf16.msra.mxu1 %v10070_v49  ;;  %v12253_v49 = vpack.c.bf16 %v5797_v3, %v5796_v11  ;;  %v6409_v3 = vld [vmem:[#allocation2 + $0xcf] sm:$0xff] }
 0x489   : > { %9575 = vmatpush3.bf16.msra.mxu0 %v10071_v9  ;;  %9532 = vmatprep.subr.bf16.mxu1 %v10073_v33  ;;  %v10080_v9 = vld [vmem:[#allocation11 + $0x198] sm:$0xff]  }
 0x48a   : > { %9576 = vmatprep.subr.bf16.mxu0 %v10072_v50 }
 0x48c   : > { %9533 = vmatpush3.bf16.msra.mxu1 %v10073_v33 }
 0x48d   : > { %9577 = vmatpush3.bf16.msra.mxu0 %v10072_v50  ;;  %9614 = vmatprep.subr.bf16.mxu1 %v10076_v38  ;;  %v5798_v50 = vld [vmem:[#allocation2 + $0xc8] sm:$0xff] }
 0x48e   : > { %9578 = vmatprep.subr.bf16.mxu0 %v10074_v61  ;;  %9499 = vmatmul.mubr.bf16.gmra.mxu0 %v12110_v29  ;;  %v5202_v29 = vld [vmem:[#allocation2 + $0x1a9] sm:$0xff] }
 0x48f   : > { %9455 = vmatmul.mubr.bf16.gmra.mxu1 %v12212_v30  ;;  %9502 = vmatprep.mubr.bf16.mxu0 %v12139_v62  ;;  %v5203_v62 = vld [vmem:[#allocation2 + $0x1b1] sm:$0xff] }
 0x490   : > { %9458 = vmatprep.mubr.bf16.mxu1 %v12214_v58  ;;  %v12228_v63 = vpack.c.bf16 %v5203_v62, %v5202_v29  ;;  %v10092_v29 = vld [vmem:[#allocation11 + $0x238] sm:$0xff]   ;;  %v12275_v62 = vld [vmem:[#allocation2 + $0x168] sm:$0xff] }
 0x491   : > { %9579 = vmatpush3.bf16.msra.mxu0 %v10074_v61  ;;  %v5800_v61 = vld [vmem:[#allocation2 + $0xe8] sm:$0xff] }
 0x492   : > { %9580 = vmatprep.subr.bf16.mxu0 %v10075_v46 }
 0x495   : > { %9581 = vmatpush3.bf16.msra.mxu0 %v10075_v46  ;;  %v5802_v46 = vld [vmem:[#allocation2 + $0x108] sm:$0xff] }
 0x496   : > { %9662 = vmatprep.subr.bf16.mxu0 %v10081_v7  ;;  %9503 = vmatmul.mubr.bf16.gmra.mxu0 %v12134_v14  ;;  %v5206_v14 = vld [vmem:[#allocation2 + $0x1e9] sm:$0xff]  ;;  %v12267_v25 = vpack.c.bf16 %v5803_v4, %v5802_v46  ;;  %v10096_v4 = vld [vmem:[#allocation11 + $0x218] sm:$0xff]  }
 0x497   : > { %9459 = vmatmul.mubr.bf16.gmra.mxu1 %v12220_v45  ;;  %9506 = vmatprep.mubr.bf16.mxu0 %v12154_v5  ;;  %v5207_v5 = vld [vmem:[#allocation2 + $0x1f1] sm:$0xff] }
 0x498   : > { %9462 = vmatprep.mubr.bf16.mxu1 %v12222_v42  ;;  %v12236_v51 = vpack.c.bf16 %v5207_v5, %v5206_v14  ;;  %v5811_v14 = vld [vmem:[#allocation2 + $0x190] sm:$0xff]  ;;  %v5810_v5 = vld [vmem:[#allocation2 + $0x188] sm:$0xff] }
 0x499   : > { %v12284_v60 = vpack.c.bf16 %v5811_v14, %v5810_v5 }
 0x49e   : > { %9507 = vmatmul.mubr.bf16.gmra.mxu0 %v12156_v16  ;;  %v5513_v16 = vld [vmem:[#allocation2 + $0x20f] sm:$0xff] }
 0x49f   : > { %9463 = vmatmul.mubr.bf16.gmra.mxu1 %v12228_v63  ;;  %9510 = vmatprep.mubr.bf16.mxu0 %v12167_v17  ;;  %v5790_v17 = vld [vmem:[#allocation2 + $0x48] sm:$0xff]  ;;  %v12241_v13 = vpack.c.bf16 %v5513_v16, %v5512_v8  ;;  %v6125_v16 = vld [vmem:[#allocation2 + $0x211] sm:$0xff] }
 0x4a0   : > { %9466 = vmatprep.mubr.bf16.mxu1 %v12230_v54  ;;  %v12243_v53 = vpack.c.bf16 %v5791_v57, %v5790_v17  ;;  %v6403_v57 = vld [vmem:[#allocation2 + $0x6f] sm:$0xff] }
 0x4a1   : > { %v6405_v8 = vld [vmem:[#allocation2 + $0x8f] sm:$0xff] }
 0x4a6   : > { %9511 = vmatmul.mubr.bf16.gmra.mxu0 %v12171_v32  ;;  %v12247_v32 = vpack.c.bf16 %v5793_v22, %v5792_v1  ;;  %v10093_v22 = vld [vmem:[#allocation11 + $0x230] sm:$0xff]  }
 0x4a7   : > { %9467 = vmatmul.mubr.bf16.gmra.mxu1 %v12236_v51  ;;  %9514 = vmatprep.mubr.bf16.mxu0 %v12176_v2  ;;  %v10078_v2 = vld [vmem:[#allocation11 + $0x1a8] sm:$0xff]  }
 0x4a8   : > { %9534 = vmatprep.mubr.bf16.mxu1 %v5820_v56  ;;  %v6400_v56 = vld [vmem:[#allocation2 + $0x47] sm:$0xff] }
 0x4ae   : > { %9515 = vmatmul.mubr.bf16.gmra.mxu0 %v12241_v13 }
 0x4af   : > { %9535 = vmatmul.mubr.bf16.vlgmr.msra.gmra.mxu1 %v12243_v53  ;;  %9582 = vmatprep.mubr.bf16.mxu0 %v12178_v12  ;;  %v5799_v12 = vld [vmem:[#allocation2 + $0xd0] sm:$0xff] }
 0x4b0   : > { %9615 = vmatpush3.bf16.msra.mxu1 %v10076_v38  ;;  %9538 = vmatprep.mubr.bf16.mxu1 %v12247_v32  ;;  %v12259_v33 = vpack.c.bf16 %v5799_v12, %v5798_v50  ;;  %v10086_v38 = vld [vmem:[#allocation11 + $0x188] sm:$0xff]  }
 0x4b1   : > { %9616 = vmatprep.subr.bf16.mxu1 %v10077_v28 }
 0x4b4   : > { %9617 = vmatpush3.bf16.msra.mxu1 %v10077_v28  ;;  %v6404_v28 = vld [vmem:[#allocation2 + $0x87] sm:$0xff] }
 0x4b5   : > { %9618 = vmatprep.subr.bf16.mxu1 %v10078_v2  ;;  %v6434_v1 = vpack.c.bf16 %v6405_v8, %v6404_v28  ;;  %v6416_v8 = vld [vmem:[#allocation2 + $0x147] sm:$0xff] }
 0x4b6   : > { %9583 = vmatmul.mubr.bf16.vlgmr.msra.gmra.mxu0 %v12182_v39  ;;  %v12261_v39 = vpack.c.bf16 %v5801_v15, %v5800_v61 }
 0x4b7   : > { %9539 = vmatmul.mubr.bf16.gmra.mxu1 %v12251_v37  ;;  %9586 = vmatprep.mubr.bf16.mxu0 %v12187_v59  ;;  %v10083_v59 = vld [vmem:[#allocation11 + $0x190] sm:$0xff]  }
 0x4b8   : > { %9542 = vmatprep.mubr.bf16.mxu1 %v12253_v49  ;;  %9619 = vmatpush3.bf16.msra.mxu1 %v10078_v2  ;;  %v6407_v2 = vld [vmem:[#allocation2 + $0xaf] sm:$0xff] }
 0x4b9   : > { %9663 = vmatpush3.bf16.msra.mxu0 %v10081_v7  ;;  %9620 = vmatprep.subr.bf16.mxu1 %v10079_v27  ;;  %v10089_v7 = vld [vmem:[#allocation11 + $0x180] sm:$0xff]  }
 0x4ba   : > { %9664 = vmatprep.subr.bf16.mxu0 %v10082_v21 }
 0x4bc   : > { %9621 = vmatpush3.bf16.msra.mxu1 %v10079_v27  ;;  %v6435_v27 = vpack.c.bf16 %v6407_v2, %v6406_v52 }
 0x4bd   : > { %9665 = vmatpush3.bf16.msra.mxu0 %v10082_v21  ;;  %9622 = vmatprep.subr.bf16.mxu1 %v10080_v9  ;;  %v6408_v21 = vld [vmem:[#allocation2 + $0xc7] sm:$0xff] }
 0x4be   : > { %9666 = vmatprep.subr.bf16.mxu0 %v10084_v55  ;;  %9587 = vmatmul.mubr.bf16.gmra.mxu0 %v12189_v35  ;;  %v12269_v35 = vpack.c.bf16 %v5805_v24, %v5804_v19  ;;  %v6436_v12 = vpack.c.bf16 %v6409_v3, %v6408_v21  ;;  %v6413_v24 = vld [vmem:[#allocation2 + $0x10f] sm:$0xff] }
 0x4bf   : > { %9543 = vmatmul.mubr.bf16.gmra.mxu1 %v12259_v33  ;;  %9590 = vmatprep.mubr.bf16.mxu0 %v12196_v34  ;;  %v10088_v34 = vld [vmem:[#allocation11 + $0x1d0] sm:$0xff]  }
 0x4c0   : > { %9546 = vmatprep.mubr.bf16.mxu1 %v12261_v39  ;;  %9623 = vmatpush3.bf16.msra.mxu1 %v10080_v9  ;;  %v10095_v9 = vld [vmem:[#allocation11 + $0x220] sm:$0xff]  }
 0x4c1   : > { %9667 = vmatpush3.bf16.msra.mxu0 %v10084_v55  ;;  %9624 = vmatprep.subr.bf16.mxu1 %v10083_v59 }
 0x4c2   : > { %9668 = vmatprep.subr.bf16.mxu0 %v10085_v18 }
 0x4c4   : > { %9625 = vmatpush3.bf16.msra.mxu1 %v10083_v59 }
 0x4c5   : > { %9669 = vmatpush3.bf16.msra.mxu0 %v10085_v18  ;;  %9626 = vmatprep.subr.bf16.mxu1 %v10086_v38  ;;  %v6411_v18 = vld [vmem:[#allocation2 + $0xef] sm:$0xff] }
 0x4c6   : > { %9670 = vmatprep.subr.bf16.mxu0 %v10087_v48  ;;  %9591 = vmatmul.mubr.bf16.gmra.mxu0 %v12198_v40  ;;  %v5830_v40 = vpack.c.bf16 %v12132_v44, %v12275_v62  ;;  %v5815_v44 = vld [vmem:[#allocation2 + $0x1d0] sm:$0xff] }
 0x4c7   : > { %9547 = vmatmul.mubr.bf16.gmra.mxu1 %v12267_v25  ;;  %9594 = vmatprep.mubr.bf16.mxu0 %v12204_v47  ;;  %v10091_v47 = vld [vmem:[#allocation11 + $0x1c0] sm:$0xff]  }
 0x4c8   : > { %9550 = vmatprep.mubr.bf16.mxu1 %v12269_v35  ;;  %9627 = vmatpush3.bf16.msra.mxu1 %v10086_v38 }
 0x4c9   : > { %9671 = vmatpush3.bf16.msra.mxu0 %v10087_v48  ;;  %9628 = vmatprep.subr.bf16.mxu1 %v10089_v7 }
 0x4ca   : > { %9672 = vmatprep.subr.bf16.mxu0 %v10088_v34 }
 0x4cc   : > { %9629 = vmatpush3.bf16.msra.mxu1 %v10089_v7 }
 0x4cd   : > { %9673 = vmatpush3.bf16.msra.mxu0 %v10088_v34  ;;  %9710 = vmatprep.subr.bf16.mxu1 %v10092_v29 }
 0x4ce   : > { %9674 = vmatprep.subr.bf16.mxu0 %v10090_v0  ;;  %9595 = vmatmul.mubr.bf16.gmra.mxu0 %v12206_v41  ;;  %v5814_v41 = vld [vmem:[#allocation2 + $0x1c8] sm:$0xff] }
 0x4cf   : > { %9551 = vmatmul.mubr.bf16.gmra.mxu1 %v12277_v10  ;;  %9598 = vmatprep.mubr.bf16.mxu0 %v12212_v30  ;;  %v12290_v31 = vpack.c.bf16 %v5815_v44, %v5814_v41  ;;  %v12296_v30 = vld [vmem:[#allocation2 + $0x208] sm:$0xff] }
 0x4d0   : > { %9554 = vmatprep.mubr.bf16.mxu1 %v5830_v40  ;;  %v6415_v41 = vld [vmem:[#allocation2 + $0x12f] sm:$0xff] }
 0x4d1   : > { %9675 = vmatpush3.bf16.msra.mxu0 %v10090_v0  ;;  %v6438_v0 = vpack.c.bf16 %v6413_v24, %v6412_v36  ;;  %v6725_v24 = vld [vmem:[#allocation2 + $0x170] sm:$0xff] }
 0x4d2   : > { %9676 = vmatprep.subr.bf16.mxu0 %v10091_v47 }
 0x4d5   : > { %9677 = vmatpush3.bf16.msra.mxu0 %v10091_v47 }
 0x4d6   : > { %9599 = vmatmul.mubr.bf16.gmra.mxu0 %v12214_v58  ;;  %v6401_v58 = vld [vmem:[#allocation2 + $0x4f] sm:$0xff] }
 0x4d7   : > { %9555 = vmatmul.mubr.bf16.gmra.mxu1 %v12284_v60  ;;  %9602 = vmatprep.mubr.bf16.mxu0 %v12220_v45  ;;  %v5835_v45 = vpack.c.bf16 %v12163_v43, %v12296_v30 }
 0x4d8   : > { %9558 = vmatprep.mubr.bf16.mxu1 %v12158_v23  ;;  %v6432_v23 = vpack.c.bf16 %v6401_v58, %v6400_v56  ;;  %v10098_v58 = vld [vmem:[#allocation11 + $0x208] sm:$0xff]  }
 0x4de   : > { %9603 = vmatmul.mubr.bf16.gmra.mxu0 %v12222_v42  ;;  %v6124_v42 = vld [vmem:[#allocation2 + $0x209] sm:$0xff] }
 0x4df   : > { %9559 = vmatmul.mubr.bf16.gmra.mxu1 %v12290_v31  ;;  %9606 = vmatprep.mubr.bf16.mxu0 %v12228_v63  ;;  %v6402_v63 = vld [vmem:[#allocation2 + $0x67] sm:$0xff] }
 0x4e0   : > { %9562 = vmatprep.mubr.bf16.mxu1 %v12169_v6  ;;  %v12302_v6 = vpack.c.bf16 %v6125_v16, %v6124_v42  ;;  %v6433_v17 = vpack.c.bf16 %v6403_v57, %v6402_v63 }
 0x4e6   : > { %9607 = vmatmul.mubr.bf16.gmra.mxu0 %v12230_v54 }
 0x4e7   : > { %9563 = vmatmul.mubr.bf16.gmra.mxu1 %v5835_v45  ;;  %9610 = vmatprep.mubr.bf16.mxu0 %v12236_v51  ;;  %v10094_v51 = vld [vmem:[#allocation11 + $0x228] sm:$0xff]  }
 0x4e8   : > { %9630 = vmatprep.mubr.bf16.mxu1 %v6432_v23  ;;  %v6417_v23 = vld [vmem:[#allocation2 + $0x14f] sm:$0xff] }
 0x4ee   : > { %9611 = vmatmul.mubr.bf16.gmra.mxu0 %v12302_v6  ;;  %v9344_v43 = vpop.f32.mrf.mxu1 }
 0x4ef   : > { %9631 = vmatmul.mubr.bf16.vlgmr.msra.gmra.mxu1 %v6433_v17  ;;  %9678 = vmatprep.mubr.bf16.mxu0 %v12243_v53  ;;  %v6440_v17 = vpack.c.bf16 %v6417_v23, %v6416_v8 }
 0x4f0   : > { %9711 = vmatpush3.bf16.msra.mxu1 %v10092_v29  ;;  %9634 = vmatprep.mubr.bf16.mxu1 %v6434_v1  ;;  %v4840_v54 = vpop.f32.mrf.mxu1  ;;  %v10097_v29 = vld [vmem:[#allocation11 + $0x210] sm:$0xff]  }
 0x4f1   : > { %9712 = vmatprep.subr.bf16.mxu1 %v10093_v22 }
 0x4f2   : > { %v9345_v26 = vpop.f32.mrf.mxu1 }
 0x4f4   : > { %9713 = vmatpush3.bf16.msra.mxu1 %v10093_v22  ;;  %v4843_v11 = vpop.f32.mrf.mxu1  ;;  %v10099_v22 = vld [vmem:[#allocation11 + $0x200] sm:$0xff]  }
 0x4f5   : > { %9714 = vmatprep.subr.bf16.mxu1 %v10094_v51 }
 0x4f6   : > { %v9392_v55 = vpop.f32.mrf.mxu0  ;;  %9679 = vmatmul.mubr.bf16.vlgmr.msra.gmra.mxu0 %v12247_v32  ;;  %v9348_v53 = vpop.f32.mrf.mxu1  ;;  %v6410_v32 = vld [vmem:[#allocation2 + $0xe7] sm:$0xff] }
 0x4f7   : > { %9635 = vmatmul.mubr.bf16.gmra.mxu1 %v6435_v27  ;;  %v12307_v15 = vadd.f32 %v9392_v55, %v9344_v43  ;;  %9682 = vmatprep.mubr.bf16.mxu0 %v12251_v37  ;;  %v6437_v7 = vpack.c.bf16 %v6411_v18, %v6410_v32  ;;  %v6420_v55 = vld [vmem:[#allocation2 + $0x187] sm:$0xff]  ;;  %v6423_v32 = vld [vmem:[#allocation2 + $0x1af] sm:$0xff] }
 0x4f8   : > { %9638 = vmatprep.mubr.bf16.mxu1 %v6436_v12  ;;  %v5049_v50 = vpop.f32.mrf.mxu0  ;;  %v4856_v61 = vpop.f32.mrf.mxu1  ;;  %9715 = vmatpush3.bf16.msra.mxu1 %v10094_v51 }
 0x4f9   : > { %v12310_v59 = vadd.f32 %v5049_v50, %v4840_v54  ;;  %9716 = vmatprep.subr.bf16.mxu1 %v10095_v9 }
 0x4fa   : > { %v9393_v38 = vpop.f32.mrf.mxu0  ;;  %v9349_v48 = vpop.f32.mrf.mxu1 }
 0x4fb   : > { %v12312_v46 = vadd.f32 %v9393_v38, %v9345_v26  ;;  %v6419_v26 = vld [vmem:[#allocation2 + $0x16f] sm:$0xff] }
 0x4fc   : > { %v5052_v19 = vpop.f32.mrf.mxu0  ;;  %v4859_v34 = vpop.f32.mrf.mxu1  ;;  %9717 = vmatpush3.bf16.msra.mxu1 %v10095_v9 }
 0x4fd   : > { %v12314_v37 = vadd.f32 %v5052_v19, %v4843_v11  ;;  %9718 = vmatprep.subr.bf16.mxu1 %v10096_v4  ;;  %v6421_v11 = vld [vmem:[#allocation2 + $0x18f] sm:$0xff] }
 0x4fe   : > { %v9396_v20 = vpop.f32.mrf.mxu0  ;;  %9683 = vmatmul.mubr.bf16.gmra.mxu0 %v12253_v49  ;;  %v6414_v49 = vld [vmem:[#allocation2 + $0x127] sm:$0xff] }
 0x4ff   : > { %v9352_v40 = vpop.f32.mrf.mxu1  ;;  %9639 = vmatmul.mubr.bf16.gmra.mxu1 %v6437_v7  ;;  %v12317_v47 = vadd.f32 %v9396_v20, %v9348_v53  ;;  %9686 = vmatprep.mubr.bf16.mxu0 %v12259_v33  ;;  %v6439_v63 = vpack.c.bf16 %v6415_v41, %v6414_v49  ;;  %v6442_v53 = vpack.c.bf16 %v6421_v11, %v6420_v55  ;;  %v6425_v7 = vld [vmem:[#allocation2 + $0x1cf] sm:$0xff] }
 0x500   : > { %9642 = vmatprep.mubr.bf16.mxu1 %v6438_v0  ;;  %v5065_v14 = vpop.f32.mrf.mxu0  ;;  %9719 = vmatpush3.bf16.msra.mxu1 %v10096_v4  ;;  %v6422_v0 = vld [vmem:[#allocation2 + $0x1a7] sm:$0xff]  ;;  %v6431_v11 = vld [vmem:[#allocation2 + $0x22f] sm:$0xff] }
 0x501   : > { %v4872_v5 = vpop.f32.mrf.mxu1  ;;  %v12320_v44 = vadd.f32 %v5065_v14, %v4856_v61  ;;  %9720 = vmatprep.subr.bf16.mxu1 %v10097_v29 }
 0x502   : > { %v9397_v45 = vpop.f32.mrf.mxu0 }
 0x503   : > { %v9353_v56 = vpop.f32.mrf.mxu1  ;;  %v12322_v42 = vadd.f32 %v9397_v45, %v9349_v48 }
 0x504   : > { %v5068_v16 = vpop.f32.mrf.mxu0  ;;  %9721 = vmatpush3.bf16.msra.mxu1 %v10097_v29  ;;  %v6747_v29 = vpack.c.bf16 %v6725_v24, %v12275_v62  ;;  %v6729_v62 = vld [vmem:[#allocation2 + $0x1b0] sm:$0xff] }
 0x505   : > { %v4875_v57 = vpop.f32.mrf.mxu1  ;;  %v12324_v33 = vadd.f32 %v5068_v16, %v4859_v34  ;;  %9722 = vmatprep.subr.bf16.mxu1 %v10098_v58  ;;  %v6427_v16 = vld [vmem:[#allocation2 + $0x1ef] sm:$0xff] }
 0x506   : > { %v9400_v28 = vpop.f32.mrf.mxu0  ;;  %9687 = vmatmul.mubr.bf16.gmra.mxu0 %v12261_v39  ;;  %v6418_v39 = vld [vmem:[#allocation2 + $0x167] sm:$0xff] }
 0x507   : > { %v9356_v43 = vpop.f32.mrf.mxu1  ;;  %9643 = vmatmul.mubr.bf16.gmra.mxu1 %v6439_v63  ;;  %v12327_v1 = vadd.f32 %v9400_v28, %v9352_v40  ;;  %9690 = vmatprep.mubr.bf16.mxu0 %v12267_v25  ;;  %v6441_v9 = vpack.c.bf16 %v6419_v26, %v6418_v39  ;;  %v6443_v40 = vpack.c.bf16 %v6423_v32, %v6422_v0  ;;  %v6732_v32 = vld [vmem:[#allocation2 + $0x1e8] sm:$0xff] }
 0x508   : > { %9646 = vmatprep.mubr.bf16.mxu1 %v6440_v17  ;;  %v5081_v54 = vpop.f32.mrf.mxu0  ;;  %9723 = vmatpush3.bf16.msra.mxu1 %v10098_v58  ;;  %v6728_v17 = vld [vmem:[#allocation2 + $0x1a8] sm:$0xff] }
 0x509   : > { %v4888_v51 = vpop.f32.mrf.mxu1  ;;  %v12330_v2 = vadd.f32 %v5081_v54, %v4872_v5  ;;  %9724 = vmatprep.subr.bf16.mxu1 %v10099_v22 }
 0x50a   : > { %v9401_v3 = vpop.f32.mrf.mxu0 }
 0x50b   : > { %v9357_v52 = vpop.f32.mrf.mxu1  ;;  %v12332_v27 = vadd.f32 %v9401_v3, %v9353_v56 }
 0x50c   : > { %v5084_v21 = vpop.f32.mrf.mxu0  ;;  %9725 = vmatpush3.bf16.msra.mxu1 %v10099_v22  ;;  %v6426_v22 = vld [vmem:[#allocation2 + $0x1e7] sm:$0xff] }
 0x50d   : > { %v4891_v12 = vpop.f32.mrf.mxu1  ;;  %v12334_v25 = vadd.f32 %v5084_v21, %v4875_v57 }
 0x50e   : > { %v9404_v50 = vpop.f32.mrf.mxu0  ;;  %9691 = vmatmul.mubr.bf16.gmra.mxu0 %v12269_v35 }
 0x50f   : > { %v9360_v61 = vpop.f32.mrf.mxu1  ;;  %9647 = vmatmul.mubr.bf16.gmra.mxu1 %v6441_v9  ;;  %v12337_v18 = vadd.f32 %v9404_v50, %v9356_v43  ;;  %9694 = vmatprep.mubr.bf16.mxu0 %v12277_v10  ;;  %v6424_v10 = vld [vmem:[#allocation2 + $0x1c7] sm:$0xff]  ;;  %v6749_v43 = vpack.c.bf16 %v6729_v62, %v6728_v17  ;;  %v6733_v9 = vld [vmem:[#allocation2 + $0x1f0] sm:$0xff] }
 0x510   : > { %9650 = vmatprep.mubr.bf16.mxu1 %v6442_v53  ;;  %v5097_v4 = vpop.f32.mrf.mxu0  ;;  %v6444_v5 = vpack.c.bf16 %v6425_v7, %v6424_v10  ;;  %v6735_v53 = vld [vmem:[#allocation2 + $0x210] sm:$0xff] }
 0x511   : > { %v4904_v38 = vpop.f32.mrf.mxu1  ;;  %v12340_v48 = vadd.f32 %v5097_v4, %v4888_v51  ;;  %v6445_v51 = vpack.c.bf16 %v6427_v16, %v6426_v22  ;;  %v7012_v4 = vld [vmem:[#allocation2 + $0x49] sm:$0xff] }
 0x512   : > { %v9405_v19 = vpop.f32.mrf.mxu0 }
 0x513   : > { %v9361_v34 = vpop.f32.mrf.mxu1  ;;  %v12342_v36 = vadd.f32 %v9405_v19, %v9357_v52  ;;  %v6430_v52 = vld [vmem:[#allocation2 + $0x227] sm:$0xff] }
 0x514   : > { %v5100_v35 = vpop.f32.mrf.mxu0 }
 0x515   : > { %v12345_v20 = vpop.f32.mrf.mxu1  ;;  %v12347_v14 = vadd.f32 %v5100_v35, %v4891_v12 }
 0x516   : > { %v9408_v41 = vpop.f32.mrf.mxu0  ;;  %9695 = vmatmul.mubr.bf16.gmra.mxu0 %v6747_v29 }
 0x517   : > { %v9364_v58 = vpop.f32.mrf.mxu1  ;;  %9651 = vmatmul.mubr.bf16.gmra.mxu1 %v6443_v40  ;;  %v12349_v45 = vadd.f32 %v9408_v41, %v9360_v61  ;;  %9698 = vmatprep.mubr.bf16.mxu0 %v12284_v60  ;;  %v6447_v61 = vpack.c.bf16 %v6431_v11, %v6430_v52  ;;  %v7014_v41 = vld [vmem:[#allocation2 + $0x69] sm:$0xff] }
 0x518   : > { %9654 = vmatprep.mubr.bf16.mxu1 %v6444_v5  ;;  %v5113_v56 = vpop.f32.mrf.mxu0 }
 0x519   : > { %v4920_v23 = vpop.f32.mrf.mxu1  ;;  %v12352_v49 = vadd.f32 %v5113_v56, %v4904_v38  ;;  %v7013_v38 = vld [vmem:[#allocation2 + $0x51] sm:$0xff] }
 0x51a   : > { %v9409_v57 = vpop.f32.mrf.mxu0  ;;  %v7044_v7 = vpack.c.bf16 %v7013_v38, %v7012_v4  ;;  %v7020_v38 = vld [vmem:[#allocation2 + $0xc9] sm:$0xff] }
 0x51b   : > { %v9365_v63 = vpop.f32.mrf.mxu1  ;;  %v12354_v8 = vadd.f32 %v9409_v57, %v9361_v34  ;;  %v6752_v34 = vpack.c.bf16 %v6735_v53, %v12296_v30  ;;  %v7016_v30 = vld [vmem:[#allocation2 + $0x89] sm:$0xff]  ;;  %v7017_v57 = vld [vmem:[#allocation2 + $0x91] sm:$0xff] }
 0x51c   : > { %v12356_v28 = vpop.f32.mrf.mxu0  ;;  %v7018_v53 = vld [vmem:[#allocation2 + $0xa9] sm:$0xff] }
 0x51d   : > { %v12358_v54 = vpop.f32.mrf.mxu1 }
 0x51e   : > { %v9412_v60 = vpop.f32.mrf.mxu0  ;;  %9699 = vmatmul.mubr.bf16.gmra.mxu0 %v6749_v43 }
 0x51f   : > { %v9368_v26 = vpop.f32.mrf.mxu1  ;;  %9655 = vmatmul.mubr.bf16.gmra.mxu1 %v6445_v51  ;;  %v12360_v3 = vadd.f32 %v9412_v60, %v9364_v58  ;;  %9702 = vmatprep.mubr.bf16.mxu0 %v12290_v31  ;;  %v6751_v31 = vpack.c.bf16 %v6733_v9, %v6732_v32  ;;  %v7015_v58 = vld [vmem:[#allocation2 + $0x71] sm:$0xff]  ;;  %v7046_v51 = vpack.c.bf16 %v7017_v57, %v7016_v30 }
 0x520   : > { %9658 = vmatprep.mubr.bf16.mxu1 %v12241_v13  ;;  %v5129_v39 = vpop.f32.mrf.mxu0  ;;  %v7045_v43 = vpack.c.bf16 %v7015_v58, %v7014_v41  ;;  %v7021_v32 = vld [vmem:[#allocation2 + $0xd1] sm:$0xff] }
 0x521   : > { %v4936_v21 = vpop.f32.mrf.mxu1  ;;  %v12364_v12 = vadd.f32 %v5129_v39, %v4920_v23  ;;  %v10110_v23 = vld [vmem:[#allocation2] sm:$0xff]  ;;  %v7023_v30 = vld [vmem:[#allocation2 + $0xf1] sm:$0xff] }
 0x522   : > { %v9413_v55 = vpop.f32.mrf.mxu0  ;;  %v6753_v62 = vpack.c.bf16 %v10110_v23, %v10110_v23 }
 0x523   : > { %v9369_v50 = vpop.f32.mrf.mxu1  ;;  %v12366_v24 = vadd.f32 %v9413_v55, %v9365_v63 }
 0x524   : > { %v12368_v19 = vpop.f32.mrf.mxu0 }
 0x525   : > { %v12370_v13 = vpop.f32.mrf.mxu1 }
 0x526   : > { %v9416_v0 = vpop.f32.mrf.mxu0  ;;  %9703 = vmatmul.mubr.bf16.gmra.mxu0 %v6751_v31 }
 0x527   : > { %v9372_v35 = vpop.f32.mrf.mxu1  ;;  %9659 = vmatmul.mubr.bf16.gmra.mxu1 %v6447_v61  ;;  %v12373_v29 = vadd.f32 %v9416_v0, %v9368_v26  ;;  %9706 = vmatprep.mubr.bf16.mxu0 %v6752_v34 }
 0x528   : > { %9726 = vmatprep.mubr.bf16.mxu1 %v7044_v7  ;;  %v5145_v40 = vpop.f32.mrf.mxu0 }
 0x529   : > { %v4952_v10 = vpop.f32.mrf.mxu1  ;;  %v12375_v5 = vadd.f32 %v5145_v40, %v4936_v21  ;;  %v7048_v40 = vpack.c.bf16 %v7021_v32, %v7020_v38 }
 0x52a   : > { %v9417_v56 = vpop.f32.mrf.mxu0 }
 0x52b   : > { %v9373_v16 = vpop.f32.mrf.mxu1  ;;  %v12377_v63 = vadd.f32 %v9417_v56, %v9369_v50  ;;  %v7019_v50 = vld [vmem:[#allocation2 + $0xb1] sm:$0xff] }
 0x52c   : > { %v12379_v17 = vpop.f32.mrf.mxu0  ;;  %v7047_v0 = vpack.c.bf16 %v7019_v50, %v7018_v53 }
 0x52d   : > { %v12381_v22 = vpop.f32.mrf.mxu1 }
 0x52e   : > { %v9420_v60 = vpop.f32.mrf.mxu0  ;;  %9707 = vmatmul.mubr.bf16.gmra.mxu0 %v6753_v62 }
 0x52f   : > { %v9440_v26 = vpop.f32.mrf.mxu1  ;;  %9727 = vmatmul.mubr.bf16.vlgmr.msra.gmra.mxu1 %v7045_v43  ;;  %v12383_v52 = vadd.f32 %v9420_v60, %v9372_v35  ;;  %v7024_v43 = vld [vmem:[#allocation2 + $0x109] sm:$0xff] }
 0x530   : > { %v5452_v11 = vadd.f32 %v9440_v26, %v12307_v15  ;;  %9730 = vmatprep.mubr.bf16.mxu1 %v7046_v51  ;;  %v5161_v39 = vpop.f32.mrf.mxu0  ;;  %v7025_v51 = vld [vmem:[#allocation2 + $0x111] sm:$0xff] }
 0x531   : > { %v5323_v21 = vpop.f32.mrf.mxu1  ;;  %v12386_v9 = vadd.f32 %v5161_v39, %v4952_v10 }
 0x532   : > { %v5450_v55 = vadd.f32 %v5323_v21, %v12310_v59  ;;  %v9421_v61 = vpop.f32.mrf.mxu0 }
 0x533   : > { %v9441_v4 = vpop.f32.mrf.mxu1  ;;  %v12389_v31 = vadd.f32 %v9421_v61, %v9373_v16  ;;  %v7022_v16 = vld [vmem:[#allocation2 + $0xe9] sm:$0xff] }
 0x534   : > { %v5453_v34 = vadd.f32 %v9441_v4, %v12312_v46  ;;  %v12392_v7 = vpop.f32.mrf.mxu0  ;;  %v7049_v39 = vpack.c.bf16 %v7023_v30, %v7022_v16 }
 0x535   : > { %v5326_v15 = vpop.f32.mrf.mxu1 }
 0x536   : > { %v12395_v35 = vadd.f32 %v5326_v15, %v12314_v37  ;;  %v9488_v10 = vpop.f32.mrf.mxu0  ;;  %v7027_v15 = vld [vmem:[#allocation2 + $0x131] sm:$0xff] }
 0x537   : > { %v9444_v59 = vpop.f32.mrf.mxu1  ;;  %9731 = vmatmul.mubr.bf16.gmra.mxu1 %v7047_v0  ;;  %v12397_v41 = vadd.f32 %v9488_v10, %v5452_v11  ;;  %v7029_v10 = vld [vmem:[#allocation2 + $0x151] sm:$0xff] }
 0x538   : > { %v5456_v58 = vadd.f32 %v9444_v59, %v12317_v47  ;;  %9734 = vmatprep.mubr.bf16.mxu1 %v7048_v40  ;;  %v5629_v56 = vpop.f32.mrf.mxu0  ;;  %v7028_v40 = vld [vmem:[#allocation2 + $0x149] sm:$0xff] }
 0x539   : > { %v5339_v23 = vpop.f32.mrf.mxu1  ;;  %v12400_v62 = vadd.f32 %v5629_v56, %v5450_v55  ;;  %v7050_v55 = vpack.c.bf16 %v7025_v51, %v7024_v43 }
 0x53a   : > { %v5454_v46 = vadd.f32 %v5339_v23, %v12320_v44  ;;  %v9489_v57 = vpop.f32.mrf.mxu0 }
 0x53b   : > { %v9445_v37 = vpop.f32.mrf.mxu1  ;;  %v12403_v60 = vadd.f32 %v9489_v57, %v5453_v34  ;;  %v7026_v34 = vld [vmem:[#allocation2 + $0x129] sm:$0xff] }
 0x53c   : > { %v5457_v26 = vadd.f32 %v9445_v37, %v12322_v42  ;;  %v12406_v11 = vpop.f32.mrf.mxu0  ;;  %v7051_v23 = vpack.c.bf16 %v7027_v15, %v7026_v34 }
 0x53d   : > { %v5342_v47 = vpop.f32.mrf.mxu1 }
 0x53e   : > { %v12409_v21 = vadd.f32 %v5342_v47, %v12324_v33  ;;  %v9492_v53 = vpop.f32.mrf.mxu0  ;;  %v7030_v47 = vld [vmem:[#allocation2 + $0x169] sm:$0xff] }
 0x53f   : > { %v9448_v44 = vpop.f32.mrf.mxu1  ;;  %9735 = vmatmul.mubr.bf16.gmra.mxu1 %v7049_v39  ;;  %v12411_v50 = vadd.f32 %v9492_v53, %v5456_v58  ;;  %v7031_v39 = vld [vmem:[#allocation2 + $0x171] sm:$0xff] }
 0x540   : > { %v5460_v61 = vadd.f32 %v9448_v44, %v12327_v1  ;;  %9738 = vmatprep.mubr.bf16.mxu1 %v7050_v55  ;;  %v5645_v4 = vpop.f32.mrf.mxu0  ;;  %v10100_v55 = vld [vmem:[#allocation12 + $0x38] sm:$0xff]   ;;  %v7032_v44 = vld [vmem:[#allocation2 + $0x189] sm:$0xff]  ;;  %v7053_v15 = vpack.c.bf16 %v7031_v39, %v7030_v47 }
 0x541   : > { %v5355_v38 = vpop.f32.mrf.mxu1  ;;  %v12414_v32 = vadd.f32 %v5645_v4, %v5454_v46  ;;  %v7052_v46 = vpack.c.bf16 %v7029_v10, %v7028_v40  ;;  %v7033_v4 = vld [vmem:[#allocation2 + $0x191] sm:$0xff]  ;;  %9758 = vmatprep.subr.bf16.mxu0 %v10100_v55 }
 0x542   : > { %v5458_v42 = vadd.f32 %v5355_v38, %v12330_v2  ;;  %v9493_v0 = vpop.f32.mrf.mxu0  ;;  %9759 = vmatpush3.bf16.msra.mxu0 %v10100_v55  ;;  %v7037_v47 = vld [vmem:[#allocation2 + $0x1d1] sm:$0xff] }
 0x543   : > { %v9449_v33 = vpop.f32.mrf.mxu1  ;;  %v12417_v59 = vadd.f32 %v9493_v0, %v5457_v26 }
 0x544   : > { %v5461_v58 = vadd.f32 %v9449_v33, %v12332_v27  ;;  %v12420_v56 = vpop.f32.mrf.mxu0 }
 0x545   : > { %v5358_v1 = vpop.f32.mrf.mxu1 }
 0x546   : > { %v12423_v16 = vadd.f32 %v5358_v1, %v12334_v25  ;;  %v9496_v30 = vpop.f32.mrf.mxu0 }
 0x547   : > { %v9452_v2 = vpop.f32.mrf.mxu1  ;;  %9739 = vmatmul.mubr.bf16.gmra.mxu1 %v7051_v23  ;;  %v12425_v57 = vadd.f32 %v9496_v30, %v5460_v61  ;;  %v7035_v30 = vld [vmem:[#allocation2 + $0x1b1] sm:$0xff] }
 0x548   : > { %v5464_v37 = vadd.f32 %v9452_v2, %v12337_v18  ;;  %9742 = vmatprep.mubr.bf16.mxu1 %v7052_v46  ;;  %v5661_v43 = vpop.f32.mrf.mxu0  ;;  %v7034_v46 = vld [vmem:[#allocation2 + $0x1a9] sm:$0xff] }
 0x549   : > { %v5371_v51 = vpop.f32.mrf.mxu1  ;;  %v12428_v26 = vadd.f32 %v5661_v43, %v5458_v42  ;;  %v10101_v2 = vld [vmem:[#allocation12 + $0x30] sm:$0xff]  }
 0x54a   : > { %v5462_v27 = vadd.f32 %v5371_v51, %v12340_v48  ;;  %v9497_v25 = vpop.f32.mrf.mxu0  ;;  %v7054_v48 = vpack.c.bf16 %v7033_v4, %v7032_v44  ;;  %v7036_v51 = vld [vmem:[#allocation2 + $0x1c9] sm:$0xff]  ;;  %9760 = vmatprep.subr.bf16.mxu0 %v10101_v2 }
 0x54b   : > { %v9453_v53 = vpop.f32.mrf.mxu1  ;;  %v12431_v38 = vadd.f32 %v9497_v25, %v5461_v58  ;;  %v7055_v25 = vpack.c.bf16 %v7035_v30, %v7034_v46  ;;  %9761 = vmatpush3.bf16.msra.mxu0 %v10101_v2  ;;  %v5133_v46 = vadd.f32 %v12368_v19, %v12358_v54  ;;  %v7042_v54 = vld [vmem:[#allocation2 + $0x229] sm:$0xff]  ;;  %v7043_v19 = vld [vmem:[#allocation2 + $0x231] sm:$0xff] }
 0x54c   : > { %v5465_v61 = vadd.f32 %v9453_v53, %v12342_v36  ;;  %v12434_v18 = vpop.f32.mrf.mxu0  ;;  %v7056_v53 = vpack.c.bf16 %v7037_v47, %v7036_v51 }
 0x54d   : > { %v5374_v34 = vpop.f32.mrf.mxu1 }
 0x54e   : > { %v12437_v42 = vadd.f32 %v5374_v34, %v12347_v14  ;;  %v9500_v0 = vpop.f32.mrf.mxu0 }
 0x54f   : > { %v9456_v33 = vpop.f32.mrf.mxu1  ;;  %9743 = vmatmul.mubr.bf16.gmra.mxu1 %v7053_v15  ;;  %v12439_v40 = vadd.f32 %v9500_v0, %v5464_v37  ;;  %v5117_v37 = vadd.f32 %v12356_v28, %v12345_v20  ;;  %v7039_v0 = vld [vmem:[#allocation2 + $0x1f1] sm:$0xff] }
 0x550   : > { %v5468_v10 = vadd.f32 %v9456_v33, %v12349_v45  ;;  %9746 = vmatprep.mubr.bf16.mxu1 %v7054_v48  ;;  %v5677_v58 = vpop.f32.mrf.mxu0  ;;  %v7038_v48 = vld [vmem:[#allocation2 + $0x1e9] sm:$0xff] }
 0x551   : > { %v5387_v36 = vpop.f32.mrf.mxu1  ;;  %v12442_v1 = vadd.f32 %v5677_v58, %v5462_v27  ;;  %v10102_v33 = vld [vmem:[#allocation12 + $0x28] sm:$0xff]  }
 0x552   : > { %v5466_v23 = vadd.f32 %v5387_v36, %v12352_v49  ;;  %v9501_v14 = vpop.f32.mrf.mxu0  ;;  %9762 = vmatprep.subr.bf16.mxu0 %v10102_v33 }
 0x553   : > { %v9457_v43 = vpop.f32.mrf.mxu1  ;;  %v12447_v39 = vadd.f32 %v9501_v14, %v5465_v61  ;;  %v7057_v14 = vpack.c.bf16 %v7039_v0, %v7038_v48  ;;  %9763 = vmatpush3.bf16.msra.mxu0 %v10102_v33 }
 0x554   : > { %v5469_v45 = vadd.f32 %v9457_v43, %v12354_v8  ;;  %v12450_v55 = vpop.f32.mrf.mxu0 }
 0x555   : > { %v5390_v27 = vpop.f32.mrf.mxu1 }
 0x556   : > { %v5467_v49 = vadd.f32 %v5390_v27, %v5117_v37  ;;  %v9504_v44 = vpop.f32.mrf.mxu0 }
 0x557   : > { %v9460_v4 = vpop.f32.mrf.mxu1  ;;  %9747 = vmatmul.mubr.bf16.gmra.mxu1 %v7055_v25  ;;  %v12452_v34 = vadd.f32 %v9504_v44, %v5468_v10 }
 0x558   : > { %v5472_v15 = vadd.f32 %v9460_v4, %v12360_v3  ;;  %9750 = vmatprep.mubr.bf16.mxu1 %v7056_v53  ;;  %v5693_v20 = vpop.f32.mrf.mxu0  ;;  %v7059_v4 = vpack.c.bf16 %v7043_v19, %v7042_v54 }
 0x559   : > { %v5403_v28 = vpop.f32.mrf.mxu1  ;;  %v12455_v61 = vadd.f32 %v5693_v20, %v5466_v23 }
 0x55a   : > { %v5470_v8 = vadd.f32 %v5403_v28, %v12364_v12  ;;  %v9505_v58 = vpop.f32.mrf.mxu0 }
 0x55b   : > { %v9461_v36 = vpop.f32.mrf.mxu1  ;;  %v12460_v30 = vadd.f32 %v9505_v58, %v5469_v45 }
 0x55c   : > { %v5473_v10 = vadd.f32 %v9461_v36, %v12366_v24  ;;  %v5696_v3 = vpop.f32.mrf.mxu0 }
 0x55d   : > { %v5406_v2 = vpop.f32.mrf.mxu1  ;;  %v12463_v23 = vadd.f32 %v5696_v3, %v5467_v49  ;;  %v10103_v49 = vld [vmem:[#allocation12 + $0x20] sm:$0xff]  }
 0x55e   : > { %v5471_v12 = vadd.f32 %v5406_v2, %v5133_v46  ;;  %v9508_v43 = vpop.f32.mrf.mxu0  ;;  %9764 = vmatprep.subr.bf16.mxu0 %v10103_v49  ;;  %v10104_v46 = vld [vmem:[#allocation12 + $0x18] sm:$0xff]   ;;  %v5165_v2 = vadd.f32 %v12392_v7, %v12381_v22 }
 0x55f   : > { %v9464_v51 = vpop.f32.mrf.mxu1  ;;  %9751 = vmatmul.mubr.bf16.gmra.mxu1 %v7057_v14  ;;  %v12465_v47 = vadd.f32 %v9508_v43, %v5472_v15  ;;  %v5149_v15 = vadd.f32 %v12379_v17, %v12370_v13  ;;  %9765 = vmatpush3.bf16.msra.mxu0 %v10103_v49 }
 0x560   : > { %v5476_v37 = vadd.f32 %v9464_v51, %v12373_v29  ;;  %9754 = vmatprep.mubr.bf16.mxu1 %v12302_v6  ;;  %v5709_v24 = vpop.f32.mrf.mxu0  ;;  %9766 = vmatprep.subr.bf16.mxu0 %v10104_v46 }
 0x561   : > { %v5419_v45 = vpop.f32.mrf.mxu1  ;;  %v12469_v27 = vadd.f32 %v5709_v24, %v5470_v8 }
 0x562   : > { %v5474_v25 = vadd.f32 %v5419_v45, %v12375_v5  ;;  %v9509_v53 = vpop.f32.mrf.mxu0  ;;  %v10105_v45 = vld [vmem:[#allocation12 + $0x10] sm:$0xff]  }
 0x563   : > { %v9465_v44 = vpop.f32.mrf.mxu1  ;;  %v12474_v20 = vadd.f32 %v9509_v53, %v5473_v10  ;;  %9767 = vmatpush3.bf16.msra.mxu0 %v10104_v46  ;;  %v5761_v46 = vadd.f32 %v12420_v56, %v12409_v21 }
 0x564   : > { %v5477_v29 = vadd.f32 %v9465_v44, %v12377_v63  ;;  %v5712_v6 = vpop.f32.mrf.mxu0  ;;  %9768 = vmatprep.subr.bf16.mxu0 %v10105_v45  ;;  %v5757_v44 = vadd.f32 %v12406_v11, %v12395_v35 }
 0x565   : > { %v5422_v28 = vpop.f32.mrf.mxu1  ;;  %v12477_v48 = vadd.f32 %v5712_v6, %v5471_v12 }
 0x566   : > { %v5475_v8 = vadd.f32 %v5422_v28, %v5149_v15  ;;  %v9512_v0 = vpop.f32.mrf.mxu0 }
 0x567   : > { %v9468_v5 = vpop.f32.mrf.mxu1  ;;  %9755 = vmatmul.mubr.bf16.gmra.mxu1 %v7059_v4  ;;  %v12479_v33 = vadd.f32 %v9512_v0, %v5476_v37  ;;  %9769 = vmatpush3.bf16.msra.mxu0 %v10105_v45  ;;  %v5765_v45 = vadd.f32 %v12434_v18, %v12423_v16 }
 0x568   : > { %v5480_v58 = vadd.f32 %v9468_v5, %v12383_v52  ;;  %v5725_v36 = vpop.f32.mrf.mxu0 }
 0x569   : > { %v5435_v13 = vpop.f32.mrf.mxu1  ;;  %v12482_v17 = vadd.f32 %v5725_v36, %v5474_v25 }
 0x56a   : > { %v5478_v63 = vadd.f32 %v5435_v13, %v12386_v9  ;;  %v9513_v10 = vpop.f32.mrf.mxu0 }
 0x56b   : > { %v9469_v3 = vpop.f32.mrf.mxu1  ;;  %v12487_v14 = vadd.f32 %v9513_v10, %v5477_v29 }
 0x56c   : > { %v5481_v12 = vadd.f32 %v9469_v3, %v12389_v31  ;;  %v5728_v43 = vpop.f32.mrf.mxu0 }
 0x56d   : > { %v5438_v51 = vpop.f32.mrf.mxu1  ;;  %v12490_v52 = vadd.f32 %v5728_v43, %v5475_v8 }
 0x56e   : > { %v5479_v37 = vadd.f32 %v5438_v51, %v5165_v2  ;;  %v9516_v54 = vpop.f32.mrf.mxu0 }
 0x56f   : > { %v9536_v19 = vpop.f32.mrf.mxu1  ;;  %v12492_v9 = vadd.f32 %v9516_v54, %v5480_v58  ;;  %v10106_v58 = vld [vmem:[#allocation12 + $0x8] sm:$0xff]  }
 0x570   : > { %v6064_v24 = vadd.f32 %v9536_v19, %v12397_v41  ;;  %v5741_v25 = vpop.f32.mrf.mxu0  ;;  %9770 = vmatprep.subr.bf16.mxu0 %v10106_v58 }
 0x571   : > { %v5935_v22 = vpop.f32.mrf.mxu1  ;;  %v12495_v7 = vadd.f32 %v5741_v25, %v5478_v63  ;;  %9771 = vmatpush3.bf16.msra.mxu0 %v10106_v58 }
 0x572   : > { %v6062_v31 = vadd.f32 %v5935_v22, %v12400_v62  ;;  %v9517_v49 = vpop.f32.mrf.mxu0 }
 0x573   : > { %v9537_v53 = vpop.f32.mrf.mxu1  ;;  %v12500_v4 = vadd.f32 %v9517_v49, %v5481_v12 }
 0x574   : > { %v12503_v15 = vadd.f32 %v9537_v53, %v12403_v60  ;;  %v5744_v41 = vpop.f32.mrf.mxu0 }
 0x575   : > { %v5938_v29 = vpop.f32.mrf.mxu1  ;;  %v12505_v6 = vadd.f32 %v5744_v41, %v5479_v37  ;;  %v10107_v37 = vld [vmem:[#allocation12] sm:$0xff]  }
 0x576   : > { %v12507_v28 = vadd.f32 %v5938_v29, %v5757_v44  ;;  %v9584_v8 = vpop.f32.mrf.mxu0  ;;  %9772 = vmatprep.subr.bf16.mxu0 %v10107_v37 }
 0x577   : > { %v9540_v62 = vpop.f32.mrf.mxu1  ;;  %v12509_v0 = vadd.f32 %v9584_v8, %v6064_v24  ;;  %9773 = vmatpush3.bf16.msra.mxu0 %v10107_v37 }
 0x578   : > { %v6068_v5 = vadd.f32 %v9540_v62, %v12411_v50  ;;  %v6241_v36 = vpop.f32.mrf.mxu0  ;;  %v5769_v62 = vadd.f32 %v12450_v55, %v12437_v42 }
 0x579   : > { %v5951_v35 = vpop.f32.mrf.mxu1  ;;  %v12512_v11 = vadd.f32 %v6241_v36, %v6062_v31 }
 0x57a   : > { %v6066_v60 = vadd.f32 %v5951_v35, %v12414_v32  ;;  %v12515_v13 = vpop.f32.mrf.mxu0 }
 0x57b   : > { %v9541_v63 = vpop.f32.mrf.mxu1 }
 0x57c   : > { %v12520_v10 = vadd.f32 %v9541_v63, %v12417_v59  ;;  %v12522_v3 = vpop.f32.mrf.mxu0 }
 0x57d   : > { %v5954_v50 = vpop.f32.mrf.mxu1 }
 0x57e   : > { %v12524_v2 = vadd.f32 %v5954_v50, %v5761_v46  ;;  %v9588_v12 = vpop.f32.mrf.mxu0 }
 0x57f   : > { %v9544_v43 = vpop.f32.mrf.mxu1  ;;  %v12526_v51 = vadd.f32 %v9588_v12, %v6068_v5 }
 0x580   : > { %v6072_v32 = vadd.f32 %v9544_v43, %v12425_v57  ;;  %v6257_v54 = vpop.f32.mrf.mxu0 }
 0x581   : > { %v5967_v19 = vpop.f32.mrf.mxu1  ;;  %v12529_v24 = vadd.f32 %v6257_v54, %v6066_v60 }
 0x582   : > { %v6070_v21 = vadd.f32 %v5967_v19, %v12428_v26  ;;  %v12532_v59 = vpop.f32.mrf.mxu0 }
 0x583   : > { %v9545_v56 = vpop.f32.mrf.mxu1 }
 0x584   : > { %v12537_v25 = vadd.f32 %v9545_v56, %v12431_v38  ;;  %v12539_v22 = vpop.f32.mrf.mxu0 }
 0x585   : > { %v5970_v57 = vpop.f32.mrf.mxu1 }
 0x586   : > { %v12541_v31 = vadd.f32 %v5970_v57, %v5765_v45  ;;  %v9592_v49 = vpop.f32.mrf.mxu0 }
 0x587   : > { %v9548_v53 = vpop.f32.mrf.mxu1  ;;  %v12543_v44 = vadd.f32 %v9592_v49, %v6072_v32 }
 0x588   : > { %v6076_v26 = vadd.f32 %v9548_v53, %v12439_v40  ;;  %v6273_v41 = vpop.f32.mrf.mxu0 }
 0x589   : > { %v5983_v29 = vpop.f32.mrf.mxu1  ;;  %v12546_v8 = vadd.f32 %v6273_v41, %v6070_v21 }
 0x58a   : > { %v6074_v16 = vadd.f32 %v5983_v29, %v12442_v1  ;;  %v12549_v18 = vpop.f32.mrf.mxu0 }
 0x58b   : > { %v9549_v38 = vpop.f32.mrf.mxu1 }
 0x58c   : > { %v12554_v5 = vadd.f32 %v9549_v38, %v12447_v39  ;;  %v12556_v58 = vpop.f32.mrf.mxu0 }
 0x58d   : > { %v5986_v36 = vpop.f32.mrf.mxu1 }
 0x58e   : > { %v12558_v35 = vadd.f32 %v5986_v36, %v5769_v62  ;;  %v9596_v40 = vpop.f32.mrf.mxu0 }
 0x58f   : > { %v9552_v60 = vpop.f32.mrf.mxu1  ;;  %v12560_v63 = vadd.f32 %v9596_v40, %v6076_v26 }
 0x590   : > { %v6080_v1 = vadd.f32 %v9552_v60, %v12452_v34  ;;  %v6289_v46 = vpop.f32.mrf.mxu0 }
 0x591   : > { %v5999_v50 = vpop.f32.mrf.mxu1  ;;  %v12563_v12 = vadd.f32 %v6289_v46, %v6074_v16 }
 0x592   : > { %v6078_v42 = vadd.f32 %v5999_v50, %v12455_v61  ;;  %v12566_v55 = vpop.f32.mrf.mxu0 }
 0x593   : > { %v9553_v39 = vpop.f32.mrf.mxu1 }
 0x594   : > { %v12569_v43 = vadd.f32 %v9553_v39, %v12460_v30  ;;  %v12571_v32 = vpop.f32.mrf.mxu0 }
 0x595   : > { %v6002_v37 = vpop.f32.mrf.mxu1 }
 0x596   : > { %v12574_v54 = vadd.f32 %v6002_v37, %v12463_v23  ;;  %v9600_v19 = vpop.f32.mrf.mxu0 }
 0x597   : > { %v9556_v34 = vpop.f32.mrf.mxu1  ;;  %v12576_v21 = vadd.f32 %v9600_v19, %v6080_v1 }
 0x598   : > { %v6084_v56 = vadd.f32 %v9556_v34, %v12465_v47  ;;  %v6305_v45 = vpop.f32.mrf.mxu0 }
 0x599   : > { %v6015_v61 = vpop.f32.mrf.mxu1  ;;  %v12579_v57 = vadd.f32 %v6305_v45, %v6078_v42 }
 0x59a   : > { %v6082_v49 = vadd.f32 %v6015_v61, %v12469_v27  ;;  %v12582_v30 = vpop.f32.mrf.mxu0 }
 0x59b   : > { %v9557_v53 = vpop.f32.mrf.mxu1 }
 0x59c   : > { %v12585_v26 = vadd.f32 %v9557_v53, %v12474_v20  ;;  %v12587_v23 = vpop.f32.mrf.mxu0 }
 0x59d   : > { %v6018_v41 = vpop.f32.mrf.mxu1 }
 0x59e   : > { %v12590_v29 = vadd.f32 %v6018_v41, %v12477_v48  ;;  %v9604_v16 = vpop.f32.mrf.mxu0 }
 0x59f   : > { %v9560_v47 = vpop.f32.mrf.mxu1  ;;  %v12592_v38 = vadd.f32 %v9604_v16, %v6084_v56 }
 0x5a0   : > { %v6088_v62 = vadd.f32 %v9560_v47, %v12479_v33  ;;  %v6321_v36 = vpop.f32.mrf.mxu0 }
 0x5a1   : > { %v6031_v27 = vpop.f32.mrf.mxu1  ;;  %v12595_v40 = vadd.f32 %v6321_v36, %v6082_v49 }
 0x5a2   : > { %v6086_v60 = vadd.f32 %v6031_v27, %v12482_v17  ;;  %v12598_v20 = vpop.f32.mrf.mxu0 }
 0x5a3   : > { %v9561_v1 = vpop.f32.mrf.mxu1 }
 0x5a4   : > { %v12601_v46 = vadd.f32 %v9561_v1, %v12487_v14  ;;  %v12603_v48 = vpop.f32.mrf.mxu0 }
 0x5a5   : > { %v6034_v50 = vpop.f32.mrf.mxu1 }
 0x5a6   : > { %v12606_v42 = vadd.f32 %v6034_v50, %v12490_v52  ;;  %v9608_v39 = vpop.f32.mrf.mxu0 }
 0x5a7   : > { %v9564_v33 = vpop.f32.mrf.mxu1  ;;  %v12608_v37 = vadd.f32 %v9608_v39, %v6088_v62 }
 0x5a8   : > { %v6092_v19 = vadd.f32 %v9564_v33, %v12492_v9  ;;  %v6337_v34 = vpop.f32.mrf.mxu0 }
 0x5a9   : > { %v6047_v17 = vpop.f32.mrf.mxu1  ;;  %v12611_v56 = vadd.f32 %v6337_v34, %v6086_v60 }
 0x5aa   : > { %v6090_v45 = vadd.f32 %v6047_v17, %v12495_v7  ;;  %v12614_v14 = vpop.f32.mrf.mxu0 }
 0x5ab   : > { %v9565_v61 = vpop.f32.mrf.mxu1 }
 0x5ac   : > { %v12617_v49 = vadd.f32 %v9565_v61, %v12500_v4  ;;  %v12619_v52 = vpop.f32.mrf.mxu0 }
 0x5ad   : > { %v6050_v53 = vpop.f32.mrf.mxu1 }
 0x5ae   : > { %v12622_v41 = vadd.f32 %v6050_v53, %v12505_v6  ;;  %v9612_v16 = vpop.f32.mrf.mxu0 }
 0x5af   : > { %v9632_v9 = vpop.f32.mrf.mxu1  ;;  %v6398_v47 = vadd.f32 %v9612_v16, %v6092_v19 }
 0x5b0   : > { %v12625_v62 = vadd.f32 %v9632_v9, %v12509_v0  ;;  %v6353_v36 = vpop.f32.mrf.mxu0 }
 0x5b1   : > { %v6547_v7 = vpop.f32.mrf.mxu1  ;;  %v6396_v27 = vadd.f32 %v6353_v36, %v6090_v45 }
 0x5b2   : > { %v12628_v60 = vadd.f32 %v6547_v7, %v12512_v11  ;;  %v12630_v4 = vpop.f32.mrf.mxu0 }
 0x5b3   : > { %v12632_v1 = vpop.f32.mrf.mxu1 }
 0x5b4   : > { %v12634_v50 = vpop.f32.mrf.mxu0 }
 0x5b5   : > { %v12636_v6 = vpop.f32.mrf.mxu1 }
 0x5b6   : > { %v9680_v39 = vpop.f32.mrf.mxu0 }
 0x5b7   : > { %v9636_v33 = vpop.f32.mrf.mxu1 }
 0x5b8   : > { %v12639_v19 = vadd.f32 %v9636_v33, %v12526_v51  ;;  %v6853_v0 = vpop.f32.mrf.mxu0 }
 0x5b9   : > { %v6563_v34 = vpop.f32.mrf.mxu1 }
 0x5ba   : > { %13288 = vst [vmem:[#allocation27_spill] sm:$0xff] %v12639_v19  ;;  %v12642_v17 = vadd.f32 %v6563_v34, %v12529_v24  ;;  %v12644_v11 = vpop.f32.mrf.mxu0 }
 0x5bb   : > { %v12646_v45 = vpop.f32.mrf.mxu1 }
 0x5bc   : > { %13289 = vst [vmem:[#allocation23_spill] sm:$0xff] %v12642_v17  ;;  %13290 = vst [vmem:[#allocation24_spill] sm:$0xff] %v12646_v45  ;;  %v12648_v61 = vpop.f32.mrf.mxu0 }
 0x5bd   : > { %v12650_v53 = vpop.f32.mrf.mxu1 }
 0x5be   : > { %13291 = vst [vmem:[#allocation25_spill] sm:$0xff] %v12650_v53  ;;  %v12652_v16 = vpop.f32.mrf.mxu0 }
 0x5bf   : > { %13292 = vst [vmem:[#allocation26_spill] sm:$0xff] %v12652_v16  ;;  %v9640_v9 = vpop.f32.mrf.mxu1 }
 0x5c0   : > { %v12655_v36 = vadd.f32 %v9640_v9, %v12543_v44  ;;  %v12657_v7 = vpop.f32.mrf.mxu0 }
 0x5c1   : > { %v6579_v51 = vpop.f32.mrf.mxu1 }
 0x5c2   : > { %13293 = vst [vmem:[#allocation30_spill] sm:$0xff] %v12655_v36  ;;  %v12660_v24 = vadd.f32 %v6579_v51, %v12546_v8  ;;  %v12666_v17 = vpop.f32.mrf.mxu0 }
 0x5c3   : > { %v12662_v33 = vpop.f32.mrf.mxu1 }
 0x5c4   : > { %13294 = vst [vmem:[#allocation28_spill] sm:$0xff] %v12660_v24  ;;  %13295 = vst [vmem:[#allocation29_spill] sm:$0xff] %v12662_v33  ;;  %v12671_v19 = vpop.f32.mrf.mxu0 }
 0x5c5   : > { %v12664_v34 = vpop.f32.mrf.mxu1 }
 0x5c6   : > { %13296 = vst [vmem:[#allocation31_spill] sm:$0xff] %v12664_v34  ;;  %v12680_v51 = vpop.f32.mrf.mxu0 }
 0x5c7   : > { %v9644_v45 = vpop.f32.mrf.mxu1 }
 0x5c8   : > { %v12669_v53 = vadd.f32 %v9644_v45, %v12560_v63  ;;  %v12685_v33 = vpop.f32.mrf.mxu0 }
 0x5c9   : > { %v6595_v16 = vpop.f32.mrf.mxu1 }
 0x5ca   : > { %13297 = vst [vmem:[#allocation32_spill] sm:$0xff] %v12669_v53  ;;  %v12674_v44 = vadd.f32 %v6595_v16, %v12563_v12  ;;  %v12694_v16 = vpop.f32.mrf.mxu0 }
 0x5cb   : > { %v12676_v9 = vpop.f32.mrf.mxu1 }
 0x5cc   : > { %13298 = vst [vmem:[#allocation33_spill] sm:$0xff] %v12674_v44  ;;  %13299 = vst [vmem:[#allocation36_spill] sm:$0xff] %v12676_v9  ;;  %v12699_v9 = vpop.f32.mrf.mxu0 }
 0x5cd   : > { %v12678_v8 = vpop.f32.mrf.mxu1 }
 0x5ce   : > { %13300 = vst [vmem:[#allocation34_spill] sm:$0xff] %v12678_v8 }
 0x5cf   : > { %v9648_v24 = vpop.f32.mrf.mxu1 }
 0x5d0   : > { %v12683_v36 = vadd.f32 %v9648_v24, %v12576_v21 }
 0x5d1   : > { %v6611_v34 = vpop.f32.mrf.mxu1 }
 0x5d2   : > { %13301 = vst [vmem:[#allocation35_spill] sm:$0xff] %v12683_v36  ;;  %v12688_v63 = vadd.f32 %v6611_v34, %v12579_v57  ;;  %v12708_v34 = vpop.f32.mrf.mxu0 }
 0x5d3   : > { %v12690_v45 = vpop.f32.mrf.mxu1 }
 0x5d4   : > { %13302 = vst [vmem:[#allocation39_spill] sm:$0xff] %v12688_v63  ;;  %13303 = vst [vmem:[#allocation46_spill] sm:$0xff] %v12690_v45  ;;  %v12713_v45 = vpop.f32.mrf.mxu0 }
 0x5d5   : > { %v12692_v12 = vpop.f32.mrf.mxu1 }
 0x5d6   : > { %13304 = vst [vmem:[#allocation37_spill] sm:$0xff] %v12692_v12 }
 0x5d7   : > { %v9652_v44 = vpop.f32.mrf.mxu1 }
 0x5d8   : > { %v12697_v8 = vadd.f32 %v9652_v44, %v12592_v38 }
 0x5d9   : > { %v6627_v53 = vpop.f32.mrf.mxu1 }
 0x5da   : > { %13305 = vst [vmem:[#allocation38_spill] sm:$0xff] %v12697_v8  ;;  %v12702_v21 = vadd.f32 %v6627_v53, %v12595_v40  ;;  %v12722_v53 = vpop.f32.mrf.mxu0 }
 0x5db   : > { %v12704_v24 = vpop.f32.mrf.mxu1 }
 0x5dc   : > { %13306 = vst [vmem:[#allocation40_spill] sm:$0xff] %v12702_v21  ;;  %13307 = vst [vmem:[#allocation41_spill] sm:$0xff] %v12704_v24  ;;  %v12726_v24 = vpop.f32.mrf.mxu0 }
 0x5dd   : > { %v12706_v57 = vpop.f32.mrf.mxu1 }
 0x5de   : > { %13308 = vst [vmem:[#allocation43_spill] sm:$0xff] %v12706_v57 }
 0x5df   : > { %v9656_v63 = vpop.f32.mrf.mxu1 }
 0x5e0   : > { %v12711_v12 = vadd.f32 %v9656_v63, %v12608_v37 }
 0x5e1   : > { %v6643_v36 = vpop.f32.mrf.mxu1 }
 0x5e2   : > { %13309 = vst [vmem:[#allocation42_spill] sm:$0xff] %v12711_v12  ;;  %v12716_v38 = vadd.f32 %v6643_v36, %v12611_v56  ;;  %v6371_v56 = vadd.f32 %v12515_v13, %v12503_v15  ;;  %v6982_v36 = vadd.f32 %v9680_v39, %v12625_v62  ;;  %v6375_v15 = vadd.f32 %v12532_v59, %v12520_v10 }
 0x5e3   : > { %v12718_v44 = vpop.f32.mrf.mxu1  ;;  %v6373_v13 = vadd.f32 %v12539_v22, %v12524_v2  ;;  %v6379_v62 = vadd.f32 %v12549_v18, %v12537_v25  ;;  %v6377_v39 = vadd.f32 %v12556_v58, %v12541_v31  ;;  %v12771_v22 = vadd.f32 %v12571_v32, %v12558_v35 }
 0x5e4   : > { %13310 = vst [vmem:[#allocation44_spill] sm:$0xff] %v12716_v38  ;;  %v12775_v31 = vadd.f32 %v12582_v30, %v12569_v43  ;;  %v12779_v18 = vadd.f32 %v12587_v23, %v12574_v54  ;;  %v12790_v43 = vadd.f32 %v12603_v48, %v12590_v29  ;;  %v12794_v54 = vadd.f32 %v12614_v14, %v12601_v46  ;;  %v13313_v29 = vld [vmem:[#allocation27_spill] sm:$0xff]  ;;  %v13314_v48 = vld [vmem:[#allocation26_spill] sm:$0xff]  ;;  %v13315_v46 = vld [vmem:[#allocation24_spill] sm:$0xff] }
 0x5e5   : > { %v12720_v40 = vpop.f32.mrf.mxu1  ;;  %v12798_v30 = vadd.f32 %v12619_v52, %v12606_v42  ;;  %v6681_v14 = vadd.f32 %v13315_v46, %v6375_v15  ;;  %v13316_v42 = vld [vmem:[#allocation25_spill] sm:$0xff] }
 0x5e6   : > { %13311 = vst [vmem:[#allocation47_spill] sm:$0xff] %v12720_v40  ;;  %v12737_v40 = vpop.f32.mrf.mxu0  ;;  %v6679_v52 = vadd.f32 %v13316_v42, %v6373_v13 }
 0x5e7   : > { %v9660_v21 = vpop.f32.mrf.mxu1 }
 0x5e8   : > { %v12724_v57 = vadd.f32 %v9660_v21, %v6398_v47  ;;  %v12742_v47 = vld [vmem:[%s13121_s11] ss:$0 sm:$0xff]  ;;  %v6677_v21 = vadd.f32 %v12632_v1, %v6371_v56  ;;  %v12766_v59 = vpop.f32.mrf.mxu0 }
 0x5e9   : > { %v6659_v8 = vpop.f32.mrf.mxu1 }
 0x5ea   : > { %v12728_v37 = vadd.f32 %v6659_v8, %v6396_v27  ;;  %v6369_v27 = vadd.f32 %v12522_v3, %v12507_v28  ;;  %v6980_v8 = vadd.f32 %v6853_v0, %v12628_v60  ;;  %v12759_v28 = vld [vmem:[%s13122_s12] ss:$0 sm:$0xff]  ;;  %v12763_v60 = vadd.f32 %v12566_v55, %v12554_v5 }
 0x5eb   : > { %v12730_v63 = vpop.f32.mrf.mxu1  ;;  %v6983_v10 = vadd.f32 %v12644_v11, %v6677_v21  ;;  %v12784_v55 = vadd.f32 %v12598_v20, %v12585_v26  ;;  %v12803_v20 = vadd.f32 %v12630_v4, %v12617_v49  ;;  %v6986_v0 = vadd.f32 %v13314_v48, %v13313_v29  ;;  %v12812_v11 = vpop.f32.mrf.mxu0  ;;  %v13317_v4 = vld [vmem:[#allocation23_spill] sm:$0xff] }
 0x5ec   : > { %v6675_v5 = vadd.f32 %v12636_v6, %v6369_v27  ;;  %v12807_v6 = vadd.f32 %v12634_v50, %v12622_v41  ;;  %v6984_v56 = vadd.f32 %v12657_v7, %v13317_v4  ;;  %v6987_v41 = vadd.f32 %v12666_v17, %v6681_v14  ;;  %v13318_v27 = vld [vmem:[#allocation29_spill] sm:$0xff]  ;;  %v13321_v14 = vld [vmem:[#allocation28_spill] sm:$0xff] }
 0x5ed   : > { %v12732_v12 = vpop.f32.mrf.mxu1  ;;  %v6988_v42 = vadd.f32 %v12685_v33, %v13321_v14 }
 0x5ee   : > { %13312 = vst [vmem:[#allocation52_spill] sm:$0xff] %v12732_v12  ;;  %v6981_v26 = vadd.f32 %v12648_v61, %v6675_v5 }
 0x5ef   : > { %v9728_v38 = vpop.f32.mrf.mxu1 }
 0x5f0   : > { %v7288_v12 = vadd.f32 %v9728_v38, %v6982_v36 }
 0x5f1   : > { %v7159_v3 = vpop.f32.mrf.mxu1 }
 0x5f2   : > { %v7327_v2 = vmul.f32 %v12742_v47, %v7288_v12  ;;  %v7286_v25 = vadd.f32 %v7159_v3, %v6980_v8  ;;  %v6685_v8 = vadd.f32 %v13318_v27, %v6379_v62  ;;  %v6985_v3 = vadd.f32 %v12671_v19, %v6679_v52 }
 0x5f3   : > { %v9729_v58 = vpop.f32.mrf.mxu1 }
 0x5f4   : > { %v7366_v1 = vadd.f32 %v12759_v28, %v7327_v2  ;;  %v7325_v35 = vmul.f32 %v12742_v47, %v7286_v25  ;;  %v7289_v32 = vadd.f32 %v9729_v58, %v6983_v10  ;;  %v13319_v10 = vld [vmem:[#allocation31_spill] sm:$0xff]  ;;  %v12825_v25 = vpop.f32.mrf.mxu0 }
 0x5f5   : > { %v7162_v23 = vpop.f32.mrf.mxu1  ;;  %v6683_v2 = vadd.f32 %v13319_v10, %v6377_v39 }
 0x5f6   : > { %v7364_v61 = vadd.f32 %v12759_v28, %v7325_v35  ;;  %v7328_v12 = vmul.f32 %v12742_v47, %v7289_v32  ;;  %v7287_v38 = vadd.f32 %v7162_v23, %v6981_v26  ;;  %v7430_v50 = vmul.f32 0.1, %v7366_v1  ;;  %v12835_v52 = vpop.f32.mrf.mxu0 }
 0x5f7   : > { %v9732_v49 = vpop.f32.mrf.mxu1  ;;  %vm7398_vm0 = vcmp.gt.f32.partialorder %v7366_v1, 0.0  ;;  %v6989_v33 = vadd.f32 %v12699_v9, %v6683_v2  ;;  %v13323_v2 = vld [vmem:[#allocation32_spill] sm:$0xff] }
 0x5f8   : > { %v7292_v36 = vadd.f32 %v9732_v49, %v6986_v0  ;;  %v7367_v21 = vadd.f32 %v12759_v28, %v7328_v12  ;;  %v7326_v15 = vmul.f32 %v12742_v47, %v7287_v38  ;;  %v7428_v17 = vmul.f32 0.1, %v7364_v61  ;;  %v13320_v0 = vld [vmem:[#allocation30_spill] sm:$0xff] }
 0x5f9   : > { %v7175_v13 = vpop.f32.mrf.mxu1  ;;  %v7462_v32 = vsel %vm7398_vm0, %v7366_v1, %v7430_v50  ;;  %vm7396_vm2 = vcmp.gt.f32.partialorder %v7364_v61, 0.0  ;;  %v6990_v46 = vadd.f32 %v12680_v51, %v13320_v0  ;;  %v6991_v50 = vadd.f32 %v12694_v16, %v6685_v8 }
 0x5fa   : > { %v7331_v7 = vmul.f32 %v12742_v47, %v7292_v36  ;;  %v7290_v5 = vadd.f32 %v7175_v13, %v6984_v56  ;;  %vm7399_vm1 = vcmp.gt.f32.partialorder %v7367_v21, 0.0  ;;  %v7431_v58 = vmul.f32 0.1, %v7367_v21  ;;  %v13322_v36 = vld [vmem:[#allocation36_spill] sm:$0xff] }
 0x5fb   : > { %v7365_v62 = vadd.f32 %v12759_v28, %v7326_v15  ;;  %v9733_v35 = vpop.f32.mrf.mxu1  ;;  %v7460_v56 = vsel %vm7396_vm2, %v7364_v61, %v7428_v17  ;;  %v6689_v27 = vadd.f32 %v13322_v36, %v12763_v60  ;;  %v6994_v17 = vadd.f32 %v12708_v34, %v13323_v2  ;;  %v13325_v36 = vld [vmem:[#allocation34_spill] sm:$0xff] }
 0x5fc   : > { %v7329_v26 = vmul.f32 %v12742_v47, %v7290_v5  ;;  %v7293_v23 = vadd.f32 %v9733_v35, %v6987_v41  ;;  %v7463_v29 = vsel %vm7399_vm1, %v7367_v21, %v7431_v58  ;;  %v7370_v39 = vadd.f32 %v12759_v28, %v7331_v7  ;;  %v12845_v7 = vpop.f32.mrf.mxu0 }
 0x5fd   : > { %v7429_v19 = vmul.f32 0.1, %v7365_v62  ;;  %v7178_v48 = vpop.f32.mrf.mxu1  ;;  %vm7397_vm3 = vcmp.gt.f32.partialorder %v7365_v62, 0.0  ;;  %v7493_v12 = vpack.c.bf16 %v7463_v29, %v7462_v32  ;;  %v13324_v32 = vld [vmem:[#allocation33_spill] sm:$0xff] }
 0x5fe   : > { %v7368_v1 = vadd.f32 %v12759_v28, %v7329_v26  ;;  %v7332_v38 = vmul.f32 %v12742_v47, %v7293_v23  ;;  %v7291_v49 = vadd.f32 %v7178_v48, %v6985_v3  ;;  %vm7402_vm4 = vcmp.gt.f32.partialorder %v7370_v39, 0.0  ;;  %v12855_v48 = vpop.f32.mrf.mxu0 }
 0x5ff   : > { %v9736_v4 = vpop.f32.mrf.mxu1  ;;  %v7461_v41 = vsel %vm7397_vm3, %v7365_v62, %v7429_v19  ;;  %v7434_v3 = vmul.f32 0.1, %v7370_v39  ;;  %v6992_v26 = vadd.f32 %v12713_v45, %v13324_v32  ;;  %v13328_v32 = vld [vmem:[#allocation39_spill] sm:$0xff] }
 0x600   : > { %v7296_v51 = vadd.f32 %v9736_v4, %v6990_v46  ;;  %v7492_v21 = vpack.c.bf16 %v7461_v41, %v7460_v56  ;;  %v7371_v15 = vadd.f32 %v12759_v28, %v7332_v38  ;;  %v7330_v13 = vmul.f32 %v12742_v47, %v7291_v49 }
 0x601   : > { %v7191_v10 = vpop.f32.mrf.mxu1  ;;  %v7432_v61 = vmul.f32 0.1, %v7368_v1  ;;  %vm7400_vm6 = vcmp.gt.f32.partialorder %v7368_v1, 0.0  ;;  %v7466_v34 = vsel %vm7402_vm4, %v7370_v39, %v7434_v3 }
 0x602   : > { %v7335_v5 = vmul.f32 %v12742_v47, %v7296_v51  ;;  %v7294_v16 = vadd.f32 %v7191_v10, %v6988_v42  ;;  %9774 = vmatprep.mubr.bf16.mxu0 %v7492_v21  ;;  %vm7403_vm5 = vcmp.gt.f32.partialorder %v7371_v15, 0.0  ;;  %v7435_v60 = vmul.f32 0.1, %v7371_v15 }
 0x603   : > { %v7369_v8 = vadd.f32 %v12759_v28, %v7330_v13  ;;  %9775 = vmatmul.mubr.bf16.vlgmr.msra.gmra.mxu0 %v7493_v12  ;;  %v9737_v9 = vpop.f32.mrf.mxu1  ;;  %v7464_v14 = vsel %vm7400_vm6, %v7368_v1, %v7432_v61  ;;  %v6687_v51 = vadd.f32 %v13325_v36, %v12771_v22  ;;  %v13326_v1 = vld [vmem:[#allocation46_spill] sm:$0xff] }
 0x604   : > { %v7374_v58 = vadd.f32 %v12759_v28, %v7335_v5  ;;  %v7333_v62 = vmul.f32 %v12742_v47, %v7294_v16  ;;  %v7297_v35 = vadd.f32 %v9737_v9, %v6991_v50  ;;  %v7467_v19 = vsel %vm7403_vm5, %v7371_v15, %v7435_v60 }
 0x605   : > { %v7433_v23 = vmul.f32 0.1, %v7369_v8  ;;  %v7194_v29 = vpop.f32.mrf.mxu1  ;;  %vm7401_vm7 = vcmp.gt.f32.partialorder %v7369_v8, 0.0  ;;  %v7495_v4 = vpack.c.bf16 %v7467_v19, %v7466_v34  ;;  %v6995_v50 = vadd.f32 %v12722_v53, %v6689_v27 }
 0x606   : > { %v7438_v0 = vmul.f32 0.1, %v7374_v58  ;;  %v7336_v46 = vmul.f32 %v12742_v47, %v7297_v35  ;;  %v7372_v42 = vadd.f32 %v12759_v28, %v7333_v62  ;;  %v7295_v12 = vadd.f32 %v7194_v29, %v6989_v33  ;;  %v12867_v33 = vpop.f32.mrf.mxu0  ;;  %v13327_v62 = vld [vmem:[#allocation35_spill] sm:$0xff] }
 0x607   : > { %v9740_v38 = vpop.f32.mrf.mxu1  ;;  %v7465_v49 = vsel %vm7401_vm7, %v7369_v8, %v7433_v23  ;;  %vm7406_vm8 = vcmp.gt.f32.partialorder %v7374_v58, 0.0  ;;  %v6693_v21 = vadd.f32 %v13326_v1, %v12775_v31  ;;  %v6993_v8 = vadd.f32 %v12726_v24, %v6687_v51  ;;  %v13330_v51 = vld [vmem:[#allocation41_spill] sm:$0xff] }
 0x608   : > { %v7375_v45 = vadd.f32 %v12759_v28, %v7336_v46  ;;  %v7300_v56 = vadd.f32 %v9740_v38, %v6994_v17  ;;  %v7494_v41 = vpack.c.bf16 %v7465_v49, %v7464_v14  ;;  %v7334_v39 = vmul.f32 %v12742_v47, %v7295_v12  ;;  %v12879_v23 = vpop.f32.mrf.mxu0 }
 0x609   : > { %v7207_v15 = vpop.f32.mrf.mxu1  ;;  %v7436_v61 = vmul.f32 0.1, %v7372_v42  ;;  %vm7404_vm10 = vcmp.gt.f32.partialorder %v7372_v42, 0.0  ;;  %v7470_v22 = vsel %vm7406_vm8, %v7374_v58, %v7438_v0  ;;  %v6998_v35 = vadd.f32 %v12737_v40, %v13327_v62 }
 0x60a   : > { %vm7407_vm9 = vcmp.gt.f32.partialorder %v7375_v45, 0.0  ;;  %v7439_v13 = vmul.f32 0.1, %v7375_v45  ;;  %v7339_v10 = vmul.f32 %v12742_v47, %v7300_v56  ;;  %v7298_v3 = vadd.f32 %v7207_v15, %v6992_v26  ;;  %9778 = vmatprep.mubr.bf16.mxu0 %v7494_v41  ;;  %v6949_v41 = vpop.f32.mrf.mxu0 }
 0x60b   : > { %v7373_v53 = vadd.f32 %v12759_v28, %v7334_v39  ;;  %9779 = vmatmul.mubr.bf16.gmra.mxu0 %v7495_v4  ;;  %v9741_v27 = vpop.f32.mrf.mxu1  ;;  %v6996_v26 = vadd.f32 %v12766_v59, %v13328_v32  ;;  %v7468_v24 = vsel %vm7404_vm10, %v7372_v42, %v7436_v61  ;;  %v6999_v38 = vadd.f32 %v12812_v11, %v6693_v21  ;;  %v13329_v59 = vld [vmem:[#allocation37_spill] sm:$0xff] }
 0x60c   : > { %v7378_v31 = vadd.f32 %v12759_v28, %v7339_v10  ;;  %v7337_v5 = vmul.f32 %v12742_v47, %v7298_v3  ;;  %v7301_v16 = vadd.f32 %v9741_v27, %v6995_v50  ;;  %v7471_v60 = vsel %vm7407_vm9, %v7375_v45, %v7439_v13 }
 0x60d   : > { %v7437_v9 = vmul.f32 0.1, %v7373_v53  ;;  %v7210_v2 = vpop.f32.mrf.mxu1  ;;  %vm7405_vm11 = vcmp.gt.f32.partialorder %v7373_v53, 0.0  ;;  %v7497_v17 = vpack.c.bf16 %v7471_v60, %v7470_v22  ;;  %v6691_v49 = vadd.f32 %v13329_v59, %v12779_v18  ;;  %v9705_v60 = vpop.f32.mrf.mxu0 }
 0x60e   : > { %v7376_v58 = vadd.f32 %v12759_v28, %v7337_v5  ;;  %v7340_v29 = vmul.f32 %v12742_v47, %v7301_v16  ;;  %v7442_v19 = vmul.f32 0.1, %v7378_v31  ;;  %v7299_v0 = vadd.f32 %v7210_v2, %v6993_v8  ;;  %v13332_v5 = vld [vmem:[#allocation40_spill] sm:$0xff] }
 0x60f   : > { %v9744_v46 = vpop.f32.mrf.mxu1  ;;  %v7469_v14 = vsel %vm7405_vm11, %v7373_v53, %v7437_v9  ;;  %vm7410_vm12 = vcmp.gt.f32.partialorder %v7378_v31, 0.0  ;;  %v6697_v1 = vadd.f32 %v13330_v51, %v12784_v55  ;;  %v6997_v3 = vadd.f32 %v12825_v25, %v6691_v49  ;;  %v13331_v55 = vld [vmem:[#allocation38_spill] sm:$0xff] }
 0x610   : > { %v7379_v34 = vadd.f32 %v12759_v28, %v7340_v29  ;;  %v7304_v12 = vadd.f32 %v9744_v46, %v6998_v35  ;;  %v7496_v40 = vpack.c.bf16 %v7469_v14, %v7468_v24  ;;  %v7440_v4 = vmul.f32 0.1, %v7376_v58  ;;  %v13333_v29 = vld [vmem:[#allocation43_spill] sm:$0xff]  ;;  %v6952_v46 = vpop.f32.mrf.mxu0 }
 0x611   : > { %v7338_v45 = vmul.f32 %v12742_v47, %v7299_v0  ;;  %v7223_v56 = vpop.f32.mrf.mxu1  ;;  %vm7408_vm14 = vcmp.gt.f32.partialorder %v7376_v58, 0.0  ;;  %v7474_v18 = vsel %vm7410_vm12, %v7378_v31, %v7442_v19  ;;  %v7002_v22 = vadd.f32 %v12835_v52, %v13331_v55 }
 0x612   : > { %vm7411_vm13 = vcmp.gt.f32.partialorder %v7379_v34, 0.0  ;;  %v7443_v50 = vmul.f32 0.1, %v7379_v34  ;;  %v7343_v42 = vmul.f32 %v12742_v47, %v7304_v12  ;;  %v7302_v36 = vadd.f32 %v7223_v56, %v6996_v26  ;;  %9782 = vmatprep.mubr.bf16.mxu0 %v7496_v40 }
 0x613   : > { %v7377_v39 = vadd.f32 %v12759_v28, %v7338_v45  ;;  %9783 = vmatmul.mubr.bf16.gmra.mxu0 %v7497_v17  ;;  %v9745_v11 = vpop.f32.mrf.mxu1  ;;  %v7000_v16 = vadd.f32 %v12845_v7, %v13332_v5  ;;  %v7472_v8 = vsel %vm7408_vm14, %v7376_v58, %v7440_v4  ;;  %v7003_v52 = vadd.f32 %v12855_v48, %v6697_v1  ;;  %v9708_v1 = vpop.f32.mrf.mxu0 }
 0x614   : > { %v7382_v21 = vadd.f32 %v12759_v28, %v7343_v42  ;;  %v7341_v15 = vmul.f32 %v12742_v47, %v7302_v36  ;;  %v7305_v13 = vadd.f32 %v9745_v11, %v6999_v38  ;;  %v7475_v10 = vsel %vm7411_vm13, %v7379_v34, %v7443_v50  ;;  %v13334_v50 = vld [vmem:[#allocation42_spill] sm:$0xff]  ;;  %v13335_v36 = vld [vmem:[#allocation44_spill] sm:$0xff] }
 0x615   : > { %v7441_v61 = vmul.f32 0.1, %v7377_v39  ;;  %v7226_v53 = vpop.f32.mrf.mxu1  ;;  %vm7409_vm15 = vcmp.gt.f32.partialorder %v7377_v39, 0.0  ;;  %v7499_v27 = vpack.c.bf16 %v7475_v10, %v7474_v18  ;;  %v6695_v7 = vadd.f32 %v13333_v29, %v12790_v43  ;;  %v6965_v5 = vpop.f32.mrf.mxu0 }
 0x616   : > { %v7344_v31 = vmul.f32 %v12742_v47, %v7305_v13  ;;  %v7446_v9 = vmul.f32 0.1, %v7382_v21  ;;  %v7380_v2 = vadd.f32 %v12759_v28, %v7341_v15  ;;  %v7303_v17 = vadd.f32 %v7226_v53, %v6997_v3 }
 0x617   : > { %v9748_v62 = vpop.f32.mrf.mxu1  ;;  %v7473_v25 = vsel %vm7409_vm15, %v7377_v39, %v7441_v61  ;;  %vm7414_vm0 = vcmp.gt.f32.partialorder %v7382_v21, 0.0  ;;  %v6701_v19 = vadd.f32 %v12718_v44, %v12794_v54  ;;  %v7001_v49 = vadd.f32 %v12867_v33, %v6695_v7  ;;  %v9709_v7 = vpop.f32.mrf.mxu0 }
 0x618   : > { %v7383_v35 = vadd.f32 %v12759_v28, %v7344_v31  ;;  %v7308_v32 = vadd.f32 %v9748_v62, %v7002_v22  ;;  %v7498_v26 = vpack.c.bf16 %v7473_v25, %v7472_v8  ;;  %v7342_v58 = vmul.f32 %v12742_v47, %v7303_v17 }
 0x619   : > { %v7239_v0 = vpop.f32.mrf.mxu1  ;;  %v7444_v12 = vmul.f32 0.1, %v7380_v2  ;;  %vm7412_vm2 = vcmp.gt.f32.partialorder %v7380_v2, 0.0  ;;  %v7478_v43 = vsel %vm7414_vm0, %v7382_v21, %v7446_v9  ;;  %v7006_v42 = vadd.f32 %v12879_v23, %v13334_v50  ;;  %v13336_v23 = vld [vmem:[#allocation47_spill] sm:$0xff] }
 0x61a   : > { %vm7415_vm1 = vcmp.gt.f32.partialorder %v7383_v35, 0.0  ;;  %v7447_v24 = vmul.f32 0.1, %v7383_v35  ;;  %v7347_v14 = vmul.f32 %v12742_v47, %v7308_v32  ;;  %v7306_v34 = vadd.f32 %v7239_v0, %v7000_v16  ;;  %9786 = vmatprep.mubr.bf16.mxu0 %v7498_v26 }
 0x61b   : > { %v7381_v40 = vadd.f32 %v12759_v28, %v7342_v58  ;;  %9787 = vmatmul.mubr.bf16.gmra.mxu0 %v7499_v27  ;;  %v9749_v48 = vpop.f32.mrf.mxu1  ;;  %v7004_v51 = vadd.f32 %v6949_v41, %v13335_v36  ;;  %v7476_v13 = vsel %vm7412_vm2, %v7380_v2, %v7444_v12  ;;  %v7007_v53 = vadd.f32 %v9705_v60, %v6701_v19 }
 0x61c   : > { %v7386_v44 = vadd.f32 %v12759_v28, %v7347_v14  ;;  %v7345_v54 = vmul.f32 %v12742_v47, %v7306_v34  ;;  %v7309_v38 = vadd.f32 %v9749_v48, %v7003_v52  ;;  %v7479_v59 = vsel %vm7415_vm1, %v7383_v35, %v7447_v24 }
 0x61d   : > { %v7445_v4 = vmul.f32 0.1, %v7381_v40  ;;  %v7242_v45 = vpop.f32.mrf.mxu1  ;;  %vm7413_vm3 = vcmp.gt.f32.partialorder %v7381_v40, 0.0  ;;  %v7501_v56 = vpack.c.bf16 %v7479_v59, %v7478_v43  ;;  %v6699_v41 = vadd.f32 %v13336_v23, %v12798_v30  ;;  %v13337_v43 = vld [vmem:[#allocation52_spill] sm:$0xff] }
 0x61e   : > { %v7384_v39 = vadd.f32 %v12759_v28, %v7345_v54  ;;  %v7348_v11 = vmul.f32 %v12742_v47, %v7309_v38  ;;  %v7450_v18 = vmul.f32 0.1, %v7386_v44  ;;  %v7307_v21 = vadd.f32 %v7242_v45, %v7001_v49  ;;  %v6968_v38 = vpop.f32.mrf.mxu0 }
 0x61f   : > { %v9752_v15 = vpop.f32.mrf.mxu1  ;;  %v7477_v33 = vsel %vm7413_vm3, %v7381_v40, %v7445_v4  ;;  %vm7418_vm4 = vcmp.gt.f32.partialorder %v7386_v44, 0.0  ;;  %v6705_v9 = vadd.f32 %v12730_v63, %v12803_v20  ;;  %v7005_v32 = vadd.f32 %v6952_v46, %v6699_v41 }
 0x620   : > { %v7387_v10 = vadd.f32 %v12759_v28, %v7348_v11  ;;  %v7312_v3 = vadd.f32 %v9752_v15, %v7006_v42  ;;  %v7500_v61 = vpack.c.bf16 %v7477_v33, %v7476_v13  ;;  %v7448_v27 = vmul.f32 0.1, %v7384_v39 }
 0x621   : > { %v7346_v55 = vmul.f32 %v12742_v47, %v7307_v21  ;;  %v7255_v22 = vpop.f32.mrf.mxu1  ;;  %vm7416_vm6 = vcmp.gt.f32.partialorder %v7384_v39, 0.0  ;;  %v7482_v30 = vsel %vm7418_vm4, %v7386_v44, %v7450_v18  ;;  %v7010_v63 = vadd.f32 %v9708_v1, %v12724_v57 }
 0x622   : > { %vm7419_vm5 = vcmp.gt.f32.partialorder %v7387_v10, 0.0  ;;  %v7451_v16 = vmul.f32 0.1, %v7387_v10  ;;  %v7351_v31 = vmul.f32 %v12742_v47, %v7312_v3  ;;  %v7310_v8 = vadd.f32 %v7255_v22, %v7004_v51  ;;  %9790 = vmatprep.mubr.bf16.mxu0 %v7500_v61 }
 0x623   : > { %v7385_v2 = vadd.f32 %v12759_v28, %v7346_v55  ;;  %9791 = vmatmul.mubr.bf16.gmra.mxu0 %v7501_v56  ;;  %v9753_v60 = vpop.f32.mrf.mxu1  ;;  %v7008_v20 = vadd.f32 %v6965_v5, %v12728_v37  ;;  %v7480_v58 = vsel %vm7416_vm6, %v7384_v39, %v7448_v27  ;;  %v6703_v57 = vadd.f32 %v13337_v43, %v12807_v6 }
 0x624   : > { %v7390_v17 = vadd.f32 %v12759_v28, %v7351_v31  ;;  %v7349_v62 = vmul.f32 %v12742_v47, %v7310_v8  ;;  %v7313_v25 = vadd.f32 %v9753_v60, %v7007_v53  ;;  %v7483_v35 = vsel %vm7419_vm5, %v7387_v10, %v7451_v16 }
 0x625   : > { %v7449_v26 = vmul.f32 0.1, %v7385_v2  ;;  %v7258_v52 = vpop.f32.mrf.mxu1  ;;  %vm7417_vm7 = vcmp.gt.f32.partialorder %v7385_v2, 0.0  ;;  %v7503_v29 = vpack.c.bf16 %v7483_v35, %v7482_v30  ;;  %v7011_v44 = vadd.f32 %v9709_v7, %v6705_v9 }
 0x626   : > { %v7352_v19 = vmul.f32 %v12742_v47, %v7313_v25  ;;  %v7454_v0 = vmul.f32 0.1, %v7390_v17  ;;  %v7388_v24 = vadd.f32 %v12759_v28, %v7349_v62  ;;  %v7311_v14 = vadd.f32 %v7258_v52, %v7005_v32 }
 0x627   : > { %v9756_v34 = vpop.f32.mrf.mxu1  ;;  %v7481_v12 = vsel %vm7417_vm7, %v7385_v2, %v7449_v26  ;;  %vm7422_vm8 = vcmp.gt.f32.partialorder %v7390_v17, 0.0  ;;  %v7009_v39 = vadd.f32 %v6968_v38, %v6703_v57 }
 0x628   : > { %v7391_v46 = vadd.f32 %v12759_v28, %v7352_v19  ;;  %v7316_v40 = vadd.f32 %v9756_v34, %v7010_v63  ;;  %v7502_v48 = vpack.c.bf16 %v7481_v12, %v7480_v58  ;;  %v7350_v37 = vmul.f32 %v12742_v47, %v7311_v14 }
 0x629   : > { %v7271_v54 = vpop.f32.mrf.mxu1  ;;  %v7452_v45 = vmul.f32 0.1, %v7388_v24  ;;  %vm7420_vm10 = vcmp.gt.f32.partialorder %v7388_v24, 0.0  ;;  %v7486_v42 = vsel %vm7422_vm8, %v7390_v17, %v7454_v0 }
 0x62a   : > { %vm7423_vm9 = vcmp.gt.f32.partialorder %v7391_v46, 0.0  ;;  %v7455_v59 = vmul.f32 0.1, %v7391_v46  ;;  %v7355_v49 = vmul.f32 %v12742_v47, %v7316_v40  ;;  %v7314_v4 = vadd.f32 %v7271_v54, %v7008_v20  ;;  %9794 = vmatprep.mubr.bf16.mxu0 %v7502_v48 }
 0x62b   : > { %v7389_v56 = vadd.f32 %v12759_v28, %v7350_v37  ;;  %9795 = vmatmul.mubr.bf16.gmra.mxu0 %v7503_v29  ;;  %v9757_v50 = vpop.f32.mrf.mxu1  ;;  %v7484_v10 = vsel %vm7420_vm10, %v7388_v24, %v7452_v45 }
 0x62c   : > { %v7394_v6 = vadd.f32 %v12759_v28, %v7355_v49  ;;  %v7353_v36 = vmul.f32 %v12742_v47, %v7314_v4  ;;  %v7317_v51 = vadd.f32 %v9757_v50, %v7011_v44  ;;  %v7487_v1 = vsel %vm7423_vm9, %v7391_v46, %v7455_v59 }
 0x62d   : > { %v7453_v11 = vmul.f32 0.1, %v7389_v56  ;;  %v7274_v18 = vpop.f32.mrf.mxu1  ;;  %vm7421_vm11 = vcmp.gt.f32.partialorder %v7389_v56, 0.0  ;;  %v7505_v21 = vpack.c.bf16 %v7487_v1, %v7486_v42 }
 0x62e   : > { %v7356_v15 = vmul.f32 %v12742_v47, %v7317_v51  ;;  %v7392_v13 = vadd.f32 %v12759_v28, %v7353_v36  ;;  %v7315_v33 = vadd.f32 %v7274_v18, %v7009_v39  ;;  %v7458_v61 = vmul.f32 0.1, %v7394_v6 }
 0x62f   : > { %v7485_v3 = vsel %vm7421_vm11, %v7389_v56, %v7453_v11  ;;  %vm7426_vm12 = vcmp.gt.f32.partialorder %v7394_v6, 0.0 }
 0x630   : > { %v7395_v53 = vadd.f32 %v12759_v28, %v7356_v15  ;;  %v7504_v23 = vpack.c.bf16 %v7485_v3, %v7484_v10  ;;  %v7354_v41 = vmul.f32 %v12742_v47, %v7315_v33  ;;  %v7456_v55 = vmul.f32 0.1, %v7392_v13  ;;  %v12954_v47 = vld [vmem:[%s13124_s14] ss:$0 sm:$0xff] }
 0x631   : > { %vm7424_vm14 = vcmp.gt.f32.partialorder %v7392_v13, 0.0  ;;  %v7490_v5 = vsel %vm7426_vm12, %v7394_v6, %v7458_v61 }
 0x632   : > { %vm7427_vm13 = vcmp.gt.f32.partialorder %v7395_v53, 0.0  ;;  %v7459_v27 = vmul.f32 0.1, %v7395_v53  ;;  %9798 = vmatprep.mubr.bf16.mxu0 %v7504_v23  ;;  %v7393_v22 = vadd.f32 %v12759_v28, %v7354_v41  ;;  %v7488_v9 = vsel %vm7424_vm14, %v7392_v13, %v7456_v55  ;;  %v12959_v28 = vld [vmem:[%s13338_s26] ss:$0 sm:$0xff] }
 0x633   : > { %9799 = vmatmul.mubr.bf16.gmra.mxu0 %v7505_v21 }
 0x634   : > { %v7491_v16 = vsel %vm7427_vm13, %v7395_v53, %v7459_v27  ;;  %v7457_v31 = vmul.f32 0.1, %v7393_v22  ;;  %vm7425_vm15 = vcmp.gt.f32.partialorder %v7393_v22, 0.0 }
 0x635   : > { %v7507_v8 = vpack.c.bf16 %v7491_v16, %v7490_v5 }
 0x636   : > { %v7489_v2 = vsel %vm7425_vm15, %v7393_v22, %v7457_v31 }
 0x637   : > { %v7506_v60 = vpack.c.bf16 %v7489_v2, %v7488_v9 }
 0x639   : > { %9802 = vmatprep.mubr.bf16.mxu0 %v7506_v60 }
 0x63b   : > { %9803 = vmatmul.mubr.bf16.gmra.mxu0 %v7507_v8 }
 0x6c3   : > { %v9776_v30 = vpop.f32.mrf.mxu0 }
 0x6c4   : > { %v7742_v17 = vmul.f32 %v9776_v30, %v12954_v47 }
 0x6c5   : > { %v7606_v62 = vpop.f32.mrf.mxu0 }
 0x6c6   : > { %v7781_v25 = vadd.f32 %v12959_v28, %v7742_v17  ;;  %v7740_v35 = vmul.f32 %v12954_v47, %v7606_v62 }
 0x6c7   : > { %v9777_v32 = vpop.f32.mrf.mxu0 }
 0x6c8   : > { %vm7813_vm0 = vcmp.gt.f32.partialorder %v7781_v25, 0.0  ;;  %v7845_v26 = vmul.f32 0.1, %v7781_v25  ;;  %v7779_v52 = vadd.f32 %v12959_v28, %v7740_v35  ;;  %v7743_v29 = vmul.f32 %v9777_v32, %v12954_v47 }
 0x6c9   : > { %v7609_v63 = vpop.f32.mrf.mxu0 }
 0x6ca   : > { %v7877_v20 = vsel %vm7813_vm0, %v7781_v25, %v7845_v26  ;;  %vm7811_vm1 = vcmp.gt.f32.partialorder %v7779_v52, 0.0  ;;  %v7843_v7 = vmul.f32 0.1, %v7779_v52  ;;  %v7782_v19 = vadd.f32 %v12959_v28, %v7743_v29 }
 0x6cb   : > { %7909 = vst [vmem:[%s12968_s25 + $0x10] sm:$0xff] %v7877_v20  ;;  %v7741_v58 = vmul.f32 %v12954_v47, %v7609_v63  ;;  %v9780_v0 = vpop.f32.mrf.mxu0 }
 0x6cc   : > { %v7875_v24 = vsel %vm7811_vm1, %v7779_v52, %v7843_v7  ;;  %vm7814_vm2 = vcmp.gt.f32.partialorder %v7782_v19, 0.0  ;;  %v7846_v14 = vmul.f32 0.1, %v7782_v19  ;;  %v7746_v34 = vmul.f32 %v9780_v0, %v12954_v47 }
 0x6cd   : > { %7907 = vst [vmem:[%s12968_s25] sm:$0xff] %v7875_v24  ;;  %v7780_v12 = vadd.f32 %v12959_v28, %v7741_v58  ;;  %v7622_v46 = vpop.f32.mrf.mxu0 }
 0x6ce   : > { %v7878_v40 = vsel %vm7814_vm2, %v7782_v19, %v7846_v14  ;;  %v7785_v48 = vadd.f32 %v12959_v28, %v7746_v34  ;;  %v7744_v43 = vmul.f32 %v12954_v47, %v7622_v46 }
 0x6cf   : > { %7910 = vst [vmem:[%s12968_s25 + $0x18] sm:$0xff] %v7878_v40  ;;  %vm7812_vm3 = vcmp.gt.f32.partialorder %v7780_v12, 0.0  ;;  %v7844_v57 = vmul.f32 0.1, %v7780_v12  ;;  %v9781_v44 = vpop.f32.mrf.mxu0 }
 0x6d0   : > { %vm7817_vm4 = vcmp.gt.f32.partialorder %v7785_v48, 0.0  ;;  %v7849_v37 = vmul.f32 0.1, %v7785_v48  ;;  %v7783_v54 = vadd.f32 %v12959_v28, %v7744_v43  ;;  %v7747_v38 = vmul.f32 %v9781_v44, %v12954_v47 }
 0x6d1   : > { %v7876_v59 = vsel %vm7812_vm3, %v7780_v12, %v7844_v57  ;;  %v7625_v49 = vpop.f32.mrf.mxu0 }
 0x6d2   : > { %7908 = vst [vmem:[%s12968_s25 + $0x8] sm:$0xff] %v7876_v59  ;;  %v7881_v4 = vsel %vm7817_vm4, %v7785_v48, %v7849_v37  ;;  %vm7815_vm5 = vcmp.gt.f32.partialorder %v7783_v54, 0.0  ;;  %v7847_v45 = vmul.f32 0.1, %v7783_v54  ;;  %v7786_v56 = vadd.f32 %v12959_v28, %v7747_v38 }
 0x6d3   : > { %7913 = vst [vmem:[%s12968_s25 + $0x30] sm:$0xff] %v7881_v4  ;;  %v7745_v50 = vmul.f32 %v12954_v47, %v7625_v49  ;;  %v9784_v42 = vpop.f32.mrf.mxu0 }
 0x6d4   : > { %v7879_v6 = vsel %vm7815_vm5, %v7783_v54, %v7847_v45  ;;  %vm7818_vm6 = vcmp.gt.f32.partialorder %v7786_v56, 0.0  ;;  %v7850_v36 = vmul.f32 0.1, %v7786_v56  ;;  %v7750_v51 = vmul.f32 %v9784_v42, %v12954_v47 }
 0x6d5   : > { %7911 = vst [vmem:[%s12968_s25 + $0x20] sm:$0xff] %v7879_v6  ;;  %v7784_v1 = vadd.f32 %v12959_v28, %v7745_v50  ;;  %v7638_v39 = vpop.f32.mrf.mxu0 }
 0x6d6   : > { %v7882_v11 = vsel %vm7818_vm6, %v7786_v56, %v7850_v36  ;;  %v7789_v18 = vadd.f32 %v12959_v28, %v7750_v51  ;;  %v7748_v21 = vmul.f32 %v12954_v47, %v7638_v39 }
 0x6d7   : > { %7914 = vst [vmem:[%s12968_s25 + $0x38] sm:$0xff] %v7882_v11  ;;  %vm7816_vm7 = vcmp.gt.f32.partialorder %v7784_v1, 0.0  ;;  %v7848_v15 = vmul.f32 0.1, %v7784_v1  ;;  %v9785_v13 = vpop.f32.mrf.mxu0 }
 0x6d8   : > { %vm7821_vm8 = vcmp.gt.f32.partialorder %v7789_v18, 0.0  ;;  %v7853_v33 = vmul.f32 0.1, %v7789_v18  ;;  %v7787_v10 = vadd.f32 %v12959_v28, %v7748_v21  ;;  %v7751_v3 = vmul.f32 %v9785_v13, %v12954_v47 }
 0x6d9   : > { %v7880_v61 = vsel %vm7816_vm7, %v7784_v1, %v7848_v15  ;;  %v7641_v53 = vpop.f32.mrf.mxu0 }
 0x6da   : > { %7912 = vst [vmem:[%s12968_s25 + $0x28] sm:$0xff] %v7880_v61  ;;  %v7885_v23 = vsel %vm7821_vm8, %v7789_v18, %v7853_v33  ;;  %vm7819_vm9 = vcmp.gt.f32.partialorder %v7787_v10, 0.0  ;;  %v7851_v41 = vmul.f32 0.1, %v7787_v10  ;;  %v7790_v27 = vadd.f32 %v12959_v28, %v7751_v3 }
 0x6db   : > { %7917 = vst [vmem:[%s12968_s25 + $0x50] sm:$0xff] %v7885_v23  ;;  %v7749_v55 = vmul.f32 %v12954_v47, %v7641_v53  ;;  %v9788_v22 = vpop.f32.mrf.mxu0 }
 0x6dc   : > { %v7883_v5 = vsel %vm7819_vm9, %v7787_v10, %v7851_v41  ;;  %vm7822_vm10 = vcmp.gt.f32.partialorder %v7790_v27, 0.0  ;;  %v7854_v16 = vmul.f32 0.1, %v7790_v27  ;;  %v7754_v31 = vmul.f32 %v9788_v22, %v12954_v47 }
 0x6dd   : > { %7915 = vst [vmem:[%s12968_s25 + $0x40] sm:$0xff] %v7883_v5  ;;  %v7788_v8 = vadd.f32 %v12959_v28, %v7749_v55  ;;  %v7654_v9 = vpop.f32.mrf.mxu0 }
 0x6de   : > { %v7886_v2 = vsel %vm7822_vm10, %v7790_v27, %v7854_v16  ;;  %v7793_v60 = vadd.f32 %v12959_v28, %v7754_v31  ;;  %v7752_v30 = vmul.f32 %v12954_v47, %v7654_v9 }
 0x6df   : > { %7918 = vst [vmem:[%s12968_s25 + $0x58] sm:$0xff] %v7886_v2  ;;  %vm7820_vm11 = vcmp.gt.f32.partialorder %v7788_v8, 0.0  ;;  %v7852_v17 = vmul.f32 0.1, %v7788_v8  ;;  %v9789_v62 = vpop.f32.mrf.mxu0 }
 0x6e0   : > { %vm7825_vm12 = vcmp.gt.f32.partialorder %v7793_v60, 0.0  ;;  %v7857_v25 = vmul.f32 0.1, %v7793_v60  ;;  %v7791_v35 = vadd.f32 %v12959_v28, %v7752_v30  ;;  %v7755_v32 = vmul.f32 %v9789_v62, %v12954_v47 }
 0x6e1   : > { %v7884_v26 = vsel %vm7820_vm11, %v7788_v8, %v7852_v17  ;;  %v7657_v52 = vpop.f32.mrf.mxu0 }
 0x6e2   : > { %7916 = vst [vmem:[%s12968_s25 + $0x48] sm:$0xff] %v7884_v26  ;;  %v7889_v29 = vsel %vm7825_vm12, %v7793_v60, %v7857_v25  ;;  %vm7823_vm13 = vcmp.gt.f32.partialorder %v7791_v35, 0.0  ;;  %v7855_v63 = vmul.f32 0.1, %v7791_v35  ;;  %v7794_v20 = vadd.f32 %v12959_v28, %v7755_v32 }
 0x6e3   : > { %7921 = vst [vmem:[%s12968_s25 + $0x70] sm:$0xff] %v7889_v29  ;;  %v7753_v7 = vmul.f32 %v12954_v47, %v7657_v52  ;;  %v9792_v19 = vpop.f32.mrf.mxu0 }
 0x6e4   : > { %v7887_v58 = vsel %vm7823_vm13, %v7791_v35, %v7855_v63  ;;  %vm7826_vm14 = vcmp.gt.f32.partialorder %v7794_v20, 0.0  ;;  %v7858_v0 = vmul.f32 0.1, %v7794_v20  ;;  %v7758_v24 = vmul.f32 %v9792_v19, %v12954_v47 }
 0x6e5   : > { %7919 = vst [vmem:[%s12968_s25 + $0x60] sm:$0xff] %v7887_v58  ;;  %v7792_v14 = vadd.f32 %v12959_v28, %v7753_v7  ;;  %v7670_v34 = vpop.f32.mrf.mxu0 }
 0x6e6   : > { %v7890_v12 = vsel %vm7826_vm14, %v7794_v20, %v7858_v0  ;;  %v7797_v46 = vadd.f32 %v12959_v28, %v7758_v24  ;;  %v7756_v40 = vmul.f32 %v12954_v47, %v7670_v34 }
 0x6e7   : > { %7922 = vst [vmem:[%s12968_s25 + $0x78] sm:$0xff] %v7890_v12  ;;  %vm7824_vm15 = vcmp.gt.f32.partialorder %v7792_v14, 0.0  ;;  %v7856_v48 = vmul.f32 0.1, %v7792_v14  ;;  %v9793_v43 = vpop.f32.mrf.mxu0 }
 0x6e8   : > { %vm7829_vm0 = vcmp.gt.f32.partialorder %v7797_v46, 0.0  ;;  %v7861_v57 = vmul.f32 0.1, %v7797_v46  ;;  %v7795_v44 = vadd.f32 %v12959_v28, %v7756_v40  ;;  %v7759_v37 = vmul.f32 %v9793_v43, %v12954_v47 }
 0x6e9   : > { %v7888_v54 = vsel %vm7824_vm15, %v7792_v14, %v7856_v48  ;;  %v7673_v38 = vpop.f32.mrf.mxu0 }
 0x6ea   : > { %7920 = vst [vmem:[%s12968_s25 + $0x68] sm:$0xff] %v7888_v54  ;;  %v7893_v59 = vsel %vm7829_vm0, %v7797_v46, %v7861_v57  ;;  %vm7827_vm1 = vcmp.gt.f32.partialorder %v7795_v44, 0.0  ;;  %v7859_v49 = vmul.f32 0.1, %v7795_v44  ;;  %v7798_v4 = vadd.f32 %v12959_v28, %v7759_v37 }
 0x6eb   : > { %7925 = vst [vmem:[%s12968_s25 + $0x90] sm:$0xff] %v7893_v59  ;;  %v7757_v45 = vmul.f32 %v12954_v47, %v7673_v38  ;;  %v9796_v56 = vpop.f32.mrf.mxu0 }
 0x6ec   : > { %v7891_v50 = vsel %vm7827_vm1, %v7795_v44, %v7859_v49  ;;  %vm7830_vm2 = vcmp.gt.f32.partialorder %v7798_v4, 0.0  ;;  %v7862_v42 = vmul.f32 0.1, %v7798_v4  ;;  %v7762_v6 = vmul.f32 %v9796_v56, %v12954_v47 }
 0x6ed   : > { %7923 = vst [vmem:[%s12968_s25 + $0x80] sm:$0xff] %v7891_v50  ;;  %v7796_v36 = vadd.f32 %v12959_v28, %v7757_v45  ;;  %v7686_v51 = vpop.f32.mrf.mxu0 }
 0x6ee   : > { %v7894_v1 = vsel %vm7830_vm2, %v7798_v4, %v7862_v42  ;;  %v7801_v39 = vadd.f32 %v12959_v28, %v7762_v6  ;;  %v7760_v11 = vmul.f32 %v12954_v47, %v7686_v51 }
 0x6ef   : > { %7926 = vst [vmem:[%s12968_s25 + $0x98] sm:$0xff] %v7894_v1  ;;  %vm7828_vm3 = vcmp.gt.f32.partialorder %v7796_v36, 0.0  ;;  %v7860_v18 = vmul.f32 0.1, %v7796_v36  ;;  %v9797_v21 = vpop.f32.mrf.mxu0 }
 0x6f0   : > { %vm7833_vm4 = vcmp.gt.f32.partialorder %v7801_v39, 0.0  ;;  %v7865_v15 = vmul.f32 0.1, %v7801_v39  ;;  %v7799_v13 = vadd.f32 %v12959_v28, %v7760_v11  ;;  %v7763_v33 = vmul.f32 %v9797_v21, %v12954_v47 }
 0x6f1   : > { %v7892_v10 = vsel %vm7828_vm3, %v7796_v36, %v7860_v18  ;;  %v7689_v3 = vpop.f32.mrf.mxu0 }
 0x6f2   : > { %7924 = vst [vmem:[%s12968_s25 + $0x88] sm:$0xff] %v7892_v10  ;;  %v7897_v61 = vsel %vm7833_vm4, %v7801_v39, %v7865_v15  ;;  %vm7831_vm5 = vcmp.gt.f32.partialorder %v7799_v13, 0.0  ;;  %v7863_v53 = vmul.f32 0.1, %v7799_v13  ;;  %v7802_v23 = vadd.f32 %v12959_v28, %v7763_v33 }
 0x6f3   : > { %7929 = vst [vmem:[%s12968_s25 + $0xb0] sm:$0xff] %v7897_v61  ;;  %v7761_v41 = vmul.f32 %v12954_v47, %v7689_v3  ;;  %v9800_v27 = vpop.f32.mrf.mxu0 }
 0x6f4   : > { %v7895_v55 = vsel %vm7831_vm5, %v7799_v13, %v7863_v53  ;;  %vm7834_vm6 = vcmp.gt.f32.partialorder %v7802_v23, 0.0  ;;  %v7866_v22 = vmul.f32 0.1, %v7802_v23  ;;  %v7766_v5 = vmul.f32 %v9800_v27, %v12954_v47 }
 0x6f5   : > { %7927 = vst [vmem:[%s12968_s25 + $0xa0] sm:$0xff] %v7895_v55  ;;  %v7800_v16 = vadd.f32 %v12959_v28, %v7761_v41  ;;  %v7702_v31 = vpop.f32.mrf.mxu0 }
 0x6f6   : > { %v7898_v8 = vsel %vm7834_vm6, %v7802_v23, %v7866_v22  ;;  %v7805_v9 = vadd.f32 %v12959_v28, %v7766_v5  ;;  %v7764_v2 = vmul.f32 %v12954_v47, %v7702_v31 }
 0x6f7   : > { %7930 = vst [vmem:[%s12968_s25 + $0xb8] sm:$0xff] %v7898_v8  ;;  %vm7832_vm7 = vcmp.gt.f32.partialorder %v7800_v16, 0.0  ;;  %v7864_v60 = vmul.f32 0.1, %v7800_v16  ;;  %v9801_v30 = vpop.f32.mrf.mxu0 }
 0x6f8   : > { %vm7837_vm8 = vcmp.gt.f32.partialorder %v7805_v9, 0.0  ;;  %v7869_v17 = vmul.f32 0.1, %v7805_v9  ;;  %v7803_v62 = vadd.f32 %v12959_v28, %v7764_v2  ;;  %v7767_v25 = vmul.f32 %v9801_v30, %v12954_v47 }
 0x6f9   : > { %v7896_v35 = vsel %vm7832_vm7, %v7800_v16, %v7864_v60  ;;  %v7705_v32 = vpop.f32.mrf.mxu0 }
 0x6fa   : > { %7928 = vst [vmem:[%s12968_s25 + $0xa8] sm:$0xff] %v7896_v35  ;;  %v7901_v26 = vsel %vm7837_vm8, %v7805_v9, %v7869_v17  ;;  %vm7835_vm9 = vcmp.gt.f32.partialorder %v7803_v62, 0.0  ;;  %v7867_v52 = vmul.f32 0.1, %v7803_v62  ;;  %v7806_v29 = vadd.f32 %v12959_v28, %v7767_v25 }
 0x6fb   : > { %7933 = vst [vmem:[%s12968_s25 + $0xd0] sm:$0xff] %v7901_v26  ;;  %v7765_v63 = vmul.f32 %v12954_v47, %v7705_v32  ;;  %v9804_v20 = vpop.f32.mrf.mxu0 }
 0x6fc   : > { %v7899_v7 = vsel %vm7835_vm9, %v7803_v62, %v7867_v52  ;;  %vm7838_vm10 = vcmp.gt.f32.partialorder %v7806_v29, 0.0  ;;  %v7870_v19 = vmul.f32 0.1, %v7806_v29  ;;  %v7770_v58 = vmul.f32 %v9804_v20, %v12954_v47 }
 0x6fd   : > { %7931 = vst [vmem:[%s12968_s25 + $0xc0] sm:$0xff] %v7899_v7  ;;  %v7804_v0 = vadd.f32 %v12959_v28, %v7765_v63  ;;  %v7718_v24 = vpop.f32.mrf.mxu0 }
 0x6fe   : > { %v7902_v14 = vsel %vm7838_vm10, %v7806_v29, %v7870_v19  ;;  %v7809_v34 = vadd.f32 %v12959_v28, %v7770_v58  ;;  %v7768_v12 = vmul.f32 %v12954_v47, %v7718_v24 }
 0x6ff   : > { %7934 = vst [vmem:[%s12968_s25 + $0xd8] sm:$0xff] %v7902_v14  ;;  %vm7836_vm11 = vcmp.gt.f32.partialorder %v7804_v0, 0.0  ;;  %v7868_v46 = vmul.f32 0.1, %v7804_v0  ;;  %v9805_v40 = vpop.f32.mrf.mxu0 }
 0x700   : > { %vm7841_vm12 = vcmp.gt.f32.partialorder %v7809_v34, 0.0  ;;  %v7873_v48 = vmul.f32 0.1, %v7809_v34  ;;  %v7807_v43 = vadd.f32 %v12959_v28, %v7768_v12  ;;  %v7771_v57 = vmul.f32 %v9805_v40, %v12954_v47 }
 0x701   : > { %v7900_v44 = vsel %vm7836_vm11, %v7804_v0, %v7868_v46  ;;  %v7721_v37 = vpop.f32.mrf.mxu0 }
 0x702   : > { %7932 = vst [vmem:[%s12968_s25 + $0xc8] sm:$0xff] %v7900_v44  ;;  %v7905_v54 = vsel %vm7841_vm12, %v7809_v34, %v7873_v48  ;;  %vm7839_vm13 = vcmp.gt.f32.partialorder %v7807_v43, 0.0  ;;  %v7871_v38 = vmul.f32 0.1, %v7807_v43  ;;  %v7810_v59 = vadd.f32 %v12959_v28, %v7771_v57 }
 0x703   : > { %7937 = vst [vmem:[%s12968_s25 + $0xf0] sm:$0xff] %v7905_v54  ;;  %v7769_v49 = vmul.f32 %v12954_v47, %v7721_v37 }
 0x704   : > { %v7903_v4 = vsel %vm7839_vm13, %v7807_v43, %v7871_v38  ;;  %vm7842_vm14 = vcmp.gt.f32.partialorder %v7810_v59, 0.0  ;;  %v7874_v45 = vmul.f32 0.1, %v7810_v59 }
 0x705   : > { %7935 = vst [vmem:[%s12968_s25 + $0xe0] sm:$0xff] %v7903_v4  ;;  %v7808_v56 = vadd.f32 %v12959_v28, %v7769_v49 }
 0x706   : > { %v7906_v50 = vsel %vm7842_vm14, %v7810_v59, %v7874_v45 }
 0x707   : > { %7938 = vst [vmem:[%s12968_s25 + $0xf8] sm:$0xff] %v7906_v50  ;;  %vm7840_vm15 = vcmp.gt.f32.partialorder %v7808_v56, 0.0  ;;  %v7872_v42 = vmul.f32 0.1, %v7808_v56 }
 0x709   : > { %v7904_v47 = vsel %vm7840_vm15, %v7808_v56, %v7872_v42 }
 0x70a   : > { %7936 = vst [vmem:[%s12968_s25 + $0xe8] sm:$0xff] %v7904_v47 }
 0x70b   : > { %10282 = shalt.err (!%p10279_p3)
}
 0x70c   : > { %s10283_s0 = scalar_lea.hbm %s13064_s4, 4096  ;;  %s10287_s25 = scalar_lea.hbm %s13339_s7, 8192 }
 0x70d   : > { %p10284_p4 = scmp.ne.s32.totalorder %s13064_s4, %s10283_s0  ;;  %p10288_p2 = scmp.lt.s32.totalorder %s13064_s4, %s13339_s7 }
 0x70e   : > { %p10289_p7 = scmp.lt.s32.totalorder %s10287_s25, %s10283_s0 }
 0x70f   : > { %p10285_p12 = pnand %p10284_p4, %p13340_p11 }
 0x710   : > { %p10290_p8 = por %p10289_p7, %p10288_p2 }
 0x711   : > { %p10286_p6 = pneg %p10285_p12 }
 0x713   : > { %p10291_p10 = pnand %p10290_p8, %p10286_p6 }
 0x715   : > { %10294 = shalt.err (!%p10291_p10)
}
 0x716   : > { %s10358_s16 = smov 128   ;;  %s10359_s10 = smov 8  }
 0x717   : > { %9844 = dma.vmem_to_hbm [thread:$0]  (%p13340_p11), %s13066_s20, 4096, %s13064_s4, %s7940_s27, %s10358_s16, %s10358_s16, %s10359_s10  }
 0x718 PF: > { %s7968_s13 = sand.u32 1, %s10333_s21   ;;  %p13341_p0 = scmp.ne.s32.totalorder %s13160_s30, 0 }
 0x719   : > { %p13342_p13 = scmp.ge.s32.totalorder %s10345_s24, 2  ;;  %s7969_s28 = scalar_lea.sflag [#allocation5], %s7968_s13 }
 0x71b   : > { %p9867_p5 = pnand %p13342_p13, %p13341_p0 }
 0x71d   : > { %p9868_p9 = pneg %p9867_p5 }
 0x71f   : > { %10328 = dma.done.wait (%p9868_p9), %s7969_s28, 4096  }
 0x720   : > { %10330 = vsyncadd (%p9868_p9), %s7969_s28, 4294963200  ;;  %s13343_s24 = sld [smem:[#allocation21_spill]]  ;;  %s13346_s21 = smov %s10337_s22 }
 0x721   : > { %s13344_s15 = sld [smem:[#allocation20_spill]] }
 0x722   : > { %s13345_s23 = sld [smem:[#allocation22_spill]] }
 0x726   : > { %p32_p1 = scmp.ge.s32.totalorder %s13343_s24, 4  }
 0x727   : > { %s13347_s22 = smov %s13344_s15 }
 0x728   :  { %34 = sbr.rel (!%p32_p1) target bundleno = 17 (0x11), region = 167 }
 0x72d   :  { %7974 = vsyncpa [#allocation4], 1 }
 0x72e   :  { %7976 = vsyncpa [#allocation4 + $0x1], 1 }
 0x72f   :  { %7977 = vsyncpa [#allocation7], 1 }
 0x730   :  { %7978 = vsyncpa [#allocation10], 1 }
 0x731   :  { %7979 = vsyncpa [#allocation13], 1 }
 0x732   :  { %7980 = vsyncpa [#allocation5], 1 }
 0x733   :  { %7982 = vsyncpa [#allocation5 + $0x1], 1 }

</bundles_post_ra>
